<compile_context>
chip_gen: v7x
topology: tpu7x:2x2x1
jax: 0.10.0
libtpu: 0.0.40
codegen_flags: <defaults>
</compile_context>

<pallas_src>
import functools

import jax
import jax.numpy as jnp
from jax.experimental import pallas as pl
from jax.experimental.pallas import tpu as pltpu

_LANE = 128
_EPS = 1e-5


def _round_up(x, m):
    return (x + m - 1) // m * m


def _vmem_limit_bytes():
    """Generation-aware scoped-VMEM cap: ~75% of physical (96 MiB on v5e/v6e, 48 MiB on v7x)."""
    cap = 128 * 1024 * 1024
    try:
        info = pltpu.get_tpu_info()
        cap = int(getattr(info, "vmem_capacity_bytes", cap) or cap)
    except Exception:
        pass
    return min(int(cap * 0.75), 100 * 1024 * 1024)


def _pick_tile_h(h, w, cin_p, cout_p, vmem_budget):
    """Largest divisor of H whose per-step footprint fits the budget; stop once
    tile_h*W provides enough MXU M rows.  (A divisor always exists -> correct for any H;
    a masked last tile would be nicer for prime H.)"""
    best = 1
    for th in range(1, h + 1):
        if h % th:
            continue
        step_bytes = (
            2 * th * w * cin_p * 2            # main input block, double buffered, bf16
            + 4 * w * cin_p * 2               # halo-row blocks
            + 2 * th * w * cout_p * 2         # raw output block, double buffered, bf16
            + (th + 2) * w * 3 * cin_p * 2    # K-folded im2col window scratch, bf16
            + th * w * 3 * cin_p * 2          # matmul patch temp, bf16
            + th * w * cout_p * 4             # local f32 accumulator
            + 2 * 9 * cin_p * cout_p * 2      # folded weights, double buffered
        )
        if step_bytes > vmem_budget:
            break
        best = th
        if th * w >= 512:                     # enough MXU M rows; no need to grow further
            break
    return best


# ---------------------------------------------------------------------------
# Unified conv kernel: (optional fused BN-apply + ReLU of the previous stage on the
# input path) -> 3x3 conv (+bias) -> bf16 raw tile + f32 per-tile BN partial stats.
# ---------------------------------------------------------------------------
def _conv_bn_stats_kernel(x_ref, top_ref, bot_ref, w_ref, b_ref, s_ref, t_ref,
                          raw_ref, stats_ref, win_ref, *, apply_act):
    # x_ref:    (1, tile_h, W, Cin_p)  bf16   main row tile of the input activation
    # top_ref:  (1, 1, W, Cin_p)       bf16   row above the tile (clamped at the border)
    # bot_ref:  (1, 1, W, Cin_p)       bf16   row below the tile (clamped at the border)
    # w_ref:    (3, 3*Cin_p, Cout_p)   bf16   weights, kx folded into K
    # b_ref:    (1, Cout_p)            f32    conv bias
    # s_ref/t_ref: (1, Cin_p)          f32    previous-stage BN scale/shift (apply_act only)
    # raw_ref:  (1, tile_h, W, Cout_p) bf16   pre-BN conv output tile
    # stats_ref:(1, 1, 2, Cout_p)      f32    [sum, sum_sq] of this tile
    # win_ref:  (tile_h+2, W, 3*Cin_p) bf16   K-folded im2col window scratch
    tile_h = raw_ref.shape[1]
    w_out = raw_ref.shape[2]
    cin_p = x_ref.shape[3]
    cout_p = raw_ref.shape[3]

    j = pl.program_id(1)
    n_h = pl.num_programs(1)

    if apply_act:
        s = s_ref[...].reshape(1, 1, cin_p)
        t = t_ref[...].reshape(1, 1, cin_p)

    def activate(v):
        # Fused BN-apply + ReLU of the previous stage (identity for stage 1).
        if apply_act:
            v = jnp.maximum(v.astype(jnp.float32) * s + t, 0.0)
        return v.astype(jnp.bfloat16)

    def write_window_rows(r0, y):
        # y: (rows, W, Cin_p).  Scatter into the K-folded window so that
        # win[r, x, kx*C + c] == padded_input[row0 + r, x + kx, c].
        rows = y.shape[0]
        r1 = r0 + rows
        zcol = jnp.zeros((rows, 1, cin_p), jnp.bfloat16)
        win_ref[r0:r1, :, cin_p:2 * cin_p] = y                               # kx = 1
        win_ref[r0:r1, 0:1, 0:cin_p] = zcol                                  # kx = 0
        win_ref[r0:r1, 1:w_out, 0:cin_p] = y[:, 0:w_out - 1, :]
        win_ref[r0:r1, w_out - 1:w_out, 2 * cin_p:3 * cin_p] = zcol          # kx = 2
        win_ref[r0:r1, 0:w_out - 1, 2 * cin_p:3 * cin_p] = y[:, 1:w_out, :]

    # Main rows, plus one halo row above/below.  Halo rows are fetched with a clamped
    # index_map and zeroed here when they fall outside the image (conv pad=1).
    write_window_rows(1, activate(x_ref[0]))
    y_top = activate(top_ref[0])
    write_window_rows(0, jnp.where(j > 0, y_top, jnp.zeros_like(y_top)))
    y_bot = activate(bot_ref[0])
    write_window_rows(tile_h + 1,
                      jnp.where(j < n_h - 1, y_bot, jnp.zeros_like(y_bot)))

    # 3 MXU matmuls with K = 3*Cin_p, accumulated in a local f32 value; the raw
    # tile and the stats are each written exactly once.
    m = tile_h * w_out
    acc = jnp.dot(win_ref[0:tile_h].reshape(m, 3 * cin_p), w_ref[0],
                  preferred_element_type=jnp.float32)
    acc = acc + jnp.dot(win_ref[1:tile_h + 1].reshape(m, 3 * cin_p), w_ref[1],
                        preferred_element_type=jnp.float32)
    acc = acc + jnp.dot(win_ref[2:tile_h + 2].reshape(m, 3 * cin_p), w_ref[2],
                        preferred_element_type=jnp.float32)
    acc = acc + b_ref[...]                                    # conv bias

    raw_ref[...] = acc.reshape(1, tile_h, w_out, cout_p).astype(raw_ref.dtype)
    stats_ref[0, 0, 0:1, :] = jnp.sum(acc, axis=0, keepdims=True)
    stats_ref[0, 0, 1:2, :] = jnp.sum(acc * acc, axis=0, keepdims=True)


def _conv_bn_stats(act, w_folded, bias, scale, shift, *, tile_h, apply_act, vmem_limit):
    n, h, w, cin_p = act.shape
    cout_p = w_folded.shape[-1]
    n_h = h // tile_h

    flops = 2 * n * h * w * 9 * cin_p * cout_p
    bytes_accessed = (n * h * w * cin_p * 2 + n * h * w * cout_p * 2
                      + n * n_h * 2 * cout_p * 4 + 9 * cin_p * cout_p * 2
                      + 3 * cout_p * 4)

    kernel = functools.partial(_conv_bn_stats_kernel, apply_act=apply_act)
    return pl.pallas_call(
        kernel,
        out_shape=(
            jax.ShapeDtypeStruct((n, h, w, cout_p), jnp.bfloat16),
            jax.ShapeDtypeStruct((n, n_h, 2, cout_p), jnp.float32),
        ),
        grid_spec=pltpu.PrefetchScalarGridSpec(
            num_scalar_prefetch=0,
            grid=(n, n_h),
            in_specs=(
                pl.BlockSpec((1, tile_h, w, cin_p), lambda i, j: (i, j, 0, 0)),
                pl.BlockSpec((1, 1, w, cin_p),
                             lambda i, j: (i, jnp.maximum(j * tile_h - 1, 0), 0, 0)),
                pl.BlockSpec((1, 1, w, cin_p),
                             lambda i, j: (i, jnp.minimum(j * tile_h + tile_h, h - 1), 0, 0)),
                pl.BlockSpec((3, 3 * cin_p, cout_p), lambda i, j: (0, 0, 0)),
                pl.BlockSpec((1, cout_p), lambda i, j: (0, 0)),
                pl.BlockSpec((1, cin_p), lambda i, j: (0, 0)),
                pl.BlockSpec((1, cin_p), lambda i, j: (0, 0)),
            ),
            out_specs=(
                pl.BlockSpec((1, tile_h, w, cout_p), lambda i, j: (i, j, 0, 0)),
                pl.BlockSpec((1, 1, 2, cout_p), lambda i, j: (i, j, 0, 0)),
            ),
            scratch_shapes=[pltpu.VMEM((tile_h + 2, w, 3 * cin_p), jnp.bfloat16)],
        ),
        compiler_params=pltpu.CompilerParams(
            dimension_semantics=("parallel", "parallel"),
            vmem_limit_bytes=vmem_limit,
        ),
        cost_estimate=pl.CostEstimate(flops=flops, transcendentals=0,
                                      bytes_accessed=bytes_accessed),
    )(act, act, act, w_folded, bias, scale, shift)


# ---------------------------------------------------------------------------
# Final fused BN-apply + ReLU; emits only the real `cout` channels.
# ---------------------------------------------------------------------------
def _bn_relu_out_kernel(raw_ref, s_ref, t_ref, out_ref):
    c_out = out_ref.shape[-1]
    s = s_ref[...].reshape(1, 1, 1, -1)
    t = t_ref[...].reshape(1, 1, 1, -1)
    y = jnp.maximum(raw_ref[...].astype(jnp.float32) * s + t, 0.0)
    out_ref[...] = y[..., :c_out]


def _bn_relu_out(raw, scale, shift, cout, *, tile_h, vmem_limit):
    n, h, w, c_p = raw.shape
    n_h = h // tile_h
    bytes_accessed = n * h * w * c_p * 2 + n * h * w * cout * 4 + 2 * c_p * 4
    return pl.pallas_call(
        _bn_relu_out_kernel,
        out_shape=jax.ShapeDtypeStruct((n, h, w, cout), jnp.float32),
        grid_spec=pltpu.PrefetchScalarGridSpec(
            num_scalar_prefetch=0,
            grid=(n, n_h),
            in_specs=(
                pl.BlockSpec((1, tile_h, w, c_p), lambda i, j: (i, j, 0, 0)),
                pl.BlockSpec((1, c_p), lambda i, j: (0, 0)),
                pl.BlockSpec((1, c_p), lambda i, j: (0, 0)),
            ),
            out_specs=pl.BlockSpec((1, tile_h, w, cout), lambda i, j: (i, j, 0, 0)),
        ),
        compiler_params=pltpu.CompilerParams(
            dimension_semantics=("parallel", "parallel"),
            vmem_limit_bytes=vmem_limit,
        ),
        cost_estimate=pl.CostEstimate(flops=3 * n * h * w * c_p, transcendentals=0,
                                      bytes_accessed=bytes_accessed),
    )(raw, scale, shift)


# ---------------------------------------------------------------------------
# Plain-JAX glue (tiny per-channel work, weight folding, layout).
# ---------------------------------------------------------------------------
def _finalize_bn(stats, gamma, beta, count, c_pad):
    # stats: (N, n_h, 2, Cp) partial [sum, sum_sq] -> per-channel (scale, shift).
    # TODO(synk): switch to a Welford/M2 combine if E[x^2]-E[x]^2 cancellation bites
    # at very large N*H*W.
    tot = jnp.sum(stats, axis=(0, 1))                       # (2, Cp)
    mean = tot[0] / count
    var = jnp.maximum(tot[1] / count - mean * mean, 0.0)    # biased batch variance
    gamma_p = jnp.pad(gamma.astype(jnp.float32), (0, c_pad - gamma.shape[0]))
    beta_p = jnp.pad(beta.astype(jnp.float32), (0, c_pad - beta.shape[0]))
    s = gamma_p * jax.lax.rsqrt(var + _EPS)
    t = beta_p - mean * s
    return s.reshape(1, c_pad), t.reshape(1, c_pad)


def _fold_weights(w_hwio, cin_p, cout_p):
    kh, kw, cin, cout = w_hwio.shape
    wp = jnp.pad(w_hwio.astype(jnp.float32),
                 ((0, 0), (0, 0), (0, cin_p - cin), (0, cout_p - cout)))
    # (ky, kx, Cin_p, Cout_p) -> (ky, kx*Cin_p + c, Cout_p): K ordering matches the
    # in-kernel im2col window layout win[r, x, kx*Cin_p + c].
    return wp.reshape(kh, kw * cin_p, cout_p).astype(jnp.bfloat16)


def _pad_bias(b, cout_p):
    return jnp.pad(b.astype(jnp.float32), (0, cout_p - b.shape[0])).reshape(1, cout_p)


def init_double_conv_params(key, in_channels, out_channels):
    """Deterministic synthetic parameters matching the PyTorch module shapes."""
    k1, k2, k3, k4 = jax.random.split(key, 4)
    w1_oihw = jax.random.normal(k1, (out_channels, in_channels, 3, 3), jnp.float32) * 0.1
    b1 = jax.random.normal(k2, (out_channels,), jnp.float32) * 0.1
    w2_oihw = jax.random.normal(k3, (out_channels, out_channels, 3, 3), jnp.float32) * 0.1
    b2 = jax.random.normal(k4, (out_channels,), jnp.float32) * 0.1
    return {
        "w1": jnp.transpose(w1_oihw, (2, 3, 1, 0)),   # (3,3,Cin,Cout) HWIO
        "b1": b1,
        "gamma1": jnp.ones((out_channels,), jnp.float32),
        "beta1": jnp.zeros((out_channels,), jnp.float32),
        "w2": jnp.transpose(w2_oihw, (2, 3, 1, 0)),   # (3,3,Cout,Cout)
        "b2": b2,
        "gamma2": jnp.ones((out_channels,), jnp.float32),
        "beta2": jnp.zeros((out_channels,), jnp.float32),
    }


@jax.jit
def double_conv_forward(x_nchw, params):
    """DoubleConv forward (training-mode BatchNorm). NCHW in -> NCHW out."""
    n, cin, h, w = x_nchw.shape
    cout = params["w1"].shape[-1]
    cin_p = _round_up(cin, _LANE)
    cout_p = _round_up(cout, _LANE)
    count = n * h * w

    vmem_limit = _vmem_limit_bytes()
    budget = int(vmem_limit * 0.6)
    tile_h1 = _pick_tile_h(h, w, cin_p, cout_p, budget)
    tile_h2 = _pick_tile_h(h, w, cout_p, cout_p, budget)

    # NCHW -> NHWC bf16, channels lane-padded.  The pad=1 spatial halo is handled
    # inside the conv kernels (no jnp.pad / padded HBM activations anywhere).
    x = jnp.transpose(x_nchw, (0, 2, 3, 1))
    x = jnp.pad(x, ((0, 0), (0, 0), (0, 0), (0, cin_p - cin))).astype(jnp.bfloat16)

    w1 = _fold_weights(params["w1"], cin_p, cout_p)
    w2 = _fold_weights(params["w2"], cout_p, cout_p)
    b1 = _pad_bias(params["b1"], cout_p)
    b2 = _pad_bias(params["b2"], cout_p)
    ident = jnp.zeros((1, cin_p), jnp.float32)   # unused when apply_act=False

    # Stage 1: conv1 (+bias) and per-tile BN partial stats.
    raw1, st1 = _conv_bn_stats(x, w1, b1, ident, ident,
                               tile_h=tile_h1, apply_act=False, vmem_limit=vmem_limit)
    s1, t1 = _finalize_bn(st1, params["gamma1"], params["beta1"], count, cout_p)

    # Stage 2: conv2 with BN1-apply + ReLU fused into its input path
    # (no separate BN/ReLU pass, no padded activation round-trip through HBM).
    raw2, st2 = _conv_bn_stats(raw1, w2, b2, s1, t1,
                               tile_h=tile_h2, apply_act=True, vmem_limit=vmem_limit)
    s2, t2 = _finalize_bn(st2, params["gamma2"], params["beta2"], count, cout_p)

    # Final BN2-apply + ReLU; emit only the real `cout` channels, then NHWC -> NCHW.
    y = _bn_relu_out(raw2, s2, t2, cout, tile_h=tile_h2, vmem_limit=vmem_limit)
    return jnp.transpose(y, (0, 3, 1, 2))


if __name__ == "__main__":
    in_channels, out_channels = 4, 8
    N, H, W = 2, 16, 16

    key = jax.random.PRNGKey(0)
    kx, kp = jax.random.split(key)
    x = jax.random.normal(kx, (N, in_channels, H, W), jnp.float32)
    params = init_double_conv_params(kp, in_channels, out_channels)

    out = double_conv_forward(x, params)
    jax.block_until_ready(out)
    assert out.shape == (N, out_channels, H, W)
    assert bool(jnp.all(jnp.isfinite(out)))
    assert bool(jnp.all(out >= 0.0))   # ReLU output is non-negative
    print("KERNEL_OK")
</pallas_src>

<mosaic_0001>
module attributes {stable_mosaic.version = 11 : i64} {
  func.func @_conv_bn_stats_kernel(%arg0: i32, %arg1: i32, %arg2: memref<1x16x16x128xbf16, #tpu.memory_space<vmem>>, %arg3: memref<1x1x16x128xbf16, #tpu.memory_space<vmem>>, %arg4: memref<1x1x16x128xbf16, #tpu.memory_space<vmem>>, %arg5: memref<3x384x128xbf16, #tpu.memory_space<vmem>>, %arg6: memref<1x128xf32, #tpu.memory_space<vmem>>, %arg7: memref<1x128xf32, #tpu.memory_space<vmem>>, %arg8: memref<1x128xf32, #tpu.memory_space<vmem>>, %arg9: memref<1x16x16x128xbf16, #tpu.memory_space<vmem>>, %arg10: memref<1x1x2x128xf32, #tpu.memory_space<vmem>>, %arg11: memref<18x16x384xbf16, #tpu.memory_space<vmem>>) attributes {dimension_semantics = [#tpu.dimension_semantics<parallel>, #tpu.dimension_semantics<parallel>], iteration_bounds = array<i64: 2, 1>, scalar_prefetch = 0 : i64, scratch_operands = 1 : i64, tpu.core_type = #tpu.core_type<tc>, window_params = [{transform_indices = @transform_0, window_bounds = array<i64: 1, 16, 16, 128>}, {transform_indices = @transform_1, window_bounds = array<i64: 1, 1, 16, 128>}, {transform_indices = @transform_2, window_bounds = array<i64: 1, 1, 16, 128>}, {pipeline_mode = #tpu.pipeline_mode<synchronous>, transform_indices = @transform_3, window_bounds = array<i64: 3, 384, 128>}, {pipeline_mode = #tpu.pipeline_mode<synchronous>, transform_indices = @transform_4, window_bounds = array<i64: 1, 128>}, {pipeline_mode = #tpu.pipeline_mode<synchronous>, transform_indices = @transform_5, window_bounds = array<i64: 1, 128>}, {pipeline_mode = #tpu.pipeline_mode<synchronous>, transform_indices = @transform_6, window_bounds = array<i64: 1, 128>}, {transform_indices = @transform_7, window_bounds = array<i64: 1, 16, 16, 128>}, {transform_indices = @transform_8, window_bounds = array<i64: 1, 1, 2, 128>}]} {
    %c0 = arith.constant 0 : index
    %c0_0 = arith.constant 0 : index
    %c0_1 = arith.constant 0 : index
    %c0_2 = arith.constant 0 : index
    %0 = vector.load %arg2[%c0, %c0_0, %c0_1, %c0_2] : memref<1x16x16x128xbf16, #tpu.memory_space<vmem>>, vector<1x16x16x128xbf16>
    %1 = vector.shape_cast %0 : vector<1x16x16x128xbf16> to vector<16x16x128xbf16>
    %cst = arith.constant 0.000000e+00 : bf16
    %2 = vector.broadcast %cst : bf16 to vector<16x1x128xbf16>
    %c1 = arith.constant 1 : index
    %c0_3 = arith.constant 0 : index
    %c128 = arith.constant 128 : index
    %3 = vector.load %arg11[%c1, %c0_3, %c128] : memref<18x16x384xbf16, #tpu.memory_space<vmem>>, vector<16x16x128xbf16>
    tpu.vector_store %arg11[%c1, %c0_3, %c128], %1 {strides = array<i32>} : memref<18x16x384xbf16, #tpu.memory_space<vmem>>, vector<16x16x128xbf16>,
    %c1_4 = arith.constant 1 : index
    %c0_5 = arith.constant 0 : index
    %c0_6 = arith.constant 0 : index
    %4 = vector.load %arg11[%c1_4, %c0_5, %c0_6] : memref<18x16x384xbf16, #tpu.memory_space<vmem>>, vector<16x1x128xbf16>
    tpu.vector_store %arg11[%c1_4, %c0_5, %c0_6], %2 {strides = array<i32>} : memref<18x16x384xbf16, #tpu.memory_space<vmem>>, vector<16x1x128xbf16>,
    %5 = vector.extract_strided_slice %1 {offsets = [0, 0, 0], sizes = [16, 15, 128], strides = [1, 1, 1]} : vector<16x16x128xbf16> to vector<16x15x128xbf16>
    %c1_7 = arith.constant 1 : index
    %c1_8 = arith.constant 1 : index
    %c0_9 = arith.constant 0 : index
    %6 = vector.load %arg11[%c1_7, %c1_8, %c0_9] : memref<18x16x384xbf16, #tpu.memory_space<vmem>>, vector<16x15x128xbf16>
    tpu.vector_store %arg11[%c1_7, %c1_8, %c0_9], %5 {strides = array<i32>} : memref<18x16x384xbf16, #tpu.memory_space<vmem>>, vector<16x15x128xbf16>,
    %c1_10 = arith.constant 1 : index
    %c15 = arith.constant 15 : index
    %c256 = arith.constant 256 : index
    %7 = vector.load %arg11[%c1_10, %c15, %c256] : memref<18x16x384xbf16, #tpu.memory_space<vmem>>, vector<16x1x128xbf16>
    tpu.vector_store %arg11[%c1_10, %c15, %c256], %2 {strides = array<i32>} : memref<18x16x384xbf16, #tpu.memory_space<vmem>>, vector<16x1x128xbf16>,
    %8 = vector.extract_strided_slice %1 {offsets = [0, 1, 0], sizes = [16, 15, 128], strides = [1, 1, 1]} : vector<16x16x128xbf16> to vector<16x15x128xbf16>
    %c1_11 = arith.constant 1 : index
    %c0_12 = arith.constant 0 : index
    %c256_13 = arith.constant 256 : index
    %9 = vector.load %arg11[%c1_11, %c0_12, %c256_13] : memref<18x16x384xbf16, #tpu.memory_space<vmem>>, vector<16x15x128xbf16>
    tpu.vector_store %arg11[%c1_11, %c0_12, %c256_13], %8 {strides = array<i32>} : memref<18x16x384xbf16, #tpu.memory_space<vmem>>, vector<16x15x128xbf16>,
    %c0_14 = arith.constant 0 : index
    %c0_15 = arith.constant 0 : index
    %c0_16 = arith.constant 0 : index
    %c0_17 = arith.constant 0 : index
    %10 = vector.load %arg3[%c0_14, %c0_15, %c0_16, %c0_17] : memref<1x1x16x128xbf16, #tpu.memory_space<vmem>>, vector<1x1x16x128xbf16>
    %11 = vector.shape_cast %10 : vector<1x1x16x128xbf16> to vector<1x16x128xbf16>
    %c0_i32 = arith.constant 0 : i32
    %12 = arith.cmpi sgt, %arg1, %c0_i32 : i32
    %cst_18 = arith.constant 0.000000e+00 : bf16
    %13 = vector.broadcast %cst_18 : bf16 to vector<1x16x128xbf16>
    %14 = arith.select %12, %11, %13 : vector<1x16x128xbf16>
    %cst_19 = arith.constant 0.000000e+00 : bf16
    %15 = vector.broadcast %cst_19 : bf16 to vector<1x1x128xbf16>
    %c0_20 = arith.constant 0 : index
    %c0_21 = arith.constant 0 : index
    %c128_22 = arith.constant 128 : index
    %16 = vector.load %arg11[%c0_20, %c0_21, %c128_22] : memref<18x16x384xbf16, #tpu.memory_space<vmem>>, vector<1x16x128xbf16>
    tpu.vector_store %arg11[%c0_20, %c0_21, %c128_22], %14 {strides = array<i32>} : memref<18x16x384xbf16, #tpu.memory_space<vmem>>, vector<1x16x128xbf16>,
    %c0_23 = arith.constant 0 : index
    %c0_24 = arith.constant 0 : index
    %c0_25 = arith.constant 0 : index
    %17 = vector.load %arg11[%c0_23, %c0_24, %c0_25] : memref<18x16x384xbf16, #tpu.memory_space<vmem>>, vector<1x1x128xbf16>
    tpu.vector_store %arg11[%c0_23, %c0_24, %c0_25], %15 {strides = array<i32>} : memref<18x16x384xbf16, #tpu.memory_space<vmem>>, vector<1x1x128xbf16>,
    %18 = vector.extract_strided_slice %14 {offsets = [0, 0, 0], sizes = [1, 15, 128], strides = [1, 1, 1]} : vector<1x16x128xbf16> to vector<1x15x128xbf16>
    %c0_26 = arith.constant 0 : index
    %c1_27 = arith.constant 1 : index
    %c0_28 = arith.constant 0 : index
    %19 = vector.load %arg11[%c0_26, %c1_27, %c0_28] : memref<18x16x384xbf16, #tpu.memory_space<vmem>>, vector<1x15x128xbf16>
    tpu.vector_store %arg11[%c0_26, %c1_27, %c0_28], %18 {strides = array<i32>} : memref<18x16x384xbf16, #tpu.memory_space<vmem>>, vector<1x15x128xbf16>,
    %c0_29 = arith.constant 0 : index
    %c15_30 = arith.constant 15 : index
    %c256_31 = arith.constant 256 : index
    %20 = vector.load %arg11[%c0_29, %c15_30, %c256_31] : memref<18x16x384xbf16, #tpu.memory_space<vmem>>, vector<1x1x128xbf16>
    tpu.vector_store %arg11[%c0_29, %c15_30, %c256_31], %15 {strides = array<i32>} : memref<18x16x384xbf16, #tpu.memory_space<vmem>>, vector<1x1x128xbf16>,
    %21 = vector.extract_strided_slice %14 {offsets = [0, 1, 0], sizes = [1, 15, 128], strides = [1, 1, 1]} : vector<1x16x128xbf16> to vector<1x15x128xbf16>
    %c0_32 = arith.constant 0 : index
    %c0_33 = arith.constant 0 : index
    %c256_34 = arith.constant 256 : index
    %22 = vector.load %arg11[%c0_32, %c0_33, %c256_34] : memref<18x16x384xbf16, #tpu.memory_space<vmem>>, vector<1x15x128xbf16>
    tpu.vector_store %arg11[%c0_32, %c0_33, %c256_34], %21 {strides = array<i32>} : memref<18x16x384xbf16, #tpu.memory_space<vmem>>, vector<1x15x128xbf16>,
    %c0_35 = arith.constant 0 : index
    %c0_36 = arith.constant 0 : index
    %c0_37 = arith.constant 0 : index
    %c0_38 = arith.constant 0 : index
    %23 = vector.load %arg4[%c0_35, %c0_36, %c0_37, %c0_38] : memref<1x1x16x128xbf16, #tpu.memory_space<vmem>>, vector<1x1x16x128xbf16>
    %24 = vector.shape_cast %23 : vector<1x1x16x128xbf16> to vector<1x16x128xbf16>
    %c0_i32_39 = arith.constant 0 : i32
    %25 = arith.cmpi slt, %arg1, %c0_i32_39 : i32
    %cst_40 = arith.constant 0.000000e+00 : bf16
    %26 = vector.broadcast %cst_40 : bf16 to vector<1x16x128xbf16>
    %27 = arith.select %25, %24, %26 : vector<1x16x128xbf16>
    %cst_41 = arith.constant 0.000000e+00 : bf16
    %28 = vector.broadcast %cst_41 : bf16 to vector<1x1x128xbf16>
    %c17 = arith.constant 17 : index
    %c0_42 = arith.constant 0 : index
    %c128_43 = arith.constant 128 : index
    %29 = vector.load %arg11[%c17, %c0_42, %c128_43] : memref<18x16x384xbf16, #tpu.memory_space<vmem>>, vector<1x16x128xbf16>
    tpu.vector_store %arg11[%c17, %c0_42, %c128_43], %27 {strides = array<i32>} : memref<18x16x384xbf16, #tpu.memory_space<vmem>>, vector<1x16x128xbf16>,
    %c17_44 = arith.constant 17 : index
    %c0_45 = arith.constant 0 : index
    %c0_46 = arith.constant 0 : index
    %30 = vector.load %arg11[%c17_44, %c0_45, %c0_46] : memref<18x16x384xbf16, #tpu.memory_space<vmem>>, vector<1x1x128xbf16>
    tpu.vector_store %arg11[%c17_44, %c0_45, %c0_46], %28 {strides = array<i32>} : memref<18x16x384xbf16, #tpu.memory_space<vmem>>, vector<1x1x128xbf16>,
    %31 = vector.extract_strided_slice %27 {offsets = [0, 0, 0], sizes = [1, 15, 128], strides = [1, 1, 1]} : vector<1x16x128xbf16> to vector<1x15x128xbf16>
    %c17_47 = arith.constant 17 : index
    %c1_48 = arith.constant 1 : index
    %c0_49 = arith.constant 0 : index
    %32 = vector.load %arg11[%c17_47, %c1_48, %c0_49] : memref<18x16x384xbf16, #tpu.memory_space<vmem>>, vector<1x15x128xbf16>
    tpu.vector_store %arg11[%c17_47, %c1_48, %c0_49], %31 {strides = array<i32>} : memref<18x16x384xbf16, #tpu.memory_space<vmem>>, vector<1x15x128xbf16>,
    %c17_50 = arith.constant 17 : index
    %c15_51 = arith.constant 15 : index
    %c256_52 = arith.constant 256 : index
    %33 = vector.load %arg11[%c17_50, %c15_51, %c256_52] : memref<18x16x384xbf16, #tpu.memory_space<vmem>>, vector<1x1x128xbf16>
    tpu.vector_store %arg11[%c17_50, %c15_51, %c256_52], %28 {strides = array<i32>} : memref<18x16x384xbf16, #tpu.memory_space<vmem>>, vector<1x1x128xbf16>,
    %34 = vector.extract_strided_slice %27 {offsets = [0, 1, 0], sizes = [1, 15, 128], strides = [1, 1, 1]} : vector<1x16x128xbf16> to vector<1x15x128xbf16>
    %c17_53 = arith.constant 17 : index
    %c0_54 = arith.constant 0 : index
    %c256_55 = arith.constant 256 : index
    %35 = vector.load %arg11[%c17_53, %c0_54, %c256_55] : memref<18x16x384xbf16, #tpu.memory_space<vmem>>, vector<1x15x128xbf16>
    tpu.vector_store %arg11[%c17_53, %c0_54, %c256_55], %34 {strides = array<i32>} : memref<18x16x384xbf16, #tpu.memory_space<vmem>>, vector<1x15x128xbf16>,
    %c0_56 = arith.constant 0 : index
    %c0_57 = arith.constant 0 : index
    %c0_58 = arith.constant 0 : index
    %36 = vector.load %arg11[%c0_56, %c0_57, %c0_58] : memref<18x16x384xbf16, #tpu.memory_space<vmem>>, vector<16x16x384xbf16>
    %37 = vector.shape_cast %36 : vector<16x16x384xbf16> to vector<256x384xbf16>
    %c0_59 = arith.constant 0 : index
    %c0_60 = arith.constant 0 : index
    %c0_61 = arith.constant 0 : index
    %38 = vector.load %arg5[%c0_59, %c0_60, %c0_61] : memref<3x384x128xbf16, #tpu.memory_space<vmem>>, vector<1x384x128xbf16>
    %39 = vector.shape_cast %38 : vector<1x384x128xbf16> to vector<384x128xbf16>
    %cst_62 = arith.constant dense<0.000000e+00> : vector<256x128xf32>
    %40 = tpu.matmul %37, %39, %cst_62 {dimension_numbers = #tpu.dot_dimension_numbers<[1], [0], [0], [1], [0, 0, 1, 1], [], []>} : vector<256x384xbf16>, vector<384x128xbf16>, vector<256x128xf32> -> vector<256x128xf32>
    %c1_63 = arith.constant 1 : index
    %c0_64 = arith.constant 0 : index
    %c0_65 = arith.constant 0 : index
    %41 = vector.load %arg11[%c1_63, %c0_64, %c0_65] : memref<18x16x384xbf16, #tpu.memory_space<vmem>>, vector<16x16x384xbf16>
    %42 = vector.shape_cast %41 : vector<16x16x384xbf16> to vector<256x384xbf16>
    %c1_66 = arith.constant 1 : index
    %c0_67 = arith.constant 0 : index
    %c0_68 = arith.constant 0 : index
    %43 = vector.load %arg5[%c1_66, %c0_67, %c0_68] : memref<3x384x128xbf16, #tpu.memory_space<vmem>>, vector<1x384x128xbf16>
    %44 = vector.shape_cast %43 : vector<1x384x128xbf16> to vector<384x128xbf16>
    %cst_69 = arith.constant dense<0.000000e+00> : vector<256x128xf32>
    %45 = tpu.matmul %42, %44, %cst_69 {dimension_numbers = #tpu.dot_dimension_numbers<[1], [0], [0], [1], [0, 0, 1, 1], [], []>} : vector<256x384xbf16>, vector<384x128xbf16>, vector<256x128xf32> -> vector<256x128xf32>
    %46 = arith.addf %40, %45 : vector<256x128xf32>
    %c2 = arith.constant 2 : index
    %c0_70 = arith.constant 0 : index
    %c0_71 = arith.constant 0 : index
    %47 = vector.load %arg11[%c2, %c0_70, %c0_71] : memref<18x16x384xbf16, #tpu.memory_space<vmem>>, vector<16x16x384xbf16>
    %48 = vector.shape_cast %47 : vector<16x16x384xbf16> to vector<256x384xbf16>
    %c2_72 = arith.constant 2 : index
    %c0_73 = arith.constant 0 : index
    %c0_74 = arith.constant 0 : index
    %49 = vector.load %arg5[%c2_72, %c0_73, %c0_74] : memref<3x384x128xbf16, #tpu.memory_space<vmem>>, vector<1x384x128xbf16>
    %50 = vector.shape_cast %49 : vector<1x384x128xbf16> to vector<384x128xbf16>
    %cst_75 = arith.constant dense<0.000000e+00> : vector<256x128xf32>
    %51 = tpu.matmul %48, %50, %cst_75 {dimension_numbers = #tpu.dot_dimension_numbers<[1], [0], [0], [1], [0, 0, 1, 1], [], []>} : vector<256x384xbf16>, vector<384x128xbf16>, vector<256x128xf32> -> vector<256x128xf32>
    %52 = arith.addf %46, %51 : vector<256x128xf32>
    %c0_76 = arith.constant 0 : index
    %c0_77 = arith.constant 0 : index
    %53 = vector.load %arg6[%c0_76, %c0_77] : memref<1x128xf32, #tpu.memory_space<vmem>>, vector<1x128xf32>
    %54 = vector.broadcast %53 : vector<1x128xf32> to vector<256x128xf32>
    %55 = arith.addf %52, %54 : vector<256x128xf32>
    %56 = vector.shape_cast %55 : vector<256x128xf32> to vector<1x16x16x128xf32>
    %57 = arith.truncf %56 : vector<1x16x16x128xf32> to vector<1x16x16x128xbf16>
    %c0_78 = arith.constant 0 : index
    %c0_79 = arith.constant 0 : index
    %c0_80 = arith.constant 0 : index
    %c0_81 = arith.constant 0 : index
    %58 = vector.load %arg9[%c0_78, %c0_79, %c0_80, %c0_81] : memref<1x16x16x128xbf16, #tpu.memory_space<vmem>>, vector<1x16x16x128xbf16>
    tpu.vector_store %arg9[%c0_78, %c0_79, %c0_80, %c0_81], %57 {strides = array<i32>} : memref<1x16x16x128xbf16, #tpu.memory_space<vmem>>, vector<1x16x16x128xbf16>,
    %cst_82 = arith.constant dense<0.000000e+00> : vector<128xf32>
    %59 = vector.multi_reduction <add>, %55, %cst_82 [0] : vector<256x128xf32> to vector<128xf32>
    %60 = vector.shape_cast %59 : vector<128xf32> to vector<1x128xf32>
    %c0_83 = arith.constant 0 : index
    %c0_84 = arith.constant 0 : index
    %c0_85 = arith.constant 0 : index
    %c0_86 = arith.constant 0 : index
    %61 = vector.load %arg10[%c0_83, %c0_84, %c0_85, %c0_86] : memref<1x1x2x128xf32, #tpu.memory_space<vmem>>, vector<1x1x1x128xf32>
    %62 = vector.shape_cast %61 : vector<1x1x1x128xf32> to vector<1x128xf32>
    %63 = vector.shape_cast %60 : vector<1x128xf32> to vector<1x1x1x128xf32>
    tpu.vector_store %arg10[%c0_83, %c0_84, %c0_85, %c0_86], %63 {strides = array<i32>} : memref<1x1x2x128xf32, #tpu.memory_space<vmem>>, vector<1x1x1x128xf32>,
    %64 = arith.mulf %55, %55 : vector<256x128xf32>
    %cst_87 = arith.constant dense<0.000000e+00> : vector<128xf32>
    %65 = vector.multi_reduction <add>, %64, %cst_87 [0] : vector<256x128xf32> to vector<128xf32>
    %66 = vector.shape_cast %65 : vector<128xf32> to vector<1x128xf32>
    %c0_88 = arith.constant 0 : index
    %c0_89 = arith.constant 0 : index
    %c1_90 = arith.constant 1 : index
    %c0_91 = arith.constant 0 : index
    %67 = vector.load %arg10[%c0_88, %c0_89, %c1_90, %c0_91] : memref<1x1x2x128xf32, #tpu.memory_space<vmem>>, vector<1x1x1x128xf32>
    %68 = vector.shape_cast %67 : vector<1x1x1x128xf32> to vector<1x128xf32>
    %69 = vector.shape_cast %66 : vector<1x128xf32> to vector<1x1x1x128xf32>
    tpu.vector_store %arg10[%c0_88, %c0_89, %c1_90, %c0_91], %69 {strides = array<i32>} : memref<1x1x2x128xf32, #tpu.memory_space<vmem>>, vector<1x1x1x128xf32>,
    return
  }
  func.func @transform_0(%arg0: i32, %arg1: i32) -> (i32, i32, i32, i32) {
    %c0_i32 = arith.constant 0 : i32
    %c0_i32_0 = arith.constant 0 : i32
    %c0_i32_1 = arith.constant 0 : i32
    return %arg0, %arg1, %c0_i32, %c0_i32_0 : i32, i32, i32, i32
  }
  func.func @transform_1(%arg0: i32, %arg1: i32) -> (i32, i32, i32, i32) {
    %c16_i32 = arith.constant 16 : i32
    %0 = arith.muli %arg1, %c16_i32 : i32
    %c1_i32 = arith.constant 1 : i32
    %1 = arith.subi %0, %c1_i32 : i32
    %c0_i32 = arith.constant 0 : i32
    %2 = arith.maxsi %1, %c0_i32 : i32
    %c0_i32_0 = arith.constant 0 : i32
    %c0_i32_1 = arith.constant 0 : i32
    %c0_i32_2 = arith.constant 0 : i32
    return %arg0, %2, %c0_i32_0, %c0_i32_1 : i32, i32, i32, i32
  }
  func.func @transform_2(%arg0: i32, %arg1: i32) -> (i32, i32, i32, i32) {
    %c16_i32 = arith.constant 16 : i32
    %0 = arith.muli %arg1, %c16_i32 : i32
    %c16_i32_0 = arith.constant 16 : i32
    %1 = arith.addi %0, %c16_i32_0 : i32
    %c15_i32 = arith.constant 15 : i32
    %2 = arith.minsi %1, %c15_i32 : i32
    %c0_i32 = arith.constant 0 : i32
    %c0_i32_1 = arith.constant 0 : i32
    %c0_i32_2 = arith.constant 0 : i32
    return %arg0, %2, %c0_i32, %c0_i32_1 : i32, i32, i32, i32
  }
  func.func @transform_3(%arg0: i32, %arg1: i32) -> (i32, i32, i32) {
    %c0_i32 = arith.constant 0 : i32
    %c0_i32_0 = arith.constant 0 : i32
    %c0_i32_1 = arith.constant 0 : i32
    %c0_i32_2 = arith.constant 0 : i32
    return %c0_i32, %c0_i32_0, %c0_i32_1 : i32, i32, i32
  }
  func.func @transform_4(%arg0: i32, %arg1: i32) -> (i32, i32) {
    %c0_i32 = arith.constant 0 : i32
    %c0_i32_0 = arith.constant 0 : i32
    %c0_i32_1 = arith.constant 0 : i32
    return %c0_i32, %c0_i32_0 : i32, i32
  }
  func.func @transform_5(%arg0: i32, %arg1: i32) -> (i32, i32) {
    %c0_i32 = arith.constant 0 : i32
    %c0_i32_0 = arith.constant 0 : i32
    %c0_i32_1 = arith.constant 0 : i32
    return %c0_i32, %c0_i32_0 : i32, i32
  }
  func.func @transform_6(%arg0: i32, %arg1: i32) -> (i32, i32) {
    %c0_i32 = arith.constant 0 : i32
    %c0_i32_0 = arith.constant 0 : i32
    %c0_i32_1 = arith.constant 0 : i32
    return %c0_i32, %c0_i32_0 : i32, i32
  }
  func.func @transform_7(%arg0: i32, %arg1: i32) -> (i32, i32, i32, i32) {
    %c0_i32 = arith.constant 0 : i32
    %c0_i32_0 = arith.constant 0 : i32
    %c0_i32_1 = arith.constant 0 : i32
    return %arg0, %arg1, %c0_i32, %c0_i32_0 : i32, i32, i32, i32
  }
  func.func @transform_8(%arg0: i32, %arg1: i32) -> (i32, i32, i32, i32) {
    %c0_i32 = arith.constant 0 : i32
    %c0_i32_0 = arith.constant 0 : i32
    %c0_i32_1 = arith.constant 0 : i32
    return %arg0, %arg1, %c0_i32, %c0_i32_0 : i32, i32, i32, i32
  }
}

module attributes {stable_mosaic.version = 11 : i64} {
  func.func @_bn_relu_out_kernel(%arg0: i32, %arg1: i32, %arg2: memref<1x16x16x128xbf16, #tpu.memory_space<vmem>>, %arg3: memref<1x128xf32, #tpu.memory_space<vmem>>, %arg4: memref<1x128xf32, #tpu.memory_space<vmem>>, %arg5: memref<1x16x16x8xf32, #tpu.memory_space<vmem>>) attributes {dimension_semantics = [#tpu.dimension_semantics<parallel>, #tpu.dimension_semantics<parallel>], iteration_bounds = array<i64: 2, 1>, scalar_prefetch = 0 : i64, scratch_operands = 0 : i64, tpu.core_type = #tpu.core_type<tc>, window_params = [{transform_indices = @transform_0, window_bounds = array<i64: 1, 16, 16, 128>}, {pipeline_mode = #tpu.pipeline_mode<synchronous>, transform_indices = @transform_1, window_bounds = array<i64: 1, 128>}, {pipeline_mode = #tpu.pipeline_mode<synchronous>, transform_indices = @transform_2, window_bounds = array<i64: 1, 128>}, {transform_indices = @transform_3, window_bounds = array<i64: 1, 16, 16, 8>}]} {
    %c0 = arith.constant 0 : index
    %c0_0 = arith.constant 0 : index
    %0 = vector.load %arg3[%c0, %c0_0] : memref<1x128xf32, #tpu.memory_space<vmem>>, vector<1x128xf32>
    %1 = vector.shape_cast %0 : vector<1x128xf32> to vector<1x1x1x128xf32>
    %c0_1 = arith.constant 0 : index
    %c0_2 = arith.constant 0 : index
    %2 = vector.load %arg4[%c0_1, %c0_2] : memref<1x128xf32, #tpu.memory_space<vmem>>, vector<1x128xf32>
    %3 = vector.shape_cast %2 : vector<1x128xf32> to vector<1x1x1x128xf32>
    %c0_3 = arith.constant 0 : index
    %c0_4 = arith.constant 0 : index
    %c0_5 = arith.constant 0 : index
    %c0_6 = arith.constant 0 : index
    %4 = vector.load %arg2[%c0_3, %c0_4, %c0_5, %c0_6] : memref<1x16x16x128xbf16, #tpu.memory_space<vmem>>, vector<1x16x16x128xbf16>
    %5 = arith.extf %4 : vector<1x16x16x128xbf16> to vector<1x16x16x128xf32>
    %6 = vector.broadcast %1 : vector<1x1x1x128xf32> to vector<1x16x16x128xf32>
    %7 = arith.mulf %5, %6 : vector<1x16x16x128xf32>
    %8 = vector.broadcast %3 : vector<1x1x1x128xf32> to vector<1x16x16x128xf32>
    %9 = arith.addf %7, %8 : vector<1x16x16x128xf32>
    %cst = arith.constant 0.000000e+00 : f32
    %10 = vector.broadcast %cst : f32 to vector<1x16x16x128xf32>
    %11 = arith.maximumf %9, %10 : vector<1x16x16x128xf32>
    %12 = vector.extract_strided_slice %11 {offsets = [0, 0, 0, 0], sizes = [1, 16, 16, 8], strides = [1, 1, 1, 1]} : vector<1x16x16x128xf32> to vector<1x16x16x8xf32>
    %c0_7 = arith.constant 0 : index
    %c0_8 = arith.constant 0 : index
    %c0_9 = arith.constant 0 : index
    %c0_10 = arith.constant 0 : index
    %13 = vector.load %arg5[%c0_7, %c0_8, %c0_9, %c0_10] : memref<1x16x16x8xf32, #tpu.memory_space<vmem>>, vector<1x16x16x8xf32>
    tpu.vector_store %arg5[%c0_7, %c0_8, %c0_9, %c0_10], %12 {strides = array<i32>} : memref<1x16x16x8xf32, #tpu.memory_space<vmem>>, vector<1x16x16x8xf32>,
    return
  }
  func.func @transform_0(%arg0: i32, %arg1: i32) -> (i32, i32, i32, i32) {
    %c0_i32 = arith.constant 0 : i32
    %c0_i32_0 = arith.constant 0 : i32
    %c0_i32_1 = arith.constant 0 : i32
    return %arg0, %arg1, %c0_i32, %c0_i32_0 : i32, i32, i32, i32
  }
  func.func @transform_1(%arg0: i32, %arg1: i32) -> (i32, i32) {
    %c0_i32 = arith.constant 0 : i32
    %c0_i32_0 = arith.constant 0 : i32
    %c0_i32_1 = arith.constant 0 : i32
    return %c0_i32, %c0_i32_0 : i32, i32
  }
  func.func @transform_2(%arg0: i32, %arg1: i32) -> (i32, i32) {
    %c0_i32 = arith.constant 0 : i32
    %c0_i32_0 = arith.constant 0 : i32
    %c0_i32_1 = arith.constant 0 : i32
    return %c0_i32, %c0_i32_0 : i32, i32
  }
  func.func @transform_3(%arg0: i32, %arg1: i32) -> (i32, i32, i32, i32) {
    %c0_i32 = arith.constant 0 : i32
    %c0_i32_0 = arith.constant 0 : i32
    %c0_i32_1 = arith.constant 0 : i32
    return %arg0, %arg1, %c0_i32, %c0_i32_0 : i32, i32, i32, i32
  }
}

module attributes {stable_mosaic.version = 11 : i64} {
  func.func @_conv_bn_stats_kernel(%arg0: i32, %arg1: i32, %arg2: memref<1x16x16x128xbf16, #tpu.memory_space<vmem>>, %arg3: memref<1x1x16x128xbf16, #tpu.memory_space<vmem>>, %arg4: memref<1x1x16x128xbf16, #tpu.memory_space<vmem>>, %arg5: memref<3x384x128xbf16, #tpu.memory_space<vmem>>, %arg6: memref<1x128xf32, #tpu.memory_space<vmem>>, %arg7: memref<1x128xf32, #tpu.memory_space<vmem>>, %arg8: memref<1x128xf32, #tpu.memory_space<vmem>>, %arg9: memref<1x16x16x128xbf16, #tpu.memory_space<vmem>>, %arg10: memref<1x1x2x128xf32, #tpu.memory_space<vmem>>, %arg11: memref<18x16x384xbf16, #tpu.memory_space<vmem>>) attributes {dimension_semantics = [#tpu.dimension_semantics<parallel>, #tpu.dimension_semantics<parallel>], iteration_bounds = array<i64: 2, 1>, scalar_prefetch = 0 : i64, scratch_operands = 1 : i64, tpu.core_type = #tpu.core_type<tc>, window_params = [{transform_indices = @transform_0, window_bounds = array<i64: 1, 16, 16, 128>}, {transform_indices = @transform_1, window_bounds = array<i64: 1, 1, 16, 128>}, {transform_indices = @transform_2, window_bounds = array<i64: 1, 1, 16, 128>}, {pipeline_mode = #tpu.pipeline_mode<synchronous>, transform_indices = @transform_3, window_bounds = array<i64: 3, 384, 128>}, {pipeline_mode = #tpu.pipeline_mode<synchronous>, transform_indices = @transform_4, window_bounds = array<i64: 1, 128>}, {pipeline_mode = #tpu.pipeline_mode<synchronous>, transform_indices = @transform_5, window_bounds = array<i64: 1, 128>}, {pipeline_mode = #tpu.pipeline_mode<synchronous>, transform_indices = @transform_6, window_bounds = array<i64: 1, 128>}, {transform_indices = @transform_7, window_bounds = array<i64: 1, 16, 16, 128>}, {transform_indices = @transform_8, window_bounds = array<i64: 1, 1, 2, 128>}]} {
    %c0 = arith.constant 0 : index
    %c0_0 = arith.constant 0 : index
    %0 = vector.load %arg7[%c0, %c0_0] : memref<1x128xf32, #tpu.memory_space<vmem>>, vector<1x128xf32>
    %1 = vector.shape_cast %0 : vector<1x128xf32> to vector<1x1x128xf32>
    %c0_1 = arith.constant 0 : index
    %c0_2 = arith.constant 0 : index
    %2 = vector.load %arg8[%c0_1, %c0_2] : memref<1x128xf32, #tpu.memory_space<vmem>>, vector<1x128xf32>
    %3 = vector.shape_cast %2 : vector<1x128xf32> to vector<1x1x128xf32>
    %c0_3 = arith.constant 0 : index
    %c0_4 = arith.constant 0 : index
    %c0_5 = arith.constant 0 : index
    %c0_6 = arith.constant 0 : index
    %4 = vector.load %arg2[%c0_3, %c0_4, %c0_5, %c0_6] : memref<1x16x16x128xbf16, #tpu.memory_space<vmem>>, vector<1x16x16x128xbf16>
    %5 = vector.shape_cast %4 : vector<1x16x16x128xbf16> to vector<16x16x128xbf16>
    %6 = arith.extf %5 : vector<16x16x128xbf16> to vector<16x16x128xf32>
    %7 = vector.broadcast %1 : vector<1x1x128xf32> to vector<16x16x128xf32>
    %8 = arith.mulf %6, %7 : vector<16x16x128xf32>
    %9 = vector.broadcast %3 : vector<1x1x128xf32> to vector<16x16x128xf32>
    %10 = arith.addf %8, %9 : vector<16x16x128xf32>
    %cst = arith.constant 0.000000e+00 : f32
    %11 = vector.broadcast %cst : f32 to vector<16x16x128xf32>
    %12 = arith.maximumf %10, %11 : vector<16x16x128xf32>
    %13 = arith.truncf %12 : vector<16x16x128xf32> to vector<16x16x128xbf16>
    %cst_7 = arith.constant 0.000000e+00 : bf16
    %14 = vector.broadcast %cst_7 : bf16 to vector<16x1x128xbf16>
    %c1 = arith.constant 1 : index
    %c0_8 = arith.constant 0 : index
    %c128 = arith.constant 128 : index
    %15 = vector.load %arg11[%c1, %c0_8, %c128] : memref<18x16x384xbf16, #tpu.memory_space<vmem>>, vector<16x16x128xbf16>
    tpu.vector_store %arg11[%c1, %c0_8, %c128], %13 {strides = array<i32>} : memref<18x16x384xbf16, #tpu.memory_space<vmem>>, vector<16x16x128xbf16>,
    %c1_9 = arith.constant 1 : index
    %c0_10 = arith.constant 0 : index
    %c0_11 = arith.constant 0 : index
    %16 = vector.load %arg11[%c1_9, %c0_10, %c0_11] : memref<18x16x384xbf16, #tpu.memory_space<vmem>>, vector<16x1x128xbf16>
    tpu.vector_store %arg11[%c1_9, %c0_10, %c0_11], %14 {strides = array<i32>} : memref<18x16x384xbf16, #tpu.memory_space<vmem>>, vector<16x1x128xbf16>,
    %17 = vector.extract_strided_slice %13 {offsets = [0, 0, 0], sizes = [16, 15, 128], strides = [1, 1, 1]} : vector<16x16x128xbf16> to vector<16x15x128xbf16>
    %c1_12 = arith.constant 1 : index
    %c1_13 = arith.constant 1 : index
    %c0_14 = arith.constant 0 : index
    %18 = vector.load %arg11[%c1_12, %c1_13, %c0_14] : memref<18x16x384xbf16, #tpu.memory_space<vmem>>, vector<16x15x128xbf16>
    tpu.vector_store %arg11[%c1_12, %c1_13, %c0_14], %17 {strides = array<i32>} : memref<18x16x384xbf16, #tpu.memory_space<vmem>>, vector<16x15x128xbf16>,
    %c1_15 = arith.constant 1 : index
    %c15 = arith.constant 15 : index
    %c256 = arith.constant 256 : index
    %19 = vector.load %arg11[%c1_15, %c15, %c256] : memref<18x16x384xbf16, #tpu.memory_space<vmem>>, vector<16x1x128xbf16>
    tpu.vector_store %arg11[%c1_15, %c15, %c256], %14 {strides = array<i32>} : memref<18x16x384xbf16, #tpu.memory_space<vmem>>, vector<16x1x128xbf16>,
    %20 = vector.extract_strided_slice %13 {offsets = [0, 1, 0], sizes = [16, 15, 128], strides = [1, 1, 1]} : vector<16x16x128xbf16> to vector<16x15x128xbf16>
    %c1_16 = arith.constant 1 : index
    %c0_17 = arith.constant 0 : index
    %c256_18 = arith.constant 256 : index
    %21 = vector.load %arg11[%c1_16, %c0_17, %c256_18] : memref<18x16x384xbf16, #tpu.memory_space<vmem>>, vector<16x15x128xbf16>
    tpu.vector_store %arg11[%c1_16, %c0_17, %c256_18], %20 {strides = array<i32>} : memref<18x16x384xbf16, #tpu.memory_space<vmem>>, vector<16x15x128xbf16>,
    %c0_19 = arith.constant 0 : index
    %c0_20 = arith.constant 0 : index
    %c0_21 = arith.constant 0 : index
    %c0_22 = arith.constant 0 : index
    %22 = vector.load %arg3[%c0_19, %c0_20, %c0_21, %c0_22] : memref<1x1x16x128xbf16, #tpu.memory_space<vmem>>, vector<1x1x16x128xbf16>
    %23 = vector.shape_cast %22 : vector<1x1x16x128xbf16> to vector<1x16x128xbf16>
    %24 = arith.extf %23 : vector<1x16x128xbf16> to vector<1x16x128xf32>
    %25 = vector.broadcast %1 : vector<1x1x128xf32> to vector<1x16x128xf32>
    %26 = arith.mulf %24, %25 : vector<1x16x128xf32>
    %27 = vector.broadcast %3 : vector<1x1x128xf32> to vector<1x16x128xf32>
    %28 = arith.addf %26, %27 : vector<1x16x128xf32>
    %cst_23 = arith.constant 0.000000e+00 : f32
    %29 = vector.broadcast %cst_23 : f32 to vector<1x16x128xf32>
    %30 = arith.maximumf %28, %29 : vector<1x16x128xf32>
    %31 = arith.truncf %30 : vector<1x16x128xf32> to vector<1x16x128xbf16>
    %c0_i32 = arith.constant 0 : i32
    %32 = arith.cmpi sgt, %arg1, %c0_i32 : i32
    %cst_24 = arith.constant 0.000000e+00 : bf16
    %33 = vector.broadcast %cst_24 : bf16 to vector<1x16x128xbf16>
    %34 = arith.select %32, %31, %33 : vector<1x16x128xbf16>
    %cst_25 = arith.constant 0.000000e+00 : bf16
    %35 = vector.broadcast %cst_25 : bf16 to vector<1x1x128xbf16>
    %c0_26 = arith.constant 0 : index
    %c0_27 = arith.constant 0 : index
    %c128_28 = arith.constant 128 : index
    %36 = vector.load %arg11[%c0_26, %c0_27, %c128_28] : memref<18x16x384xbf16, #tpu.memory_space<vmem>>, vector<1x16x128xbf16>
    tpu.vector_store %arg11[%c0_26, %c0_27, %c128_28], %34 {strides = array<i32>} : memref<18x16x384xbf16, #tpu.memory_space<vmem>>, vector<1x16x128xbf16>,
    %c0_29 = arith.constant 0 : index
    %c0_30 = arith.constant 0 : index
    %c0_31 = arith.constant 0 : index
    %37 = vector.load %arg11[%c0_29, %c0_30, %c0_31] : memref<18x16x384xbf16, #tpu.memory_space<vmem>>, vector<1x1x128xbf16>
    tpu.vector_store %arg11[%c0_29, %c0_30, %c0_31], %35 {strides = array<i32>} : memref<18x16x384xbf16, #tpu.memory_space<vmem>>, vector<1x1x128xbf16>,
    %38 = vector.extract_strided_slice %34 {offsets = [0, 0, 0], sizes = [1, 15, 128], strides = [1, 1, 1]} : vector<1x16x128xbf16> to vector<1x15x128xbf16>
    %c0_32 = arith.constant 0 : index
    %c1_33 = arith.constant 1 : index
    %c0_34 = arith.constant 0 : index
    %39 = vector.load %arg11[%c0_32, %c1_33, %c0_34] : memref<18x16x384xbf16, #tpu.memory_space<vmem>>, vector<1x15x128xbf16>
    tpu.vector_store %arg11[%c0_32, %c1_33, %c0_34], %38 {strides = array<i32>} : memref<18x16x384xbf16, #tpu.memory_space<vmem>>, vector<1x15x128xbf16>,
    %c0_35 = arith.constant 0 : index
    %c15_36 = arith.constant 15 : index
    %c256_37 = arith.constant 256 : index
    %40 = vector.load %arg11[%c0_35, %c15_36, %c256_37] : memref<18x16x384xbf16, #tpu.memory_space<vmem>>, vector<1x1x128xbf16>
    tpu.vector_store %arg11[%c0_35, %c15_36, %c256_37], %35 {strides = array<i32>} : memref<18x16x384xbf16, #tpu.memory_space<vmem>>, vector<1x1x128xbf16>,
    %41 = vector.extract_strided_slice %34 {offsets = [0, 1, 0], sizes = [1, 15, 128], strides = [1, 1, 1]} : vector<1x16x128xbf16> to vector<1x15x128xbf16>
    %c0_38 = arith.constant 0 : index
    %c0_39 = arith.constant 0 : index
    %c256_40 = arith.constant 256 : index
    %42 = vector.load %arg11[%c0_38, %c0_39, %c256_40] : memref<18x16x384xbf16, #tpu.memory_space<vmem>>, vector<1x15x128xbf16>
    tpu.vector_store %arg11[%c0_38, %c0_39, %c256_40], %41 {strides = array<i32>} : memref<18x16x384xbf16, #tpu.memory_space<vmem>>, vector<1x15x128xbf16>,
    %c0_41 = arith.constant 0 : index
    %c0_42 = arith.constant 0 : index
    %c0_43 = arith.constant 0 : index
    %c0_44 = arith.constant 0 : index
    %43 = vector.load %arg4[%c0_41, %c0_42, %c0_43, %c0_44] : memref<1x1x16x128xbf16, #tpu.memory_space<vmem>>, vector<1x1x16x128xbf16>
    %44 = vector.shape_cast %43 : vector<1x1x16x128xbf16> to vector<1x16x128xbf16>
    %45 = arith.extf %44 : vector<1x16x128xbf16> to vector<1x16x128xf32>
    %46 = vector.broadcast %1 : vector<1x1x128xf32> to vector<1x16x128xf32>
    %47 = arith.mulf %45, %46 : vector<1x16x128xf32>
    %48 = vector.broadcast %3 : vector<1x1x128xf32> to vector<1x16x128xf32>
    %49 = arith.addf %47, %48 : vector<1x16x128xf32>
    %cst_45 = arith.constant 0.000000e+00 : f32
    %50 = vector.broadcast %cst_45 : f32 to vector<1x16x128xf32>
    %51 = arith.maximumf %49, %50 : vector<1x16x128xf32>
    %52 = arith.truncf %51 : vector<1x16x128xf32> to vector<1x16x128xbf16>
    %c0_i32_46 = arith.constant 0 : i32
    %53 = arith.cmpi slt, %arg1, %c0_i32_46 : i32
    %cst_47 = arith.constant 0.000000e+00 : bf16
    %54 = vector.broadcast %cst_47 : bf16 to vector<1x16x128xbf16>
    %55 = arith.select %53, %52, %54 : vector<1x16x128xbf16>
    %cst_48 = arith.constant 0.000000e+00 : bf16
    %56 = vector.broadcast %cst_48 : bf16 to vector<1x1x128xbf16>
    %c17 = arith.constant 17 : index
    %c0_49 = arith.constant 0 : index
    %c128_50 = arith.constant 128 : index
    %57 = vector.load %arg11[%c17, %c0_49, %c128_50] : memref<18x16x384xbf16, #tpu.memory_space<vmem>>, vector<1x16x128xbf16>
    tpu.vector_store %arg11[%c17, %c0_49, %c128_50], %55 {strides = array<i32>} : memref<18x16x384xbf16, #tpu.memory_space<vmem>>, vector<1x16x128xbf16>,
    %c17_51 = arith.constant 17 : index
    %c0_52 = arith.constant 0 : index
    %c0_53 = arith.constant 0 : index
    %58 = vector.load %arg11[%c17_51, %c0_52, %c0_53] : memref<18x16x384xbf16, #tpu.memory_space<vmem>>, vector<1x1x128xbf16>
    tpu.vector_store %arg11[%c17_51, %c0_52, %c0_53], %56 {strides = array<i32>} : memref<18x16x384xbf16, #tpu.memory_space<vmem>>, vector<1x1x128xbf16>,
    %59 = vector.extract_strided_slice %55 {offsets = [0, 0, 0], sizes = [1, 15, 128], strides = [1, 1, 1]} : vector<1x16x128xbf16> to vector<1x15x128xbf16>
    %c17_54 = arith.constant 17 : index
    %c1_55 = arith.constant 1 : index
    %c0_56 = arith.constant 0 : index
    %60 = vector.load %arg11[%c17_54, %c1_55, %c0_56] : memref<18x16x384xbf16, #tpu.memory_space<vmem>>, vector<1x15x128xbf16>
    tpu.vector_store %arg11[%c17_54, %c1_55, %c0_56], %59 {strides = array<i32>} : memref<18x16x384xbf16, #tpu.memory_space<vmem>>, vector<1x15x128xbf16>,
    %c17_57 = arith.constant 17 : index
    %c15_58 = arith.constant 15 : index
    %c256_59 = arith.constant 256 : index
    %61 = vector.load %arg11[%c17_57, %c15_58, %c256_59] : memref<18x16x384xbf16, #tpu.memory_space<vmem>>, vector<1x1x128xbf16>
    tpu.vector_store %arg11[%c17_57, %c15_58, %c256_59], %56 {strides = array<i32>} : memref<18x16x384xbf16, #tpu.memory_space<vmem>>, vector<1x1x128xbf16>,
    %62 = vector.extract_strided_slice %55 {offsets = [0, 1, 0], sizes = [1, 15, 128], strides = [1, 1, 1]} : vector<1x16x128xbf16> to vector<1x15x128xbf16>
    %c17_60 = arith.constant 17 : index
    %c0_61 = arith.constant 0 : index
    %c256_62 = arith.constant 256 : index
    %63 = vector.load %arg11[%c17_60, %c0_61, %c256_62] : memref<18x16x384xbf16, #tpu.memory_space<vmem>>, vector<1x15x128xbf16>
    tpu.vector_store %arg11[%c17_60, %c0_61, %c256_62], %62 {strides = array<i32>} : memref<18x16x384xbf16, #tpu.memory_space<vmem>>, vector<1x15x128xbf16>,
    %c0_63 = arith.constant 0 : index
    %c0_64 = arith.constant 0 : index
    %c0_65 = arith.constant 0 : index
    %64 = vector.load %arg11[%c0_63, %c0_64, %c0_65] : memref<18x16x384xbf16, #tpu.memory_space<vmem>>, vector<16x16x384xbf16>
    %65 = vector.shape_cast %64 : vector<16x16x384xbf16> to vector<256x384xbf16>
    %c0_66 = arith.constant 0 : index
    %c0_67 = arith.constant 0 : index
    %c0_68 = arith.constant 0 : index
    %66 = vector.load %arg5[%c0_66, %c0_67, %c0_68] : memref<3x384x128xbf16, #tpu.memory_space<vmem>>, vector<1x384x128xbf16>
    %67 = vector.shape_cast %66 : vector<1x384x128xbf16> to vector<384x128xbf16>
    %cst_69 = arith.constant dense<0.000000e+00> : vector<256x128xf32>
    %68 = tpu.matmul %65, %67, %cst_69 {dimension_numbers = #tpu.dot_dimension_numbers<[1], [0], [0], [1], [0, 0, 1, 1], [], []>} : vector<256x384xbf16>, vector<384x128xbf16>, vector<256x128xf32> -> vector<256x128xf32>
    %c1_70 = arith.constant 1 : index
    %c0_71 = arith.constant 0 : index
    %c0_72 = arith.constant 0 : index
    %69 = vector.load %arg11[%c1_70, %c0_71, %c0_72] : memref<18x16x384xbf16, #tpu.memory_space<vmem>>, vector<16x16x384xbf16>
    %70 = vector.shape_cast %69 : vector<16x16x384xbf16> to vector<256x384xbf16>
    %c1_73 = arith.constant 1 : index
    %c0_74 = arith.constant 0 : index
    %c0_75 = arith.constant 0 : index
    %71 = vector.load %arg5[%c1_73, %c0_74, %c0_75] : memref<3x384x128xbf16, #tpu.memory_space<vmem>>, vector<1x384x128xbf16>
    %72 = vector.shape_cast %71 : vector<1x384x128xbf16> to vector<384x128xbf16>
    %cst_76 = arith.constant dense<0.000000e+00> : vector<256x128xf32>
    %73 = tpu.matmul %70, %72, %cst_76 {dimension_numbers = #tpu.dot_dimension_numbers<[1], [0], [0], [1], [0, 0, 1, 1], [], []>} : vector<256x384xbf16>, vector<384x128xbf16>, vector<256x128xf32> -> vector<256x128xf32>
    %74 = arith.addf %68, %73 : vector<256x128xf32>
    %c2 = arith.constant 2 : index
    %c0_77 = arith.constant 0 : index
    %c0_78 = arith.constant 0 : index
    %75 = vector.load %arg11[%c2, %c0_77, %c0_78] : memref<18x16x384xbf16, #tpu.memory_space<vmem>>, vector<16x16x384xbf16>
    %76 = vector.shape_cast %75 : vector<16x16x384xbf16> to vector<256x384xbf16>
    %c2_79 = arith.constant 2 : index
    %c0_80 = arith.constant 0 : index
    %c0_81 = arith.constant 0 : index
    %77 = vector.load %arg5[%c2_79, %c0_80, %c0_81] : memref<3x384x128xbf16, #tpu.memory_space<vmem>>, vector<1x384x128xbf16>
    %78 = vector.shape_cast %77 : vector<1x384x128xbf16> to vector<384x128xbf16>
    %cst_82 = arith.constant dense<0.000000e+00> : vector<256x128xf32>
    %79 = tpu.matmul %76, %78, %cst_82 {dimension_numbers = #tpu.dot_dimension_numbers<[1], [0], [0], [1], [0, 0, 1, 1], [], []>} : vector<256x384xbf16>, vector<384x128xbf16>, vector<256x128xf32> -> vector<256x128xf32>
    %80 = arith.addf %74, %79 : vector<256x128xf32>
    %c0_83 = arith.constant 0 : index
    %c0_84 = arith.constant 0 : index
    %81 = vector.load %arg6[%c0_83, %c0_84] : memref<1x128xf32, #tpu.memory_space<vmem>>, vector<1x128xf32>
    %82 = vector.broadcast %81 : vector<1x128xf32> to vector<256x128xf32>
    %83 = arith.addf %80, %82 : vector<256x128xf32>
    %84 = vector.shape_cast %83 : vector<256x128xf32> to vector<1x16x16x128xf32>
    %85 = arith.truncf %84 : vector<1x16x16x128xf32> to vector<1x16x16x128xbf16>
    %c0_85 = arith.constant 0 : index
    %c0_86 = arith.constant 0 : index
    %c0_87 = arith.constant 0 : index
    %c0_88 = arith.constant 0 : index
    %86 = vector.load %arg9[%c0_85, %c0_86, %c0_87, %c0_88] : memref<1x16x16x128xbf16, #tpu.memory_space<vmem>>, vector<1x16x16x128xbf16>
    tpu.vector_store %arg9[%c0_85, %c0_86, %c0_87, %c0_88], %85 {strides = array<i32>} : memref<1x16x16x128xbf16, #tpu.memory_space<vmem>>, vector<1x16x16x128xbf16>,
    %cst_89 = arith.constant dense<0.000000e+00> : vector<128xf32>
    %87 = vector.multi_reduction <add>, %83, %cst_89 [0] : vector<256x128xf32> to vector<128xf32>
    %88 = vector.shape_cast %87 : vector<128xf32> to vector<1x128xf32>
    %c0_90 = arith.constant 0 : index
    %c0_91 = arith.constant 0 : index
    %c0_92 = arith.constant 0 : index
    %c0_93 = arith.constant 0 : index
    %89 = vector.load %arg10[%c0_90, %c0_91, %c0_92, %c0_93] : memref<1x1x2x128xf32, #tpu.memory_space<vmem>>, vector<1x1x1x128xf32>
    %90 = vector.shape_cast %89 : vector<1x1x1x128xf32> to vector<1x128xf32>
    %91 = vector.shape_cast %88 : vector<1x128xf32> to vector<1x1x1x128xf32>
    tpu.vector_store %arg10[%c0_90, %c0_91, %c0_92, %c0_93], %91 {strides = array<i32>} : memref<1x1x2x128xf32, #tpu.memory_space<vmem>>, vector<1x1x1x128xf32>,
    %92 = arith.mulf %83, %83 : vector<256x128xf32>
    %cst_94 = arith.constant dense<0.000000e+00> : vector<128xf32>
    %93 = vector.multi_reduction <add>, %92, %cst_94 [0] : vector<256x128xf32> to vector<128xf32>
    %94 = vector.shape_cast %93 : vector<128xf32> to vector<1x128xf32>
    %c0_95 = arith.constant 0 : index
    %c0_96 = arith.constant 0 : index
    %c1_97 = arith.constant 1 : index
    %c0_98 = arith.constant 0 : index
    %95 = vector.load %arg10[%c0_95, %c0_96, %c1_97, %c0_98] : memref<1x1x2x128xf32, #tpu.memory_space<vmem>>, vector<1x1x1x128xf32>
    %96 = vector.shape_cast %95 : vector<1x1x1x128xf32> to vector<1x128xf32>
    %97 = vector.shape_cast %94 : vector<1x128xf32> to vector<1x1x1x128xf32>
    tpu.vector_store %arg10[%c0_95, %c0_96, %c1_97, %c0_98], %97 {strides = array<i32>} : memref<1x1x2x128xf32, #tpu.memory_space<vmem>>, vector<1x1x1x128xf32>,
    return
  }
  func.func @transform_0(%arg0: i32, %arg1: i32) -> (i32, i32, i32, i32) {
    %c0_i32 = arith.constant 0 : i32
    %c0_i32_0 = arith.constant 0 : i32
    %c0_i32_1 = arith.constant 0 : i32
    return %arg0, %arg1, %c0_i32, %c0_i32_0 : i32, i32, i32, i32
  }
  func.func @transform_1(%arg0: i32, %arg1: i32) -> (i32, i32, i32, i32) {
    %c16_i32 = arith.constant 16 : i32
    %0 = arith.muli %arg1, %c16_i32 : i32
    %c1_i32 = arith.constant 1 : i32
    %1 = arith.subi %0, %c1_i32 : i32
    %c0_i32 = arith.constant 0 : i32
    %2 = arith.maxsi %1, %c0_i32 : i32
    %c0_i32_0 = arith.constant 0 : i32
    %c0_i32_1 = arith.constant 0 : i32
    %c0_i32_2 = arith.constant 0 : i32
    return %arg0, %2, %c0_i32_0, %c0_i32_1 : i32, i32, i32, i32
  }
  func.func @transform_2(%arg0: i32, %arg1: i32) -> (i32, i32, i32, i32) {
    %c16_i32 = arith.constant 16 : i32
    %0 = arith.muli %arg1, %c16_i32 : i32
    %c16_i32_0 = arith.constant 16 : i32
    %1 = arith.addi %0, %c16_i32_0 : i32
    %c15_i32 = arith.constant 15 : i32
    %2 = arith.minsi %1, %c15_i32 : i32
    %c0_i32 = arith.constant 0 : i32
    %c0_i32_1 = arith.constant 0 : i32
    %c0_i32_2 = arith.constant 0 : i32
    return %arg0, %2, %c0_i32, %c0_i32_1 : i32, i32, i32, i32
  }
  func.func @transform_3(%arg0: i32, %arg1: i32) -> (i32, i32, i32) {
    %c0_i32 = arith.constant 0 : i32
    %c0_i32_0 = arith.constant 0 : i32
    %c0_i32_1 = arith.constant 0 : i32
    %c0_i32_2 = arith.constant 0 : i32
    return %c0_i32, %c0_i32_0, %c0_i32_1 : i32, i32, i32
  }
  func.func @transform_4(%arg0: i32, %arg1: i32) -> (i32, i32) {
    %c0_i32 = arith.constant 0 : i32
    %c0_i32_0 = arith.constant 0 : i32
    %c0_i32_1 = arith.constant 0 : i32
    return %c0_i32, %c0_i32_0 : i32, i32
  }
  func.func @transform_5(%arg0: i32, %arg1: i32) -> (i32, i32) {
    %c0_i32 = arith.constant 0 : i32
    %c0_i32_0 = arith.constant 0 : i32
    %c0_i32_1 = arith.constant 0 : i32
    return %c0_i32, %c0_i32_0 : i32, i32
  }
  func.func @transform_6(%arg0: i32, %arg1: i32) -> (i32, i32) {
    %c0_i32 = arith.constant 0 : i32
    %c0_i32_0 = arith.constant 0 : i32
    %c0_i32_1 = arith.constant 0 : i32
    return %c0_i32, %c0_i32_0 : i32, i32
  }
  func.func @transform_7(%arg0: i32, %arg1: i32) -> (i32, i32, i32, i32) {
    %c0_i32 = arith.constant 0 : i32
    %c0_i32_0 = arith.constant 0 : i32
    %c0_i32_1 = arith.constant 0 : i32
    return %arg0, %arg1, %c0_i32, %c0_i32_0 : i32, i32, i32, i32
  }
  func.func @transform_8(%arg0: i32, %arg1: i32) -> (i32, i32, i32, i32) {
    %c0_i32 = arith.constant 0 : i32
    %c0_i32_0 = arith.constant 0 : i32
    %c0_i32_1 = arith.constant 0 : i32
    return %arg0, %arg1, %c0_i32, %c0_i32_0 : i32, i32, i32, i32
  }
}

</mosaic_0001>

<bundles_post_ra>
// kernel: double_conv_forward.5
= control target key start
LH: loop header
LB: loop body
LE: loop exit
PB: predicated region body
PF: predicated region fallthrough
CT: control target
= control target key end

     0   :  { %8 = vsyncpa [#allocation3], 0  ;;  %s1359_s0 = inlined_call_operand.hbm [shape: bf16[2,16,16,128], index: 0, kind: input, shape index: {}]   ;;  %s1360_s1 = inlined_call_operand.hbm [shape: f32[1,128], index: 1, kind: input, shape index: {}]   ;;  %s1361_s2 = inlined_call_operand.hbm [shape: f32[1,128], index: 2, kind: input, shape index: {}]   ;;  %s1362_s3 = inlined_call_operand.hbm [shape: f32[2,16,16,8], index: 3, kind: output, shape index: {}]  }
   0x1   :  { %10 = vsyncpa [#allocation3 + $0x1], 0 }
   0x2   :  { %11 = vsyncpa [#allocation6], 0 }
   0x3   :  { %12 = vsyncpa [#allocation4], 0 }
   0x4   :  { %14 = vsyncpa [#allocation4 + $0x1], 0  ;;  %s956_s12 = smov 0   ;;  %s958_s13 = smov 0  }
   0x5   :  { %s960_s14 = smov 0   ;;  %s962_s15 = smov 0  }
   0x6   :  { %s964_s16 = smov 0   ;;  %s966_s17 = smov 0  }
   0x7 LB: > { %s565_s18 = sadd.s32 4294967295, %s926_s17   ;;  %s566_s19 = sadd.s32 4294967294, %s926_s17   ;;  %s926_s17 = sphi %s966_s17, %s20_s17   ;;  %s922_s16 = sphi %s964_s16, %s1388_s16   ;;  %s918_s15 = sphi %s962_s15, %s1387_s15   ;;  %s914_s14 = sphi %s960_s14, %s1386_s14   ;;  %s910_s13 = sphi %s958_s13, %s1385_s13   ;;  %s906_s12 = sphi %s956_s12, %s1384_s12  }
   0x8   : > { %s41_s20 = sadd.s32 1, %s914_s14  ;;  %p48_p0 = scmp.ne.s32.totalorder %s914_s14, %s910_s13 }
   0x9   : > { %p49_p1 = scmp.eq.s32.totalorder %s926_s17, 0  ;;  %p54_p2 = scmp.ne.s32.totalorder %s910_s13, %s906_s12 }
   0xa   : > { %p994_p3 = scmp.eq.s32.totalorder %s565_s18, 0  ;;  %p122_p4 = scmp.eq.s32.totalorder %s565_s18, 1 }
   0xb   : > { %p998_p5 = por %p49_p1, %p48_p0  ;;  %p128_p6 = scmp.eq.s32.totalorder %s566_s19, 1 }
   0xc   : > { %s1369_s21 = scalar_select %p994_p3, 1, 0 }
   0xd   : > { %p1004_p7 = por %p994_p3, %p54_p2  ;;  %p1008_p8 = por %p122_p4, %p48_p0 }
   0xe   : > { %p1012_p9 = por %p128_p6, %p54_p2  ;;  %p567_p10 = scmp.ge.s32.totalorder %s926_s17, 1 }
   0xf   : > { %s1371_s23 = scalar_select %p1004_p7, 1, 0 }
  0x10   : > { %s1372_s24 = scalar_select %p1008_p8, 1, 0 }
  0x11   : > { %s1373_s25 = scalar_select %p1012_p9, 1, 0 }
  0x12   : > { %p135_p11 = scmp.lt.s32.totalorder %s926_s17, 3  ;;  %s928_s27 = smov [#allocation5]  }
  0x13   : > { %s148_s28 = sshll.u32 %s928_s27, 4  ;;  %p696_p1 = scmp.lt.s32.totalorder %s926_s17, 2  ;;  %s149_s28 = int_to_ptr.vmem [resolvable:$true] %s148_s28 }
  0x14   : > { %p1019_p13 = pnand %p567_p10, %p135_p11  ;;  %s929_s30 = smov [#allocation7]  }
  0x15   : > { %p1028_p4 = pnand %p696_p1, %p998_p5  ;;  %s159_s4 = sshll.u32 %s929_s30, 4  ;;  %s1038_s4 = int_to_ptr.vmem [resolvable:$true] %s159_s4 }
  0x16   : > { %s1374_s26 = scalar_select %p1019_p13, 1, 0 }
  0x17   : > { %p679_p0 = pneg %p1019_p13  ;;  %s754_s8 = scalar_lea.hbm %s1360_s1, 16 }
  0x18   : > { %s1375_s29 = scalar_select %p1028_p4, 1, 0 }
  0x19   : > { %p1034_p2 = pnand %p679_p0, %p994_p3  ;;  %p755_p5 = scmp.ne.s32.totalorder %s1360_s1, %s754_s8 }
  0x1a   : > { %p761_p1 = scmp.lt.u32.totalorder %s754_s8, %s1360_s1 }
  0x1b   : > { %p756_p6 = pneg %p1034_p2 }
  0x1d   : > { %p757_p10 = pnand %p756_p6, %p755_p5 }
  0x1f   : > { %p758_p11 = pneg %p757_p10 }
  0x21   : > { %p763_p0 = pnand %p761_p1, %p758_p11 }
  0x23   : > { %766 = shalt.err (!%p763_p0)
}
  0x24   : > { %s767_s19 = scalar_lea.vmem %s149_s28, 16  ;;  %s774_s22 = scalar_lea.vmem %s149_s28, 32 }
  0x25   : > { %p768_p12 = scmp.ne.s32.totalorder %s149_s28, %s767_s19  ;;  %p775_p3 = scmp.lt.s32.totalorder %s149_s28, %s149_s28 }
  0x26   : > { %p776_p7 = scmp.lt.s32.totalorder %s774_s22, %s767_s19 }
  0x27   : > { %p770_p9 = pnand %p768_p12, %p756_p6 }
  0x28   : > { %p777_p13 = por %p776_p7, %p775_p3 }
  0x29   : > { %p771_p8 = pneg %p770_p9 }
  0x2b   : > { %p778_p4 = pnand %p777_p13, %p771_p8 }
  0x2d   : > { %781 = shalt.err (!%p778_p4)
}
  0x2e   : > { %682 = dma.hbm_to_vmem [thread:$0]  (!%p1034_p2), %s1360_s1, 16, %s149_s28, [#allocation6]  }
  0x2f   : > { %s782_s8 = scalar_lea.hbm %s1361_s2, 16 }
  0x30   : > { %p783_p9 = scmp.ne.s32.totalorder %s1361_s2, %s782_s8  ;;  %p789_p8 = scmp.lt.u32.totalorder %s782_s8, %s1361_s2 }
  0x32   : > { %p785_p3 = pnand %p783_p9, %p756_p6 }
  0x34   : > { %p786_p7 = pneg %p785_p3 }
  0x36   : > { %p791_p12 = pnand %p789_p8, %p786_p7 }
  0x38   : > { %794 = shalt.err (!%p791_p12)
}
  0x39   : > { %s795_s28 = scalar_lea.vmem %s1038_s4, 16  ;;  %s802_s19 = scalar_lea.vmem %s1038_s4, 32 }
  0x3a   : > { %p796_p13 = scmp.ne.s32.totalorder %s1038_s4, %s795_s28  ;;  %p803_p10 = scmp.lt.s32.totalorder %s1038_s4, %s1038_s4 }
  0x3b   : > { %p804_p11 = scmp.lt.s32.totalorder %s802_s19, %s795_s28 }
  0x3c   : > { %p798_p4 = pnand %p796_p13, %p756_p6 }
  0x3d   : > { %p805_p1 = por %p804_p11, %p803_p10 }
  0x3e   : > { %p799_p5 = pneg %p798_p4 }
  0x40   : > { %p806_p0 = pnand %p805_p1, %p799_p5 }
  0x42   : > { %809 = shalt.err (!%p806_p0)
}
  0x43   : > { %685 = dma.hbm_to_vmem [thread:$0]  (!%p1034_p2), %s1361_s2, 16, %s1038_s4, [#allocation6]  }
  0x44   : > { %s32_s30 = sadd.s32 1, %s922_s16  ;;  %s170_s6 = sand.u32 1, %s914_s14  }
  0x45   : > { %p34_p6 = scmp.ge.s32.totalorder %s32_s30, 2  ;;  %s571_s7 = sshll.u32 %s170_s6, 7 }
  0x46   : > { %s586_s8 = sshll.u32 %s922_s16, 11  ;;  %s174_s4 = scalar_lea.vmem [#allocation2], %s571_s7 }
  0x47   : > { %s1390_s30 = smov (%p34_p6, %s32_s30), 0  ;;  %s1096_s10 = scalar_lea.hbm %s1359_s0, %s586_s8 }
  0x48   : > { %s36_s11 = ssub.s32 %s922_s16, %s1390_s30  ;;  %s184_s18 = sshll.u32 %s174_s4, 4  ;;  %s1100_s18 = int_to_ptr.vmem [resolvable:$true] %s184_s18 }
  0x49   : > { %p39_p2 = scmp.eq.s32.totalorder %s36_s11, 0  ;;  %s1107_s19 = scalar_lea.sflag [#allocation3], %s170_s6 }
  0x4a   : > { %s810_s22 = scalar_lea.hbm %s1096_s10, 2048  ;;  %p1377_p3 = scmp.ne.s32.totalorder %s1375_s29, 0 }
  0x4b   : > { %s1105_s28 = scalar_select %p39_p2, %s914_s14, %s41_s20  }
  0x4c   : > { %p811_p9 = scmp.ne.s32.totalorder %s1096_s10, %s810_s22  ;;  %p812_p7 = pneg %p1377_p3 }
  0x4d   : > { %s815_s7 = scalar_lea.hbm %s1359_s0, 4096  ;;  %p816_p13 = scmp.lt.u32.totalorder %s1096_s10, %s1359_s0 }
  0x4e   : > { %p813_p8 = pnand %p812_p7, %p811_p9  ;;  %p817_p4 = scmp.lt.u32.totalorder %s815_s7, %s810_s22 }
  0x4f   : > { %p819_p10 = scmp.lt.u32.totalorder %s810_s22, %s1096_s10 }
  0x50   : > { %p814_p12 = pneg %p813_p8  ;;  %p818_p5 = por %p817_p4, %p816_p13 }
  0x52   : > { %p820_p11 = por %p819_p10, %p818_p5 }
  0x54   : > { %p821_p1 = pnand %p820_p11, %p814_p12 }
  0x56   : > { %824 = shalt.err (!%p821_p1)
}
  0x57   : > { %s825_s20 = scalar_lea.vmem %s1100_s18, 2048  ;;  %s930_s6 = smov [#allocation2]  }
  0x58   : > { %p826_p0 = scmp.ne.s32.totalorder %s1100_s18, %s825_s20  ;;  %s830_s11 = sshll.u32 %s930_s6, 4  ;;  %s831_s11 = int_to_ptr.vmem [resolvable:$false] %s830_s11 }
  0x59   : > { %s832_s4 = scalar_lea.vmem %s831_s11, 4096  ;;  %p833_p9 = scmp.lt.s32.totalorder %s1100_s18, %s831_s11 }
  0x5a   : > { %p828_p6 = pnand %p826_p0, %p812_p7  ;;  %p834_p8 = scmp.lt.s32.totalorder %s832_s4, %s825_s20 }
  0x5c   : > { %p829_p2 = pneg %p828_p6  ;;  %p835_p13 = por %p834_p8, %p833_p9 }
  0x5e   : > { %p836_p4 = pnand %p835_p13, %p829_p2 }
  0x60   : > { %839 = shalt.err (!%p836_p4)
}
  0x61   : > { %s931_s22 = smov 64   ;;  %s932_s27 = smov 4  }
  0x62   : > { %689 = dma.hbm_to_vmem [thread:$0]  (!%p1377_p3), %s1096_s10, 2048, %s1100_s18, %s1107_s19, %s931_s22, %s931_s22, %s932_s27  }
  0x63   : > { %p1378_p7 = scmp.ne.s32.totalorder %s1374_s26, 0 }
  0x64   : > { %s1138_s8 = sand.u32 (!%p1378_p7), 1, %s910_s13   ;;  %p1379_p12 = scmp.ne.s32.totalorder (!%p1378_p7), %s1371_s23, 0 }
  0x65   : > { %196 = sbr.rel (%p1378_p7) target bundleno = 163 (0xa3), region = 32  ;;  %s575_s7 = sshll.u32 (!%p1378_p7), %s1138_s8, 7 }
  0x66   : > { %s199_s5 = scalar_lea.sflag (!%p1378_p7), [#allocation3], %s1138_s8  ;;  %s1142_s9 = scalar_lea.vmem (!%p1378_p7), [#allocation2], %s575_s7 }
  0x6c   : > { %893 = dma.done.wait (%p1379_p12), %s199_s5, 2048  }
  0x6d   : > { %895 = vsyncadd (%p1379_p12), %s199_s5, 4294965248  ;;  %p1380_p3 = scmp.ne.s32.totalorder %s1369_s21, 0 }
  0x6f   : > { %897 = dma.done.wait (%p1380_p3), [#allocation6], 32  }
  0x70   : > { %899 = vsyncadd (%p1380_p3), [#allocation6], 4294967264  ;;  %v1152_v0 = vld [vmem:[#allocation5] ss:$0 sm:$0xff]  ;;  %vm409_vm0 = vcmask 64512   ;;  %v652_v4 = vld [vmem:[%s1142_s9 + $0x8] sm:$0xff]  }
  0x71   : > { %v589_v1 = vld [vmem:[%s1142_s9] sm:$0xff]   ;;  %v653_v5 = vld [vmem:[%s1142_s9 + $0x10] sm:$0xff]   ;;  %v654_v6 = vld [vmem:[%s1142_s9 + $0x18] sm:$0xff]   ;;  %v594_v8 = vunpack.c.l.bf16 %v652_v4  ;;  %v595_v9 = vunpack.c.h.bf16 %v652_v4  ;;  %s578_s21 = sshll.u32 %s1138_s8, 8  ;;  %s587_s26 = sshll.u32 %s918_s15, 12 }
  0x72   : > { %v590_v2 = vunpack.c.l.bf16 %v589_v1  ;;  %v591_v3 = vunpack.c.h.bf16 %v589_v1  ;;  %v1158_v7 = vld [vmem:[#allocation7] ss:$0 sm:$0xff]  ;;  %v598_v10 = vunpack.c.l.bf16 %v653_v5  ;;  %v599_v11 = vunpack.c.h.bf16 %v653_v5  ;;  %v656_v33 = vld [vmem:[%s1142_s9 + $0x28] sm:$0xff]   ;;  %v657_v34 = vld [vmem:[%s1142_s9 + $0x30] sm:$0xff]   ;;  %s1181_s23 = scalar_lea.vmem [#allocation8], %s578_s21  ;;  %s1292_s18 = scalar_lea.hbm %s1362_s3, %s587_s26 }
  0x73   : > { %v602_v14 = vunpack.c.l.bf16 %v654_v6  ;;  %v603_v15 = vunpack.c.h.bf16 %v654_v6  ;;  %v309_v16 = vmul.f32 %v594_v8, %v1152_v0  ;;  %v310_v17 = vmul.f32 %v595_v9, %v1152_v0  ;;  %v655_v28 = vld [vmem:[%s1142_s9 + $0x20] sm:$0xff]   ;;  %v658_v39 = vld [vmem:[%s1142_s9 + $0x38] sm:$0xff]   ;;  %v660_v6 = vld [vmem:[%s1142_s9 + $0x48] sm:$0xff]   ;;  %s459_s29 = sshll.u32 %s1181_s23, 4  ;;  %s443_s19 = scalar_lea.sflag [#allocation4], %s1138_s8  ;;  %s1294_s29 = int_to_ptr.vmem [resolvable:$true] %s459_s29 }
  0x74   : > { %v307_v12 = vmul.f32 %v590_v2, %v1152_v0  ;;  %v308_v13 = vmul.f32 %v591_v3, %v1152_v0  ;;  %v311_v18 = vmul.f32 %v598_v10, %v1152_v0  ;;  %v312_v19 = vmul.f32 %v599_v11, %v1152_v0  ;;  %v659_v1 = vld [vmem:[%s1142_s9 + $0x40] sm:$0xff]   ;;  %v661_v8 = vld [vmem:[%s1142_s9 + $0x50] sm:$0xff]   ;;  %s840_s20 = scalar_lea.vmem %s1294_s29, 4096  ;;  %p1381_p10 = scmp.ne.s32.totalorder %s1372_s24, 0 }
  0x75   : > { %v313_v22 = vmul.f32 %v602_v14, %v1152_v0  ;;  %v314_v23 = vmul.f32 %v603_v15, %v1152_v0  ;;  %v347_v24 = vadd.f32 %v1158_v7, %v309_v16  ;;  %v348_v25 = vadd.f32 %v1158_v7, %v310_v17  ;;  %p841_p5 = scmp.ne.s32.totalorder %s1294_s29, %s840_s20  ;;  %s933_s6 = smov [#allocation8]  }
  0x76   : > { %v345_v20 = vadd.f32 %v1158_v7, %v307_v12  ;;  %v346_v21 = vadd.f32 %v1158_v7, %v308_v13  ;;  %v349_v26 = vadd.f32 %v1158_v7, %v311_v18  ;;  %v350_v27 = vadd.f32 %v1158_v7, %v312_v19  ;;  %v662_v13 = vld [vmem:[%s1142_s9 + $0x58] sm:$0xff]   ;;  %s844_s11 = sshll.u32 %s933_s6, 4  ;;  %s845_s11 = int_to_ptr.vmem [resolvable:$false] %s844_s11 }
  0x77   : > { %v351_v31 = vadd.f32 %v1158_v7, %v313_v22  ;;  %v352_v32 = vadd.f32 %v1158_v7, %v314_v23  ;;  %v379_v35 = vmax.f32 %v347_v24, 0.0  ;;  %v380_v36 = vmax.f32 %v348_v25, 0.0  ;;  %p842_p11 = pnand %p841_p5, %p1381_p10  ;;  %s846_s4 = scalar_lea.vmem %s845_s11, 8192 }
  0x78   : > { %v377_v29 = vmax.f32 %v345_v20, 0.0  ;;  %v378_v30 = vmax.f32 %v346_v21, 0.0  ;;  %v381_v37 = vmax.f32 %v349_v26, 0.0  ;;  %v382_v38 = vmax.f32 %v350_v27, 0.0  ;;  %p847_p0 = scmp.lt.s32.totalorder %s1294_s29, %s845_s11  ;;  %p848_p6 = scmp.lt.s32.totalorder %s846_s4, %s840_s20 }
  0x79   : > { %v383_v40 = vmax.f32 %v351_v31, 0.0  ;;  %v384_v41 = vmax.f32 %v352_v32, 0.0  ;;  %v606_v42 = vunpack.c.l.bf16 %v655_v28  ;;  %v607_v43 = vunpack.c.h.bf16 %v655_v28  ;;  %412 = vst.msk [vmem:[%s1181_s23 + $0x10] sm:$0xff] %vm409_vm0, %v379_v35  ;;  %413 = vst.msk [vmem:[%s1181_s23 + $0x18] sm:$0xff] %vm409_vm0, %v380_v36  ;;  %p843_p1 = pneg %p842_p11 }
  0x7a   : > { %410 = vst.msk [vmem:[%s1181_s23] sm:$0xff] %vm409_vm0, %v377_v29  ;;  %411 = vst.msk [vmem:[%s1181_s23 + $0x8] sm:$0xff] %vm409_vm0, %v378_v30  ;;  %v610_v44 = vunpack.c.l.bf16 %v656_v33  ;;  %v611_v45 = vunpack.c.h.bf16 %v656_v33  ;;  %v614_v46 = vunpack.c.l.bf16 %v657_v34  ;;  %v615_v47 = vunpack.c.h.bf16 %v657_v34  ;;  %p849_p2 = por %p848_p6, %p847_p0 }
  0x7b   : > { %414 = vst.msk [vmem:[%s1181_s23 + $0x20] sm:$0xff] %vm409_vm0, %v381_v37  ;;  %415 = vst.msk [vmem:[%s1181_s23 + $0x28] sm:$0xff] %vm409_vm0, %v382_v38  ;;  %v315_v48 = vmul.f32 %v606_v42, %v1152_v0  ;;  %v316_v49 = vmul.f32 %v607_v43, %v1152_v0  ;;  %v618_v50 = vunpack.c.l.bf16 %v658_v39  ;;  %v619_v51 = vunpack.c.h.bf16 %v658_v39  ;;  %v663_v38 = vld [vmem:[%s1142_s9 + $0x60] sm:$0xff]   ;;  %v664_v43 = vld [vmem:[%s1142_s9 + $0x68] sm:$0xff]  }
  0x7c   : > { %416 = vst.msk [vmem:[%s1181_s23 + $0x30] sm:$0xff] %vm409_vm0, %v383_v40  ;;  %417 = vst.msk [vmem:[%s1181_s23 + $0x38] sm:$0xff] %vm409_vm0, %v384_v41  ;;  %v317_v52 = vmul.f32 %v610_v44, %v1152_v0  ;;  %v318_v53 = vmul.f32 %v611_v45, %v1152_v0  ;;  %v319_v54 = vmul.f32 %v614_v46, %v1152_v0  ;;  %v622_v16 = vunpack.c.l.bf16 %v659_v1  ;;  %v665_v44 = vld [vmem:[%s1142_s9 + $0x70] sm:$0xff]   ;;  %p850_p9 = pnand %p849_p2, %p843_p1 }
  0x7d   : > { %v320_v55 = vmul.f32 %v615_v47, %v1152_v0  ;;  %v353_v56 = vadd.f32 %v1158_v7, %v315_v48  ;;  %v354_v57 = vadd.f32 %v1158_v7, %v316_v49  ;;  %v321_v58 = vmul.f32 %v618_v50, %v1152_v0  ;;  %v666_v49 = vld [vmem:[%s1142_s9 + $0x78] sm:$0xff]  }
  0x7e   : > { %v322_v59 = vmul.f32 %v619_v51, %v1152_v0  ;;  %v355_v60 = vadd.f32 %v1158_v7, %v317_v52  ;;  %v356_v61 = vadd.f32 %v1158_v7, %v318_v53  ;;  %v357_v62 = vadd.f32 %v1158_v7, %v319_v54 }
  0x7f   : > { %v358_v63 = vadd.f32 %v1158_v7, %v320_v55  ;;  %v385_v2 = vmax.f32 %v353_v56, 0.0  ;;  %v386_v3 = vmax.f32 %v354_v57, 0.0  ;;  %v359_v4 = vadd.f32 %v1158_v7, %v321_v58 }
  0x80   : > { %v360_v5 = vadd.f32 %v1158_v7, %v322_v59  ;;  %v387_v9 = vmax.f32 %v355_v60, 0.0  ;;  %v388_v10 = vmax.f32 %v356_v61, 0.0  ;;  %v389_v11 = vmax.f32 %v357_v62, 0.0 }
  0x81   : > { %v390_v12 = vmax.f32 %v358_v63, 0.0  ;;  %418 = vst.msk [vmem:[%s1181_s23 + $0x40] sm:$0xff] %vm409_vm0, %v385_v2  ;;  %419 = vst.msk [vmem:[%s1181_s23 + $0x48] sm:$0xff] %vm409_vm0, %v386_v3  ;;  %v391_v14 = vmax.f32 %v359_v4, 0.0  ;;  %v623_v17 = vunpack.c.h.bf16 %v659_v1  ;;  %v626_v18 = vunpack.c.l.bf16 %v660_v6 }
  0x82   : > { %v392_v15 = vmax.f32 %v360_v5, 0.0  ;;  %420 = vst.msk [vmem:[%s1181_s23 + $0x50] sm:$0xff] %vm409_vm0, %v387_v9  ;;  %421 = vst.msk [vmem:[%s1181_s23 + $0x58] sm:$0xff] %vm409_vm0, %v388_v10  ;;  %v627_v19 = vunpack.c.h.bf16 %v660_v6  ;;  %v630_v20 = vunpack.c.l.bf16 %v661_v8  ;;  %v631_v21 = vunpack.c.h.bf16 %v661_v8 }
  0x83   : > { %422 = vst.msk [vmem:[%s1181_s23 + $0x60] sm:$0xff] %vm409_vm0, %v389_v11  ;;  %423 = vst.msk [vmem:[%s1181_s23 + $0x68] sm:$0xff] %vm409_vm0, %v390_v12  ;;  %v323_v22 = vmul.f32 %v622_v16, %v1152_v0  ;;  %v324_v23 = vmul.f32 %v623_v17, %v1152_v0  ;;  %v634_v24 = vunpack.c.l.bf16 %v662_v13  ;;  %v635_v25 = vunpack.c.h.bf16 %v662_v13 }
  0x84   : > { %424 = vst.msk [vmem:[%s1181_s23 + $0x70] sm:$0xff] %vm409_vm0, %v391_v14  ;;  %425 = vst.msk [vmem:[%s1181_s23 + $0x78] sm:$0xff] %vm409_vm0, %v392_v15  ;;  %v325_v26 = vmul.f32 %v626_v18, %v1152_v0  ;;  %v326_v27 = vmul.f32 %v627_v19, %v1152_v0  ;;  %v327_v28 = vmul.f32 %v630_v20, %v1152_v0  ;;  %v638_v52 = vunpack.c.l.bf16 %v663_v38 }
  0x85   : > { %v328_v29 = vmul.f32 %v631_v21, %v1152_v0  ;;  %v361_v30 = vadd.f32 %v1158_v7, %v323_v22  ;;  %v362_v31 = vadd.f32 %v1158_v7, %v324_v23  ;;  %v329_v32 = vmul.f32 %v634_v24, %v1152_v0 }
  0x86   : > { %v330_v33 = vmul.f32 %v635_v25, %v1152_v0  ;;  %v363_v34 = vadd.f32 %v1158_v7, %v325_v26  ;;  %v364_v35 = vadd.f32 %v1158_v7, %v326_v27  ;;  %v365_v36 = vadd.f32 %v1158_v7, %v327_v28 }
  0x87   : > { %v366_v37 = vadd.f32 %v1158_v7, %v328_v29  ;;  %v393_v39 = vmax.f32 %v361_v30, 0.0  ;;  %v394_v40 = vmax.f32 %v362_v31, 0.0  ;;  %v367_v41 = vadd.f32 %v1158_v7, %v329_v32 }
  0x88   : > { %v368_v42 = vadd.f32 %v1158_v7, %v330_v33  ;;  %v395_v45 = vmax.f32 %v363_v34, 0.0  ;;  %v396_v46 = vmax.f32 %v364_v35, 0.0  ;;  %v397_v47 = vmax.f32 %v365_v36, 0.0 }
  0x89   : > { %v398_v48 = vmax.f32 %v366_v37, 0.0  ;;  %426 = vst.msk [vmem:[%s1181_s23 + $0x80] sm:$0xff] %vm409_vm0, %v393_v39  ;;  %427 = vst.msk [vmem:[%s1181_s23 + $0x88] sm:$0xff] %vm409_vm0, %v394_v40  ;;  %v399_v50 = vmax.f32 %v367_v41, 0.0  ;;  %v639_v53 = vunpack.c.h.bf16 %v663_v38  ;;  %v642_v54 = vunpack.c.l.bf16 %v664_v43 }
  0x8a   : > { %v400_v51 = vmax.f32 %v368_v42, 0.0  ;;  %428 = vst.msk [vmem:[%s1181_s23 + $0x90] sm:$0xff] %vm409_vm0, %v395_v45  ;;  %429 = vst.msk [vmem:[%s1181_s23 + $0x98] sm:$0xff] %vm409_vm0, %v396_v46  ;;  %v643_v55 = vunpack.c.h.bf16 %v664_v43  ;;  %v646_v56 = vunpack.c.l.bf16 %v665_v44  ;;  %v647_v57 = vunpack.c.h.bf16 %v665_v44 }
  0x8b   : > { %430 = vst.msk [vmem:[%s1181_s23 + $0xa0] sm:$0xff] %vm409_vm0, %v397_v47  ;;  %431 = vst.msk [vmem:[%s1181_s23 + $0xa8] sm:$0xff] %vm409_vm0, %v398_v48  ;;  %v331_v58 = vmul.f32 %v638_v52, %v1152_v0  ;;  %v332_v59 = vmul.f32 %v639_v53, %v1152_v0  ;;  %v650_v60 = vunpack.c.l.bf16 %v666_v49  ;;  %v651_v61 = vunpack.c.h.bf16 %v666_v49 }
  0x8c   : > { %432 = vst.msk [vmem:[%s1181_s23 + $0xb0] sm:$0xff] %vm409_vm0, %v399_v50  ;;  %433 = vst.msk [vmem:[%s1181_s23 + $0xb8] sm:$0xff] %vm409_vm0, %v400_v51  ;;  %v333_v62 = vmul.f32 %v642_v54, %v1152_v0  ;;  %v334_v63 = vmul.f32 %v643_v55, %v1152_v0  ;;  %v335_v1 = vmul.f32 %v646_v56, %v1152_v0 }
  0x8d   : > { %v336_v2 = vmul.f32 %v647_v57, %v1152_v0  ;;  %v369_v3 = vadd.f32 %v1158_v7, %v331_v58  ;;  %v370_v4 = vadd.f32 %v1158_v7, %v332_v59  ;;  %v337_v5 = vmul.f32 %v650_v60, %v1152_v0 }
  0x8e   : > { %v338_v6 = vmul.f32 %v651_v61, %v1152_v0  ;;  %v371_v8 = vadd.f32 %v1158_v7, %v333_v62  ;;  %v372_v9 = vadd.f32 %v1158_v7, %v334_v63  ;;  %v373_v10 = vadd.f32 %v1158_v7, %v335_v1 }
  0x8f   : > { %v374_v11 = vadd.f32 %v1158_v7, %v336_v2  ;;  %v401_v12 = vmax.f32 %v369_v3, 0.0  ;;  %v402_v13 = vmax.f32 %v370_v4, 0.0  ;;  %v375_v0 = vadd.f32 %v1158_v7, %v337_v5 }
  0x90   : > { %v376_v14 = vadd.f32 %v1158_v7, %v338_v6  ;;  %v403_v15 = vmax.f32 %v371_v8, 0.0  ;;  %v404_v16 = vmax.f32 %v372_v9, 0.0  ;;  %v405_v17 = vmax.f32 %v373_v10, 0.0 }
  0x91   : > { %v406_v18 = vmax.f32 %v374_v11, 0.0  ;;  %434 = vst.msk [vmem:[%s1181_s23 + $0xc0] sm:$0xff] %vm409_vm0, %v401_v12  ;;  %435 = vst.msk [vmem:[%s1181_s23 + $0xc8] sm:$0xff] %vm409_vm0, %v402_v13  ;;  %v407_v7 = vmax.f32 %v375_v0, 0.0 }
  0x92   : > { %v408_v19 = vmax.f32 %v376_v14, 0.0  ;;  %436 = vst.msk [vmem:[%s1181_s23 + $0xd0] sm:$0xff] %vm409_vm0, %v403_v15  ;;  %437 = vst.msk [vmem:[%s1181_s23 + $0xd8] sm:$0xff] %vm409_vm0, %v404_v16 }
  0x93   : > { %438 = vst.msk [vmem:[%s1181_s23 + $0xe0] sm:$0xff] %vm409_vm0, %v405_v17  ;;  %439 = vst.msk [vmem:[%s1181_s23 + $0xe8] sm:$0xff] %vm409_vm0, %v406_v18 }
  0x94   : > { %440 = vst.msk [vmem:[%s1181_s23 + $0xf0] sm:$0xff] %vm409_vm0, %v407_v7  ;;  %441 = vst.msk [vmem:[%s1181_s23 + $0xf8] sm:$0xff] %vm409_vm0, %v408_v19 }
  0x95   : > { %853 = shalt.err (!%p850_p9)
}
  0x96   : > { %s854_s22 = scalar_lea.hbm %s1292_s18, 4096  ;;  %s858_s5 = scalar_lea.hbm %s1362_s3, 8192 }
  0x97   : > { %p855_p8 = scmp.ne.s32.totalorder %s1292_s18, %s854_s22  ;;  %p859_p7 = scmp.lt.u32.totalorder %s1292_s18, %s1362_s3 }
  0x98   : > { %p860_p12 = scmp.lt.u32.totalorder %s858_s5, %s854_s22  ;;  %p862_p5 = scmp.lt.u32.totalorder %s854_s22, %s1292_s18 }
  0x99   : > { %p856_p13 = pnand %p855_p8, %p1381_p10 }
  0x9a   : > { %p861_p3 = por %p860_p12, %p859_p7 }
  0x9b   : > { %p857_p4 = pneg %p856_p13 }
  0x9c   : > { %p863_p11 = por %p862_p5, %p861_p3 }
  0x9e   : > { %p864_p1 = pnand %p863_p11, %p857_p4 }
  0xa0   : > { %867 = shalt.err (!%p864_p1)
}
  0xa1   : > { %s934_s23 = smov 128   ;;  %s935_s26 = smov 8  }
  0xa2   : > { %677 = dma.vmem_to_hbm [thread:$0]  (%p1381_p10), %s1294_s29, 4096, %s1292_s18, %s443_s19, %s934_s23, %s934_s23, %s935_s26  }
  0xa3 PF: > { %s474_s15 = sand.u32 1, %s906_s12   ;;  %p1382_p0 = scmp.ne.s32.totalorder %s1373_s25, 0 }
  0xa4   : > { %p1383_p6 = scmp.ge.s32.totalorder %s926_s17, 2  ;;  %s475_s10 = scalar_lea.sflag [#allocation4], %s474_s15 }
  0xa6   : > { %p691_p2 = pnand %p1383_p6, %p1382_p0 }
  0xa8   : > { %901 = dma.done.wait (!%p691_p2), %s475_s10, 4096  }
  0xa9   : > { %903 = vsyncadd (!%p691_p2), %s475_s10, 4294963200  ;;  %s20_s17 = sadd.s32 1, %s926_s17   ;;  %s1384_s12 = smov %s910_s13 }
  0xaa   : > { %p17_p9 = scmp.ge.s32.totalorder %s20_s17, 4   ;;  %s1385_s13 = smov %s914_s14 }
  0xab   : > { %s1386_s14 = smov %s1105_s28  ;;  %s1387_s15 = smov %s922_s16 }
  0xac   : > { %s1388_s16 = smov %s1390_s30  ;;  %19 = sbr.rel (!%p17_p9) target bundleno = 7 (0x7), region = 85 }
  0xb3   :  { %480 = vsyncpa [#allocation3], 1 }
  0xb4   :  { %482 = vsyncpa [#allocation3 + $0x1], 1 }
  0xb5   :  { %483 = vsyncpa [#allocation6], 1 }
  0xb6   :  { %484 = vsyncpa [#allocation4], 1 }
  0xb7   :  { %486 = vsyncpa [#allocation4 + $0x1], 1 }

// kernel: double_conv_forward.4
= control target key start
LH: loop header
LB: loop body
LE: loop exit
PB: predicated region body
PF: predicated region fallthrough
CT: control target
= control target key end

     0   :  { %s6688_s0 = inlined_call_operand.hbm [shape: bf16[2,16,16,128], index: 0, kind: input, shape index: {}, may-alias: {0,1,2}]   ;;  %s6689_s1 = inlined_call_operand.hbm [shape: bf16[2,16,16,128], index: 1, kind: input, shape index: {}, may-alias: {0,1,2}]   ;;  %s6690_s2 = inlined_call_operand.hbm [shape: bf16[2,16,16,128], index: 2, kind: input, shape index: {}, may-alias: {0,1,2}]   ;;  %s6691_s3 = inlined_call_operand.hbm [shape: bf16[3,384,128], index: 3, kind: input, shape index: {}]   ;;  %s6692_s4 = inlined_call_operand.hbm [shape: f32[1,128], index: 4, kind: input, shape index: {}]   ;;  %s6693_s5 = inlined_call_operand.hbm [shape: f32[1,128], index: 5, kind: input, shape index: {}]   ;;  %s6694_s6 = inlined_call_operand.hbm [shape: f32[1,128], index: 6, kind: input, shape index: {}]   ;;  %s6695_s7 = inlined_call_operand.hbm [shape: bf16[2,16,16,128], index: 7, kind: output, shape index: {0}]   ;;  %s6696_s8 = inlined_call_operand.hbm [shape: f32[2,1,2,128], index: 8, kind: output, shape index: {1}]  }
   0x1   :  { %6735 = sst [smem:[#allocation33_spill]] %s6689_s1 }
   0x2   :  { %6736 = sst [smem:[#allocation34_spill]] %s6691_s3 }
   0x3   :  { %6737 = sst [smem:[#allocation35_spill]] %s6693_s5 }
   0x4   :  { %6738 = sst [smem:[#allocation36_spill]] %s6695_s7 }
   0x5   :  { %6739 = sst [smem:[#allocation37_spill]] %s6696_s8 }
   0x6   :  { %14 = vsyncpa [#allocation4], 0 }
   0x7   :  { %16 = vsyncpa [#allocation4 + $0x1], 0 }
   0x8   :  { %17 = vsyncpa [#allocation7], 0 }
   0x9   :  { %19 = vsyncpa [#allocation7 + $0x1], 0 }
   0xa   :  { %20 = vsyncpa [#allocation10], 0 }
   0xb   :  { %21 = vsyncpa [#allocation13], 0 }
   0xc   :  { %22 = vsyncpa [#allocation5], 0 }
   0xd   :  { %24 = vsyncpa [#allocation5 + $0x1], 0 }
   0xe   :  { %25 = vsyncpa [#allocation17], 0 }
   0xf   :  { %27 = vsyncpa [#allocation17 + $0x1], 0  ;;  %s5136_s27 = smov 0   ;;  %s5138_s28 = smov 0  }
  0x10   :  { %s5140_s29 = smov 0   ;;  %s5142_s30 = smov 0  }
  0x11   :  { %s5144_s9 = smov 0   ;;  %s5146_s10 = smov 0  }
  0x12 LB: > { %6740 = sst [smem:[#allocation24_spill]] %s5055_s27  ;;  %s5167_s11 = sadd.s32 4294967295, %s5075_s10   ;;  %s5075_s10 = sphi %s5146_s10, %s33_s10   ;;  %s5071_s9 = sphi %s5144_s9, %s6809_s9   ;;  %s5067_s30 = sphi %s5142_s30, %s6805_s30   ;;  %s5063_s29 = sphi %s5140_s29, %s6804_s29   ;;  %s5059_s28 = sphi %s5138_s28, %s6808_s28   ;;  %s5055_s27 = sphi %s5136_s27, %s6807_s27  }
  0x13   : > { %6741 = sst [smem:[#allocation25_spill]] %s5063_s29  ;;  %s3467_s12 = sadd.s32 4294967294, %s5075_s10  }
  0x14   : > { %6742 = sst [smem:[#allocation26_spill]] %s5071_s9  ;;  %p67_p0 = scmp.ne.s32.totalorder %s5059_s28, %s5055_s27 }
  0x15   : > { %6743 = sst [smem:[#allocation27_spill]] %s5075_s10  ;;  %p6697_p1 = scmp.eq.s32.totalorder %s5167_s11, 0 }
  0x16   : > { %p255_p3 = scmp.eq.s32.totalorder %s3467_s12, 1  ;;  %p3468_p5 = scmp.ge.s32.totalorder %s5075_s10, 1 }
  0x17   : > { %p5176_p4 = por %p6697_p1, %p67_p0  ;;  %p290_p7 = scmp.lt.s32.totalorder %s5075_s10, 3 }
  0x18   : > { %p5181_p6 = por %p255_p3, %p67_p0  ;;  %s5077_s16 = smov [#allocation9]  }
  0x19   : > { %s6744_s13 = scalar_select %p5176_p4, 1, 0 }
  0x1a   : > { %s6745_s14 = scalar_select %p5181_p6, 1, 0 }
  0x1b   : > { %p5186_p8 = pnand %p3468_p5, %p290_p7  ;;  %s302_s17 = sshll.u32 %s5077_s16, 4  ;;  %s5190_s17 = int_to_ptr.vmem [resolvable:$true] %s302_s17 }
  0x1c   : > { %6746 = sst [smem:[#allocation28_spill]] %s6745_s14  ;;  %s5078_s19 = smov [#allocation12]  }
  0x1d   : > { %s6747_s15 = scalar_select %p5186_p8, 1, 0 }
  0x1e   : > { %p4573_p9 = pneg %p5186_p8  ;;  %s327_s20 = sshll.u32 %s5078_s19, 4  ;;  %s5201_s20 = int_to_ptr.vmem [resolvable:$true] %s327_s20 }
  0x1f   : > { %s6749_s3 = sld [smem:[#allocation34_spill]] }
  0x20   : > { %p5197_p11 = pnand %p4573_p9, %p6697_p1 }
  0x22   : > { %s6748_s18 = scalar_select %p5197_p11, 1, 0 }
  0x23   : > { %p5211_p13 = pneg %p5197_p11 }
  0x25   : > { %s4747_s23 = scalar_lea.hbm %s6749_s3, 9216 }
  0x26   : > { %p4748_p12 = scmp.ne.s32.totalorder %s6749_s3, %s4747_s23  ;;  %p4754_p5 = scmp.lt.u32.totalorder %s4747_s23, %s6749_s3 }
  0x27   : > { %s6750_s26 = scalar_select %p5211_p13, 1, 0 }
  0x28   : > { %p4750_p0 = pnand %p5211_p13, %p4748_p12 }
  0x2a   : > { %p4751_p3 = pneg %p4750_p0 }
  0x2c   : > { %p4756_p7 = pnand %p4754_p5, %p4751_p3 }
  0x2e   : > { %4759 = shalt.err (!%p4756_p7)
}
  0x2f   : > { %s4760_s19 = scalar_lea.vmem %s5190_s17, 9216  ;;  %p4768_p2 = scmp.lt.s32.totalorder %s5190_s17, %s5190_s17 }
  0x30   : > { %p4761_p9 = scmp.ne.s32.totalorder %s5190_s17, %s4760_s19  ;;  %p4769_p6 = scmp.lt.s32.totalorder %s4760_s19, %s4760_s19 }
  0x32   : > { %p4763_p10 = pnand %p4761_p9, %p5211_p13  ;;  %p4770_p12 = por %p4769_p6, %p4768_p2 }
  0x34   : > { %p4764_p1 = pneg %p4763_p10 }
  0x36   : > { %p4771_p0 = pnand %p4770_p12, %p4764_p1 }
  0x38   : > { %4774 = shalt.err (!%p4771_p0)
}
  0x39   : > { %s6701_s21 = smov 64   ;;  %s6703_s22 = smov 4  }
  0x3a   : > { %4576 = dma.hbm_to_vmem [thread:$0]  (!%p5197_p11), %s6749_s3, 9216, %s5190_s17, [#allocation10], %s6701_s21, %s6701_s21, %s6703_s22  }
  0x3b   : > { %s6751_s5 = sld [smem:[#allocation35_spill]] }
  0x41   : > { %s4775_s16 = scalar_lea.hbm %s6751_s5, 16 }
  0x42   : > { %p4776_p1 = scmp.ne.s32.totalorder %s6751_s5, %s4775_s16  ;;  %p4782_p10 = scmp.lt.u32.totalorder %s4775_s16, %s6751_s5 }
  0x44   : > { %p4778_p2 = pnand %p4776_p1, %p5211_p13 }
  0x46   : > { %p4779_p6 = pneg %p4778_p2 }
  0x48   : > { %p4784_p3 = pnand %p4782_p10, %p4779_p6 }
  0x4a   : > { %4787 = shalt.err (!%p4784_p3)
}
  0x4b   : > { %s4788_s17 = scalar_lea.vmem %s5201_s20, 16  ;;  %s4795_s14 = scalar_lea.vmem %s5201_s20, 32 }
  0x4c   : > { %p4789_p5 = scmp.ne.s32.totalorder %s5201_s20, %s4788_s17  ;;  %p4796_p12 = scmp.lt.s32.totalorder %s5201_s20, %s5201_s20 }
  0x4d   : > { %p4797_p0 = scmp.lt.s32.totalorder %s4795_s14, %s4788_s17 }
  0x4e   : > { %p4791_p7 = pnand %p4789_p5, %p5211_p13 }
  0x4f   : > { %p4798_p1 = por %p4797_p0, %p4796_p12 }
  0x50   : > { %p4792_p9 = pneg %p4791_p7 }
  0x52   : > { %p4799_p2 = pnand %p4798_p1, %p4792_p9 }
  0x54   : > { %4802 = shalt.err (!%p4799_p2)
}
  0x55   : > { %4582 = dma.hbm_to_vmem [thread:$0]  (!%p5197_p11), %s6751_s5, 16, %s5201_s20, [#allocation13]  }
  0x56   : > { %s45_s23 = sadd.s32 1, %s5071_s9  ;;  %s54_s24 = sadd.s32 1, %s5063_s29 }
  0x57   : > { %p47_p6 = scmp.ge.s32.totalorder %s45_s23, 2  ;;  %p61_p10 = scmp.ne.s32.totalorder %s5063_s29, %s5059_s28 }
  0x58   : > { %p62_p3 = scmp.eq.s32.totalorder %s5075_s10, 0  ;;  %p4607_p5 = scmp.lt.s32.totalorder %s5075_s10, 2 }
  0x59   : > { %s6811_s23 = smov (%p47_p6, %s45_s23), 0  ;;  %p6753_p9 = scmp.eq.s32.totalorder %s5167_s11, 1 }
  0x5a   : > { %6752 = sst [smem:[#allocation29_spill]] %s6811_s23  ;;  %p63_p7 = por %p62_p3, %p61_p10 }
  0x5b   : > { %p5269_p12 = por %p6753_p9, %p61_p10  ;;  %s49_s12 = ssub.s32 %s5071_s9, %s6811_s23 }
  0x5c   : > { %s5276_s16 = sand.u32 1, %s5063_s29   ;;  %p52_p0 = scmp.eq.s32.totalorder %s49_s12, 0 }
  0x5d   : > { %s6754_s25 = scalar_select %p5269_p12, 1, 0 }
  0x5e   : > { %s5279_s20 = sshll.u32 %s5071_s9, 11  ;;  %p5281_p1 = pnand %p4607_p5, %p63_p7 }
  0x5f   : > { %6755 = sst [smem:[#allocation30_spill]] %s6754_s25  ;;  %s373_s17 = sand.u32 1, %s5075_s10  }
  0x60   : > { %s6756_s19 = scalar_select %p5281_p1, 1, 0 }
  0x61   : > { %s5287_s14 = scalar_select %p52_p0, %s5063_s29, %s54_s24  }
  0x62   : > { %s3477_s8 = sshll.u32 %s5276_s16, 3  ;;  %s6758_s1 = sld [smem:[#allocation33_spill]] }
  0x63   : > { %6757 = sst [smem:[#allocation31_spill]] %s5287_s14  ;;  %s377_s12 = scalar_lea.vmem [#allocation6], %s3477_s8 }
  0x64   : > { %s390_s3 = sshll.u32 %s377_s12, 4  ;;  %s404_s5 = scalar_lea.vmem [#allocation8], %s3477_s8  ;;  %s5296_s3 = int_to_ptr.vmem [resolvable:$true] %s390_s3 }
  0x65   : > { %s417_s23 = sshll.u32 %s404_s5, 4  ;;  %s5300_s24 = scalar_lea.sflag [#allocation7], %s373_s17  ;;  %s5298_s23 = int_to_ptr.vmem [resolvable:$true] %s417_s23 }
  0x66   : > { %p5306_p6 = pneg %p5281_p1 }
  0x68   : > { %s5294_s22 = scalar_lea.hbm %s6758_s1, %s5279_s20  ;;  %s4808_s5 = scalar_lea.hbm %s6758_s1, 4096 }
  0x69   : > { %s4803_s9 = scalar_lea.hbm %s5294_s22, 128  ;;  %p4809_p5 = scmp.lt.u32.totalorder %s5294_s22, %s6758_s1 }
  0x6a   : > { %p4804_p2 = scmp.ne.s32.totalorder %s5294_s22, %s4803_s9  ;;  %p4810_p7 = scmp.lt.u32.totalorder %s4808_s5, %s4803_s9 }
  0x6b   : > { %p4812_p0 = scmp.lt.u32.totalorder %s4803_s9, %s5294_s22 }
  0x6c   : > { %p4806_p10 = pnand %p5306_p6, %p4804_p2  ;;  %p4811_p9 = por %p4810_p7, %p4809_p5 }
  0x6e   : > { %p4807_p3 = pneg %p4806_p10  ;;  %p4813_p12 = por %p4812_p0, %p4811_p9 }
  0x70   : > { %p4814_p4 = pnand %p4813_p12, %p4807_p3 }
  0x72   : > { %4817 = shalt.err (!%p4814_p4)
}
  0x73   : > { %s4818_s17 = scalar_lea.vmem %s5296_s3, 128  ;;  %s5081_s27 = smov [#allocation6]  }
  0x74   : > { %p4819_p2 = scmp.ne.s32.totalorder %s5296_s3, %s4818_s17  ;;  %s4823_s8 = sshll.u32 %s5081_s27, 4  ;;  %s4824_s8 = int_to_ptr.vmem [resolvable:$false] %s4823_s8 }
  0x75   : > { %s4825_s14 = scalar_lea.vmem %s4824_s8, 256  ;;  %p4826_p11 = scmp.lt.s32.totalorder %s5296_s3, %s4824_s8 }
  0x76   : > { %p4821_p10 = pnand %p4819_p2, %p5306_p6  ;;  %p4827_p13 = scmp.lt.s32.totalorder %s4825_s14, %s4818_s17 }
  0x78   : > { %p4822_p8 = pneg %p4821_p10  ;;  %p4828_p5 = por %p4827_p13, %p4826_p11 }
  0x7a   : > { %p4829_p7 = pnand %p4828_p5, %p4822_p8 }
  0x7c   : > { %4832 = shalt.err (!%p4829_p7)
}
  0x7d   : > { %s6760_s9 = smov 4   ;;  %s6761_s5 = smov 64  }
  0x7e   : > { %4592 = dma.hbm_to_vmem [thread:$0]  (!%p5281_p1), %s5294_s22, 128, %s5296_s3, %s5300_s24, %s6761_s5, %s6761_s5, %s6760_s9  }
  0x7f   : > { %s5082_s12 = smov [#allocation11]   ;;  %s5083_s27 = smov [#allocation14]  }
  0x80   : > { %s316_s1 = sshll.u32 %s5082_s12, 4  ;;  %s338_s29 = sshll.u32 %s5083_s27, 4  ;;  %s317_s1 = int_to_ptr.vmem [resolvable:$true] %s316_s1  ;;  %s5333_s29 = int_to_ptr.vmem [resolvable:$true] %s338_s29 }
  0x81   : > { %s4833_s14 = scalar_lea.hbm %s6692_s4, 16  ;;  %p6762_p8 = scmp.ne.s32.totalorder %s6750_s26, 0 }
  0x82   : > { %p4834_p4 = scmp.ne.s32.totalorder %s6692_s4, %s4833_s14  ;;  %p4840_p12 = scmp.lt.u32.totalorder %s4833_s14, %s6692_s4 }
  0x84   : > { %p4836_p11 = pnand %p4834_p4, %p6762_p8 }
  0x86   : > { %p4837_p13 = pneg %p4836_p11 }
  0x88   : > { %p4842_p3 = pnand %p4840_p12, %p4837_p13 }
  0x8a   : > { %4845 = shalt.err (!%p4842_p3)
}
  0x8b   : > { %s4846_s22 = scalar_lea.vmem %s317_s1, 16  ;;  %s4853_s12 = scalar_lea.vmem %s317_s1, 32 }
  0x8c   : > { %p4847_p9 = scmp.ne.s32.totalorder %s317_s1, %s4846_s22  ;;  %p4854_p10 = scmp.lt.s32.totalorder %s317_s1, %s317_s1 }
  0x8d   : > { %p4855_p5 = scmp.lt.s32.totalorder %s4853_s12, %s4846_s22 }
  0x8e   : > { %p4849_p0 = pnand %p4847_p9, %p6762_p8 }
  0x8f   : > { %p4856_p7 = por %p4855_p5, %p4854_p10 }
  0x90   : > { %p4850_p2 = pneg %p4849_p0 }
  0x92   : > { %p4857_p1 = pnand %p4856_p7, %p4850_p2 }
  0x94   : > { %4860 = shalt.err (!%p4857_p1)
}
  0x95   : > { %p6763_p4 = scmp.ne.s32.totalorder %s6748_s18, 0  ;;  %s4861_s17 = scalar_lea.hbm %s6694_s6, 16 }
  0x96   : > { %p4862_p11 = scmp.ne.s32.totalorder %s6694_s6, %s4861_s17  ;;  %p4868_p1 = scmp.lt.u32.totalorder %s4861_s17, %s6694_s6 }
  0x97   : > { %4579 = dma.hbm_to_vmem [thread:$0]  (!%p6763_p4), %s6692_s4, 16, %s317_s1, [#allocation10]  }
  0x98   : > { %p4864_p13 = pnand %p4862_p11, %p6762_p8 }
  0x9a   : > { %p4865_p12 = pneg %p4864_p13 }
  0x9c   : > { %p4870_p3 = pnand %p4868_p1, %p4865_p12 }
  0x9e   : > { %4873 = shalt.err (!%p4870_p3)
}
  0x9f   : > { %s4874_s1 = scalar_lea.vmem %s5333_s29, 16  ;;  %s4881_s12 = scalar_lea.vmem %s5333_s29, 32 }
  0xa0   : > { %p4875_p9 = scmp.ne.s32.totalorder %s5333_s29, %s4874_s1  ;;  %p4882_p10 = scmp.lt.s32.totalorder %s5333_s29, %s5333_s29 }
  0xa1   : > { %p4883_p5 = scmp.lt.s32.totalorder %s4881_s12, %s4874_s1 }
  0xa2   : > { %p4877_p0 = pnand %p4875_p9, %p6762_p8 }
  0xa3   : > { %p4884_p7 = por %p4883_p5, %p4882_p10 }
  0xa4   : > { %p4878_p2 = pneg %p4877_p0 }
  0xa6   : > { %p4885_p11 = pnand %p4884_p7, %p4878_p2 }
  0xa8   : > { %4888 = shalt.err (!%p4885_p11)
}
  0xa9   : > { %4585 = dma.hbm_to_vmem [thread:$0]  (!%p6763_p4), %s6694_s6, 16, %s5333_s29, [#allocation13]  }
  0xaa   : > { %s3474_s26 = sshll.u32 %s5276_s16, 7  ;;  %s5382_s17 = scalar_lea.hbm %s6688_s0, %s5279_s20 }
  0xab   : > { %s353_s18 = scalar_lea.vmem [#allocation3], %s3474_s26  ;;  %s3610_s14 = sadd.s32 1920, %s5279_s20 }
  0xac   : > { %s363_s8 = sshll.u32 %s353_s18, 4  ;;  %s5390_s1 = scalar_lea.hbm %s6690_s2, %s3610_s14  ;;  %s5385_s8 = int_to_ptr.vmem [resolvable:$true] %s363_s8 }
  0xad   : > { %s350_s29 = scalar_lea.sflag [#allocation4], %s5276_s16  ;;  %s4889_s12 = scalar_lea.hbm %s5382_s17, 2048 }
  0xae   : > { %p4890_p8 = scmp.ne.s32.totalorder %s5382_s17, %s4889_s12  ;;  %s4894_s25 = scalar_lea.hbm %s6688_s0, 4096 }
  0xaf   : > { %p4895_p12 = scmp.lt.u32.totalorder %s5382_s17, %s6688_s0  ;;  %p4896_p1 = scmp.lt.u32.totalorder %s4894_s25, %s4889_s12 }
  0xb0   : > { %p4892_p4 = pnand %p4890_p8, %p5306_p6  ;;  %p4898_p9 = scmp.lt.u32.totalorder %s4889_s12, %s5382_s17 }
  0xb1   : > { %p4897_p3 = por %p4896_p1, %p4895_p12 }
  0xb2   : > { %p4893_p13 = pneg %p4892_p4 }
  0xb3   : > { %p4899_p0 = por %p4898_p9, %p4897_p3 }
  0xb5   : > { %p4900_p2 = pnand %p4899_p0, %p4893_p13 }
  0xb7   : > { %4903 = shalt.err (!%p4900_p2)
}
  0xb8   : > { %s4904_s20 = scalar_lea.vmem %s5385_s8, 2048  ;;  %s5084_s18 = smov [#allocation3]  }
  0xb9   : > { %p4905_p10 = scmp.ne.s32.totalorder %s5385_s8, %s4904_s20  ;;  %s4909_s14 = sshll.u32 %s5084_s18, 4  ;;  %s4910_s14 = int_to_ptr.vmem [resolvable:$false] %s4909_s14 }
  0xba   : > { %s4911_s3 = scalar_lea.vmem %s4910_s14, 4096  ;;  %p4912_p11 = scmp.lt.s32.totalorder %s5385_s8, %s4910_s14 }
  0xbb   : > { %p4907_p5 = pnand %p4905_p10, %p5306_p6  ;;  %p4913_p8 = scmp.lt.s32.totalorder %s4911_s3, %s4904_s20 }
  0xbd   : > { %p4908_p7 = pneg %p4907_p5  ;;  %p4914_p4 = por %p4913_p8, %p4912_p11 }
  0xbf   : > { %p4915_p12 = pnand %p4914_p4, %p4908_p7 }
  0xc1   : > { %4918 = shalt.err (!%p4915_p12)
}
  0xc2   : > { %p6764_p13 = scmp.ne.s32.totalorder %s6756_s19, 0  ;;  %s4919_s22 = scalar_lea.hbm %s5390_s1, 128 }
  0xc3   : > { %p4920_p1 = scmp.ne.s32.totalorder %s5390_s1, %s4919_s22  ;;  %s4924_s10 = scalar_lea.hbm %s6690_s2, 4096 }
  0xc4   : > { %4589 = dma.hbm_to_vmem [thread:$0]  (!%p6764_p13), %s5382_s17, 2048, %s5385_s8, %s350_s29, %s6761_s5, %s6761_s5, %s6760_s9  }
  0xc5   : > { %p4922_p3 = pnand %p4920_p1, %p5306_p6  ;;  %p4925_p0 = scmp.lt.u32.totalorder %s5390_s1, %s6690_s2 }
  0xc6   : > { %p4926_p2 = scmp.lt.u32.totalorder %s4924_s10, %s4919_s22  ;;  %p4928_p5 = scmp.lt.u32.totalorder %s4919_s22, %s5390_s1 }
  0xc7   : > { %p4923_p9 = pneg %p4922_p3 }
  0xc8   : > { %p4927_p10 = por %p4926_p2, %p4925_p0 }
  0xca   : > { %p4929_p7 = por %p4928_p5, %p4927_p10 }
  0xcc   : > { %p4930_p11 = pnand %p4929_p7, %p4923_p9 }
  0xce   : > { %4933 = shalt.err (!%p4930_p11)
}
  0xcf   : > { %s4934_s16 = scalar_lea.vmem %s5298_s23, 128  ;;  %s5085_s17 = smov [#allocation8]  }
  0xd0   : > { %p4935_p8 = scmp.ne.s32.totalorder %s5298_s23, %s4934_s16  ;;  %s4939_s8 = sshll.u32 %s5085_s17, 4  ;;  %s4940_s8 = int_to_ptr.vmem [resolvable:$false] %s4939_s8 }
  0xd1   : > { %s4941_s29 = scalar_lea.vmem %s4940_s8, 256  ;;  %p4942_p1 = scmp.lt.s32.totalorder %s5298_s23, %s4940_s8 }
  0xd2   : > { %p4937_p4 = pnand %p4935_p8, %p5306_p6  ;;  %p4943_p3 = scmp.lt.s32.totalorder %s4941_s29, %s4934_s16 }
  0xd4   : > { %p4938_p12 = pneg %p4937_p4  ;;  %p4944_p0 = por %p4943_p3, %p4942_p1 }
  0xd6   : > { %p4945_p2 = pnand %p4944_p0, %p4938_p12 }
  0xd8   : > { %4948 = shalt.err (!%p4945_p2)
}
  0xd9   : > { %4595 = dma.hbm_to_vmem [thread:$0]  (!%p6764_p13), %s5390_s1, 128, %s5298_s23, %s5300_s24, %s6761_s5, %s6761_s5, %s6760_s9  }
  0xda   : > { %p6765_p6 = scmp.ne.s32.totalorder %s6747_s15, 0 }
  0xdc   : > { %429 = sbr.rel (%p6765_p6) target bundleno = 833 (0x341), region = 48 }
  0xe3   : > { %s5447_s21 = sand.u32 1, %s5059_s28   ;;  %p6766_p9 = scmp.ne.s32.totalorder %s6744_s13, 0 }
  0xe4   : > { %s3484_s27 = sshll.u32 %s5447_s21, 7  ;;  %s432_s20 = scalar_lea.sflag [#allocation4], %s5447_s21 }
  0xe5   : > { %s5453_s19 = scalar_lea.vmem [#allocation3], %s3484_s27 }
  0xe6   : > { %5030 = dma.done.wait (%p6766_p9), %s432_s20, 2048  }
  0xe7   : > { %5032 = vsyncadd (%p6766_p9), %s432_s20, 4294965248  ;;  %s440_s15 = sand.u32 1, %s5167_s11  }
  0xe8   : > { %s441_s23 = scalar_lea.sflag [#allocation7], %s440_s15 }
  0xe9   : > { %5034 = dma.done.wait (%p6766_p9), %s441_s23, 256  }
  0xea   : > { %5036 = vsyncadd (%p6766_p9), %s441_s23, 4294967040  ;;  %p6767_p13 = scmp.eq.s32.totalorder %s5167_s11, 0 }
  0xec   : > { %5038 = dma.done.wait (%p6767_p13), [#allocation10], 9232   ;;  %p6768_p10 = pmov %p6767_p13 }
  0xee   : > { %5040 = vsyncadd (%p6768_p10), [#allocation10], 4294958064  ;;  %p6769_p5 = pmov %p6768_p10 }
  0xf0   : > { %5042 = dma.done.wait (%p6769_p5), [#allocation13], 32   ;;  %p6770_p7 = pmov %p6769_p5 }
  0xf1   : > { %v5086_v0 = vmov 0   ;;  %v4670_v1 = vld [vmem:[#allocation9 + $0x100] sm:$0xff]   ;;  %v4673_v4 = vld [vmem:[#allocation9 + $0x108] sm:$0xff]   ;;  %vm966_vm0 = vsmask.f32 7966  ;;  %v4676_v7 = vld [vmem:[#allocation9 + $0x110] sm:$0xff]  }
  0xf2   : > { %5044 = vsyncadd (%p6770_p7), [#allocation13], 4294967264  ;;  %1130 = vst [vmem:[#allocation2 + $0x8] sm:$0xff] %v5086_v0  ;;  %v5473_v2 = vld [vmem:[#allocation9 + $0x140] sm:$0xff]   ;;  %3819 = vmatprep.subr.bf16.mxu0 %v4670_v1  ;;  %v5477_v5 = vld [vmem:[#allocation9 + $0x148] sm:$0xff]   ;;  %vm965_vm1 = vcmask 1047559  }
  0xf3   : > { %v4672_v3 = vld [vmem:[#allocation9 + $0xc0] sm:$0xff]   ;;  %4371 = vmatprep.subr.bf16.mxu1 %v5473_v2  ;;  %v4675_v6 = vld [vmem:[#allocation9 + $0xc8] sm:$0xff]   ;;  %v5480_v8 = vld [vmem:[#allocation9 + $0x150] sm:$0xff]   ;;  %vm736_vm2 = vsmask.f32 256  ;;  %vm735_vm4 = vcmask 1040384  }
  0xf4   : > { %3820 = vmatpush3.bf16.msra.mxu0 %v4672_v3  ;;  %4379 = vmatpush3.bf16.msra.mxu1 %v5473_v2  ;;  %v4678_v9 = vld [vmem:[#allocation9 + $0xd0] sm:$0xff]   ;;  %v4679_v10 = vld [vmem:[#allocation9 + $0x118] sm:$0xff]   ;;  %v4682_v13 = vld [vmem:[#allocation9 + $0x120] sm:$0xff]   ;;  %vm1064_vm6 = vsmask.f32 7424  ;;  %vm914_vm7 = vcmask 1047552  }
  0xf5   : > { %3821 = vmatprep.subr.bf16.mxu0 %v4673_v4  ;;  %4372 = vmatprep.subr.bf16.mxu1 %v5477_v5  ;;  %v5484_v11 = vld [vmem:[#allocation9 + $0x158] sm:$0xff]   ;;  %v5488_v14 = vld [vmem:[#allocation9 + $0x160] sm:$0xff]   ;;  %vm5491_vm3 = vmand %vm965_vm1, %vm966_vm0  ;;  %vm915_vm8 = vsmask.f32 7938  ;;  %s6509_s11 = scalar_lea.vmem [#allocation15], %s3484_s27  ;;  %s3643_s13 = sshll.u32 %s5067_s30, 11 }
  0xf6   : > { %v4681_v12 = vld [vmem:[#allocation9 + $0xd8] sm:$0xff]   ;;  %v4684_v15 = vld [vmem:[#allocation9 + $0xe0] sm:$0xff]   ;;  %v4685_v17 = vld [vmem:[#allocation9 + $0x128] sm:$0xff]   ;;  %s3245_s24 = sshll.u32 %s6509_s11, 4  ;;  %s6794_s9 = sld [smem:[#allocation30_spill]]  ;;  %s6606_s24 = int_to_ptr.vmem [resolvable:$true] %s3245_s24 }
  0xf7   : > { %v5497_v18 = vld [vmem:[#allocation9 + $0x168] sm:$0xff]   ;;  %vm5499_vm5 = vmand %vm735_vm4, %vm736_vm2  ;;  %v4688_v21 = vld [vmem:[#allocation9 + $0x130] sm:$0xff]   ;;  %s6795_s18 = sld [smem:[#allocation36_spill]]  ;;  %s3224_s3 = scalar_lea.sflag [#allocation5], %s5447_s21 }
  0xf8   : > { %3822 = vmatpush3.bf16.msra.mxu0 %v4675_v6  ;;  %4380 = vmatpush3.bf16.msra.mxu1 %v5477_v5  ;;  %v4687_v20 = vld [vmem:[#allocation9 + $0xe8] sm:$0xff]   ;;  %v5505_v22 = vld [vmem:[#allocation9 + $0x170] sm:$0xff]   ;;  %v4691_v24 = vld [vmem:[#allocation9 + $0x138] sm:$0xff]   ;;  %s4949_s22 = scalar_lea.vmem %s6606_s24, 2048  ;;  %s5087_s12 = smov [#allocation15]  }
  0xf9   : > { %3823 = vmatprep.subr.bf16.mxu0 %v4676_v7  ;;  %4373 = vmatprep.subr.bf16.mxu1 %v5480_v8  ;;  %v4690_v23 = vld [vmem:[#allocation9 + $0xf0] sm:$0xff]   ;;  %v5507_v25 = vld [vmem:[#allocation9 + $0x178] sm:$0xff]   ;;  %v5510_v26 = vld [vmem:[#allocation12] ss:$0 sm:$0xff]  ;;  %p4950_p11 = scmp.ne.s32.totalorder %s6606_s24, %s4949_s22  ;;  %s4953_s7 = sshll.u32 %s5087_s12, 4  ;;  %s4954_s7 = int_to_ptr.vmem [resolvable:$false] %s4953_s7 }
  0xfa   : > { %v5512_v27 = vld [vmem:[#allocation14] ss:$0 sm:$0xff]  ;;  %v992_v32 = vld [vmem:[#allocation2 + $0xe8] sm:$0x80]  ;;  %v738_v33 = vld [vmem:[#allocation2 + $0x18] sm:$0x1]  ;;  %p4956_p1 = scmp.lt.s32.totalorder %s6606_s24, %s4954_s7 }
  0xfb   : > { %v3645_v28 = vld [vmem:[%s5453_s19] sm:$0xff]   ;;  %v993_v36 = vsel %vm5491_vm3, 0, %v992_v32  ;;  %v739_v37 = vsel %vm5499_vm5, 0, %v738_v33  ;;  %v3797_v38 = vld [vmem:[%s5453_s19 + $0x48] sm:$0xff]   ;;  %v995_v39 = vld [vmem:[#allocation2 + $0x100] sm:$0x80] }
  0xfc   : > { %3824 = vmatpush3.bf16.msra.mxu0 %v4678_v9  ;;  %4381 = vmatpush3.bf16.msra.mxu1 %v5480_v8  ;;  %v3646_v29 = vunpack.c.l.bf16 %v3645_v28  ;;  %v3647_v30 = vunpack.c.h.bf16 %v3645_v28  ;;  %v3796_v31 = vld [vmem:[%s5453_s19 + $0x40] sm:$0xff]   ;;  %994 = vst [vmem:[#allocation2 + $0xe8] sm:$0x80] %v993_v36  ;;  %740 = vst [vmem:[#allocation2 + $0x18] sm:$0x1] %v739_v37  ;;  %v3682_v42 = vunpack.c.l.bf16 %v3797_v38  ;;  %v3683_v43 = vunpack.c.h.bf16 %v3797_v38  ;;  %v4693_v44 = vld [vmem:[#allocation9 + $0xf8] sm:$0xff]  }
  0xfd   : > { %3825 = vmatprep.subr.bf16.mxu0 %v4679_v10  ;;  %4374 = vmatprep.subr.bf16.mxu1 %v5484_v11  ;;  %v3678_v34 = vunpack.c.l.bf16 %v3796_v31  ;;  %v3679_v35 = vunpack.c.h.bf16 %v3796_v31  ;;  %v996_v47 = vsel %vm5491_vm3, 0, %v995_v39  ;;  %v4694_v51 = vld [vmem:[#allocation9 + $0x40] sm:$0xff]   ;;  %v3789_v55 = vld [vmem:[%s5453_s19 + $0x8] sm:$0xff]   ;;  %v3798_v60 = vld [vmem:[%s5453_s19 + $0x50] sm:$0xff]   ;;  %s6604_s14 = scalar_lea.hbm %s6795_s18, %s3643_s13  ;;  %p6796_p8 = scmp.ne.s32.totalorder %s6794_s9, 0 }
  0xfe   : > { %v600_v40 = vmul.f32 %v3646_v29, %v5510_v26  ;;  %v601_v41 = vmul.f32 %v3647_v30, %v5510_v26  ;;  %v618_v50 = vmul.f32 %v3682_v42, %v5510_v26  ;;  %997 = vst [vmem:[#allocation2 + $0x100] sm:$0x80] %v996_v47  ;;  %v619_v54 = vmul.f32 %v3683_v43, %v5510_v26  ;;  %v741_v31 = vld [vmem:[#allocation2 + $0x30] sm:$0x1]  ;;  %vm5566_vm9 = vmand %vm914_vm7, %vm915_vm8  ;;  %v4735_v37 = vld [vmem:[#allocation9 + $0x208] sm:$0xff]   ;;  %s4955_s10 = scalar_lea.vmem %s4954_s7, 4096 }
  0xff   : > { %v616_v45 = vmul.f32 %v3678_v34, %v5510_v26  ;;  %v617_v46 = vmul.f32 %v3679_v35, %v5510_v26  ;;  %v3650_v59 = vunpack.c.l.bf16 %v3789_v55  ;;  %v3651_v1 = vunpack.c.h.bf16 %v3789_v55  ;;  %vm5577_vm10 = vmand %vm914_vm7, %vm1064_vm6  ;;  %v4736_v42 = vld [vmem:[#allocation9 + $0x210] sm:$0xff]   ;;  %p4951_p4 = pnand %p4950_p11, %p6796_p8  ;;  %p4957_p3 = scmp.lt.s32.totalorder %s4955_s10, %s4949_s22 }
 0x100   : > { %3826 = vmatpush3.bf16.msra.mxu0 %v4681_v12  ;;  %4382 = vmatpush3.bf16.msra.mxu1 %v5484_v11  ;;  %v638_v48 = vadd.f32 %v5512_v27, %v600_v40  ;;  %v639_v49 = vadd.f32 %v5512_v27, %v601_v41  ;;  %v656_v58 = vadd.f32 %v5512_v27, %v618_v50  ;;  %v3686_v7 = vunpack.c.l.bf16 %v3798_v60 }
 0x101   : > { %3827 = vmatprep.subr.bf16.mxu0 %v4682_v13  ;;  %4375 = vmatprep.subr.bf16.mxu1 %v5488_v14  ;;  %v654_v52 = vadd.f32 %v5512_v27, %v616_v45  ;;  %v655_v53 = vadd.f32 %v5512_v27, %v617_v46  ;;  %v657_v63 = vadd.f32 %v5512_v27, %v619_v54  ;;  %v3687_v13 = vunpack.c.h.bf16 %v3798_v60  ;;  %p4952_p12 = pneg %p4951_p4  ;;  %p4958_p0 = por %p4957_p3, %p4956_p1 }
 0x102   : > { %v670_v56 = vmax.f32 %v638_v48, 0.0  ;;  %v671_v57 = vmax.f32 %v639_v49, 0.0  ;;  %v688_v4 = vmax.f32 %v656_v58, 0.0  ;;  %v602_v6 = vmul.f32 %v3650_v59, %v5510_v26  ;;  %v3790_v58 = vld [vmem:[%s5453_s19 + $0x10] sm:$0xff]  }
 0x103   : > { %v686_v61 = vmax.f32 %v654_v52, 0.0  ;;  %v687_v62 = vmax.f32 %v655_v53, 0.0  ;;  %v689_v10 = vmax.f32 %v657_v63, 0.0  ;;  %v603_v12 = vmul.f32 %v3651_v1, %v5510_v26  ;;  %v917_v33 = vld [vmem:[#allocation2 + $0x18] sm:$0xff]  ;;  %v1090_v43 = vld [vmem:[#allocation2 + $0xe8] sm:$0xff]  ;;  %p4959_p2 = pnand %p4958_p0, %p4952_p12 }
 0x104   : > { %3828 = vmatpush3.bf16.msra.mxu0 %v4684_v15  ;;  %4383 = vmatpush3.bf16.msra.mxu1 %v5488_v14  ;;  %v5541_v3 = vpack.c.bf16 %v671_v57, %v670_v56  ;;  %v621_v35 = vmul.f32 %v3687_v13, %v5510_v26  ;;  %v5584_v46 = vrot.slane %v5086_v0, 7  ;;  %v1001_v52 = vld [vmem:[#allocation2 + $0x130] sm:$0x80]  ;;  %v742_v57 = vsel %vm5499_vm5, 0, %v741_v31  ;;  %v4696_v63 = vld [vmem:[#allocation9 + $0x48] sm:$0xff]  }
 0x105   : > { %3829 = vmatprep.subr.bf16.mxu0 %v4685_v17  ;;  %4376 = vmatprep.subr.bf16.mxu1 %v5497_v18  ;;  %v5545_v9 = vpack.c.bf16 %v687_v62, %v686_v61  ;;  %v5556_v29 = vpack.c.bf16 %v689_v10, %v688_v4  ;;  %v641_v30 = vadd.f32 %v5512_v27, %v603_v12  ;;  %v1093_v54 = vld [vmem:[#allocation2 + $0x100] sm:$0xff]  ;;  %v4695_v0 = vld [vmem:[#allocation9] sm:$0xff]   ;;  %v1004_v10 = vld [vmem:[#allocation2 + $0x148] sm:$0x80] }
 0x106   : > { %v6727_v15 = vshrl.u32 %v5541_v3, 16  ;;  %v790_v17 = vshll.u32 %v5541_v3, 16  ;;  %1564 = vmatprep.mubr.bf16.mxu0 %v5541_v3  ;;  %v659_v45 = vadd.f32 %v5512_v27, %v621_v35  ;;  %743 = vst [vmem:[#allocation2 + $0x30] sm:$0x1] %v742_v57  ;;  %v3655_v35 = vunpack.c.h.bf16 %v3790_v58 }
 0x107   : > { %v846_v28 = vshll.u32 %v5545_v9, 16  ;;  %727 = vst [vmem:[#allocation2 + $0xe0] sm:$0xff] %v5545_v9  ;;  %v850_v38 = vshrl.u32 %v5556_v29, 16  ;;  %v853_v39 = vshll.u32 %v5556_v29, 16  ;;  %728 = vst [vmem:[#allocation2 + $0xf8] sm:$0xff] %v5556_v29  ;;  %v673_v40 = vmax.f32 %v641_v30, 0.0 }
 0x108   : > { %3830 = vmatpush3.bf16.msra.mxu0 %v4687_v20  ;;  %4384 = vmatpush3.bf16.msra.mxu1 %v5497_v18  ;;  %v640_v20 = vadd.f32 %v5512_v27, %v602_v6  ;;  %v789_v32 = vrot.slane %v6727_v15, 7  ;;  %v691_v56 = vmax.f32 %v659_v45, 0.0 }
 0x109   : > { %3831 = vmatprep.subr.bf16.mxu0 %v4688_v21  ;;  %4377 = vmatprep.subr.bf16.mxu1 %v5505_v22  ;;  %v620_v21 = vmul.f32 %v3686_v7, %v5510_v26  ;;  %v1032_v36 = vrot.slane %v846_v28, 1  ;;  %v1034_v48 = vrot.slane %v853_v39, 1  ;;  %v1002_v7 = vsel %vm5491_vm3, 0, %v1001_v52 }
 0x10a   : > { %v672_v34 = vmax.f32 %v640_v20, 0.0  ;;  %v792_v41 = vor.u32 %v790_v17, %v789_v32  ;;  %1003 = vst [vmem:[#allocation2 + $0x130] sm:$0x80] %v1002_v7  ;;  %v3654_v20 = vunpack.c.l.bf16 %v3790_v58  ;;  %v5630_v32 = vrot.slane %v790_v17, 1  ;;  %v744_v17 = vld [vmem:[#allocation2 + $0x48] sm:$0x1] }
 0x10b   : > { %v1035_v60 = vor.u32 %v1034_v48, %v850_v38  ;;  %v4699_v48 = vld [vmem:[#allocation9 + $0x10] sm:$0xff]  }
 0x10c   : > { %3832 = vmatpush3.bf16.msra.mxu0 %v4690_v23  ;;  %4385 = vmatpush3.bf16.msra.mxu1 %v5505_v22  ;;  %v998_v23 = vld [vmem:[#allocation2 + $0x118] sm:$0x80]  ;;  %v5590_v49 = vpack.c.bf16 %v673_v40, %v672_v34  ;;  %v5597_v53 = vsel %vm5566_vm9, %v792_v41, %v917_v33 }
 0x10d   : > { %3833 = vmatprep.subr.bf16.mxu0 %v4691_v24  ;;  %4378 = vmatprep.subr.bf16.mxu1 %v5507_v25  ;;  %v843_v24 = vshrl.u32 %v5545_v9, 16  ;;  %v999_v50 = vsel %vm5491_vm3, 0, %v998_v23  ;;  %919 = vst [vmem:[#allocation2 + $0x18] sm:$0xff] %v5597_v53  ;;  %v1094_v12 = vsel %vm5577_vm10, %v1035_v60, %v1093_v54  ;;  %v4697_v33 = vld [vmem:[#allocation9 + $0x8] sm:$0xff]   ;;  %v1005_v54 = vsel %vm5491_vm3, 0, %v1004_v10 }
 0x10e   : > { %1000 = vst [vmem:[#allocation2 + $0x118] sm:$0x80] %v999_v50  ;;  %720 = vst [vmem:[#allocation2 + $0x38] sm:$0xff] %v5590_v49  ;;  %v6724_v61 = vshrl.u32 %v5590_v49, 16  ;;  %v797_v62 = vshll.u32 %v5590_v49, 16  ;;  %v605_v50 = vmul.f32 %v3655_v35, %v5510_v26  ;;  %v5667_v35 = vld [vmem:[%s5453_s19 + $0x70] sm:$0xff]  }
 0x10f   : > { %v1033_v47 = vor.u32 %v1032_v36, %v843_v24  ;;  %1095 = vst [vmem:[#allocation2 + $0x100] sm:$0xff] %v1094_v12  ;;  %v604_v36 = vmul.f32 %v3654_v20, %v5510_v26  ;;  %1006 = vst [vmem:[#allocation2 + $0x148] sm:$0x80] %v1005_v54  ;;  %v745_v20 = vsel %vm5499_vm5, 0, %v744_v17 }
 0x110   : > { %3834 = vmatpush3.bf16.msra.mxu0 %v4693_v44  ;;  %4386 = vmatpush3.bf16.msra.mxu1 %v5507_v25  ;;  %v658_v44 = vadd.f32 %v5512_v27, %v620_v21  ;;  %v796_v13 = vrot.slane %v6724_v61, 7  ;;  %746 = vst [vmem:[#allocation2 + $0x48] sm:$0x1] %v745_v20  ;;  %v1010_v20 = vld [vmem:[#allocation2 + $0x178] sm:$0x80] }
 0x111   : > { %4227 = vmatprep.subr.bf16.mxu0 %v5473_v2  ;;  %3955 = vmatprep.subr.bf16.mxu1 %v4694_v51  ;;  %v3799_v51 = vld [vmem:[%s5453_s19 + $0x58] sm:$0xff]   ;;  %v1091_v59 = vsel %vm5577_vm10, %v1033_v47, %v1090_v43 }
 0x112   : > { %v690_v55 = vmax.f32 %v658_v44, 0.0  ;;  %1092 = vst [vmem:[#allocation2 + $0xe8] sm:$0xff] %v1091_v59  ;;  %4259 = vmatprep.mubr.bf16.mxu1 %v1091_v59  ;;  %v3690_v4 = vunpack.c.l.bf16 %v3799_v51  ;;  %v3691_v6 = vunpack.c.h.bf16 %v3799_v51  ;;  %v799_v34 = vor.u32 %v797_v62, %v796_v13  ;;  %v4698_v44 = vld [vmem:[#allocation9 + $0x50] sm:$0xff]   ;;  %v3801_v59 = vld [vmem:[%s5453_s19 + $0x68] sm:$0xff]  }
 0x113   : > { %1565 = vmatmul.mubr.bf16.vlgmr.msra.gmra.mrb[0].mxu0 %v5597_v53  ;;  %4260 = vmatmul.mubr.bf16.vlgmr.msra.gmra.mrb[0].mxu1 %v1094_v12  ;;  %v642_v51 = vadd.f32 %v5512_v27, %v604_v36 }
 0x114   : > { %4228 = vmatpush3.bf16.msra.mxu0 %v5473_v2  ;;  %v5612_v1 = vpack.c.bf16 %v691_v56, %v690_v55  ;;  %1572 = vmatprep.mubr.bf16.mxu0 %v5590_v49  ;;  %v3800_v2 = vld [vmem:[%s5453_s19 + $0x60] sm:$0xff]   ;;  %v622_v30 = vmul.f32 %v3690_v4, %v5510_v26  ;;  %v623_v31 = vmul.f32 %v3691_v6, %v5510_v26 }
 0x115   : > { %4229 = vmatprep.subr.bf16.mxu0 %v5477_v5  ;;  %3956 = vmatpush3.bf16.msra.mxu1 %v4695_v0  ;;  %v3694_v45 = vunpack.c.l.bf16 %v3800_v2  ;;  %v1096_v47 = vld [vmem:[#allocation2 + $0x118] sm:$0xff]  ;;  %v3695_v52 = vunpack.c.h.bf16 %v3800_v2  ;;  %v1007_v0 = vld [vmem:[#allocation2 + $0x160] sm:$0x80]  ;;  %v920_v56 = vld [vmem:[#allocation2 + $0x30] sm:$0xff]  ;;  %v643_v4 = vadd.f32 %v5512_v27, %v605_v50  ;;  %v674_v6 = vmax.f32 %v642_v51, 0.0 }
 0x116   : > { %v857_v21 = vshrl.u32 %v5612_v1, 16  ;;  %v860_v23 = vshll.u32 %v5612_v1, 16  ;;  %729 = vst [vmem:[#allocation2 + $0x110] sm:$0xff] %v5612_v1  ;;  %3957 = vmatprep.subr.bf16.mxu1 %v4696_v63  ;;  %v660_v41 = vadd.f32 %v5512_v27, %v622_v30  ;;  %v661_v43 = vadd.f32 %v5512_v27, %v623_v31  ;;  %v4700_v63 = vld [vmem:[#allocation9 + $0x58] sm:$0xff]   ;;  %v4702_v51 = vld [vmem:[#allocation9 + $0x60] sm:$0xff]  }
 0x117   : > { %v5651_v60 = vsel %vm5566_vm9, %v799_v34, %v920_v56  ;;  %v625_v7 = vmul.f32 %v3695_v52, %v5510_v26  ;;  %v3791_v2 = vld [vmem:[%s5453_s19 + $0x18] sm:$0xff]   ;;  %v675_v30 = vmax.f32 %v643_v4, 0.0  ;;  %v3699_v34 = vunpack.c.h.bf16 %v3801_v59 }
 0x118   : > { %v1036_v40 = vrot.slane %v860_v23, 1  ;;  %4230 = vmatpush3.bf16.msra.mxu0 %v5477_v5  ;;  %v692_v57 = vmax.f32 %v660_v41, 0.0  ;;  %v693_v58 = vmax.f32 %v661_v43, 0.0  ;;  %v624_v5 = vmul.f32 %v3694_v45, %v5510_v26  ;;  %922 = vst [vmem:[#allocation2 + $0x30] sm:$0xff] %v5651_v60 }
 0x119   : > { %4231 = vmatprep.subr.bf16.mxu0 %v5480_v8  ;;  %3958 = vmatpush3.bf16.msra.mxu1 %v4697_v33  ;;  %v663_v31 = vadd.f32 %v5512_v27, %v625_v7  ;;  %v3698_v33 = vunpack.c.l.bf16 %v3801_v59  ;;  %v1008_v43 = vsel %vm5491_vm3, 0, %v1007_v0  ;;  %v5676_v45 = vpack.c.bf16 %v675_v30, %v674_v6  ;;  %v923_v30 = vld [vmem:[#allocation2 + $0x48] sm:$0xff] }
 0x11a   : > { %v1037_v55 = vor.u32 %v1036_v40, %v857_v21  ;;  %v5659_v12 = vpack.c.bf16 %v693_v58, %v692_v57  ;;  %3959 = vmatprep.subr.bf16.mxu1 %v4698_v44  ;;  %v662_v13 = vadd.f32 %v5512_v27, %v624_v5  ;;  %v4701_v44 = vld [vmem:[#allocation9 + $0x18] sm:$0xff]   ;;  %1009 = vst [vmem:[#allocation2 + $0x160] sm:$0x80] %v1008_v43  ;;  %v3658_v52 = vunpack.c.l.bf16 %v3791_v2 }
 0x11b   : > { %1573 = vmatmul.mubr.bf16.gmra.mrb[4].mxu0 %v5651_v60  ;;  %v695_v17 = vmax.f32 %v663_v31, 0.0  ;;  %v3659_v54 = vunpack.c.h.bf16 %v3791_v2  ;;  %v3702_v0 = vunpack.c.l.bf16 %v5667_v35  ;;  %721 = vst [vmem:[#allocation2 + $0x50] sm:$0xff] %v5676_v45  ;;  %v804_v56 = vshll.u32 %v5676_v45, 16 }
 0x11c   : > { %v1097_v10 = vsel %vm5577_vm10, %v1037_v55, %v1096_v47  ;;  %4232 = vmatpush3.bf16.msra.mxu0 %v5480_v8  ;;  %v864_v36 = vshrl.u32 %v5659_v12, 16  ;;  %v867_v40 = vshll.u32 %v5659_v12, 16  ;;  %730 = vst [vmem:[#allocation2 + $0x128] sm:$0xff] %v5659_v12  ;;  %v694_v41 = vmax.f32 %v662_v13, 0.0  ;;  %v1099_v55 = vld [vmem:[#allocation2 + $0x130] sm:$0xff]  ;;  %1580 = vmatprep.mubr.bf16.mxu0 %v5676_v45 }
 0x11d   : > { %1098 = vst [vmem:[#allocation2 + $0x118] sm:$0xff] %v1097_v10  ;;  %4263 = vmatprep.mubr.bf16.mxu1 %v1097_v10  ;;  %4233 = vmatprep.subr.bf16.mxu0 %v5484_v11  ;;  %v626_v47 = vmul.f32 %v3698_v33, %v5510_v26  ;;  %v627_v8 = vmul.f32 %v3699_v34, %v5510_v26  ;;  %v5699_v7 = vrot.slane %v797_v62, 1  ;;  %v4704_v62 = vld [vmem:[#allocation9 + $0x68] sm:$0xff]  }
 0x11e   : > { %3960 = vmatpush3.bf16.msra.mxu1 %v4699_v48  ;;  %v1038_v50 = vrot.slane %v867_v40, 1  ;;  %v6723_v48 = vshrl.u32 %v5676_v45, 16  ;;  %v5687_v57 = vpack.c.bf16 %v695_v17, %v694_v41  ;;  %v606_v4 = vmul.f32 %v3658_v52, %v5510_v26 }
 0x11f   : > { %3961 = vmatprep.subr.bf16.mxu1 %v4700_v63  ;;  %v664_v58 = vadd.f32 %v5512_v27, %v626_v47  ;;  %v665_v59 = vadd.f32 %v5512_v27, %v627_v8  ;;  %v4703_v63 = vld [vmem:[#allocation9 + $0x20] sm:$0xff]   ;;  %v607_v6 = vmul.f32 %v3659_v54, %v5510_v26  ;;  %v3703_v17 = vunpack.c.h.bf16 %v5667_v35  ;;  %v747_v47 = vld [vmem:[#allocation2 + $0x60] sm:$0x1]  ;;  %v1102_v8 = vld [vmem:[#allocation2 + $0x148] sm:$0xff] }
 0x120   : > { %4234 = vmatpush3.bf16.msra.mxu0 %v5484_v11  ;;  %v1039_v5 = vor.u32 %v1038_v50, %v864_v36  ;;  %v803_v11 = vrot.slane %v6723_v48, 7  ;;  %v871_v10 = vshrl.u32 %v5687_v57, 16  ;;  %v6733_v13 = vshll.u32 %v5687_v57, 16  ;;  %731 = vst [vmem:[#allocation2 + $0x140] sm:$0xff] %v5687_v57  ;;  %v4717_v48 = vld [vmem:[#allocation9 + $0x1c0] sm:$0xff]  }
 0x121   : > { %4235 = vmatprep.subr.bf16.mxu0 %v5488_v14  ;;  %v696_v31 = vmax.f32 %v664_v58, 0.0  ;;  %v697_v33 = vmax.f32 %v665_v59, 0.0  ;;  %v644_v34 = vadd.f32 %v5512_v27, %v606_v4  ;;  %v628_v52 = vmul.f32 %v3702_v0, %v5510_v26  ;;  %v1013_v0 = vld [vmem:[#allocation2 + $0x190] sm:$0x80] }
 0x122   : > { %3962 = vmatpush3.bf16.msra.mxu1 %v4701_v44  ;;  %v1100_v2 = vsel %vm5577_vm10, %v1039_v5, %v1099_v55  ;;  %v1040_v41 = vrot.slane %v6733_v13, 1  ;;  %v806_v43 = vor.u32 %v804_v56, %v803_v11  ;;  %v645_v44 = vadd.f32 %v5512_v27, %v607_v6  ;;  %v3803_v55 = vld [vmem:[%s5453_s19 + $0x78] sm:$0xff]  }
 0x123   : > { %3963 = vmatprep.subr.bf16.mxu1 %v4702_v51  ;;  %1101 = vst [vmem:[#allocation2 + $0x130] sm:$0xff] %v1100_v2  ;;  %4264 = vmatmul.mubr.bf16.gmra.mrb[4].mxu1 %v1100_v2  ;;  %v5716_v50 = vpack.c.bf16 %v697_v33, %v696_v31  ;;  %v676_v51 = vmax.f32 %v644_v34, 0.0  ;;  %v1011_v54 = vsel %vm5491_vm3, 0, %v1010_v20  ;;  %v629_v59 = vmul.f32 %v3703_v17, %v5510_v26  ;;  %v4706_v20 = vld [vmem:[#allocation9 + $0x70] sm:$0xff]   ;;  %v3792_v34 = vld [vmem:[%s5453_s19 + $0x20] sm:$0xff]  }
 0x124   : > { %4236 = vmatpush3.bf16.msra.mxu0 %v5488_v14  ;;  %v1041_v58 = vor.u32 %v1040_v41, %v871_v10  ;;  %v5727_v35 = vsel %vm5566_vm9, %v806_v43, %v923_v30  ;;  %v4705_v14 = vld [vmem:[#allocation9 + $0x28] sm:$0xff]   ;;  %v677_v5 = vmax.f32 %v645_v44, 0.0  ;;  %1012 = vst [vmem:[#allocation2 + $0x178] sm:$0x80] %v1011_v54  ;;  %v748_v11 = vsel %vm5499_vm5, 0, %v747_v47  ;;  %v1105_v17 = vld [vmem:[#allocation2 + $0x160] sm:$0xff] }
 0x125   : > { %4237 = vmatprep.subr.bf16.mxu0 %v5497_v18  ;;  %925 = vst [vmem:[#allocation2 + $0x48] sm:$0xff] %v5727_v35  ;;  %1581 = vmatmul.mubr.bf16.gmra.mrb[8].mxu0 %v5727_v35  ;;  %v878_v4 = vshrl.u32 %v5716_v50, 16  ;;  %v6728_v6 = vshll.u32 %v5716_v50, 16  ;;  %732 = vst [vmem:[#allocation2 + $0x158] sm:$0xff] %v5716_v50  ;;  %v667_v31 = vadd.f32 %v5512_v27, %v629_v59  ;;  %v3706_v33 = vunpack.c.l.bf16 %v3803_v55 }
 0x126   : > { %3964 = vmatpush3.bf16.msra.mxu1 %v4703_v63  ;;  %v666_v63 = vadd.f32 %v5512_v27, %v628_v52  ;;  %v1103_v2 = vsel %vm5577_vm10, %v1041_v58, %v1102_v8  ;;  %v5740_v30 = vpack.c.bf16 %v677_v5, %v676_v51  ;;  %749 = vst [vmem:[#allocation2 + $0x60] sm:$0x1] %v748_v11  ;;  %v3707_v43 = vunpack.c.h.bf16 %v3803_v55  ;;  %v4707_v55 = vld [vmem:[#allocation9 + $0x30] sm:$0xff]   ;;  %v4708_v58 = vld [vmem:[#allocation9 + $0x78] sm:$0xff]  }
 0x127   : > { %3965 = vmatprep.subr.bf16.mxu1 %v4704_v62  ;;  %1104 = vst [vmem:[#allocation2 + $0x148] sm:$0xff] %v1103_v2  ;;  %4267 = vmatprep.mubr.bf16.mxu1 %v1103_v2  ;;  %v1042_v62 = vrot.slane %v6728_v6, 1  ;;  %v1014_v44 = vsel %vm5491_vm3, 0, %v1013_v0  ;;  %v699_v8 = vmax.f32 %v667_v31, 0.0  ;;  %v630_v51 = vmul.f32 %v3706_v33, %v5510_v26  ;;  %v750_v2 = vld [vmem:[#allocation2 + $0x78] sm:$0x1] }
 0x128   : > { %4238 = vmatpush3.bf16.msra.mxu0 %v5497_v18  ;;  %v698_v41 = vmax.f32 %v666_v63, 0.0  ;;  %722 = vst [vmem:[#allocation2 + $0x68] sm:$0xff] %v5740_v30  ;;  %v6722_v47 = vshrl.u32 %v5740_v30, 16  ;;  %v811_v18 = vshll.u32 %v5740_v30, 16  ;;  %1588 = vmatprep.mubr.bf16.mxu0 %v5740_v30  ;;  %1015 = vst [vmem:[#allocation2 + $0x190] sm:$0x80] %v1014_v44  ;;  %v631_v54 = vmul.f32 %v3707_v43, %v5510_v26 }
 0x129   : > { %4239 = vmatprep.subr.bf16.mxu0 %v5505_v22  ;;  %v1043_v52 = vor.u32 %v1042_v62, %v878_v4  ;;  %v3663_v5 = vunpack.c.h.bf16 %v3792_v34  ;;  %v5760_v59 = vrot.slane %v804_v56, 1  ;;  %v668_v11 = vadd.f32 %v5512_v27, %v630_v51  ;;  %v4709_v33 = vld [vmem:[#allocation9 + $0x38] sm:$0xff]   ;;  %v1131_v62 = vld [vmem:[#allocation2] sm:$0x1]  ;;  %v3793_v43 = vld [vmem:[%s5453_s19 + $0x28] sm:$0xff]  }
 0x12a   : > { %3966 = vmatpush3.bf16.msra.mxu1 %v4705_v14  ;;  %v3662_v14 = vunpack.c.l.bf16 %v3792_v34  ;;  %v810_v0 = vrot.slane %v6722_v47, 7  ;;  %v5764_v63 = vpack.c.bf16 %v699_v8, %v698_v41  ;;  %v669_v31 = vadd.f32 %v5512_v27, %v631_v54  ;;  %v753_v41 = vld [vmem:[#allocation2 + $0x90] sm:$0x1] }
 0x12b   : > { %3967 = vmatprep.subr.bf16.mxu1 %v4706_v20  ;;  %v1106_v20 = vsel %vm5577_vm10, %v1043_v52, %v1105_v17  ;;  %v609_v34 = vmul.f32 %v3663_v5, %v5510_v26  ;;  %v700_v8 = vmax.f32 %v668_v11, 0.0  ;;  %v5780_v51 = vld [vmem:[#allocation9 + $0x80] sm:$0xff]   ;;  %v3794_v52 = vld [vmem:[%s5453_s19 + $0x30] sm:$0xff]   ;;  %v751_v47 = vsel %vm5499_vm5, 0, %v750_v2 }
 0x12c   : > { %4240 = vmatpush3.bf16.msra.mxu0 %v5505_v22  ;;  %v608_v56 = vmul.f32 %v3662_v14, %v5510_v26  ;;  %1107 = vst [vmem:[#allocation2 + $0x160] sm:$0xff] %v1106_v20  ;;  %4268 = vmatmul.mubr.bf16.gmra.mrb[8].mxu1 %v1106_v20  ;;  %v6729_v22 = vshrl.u32 %v5764_v63, 16  ;;  %v6725_v44 = vshll.u32 %v5764_v63, 16  ;;  %733 = vst [vmem:[#allocation2 + $0x170] sm:$0xff] %v5764_v63  ;;  %v701_v14 = vmax.f32 %v669_v31, 0.0  ;;  %v1108_v31 = vld [vmem:[#allocation2 + $0x178] sm:$0xff] }
 0x12d   : > { %4241 = vmatprep.subr.bf16.mxu0 %v5507_v25  ;;  %v813_v17 = vor.u32 %v811_v18, %v810_v0  ;;  %v926_v54 = vld [vmem:[#allocation2 + $0x60] sm:$0xff]  ;;  %v647_v20 = vadd.f32 %v5512_v27, %v609_v34  ;;  %752 = vst [vmem:[#allocation2 + $0x78] sm:$0x1] %v751_v47  ;;  %v3666_v11 = vunpack.c.l.bf16 %v3793_v43 }
 0x12e   : > { %3968 = vmatpush3.bf16.msra.mxu1 %v4707_v55  ;;  %v646_v5 = vadd.f32 %v5512_v27, %v608_v56  ;;  %v1044_v61 = vrot.slane %v6725_v44, 1  ;;  %v1132_v55 = vsel %vm5499_vm5, 0, %v1131_v62  ;;  %v5798_v2 = vpack.c.bf16 %v701_v14, %v700_v8 }
 0x12f   : > { %v5791_v0 = vsel %vm5566_vm9, %v813_v17, %v926_v54  ;;  %3969 = vmatprep.subr.bf16.mxu1 %v4708_v58  ;;  %v679_v34 = vmax.f32 %v647_v20, 0.0  ;;  %1133 = vst [vmem:[#allocation2] sm:$0x1] %v1132_v55  ;;  %v3667_v17 = vunpack.c.h.bf16 %v3793_v43  ;;  %v756_v54 = vld [vmem:[#allocation2 + $0xa8] sm:$0x1]  ;;  %v610_v58 = vmul.f32 %v3666_v11, %v5510_v26  ;;  %v1111_v55 = vld [vmem:[#allocation2 + $0x190] sm:$0xff] }
 0x130   : > { %4242 = vmatpush3.bf16.msra.mxu0 %v5507_v25  ;;  %928 = vst [vmem:[#allocation2 + $0x60] sm:$0xff] %v5791_v0  ;;  %v678_v56 = vmax.f32 %v646_v5, 0.0  ;;  %v1045_v47 = vor.u32 %v1044_v61, %v6729_v22  ;;  %v754_v25 = vsel %vm5499_vm5, 0, %v753_v41  ;;  %v3670_v62 = vunpack.c.l.bf16 %v3794_v52  ;;  %734 = vst [vmem:[#allocation2 + $0x188] sm:$0xff] %v5798_v2  ;;  %v3795_v20 = vld [vmem:[%s5453_s19 + $0x38] sm:$0xff]  }
 0x131   : > { %1589 = vmatmul.mubr.bf16.gmra.mrb[12].mxu0 %v5791_v0  ;;  %4091 = vmatprep.subr.bf16.mxu0 %v4717_v48  ;;  %v6730_v44 = vshrl.u32 %v5798_v2, 16  ;;  %v6726_v8 = vshll.u32 %v5798_v2, 16  ;;  %v611_v48 = vmul.f32 %v3667_v17, %v5510_v26  ;;  %755 = vst [vmem:[#allocation2 + $0x90] sm:$0x1] %v754_v25  ;;  %v648_v41 = vadd.f32 %v5512_v27, %v610_v58 }
 0x132   : > { %3970 = vmatpush3.bf16.msra.mxu1 %v4709_v33  ;;  %v5808_v43 = vpack.c.bf16 %v679_v34, %v678_v56  ;;  %v1109_v61 = vsel %vm5577_vm10, %v1045_v47, %v1108_v31  ;;  %v3671_v14 = vunpack.c.h.bf16 %v3794_v52  ;;  %v612_v5 = vmul.f32 %v3670_v62, %v5510_v26  ;;  %v759_v34 = vld [vmem:[#allocation2 + $0xc0] sm:$0x1] }
 0x133   : > { %4275 = vmatprep.subr.bf16.mxu1 %v5780_v51  ;;  %1110 = vst [vmem:[#allocation2 + $0x178] sm:$0xff] %v1109_v61  ;;  %4271 = vmatprep.mubr.bf16.mxu1 %v1109_v61  ;;  %v1046_v33 = vrot.slane %v6726_v8, 1  ;;  %v649_v31 = vadd.f32 %v5512_v27, %v611_v48  ;;  %v680_v17 = vmax.f32 %v648_v41, 0.0  ;;  %v757_v58 = vsel %vm5499_vm5, 0, %v756_v54  ;;  %v762_v8 = vld [vmem:[#allocation2 + $0xd8] sm:$0x1] }
 0x134   : > { %v6732_v11 = vshrl.u32 %v5808_v43, 16  ;;  %v818_v56 = vshll.u32 %v5808_v43, 16  ;;  %1596 = vmatprep.mubr.bf16.mxu0 %v5808_v43  ;;  %v613_v52 = vmul.f32 %v3671_v14, %v5510_v26  ;;  %v650_v47 = vadd.f32 %v5512_v27, %v612_v5  ;;  %758 = vst [vmem:[#allocation2 + $0xa8] sm:$0x1] %v757_v58  ;;  %v929_v15 = vld [vmem:[#allocation2 + $0x78] sm:$0xff] }
 0x135   : > { %v1047_v25 = vor.u32 %v1046_v33, %v6730_v44  ;;  %v681_v61 = vmax.f32 %v649_v31, 0.0  ;;  %v3674_v14 = vunpack.c.l.bf16 %v3795_v20  ;;  %v3675_v22 = vunpack.c.h.bf16 %v3795_v20  ;;  %v765_v31 = vld [vmem:[#allocation2 + $0xf0] sm:$0x1] }
 0x136   : > { %v817_v62 = vrot.slane %v6732_v11, 7  ;;  %v1142_v48 = vld [vmem:[#allocation2] sm:$0xff]  ;;  %v651_v41 = vadd.f32 %v5512_v27, %v613_v52  ;;  %v682_v6 = vmax.f32 %v650_v47, 0.0  ;;  %v760_v20 = vsel %vm5499_vm5, 0, %v759_v34 }
 0x137   : > { %v1112_v5 = vsel %vm5577_vm10, %v1047_v25, %v1111_v55  ;;  %v1143_v33 = vsel %vm5566_vm9, %v5584_v46, %v1142_v48  ;;  %v5837_v44 = vpack.c.bf16 %v681_v61, %v680_v17  ;;  %v614_v52 = vmul.f32 %v3674_v14, %v5510_v26  ;;  %v768_v55 = vld [vmem:[#allocation2 + $0x108] sm:$0x1]  ;;  %761 = vst [vmem:[#allocation2 + $0xc0] sm:$0x1] %v760_v20  ;;  %v774_v14 = vld [vmem:[#allocation2 + $0x138] sm:$0x1] }
 0x138   : > { %v820_v54 = vor.u32 %v818_v56, %v817_v62  ;;  %1113 = vst [vmem:[#allocation2 + $0x190] sm:$0xff] %v1112_v5  ;;  %4272 = vmatmul.mubr.bf16.gmra.mrb[12].mxu1 %v1112_v5  ;;  %1144 = vst [vmem:[#allocation2] sm:$0xff] %v1143_v33  ;;  %v683_v58 = vmax.f32 %v651_v41, 0.0  ;;  %v615_v47 = vmul.f32 %v3675_v22, %v5510_v26  ;;  %v5843_v25 = vld [vmem:[#allocation2 + $0x8] sm:$0xff]  ;;  %v763_v26 = vsel %vm5499_vm5, 0, %v762_v8 }
 0x139   : > { %2030 = vmatprep.mubr.bf16.mxu1 %v5843_v25  ;;  %v6731_v62 = vshrl.u32 %v5837_v44, 16  ;;  %v825_v61 = vshll.u32 %v5837_v44, 16  ;;  %v652_v34 = vadd.f32 %v5512_v27, %v614_v52  ;;  %764 = vst [vmem:[#allocation2 + $0xd8] sm:$0x1] %v763_v26  ;;  %v771_v41 = vld [vmem:[#allocation2 + $0x120] sm:$0x1] }
 0x13a   : > { %v5848_v17 = vsel %vm5566_vm9, %v820_v54, %v929_v15  ;;  %v5856_v22 = vpack.c.bf16 %v683_v58, %v682_v6  ;;  %v653_v48 = vadd.f32 %v5512_v27, %v615_v47  ;;  %v845_v15 = vrot.slane %v843_v24, 7  ;;  %v932_v54 = vld [vmem:[#allocation2 + $0x90] sm:$0xff]  ;;  %v5875_v52 = vld [vmem:[#allocation9 + $0x88] sm:$0xff]  }
 0x13b   : > { %931 = vst [vmem:[#allocation2 + $0x78] sm:$0xff] %v5848_v17  ;;  %1597 = vmatmul.mubr.bf16.gmra.mrb[16].mxu0 %v5848_v17  ;;  %v5864_v5 = vrot.slane %v811_v18, 1  ;;  %v824_v8 = vrot.slane %v6731_v62, 7  ;;  %v766_v6 = vsel %vm5499_vm5, 0, %v765_v31  ;;  %v852_v27 = vrot.slane %v850_v38, 7 }
 0x13c   : > { %1604 = vmatprep.mubr.bf16.mxu0 %v5837_v44  ;;  %v829_v24 = vshrl.u32 %v5856_v22, 16  ;;  %v832_v58 = vshll.u32 %v5856_v22, 16  ;;  %v684_v18 = vmax.f32 %v652_v34, 0.0  ;;  %v685_v47 = vmax.f32 %v653_v48, 0.0  ;;  %767 = vst [vmem:[#allocation2 + $0xf0] sm:$0x1] %v766_v6 }
 0x13d   : > { %v777_v20 = vld [vmem:[#allocation2 + $0x150] sm:$0x1]  ;;  %v5877_v26 = vrot.slane %v818_v56, 1  ;;  %v827_v62 = vor.u32 %v825_v61, %v824_v8  ;;  %v769_v31 = vsel %vm5499_vm5, 0, %v768_v55  ;;  %v848_v13 = vor.u32 %v846_v28, %v845_v15  ;;  %v780_v48 = vld [vmem:[#allocation2 + $0x168] sm:$0x1] }
 0x13e   : > { %v831_v38 = vrot.slane %v829_v24, 7  ;;  %v5883_v11 = vpack.c.bf16 %v685_v47, %v684_v18  ;;  %770 = vst [vmem:[#allocation2 + $0x108] sm:$0x1] %v769_v31  ;;  %v859_v34 = vrot.slane %v857_v21, 7  ;;  %v935_v8 = vld [vmem:[#allocation2 + $0xa8] sm:$0xff]  ;;  %v772_v55 = vsel %vm5499_vm5, 0, %v771_v41 }
 0x13f   : > { %v5891_v56 = vsel %vm5566_vm9, %v827_v62, %v932_v54  ;;  %v866_v6 = vrot.slane %v864_v36, 7  ;;  %v775_v9 = vsel %vm5499_vm5, 0, %v774_v14  ;;  %v783_v28 = vld [vmem:[#allocation2 + $0x180] sm:$0x1]  ;;  %v855_v41 = vor.u32 %v853_v39, %v852_v27  ;;  %773 = vst [vmem:[#allocation2 + $0x120] sm:$0x1] %v772_v55 }
 0x140   : > { %2031 = vmatmul.mubr.bf16.vlgmr.msra.gmra.mrb[16].mxu1 %v1143_v33  ;;  %934 = vst [vmem:[#allocation2 + $0x90] sm:$0xff] %v5891_v56  ;;  %v834_v21 = vor.u32 %v832_v58, %v831_v38  ;;  %v6734_v62 = vshrl.u32 %v5883_v11, 16  ;;  %v839_v15 = vshll.u32 %v5883_v11, 16  ;;  %v5904_v54 = vld [vmem:[#allocation9 + $0x90] sm:$0xff]   ;;  %776 = vst [vmem:[#allocation2 + $0x138] sm:$0x1] %v775_v9  ;;  %v862_v31 = vor.u32 %v860_v23, %v859_v34 }
 0x141   : > { %v968_v36 = vld [vmem:[#allocation2 + $0x28] sm:$0x80]  ;;  %v971_v14 = vld [vmem:[#allocation2 + $0x40] sm:$0x80]  ;;  %v974_v18 = vld [vmem:[#allocation2 + $0x58] sm:$0x80]  ;;  %4276 = vmatpush3.bf16.msra.mxu1 %v5780_v51  ;;  %2038 = vmatprep.mubr.bf16.mxu1 %v5541_v3  ;;  %v869_v34 = vor.u32 %v867_v40, %v866_v6 }
 0x142   : > { %v5909_v33 = vrot.slane %v825_v61, 1  ;;  %v941_v47 = vld [vmem:[#allocation2 + $0xd8] sm:$0xff]  ;;  %v873_v38 = vrot.slane %v871_v10, 7  ;;  %v778_v29 = vsel %vm5499_vm5, 0, %v777_v20  ;;  %v5921_v39 = vsel %vm5566_vm9, %v834_v21, %v935_v8  ;;  %4277 = vmatprep.subr.bf16.mxu1 %v5875_v52  ;;  %v977_v10 = vld [vmem:[#allocation2 + $0x70] sm:$0x80] }
 0x143   : > { %1605 = vmatmul.mubr.bf16.gmra.mrb[20].mxu0 %v5891_v56  ;;  %v838_v51 = vrot.slane %v6734_v62, 7  ;;  %v5928_v1 = vsel %vm5566_vm9, %v848_v13, %v941_v47  ;;  %779 = vst [vmem:[#allocation2 + $0x150] sm:$0x1] %v778_v29  ;;  %v880_v23 = vrot.slane %v878_v4, 7  ;;  %v980_v61 = vld [vmem:[#allocation2 + $0x88] sm:$0x80] }
 0x144   : > { %1612 = vmatprep.mubr.bf16.mxu0 %v5856_v22  ;;  %937 = vst [vmem:[#allocation2 + $0xa8] sm:$0xff] %v5921_v39  ;;  %v938_v27 = vld [vmem:[#allocation2 + $0xc0] sm:$0xff]  ;;  %943 = vst [vmem:[#allocation2 + $0xd8] sm:$0xff] %v5928_v1  ;;  %v944_v20 = vld [vmem:[#allocation2 + $0xf0] sm:$0xff]  ;;  %v6779_v13 = vshll.u32 %v5687_v57, 16  ;;  %v781_v55 = vsel %vm5499_vm5, 0, %v780_v48 }
 0x145   : > { %v6780_v4 = vshrl.u32 %v5764_v63, 16  ;;  %v983_v21 = vld [vmem:[#allocation2 + $0xa0] sm:$0x80]  ;;  %v841_v47 = vor.u32 %v839_v15, %v838_v51  ;;  %v5947_v29 = vsel %vm5566_vm9, %v855_v41, %v944_v20  ;;  %v4713_v62 = vld [vmem:[#allocation9 + $0x98] sm:$0xff]   ;;  %782 = vst [vmem:[#allocation2 + $0x168] sm:$0x1] %v781_v55  ;;  %4278 = vmatpush3.bf16.msra.mxu1 %v5875_v52 }
 0x146   : > { %v876_v8 = vor.u32 %v6779_v13, %v873_v38  ;;  %v784_v40 = vsel %vm5499_vm5, 0, %v783_v28  ;;  %v6781_v6 = vshrl.u32 %v5798_v2, 16  ;;  %v986_v48 = vld [vmem:[#allocation2 + $0xb8] sm:$0x80]  ;;  %v989_v13 = vld [vmem:[#allocation2 + $0xd0] sm:$0x80]  ;;  %4279 = vmatprep.subr.bf16.mxu1 %v5904_v54 }
 0x147   : > { %v887_v9 = vrot.slane %v6780_v4, 7  ;;  %946 = vst [vmem:[#allocation2 + $0xf0] sm:$0xff] %v5947_v29  ;;  %v947_v4 = vld [vmem:[#allocation2 + $0x108] sm:$0xff]  ;;  %785 = vst [vmem:[#allocation2 + $0x180] sm:$0x1] %v784_v40  ;;  %v969_v41 = vsel %vm5491_vm3, 0, %v968_v36  ;;  %v5963_v20 = vsel %vm5566_vm9, %v841_v47, %v938_v27 }
 0x148   : > { %v894_v38 = vrot.slane %v6781_v6, 7  ;;  %v972_v51 = vsel %vm5491_vm3, 0, %v971_v14  ;;  %v975_v28 = vsel %vm5491_vm3, 0, %v974_v18  ;;  %v5968_v52 = vsel %vm5566_vm9, %v862_v31, %v947_v4  ;;  %970 = vst [vmem:[#allocation2 + $0x28] sm:$0x80] %v969_v41  ;;  %940 = vst [vmem:[#allocation2 + $0xc0] sm:$0xff] %v5963_v20  ;;  %2039 = vmatmul.mubr.bf16.gmra.mrb[20].mxu1 %v5597_v53 }
 0x149   : > { %v6782_v55 = vshll.u32 %v5716_v50, 16  ;;  %973 = vst [vmem:[#allocation2 + $0x40] sm:$0x80] %v972_v51  ;;  %976 = vst [vmem:[#allocation2 + $0x58] sm:$0x80] %v975_v28  ;;  %v6783_v36 = vshrl.u32 %v5541_v3, 16  ;;  %2046 = vmatprep.mubr.bf16.mxu1 %v5590_v49  ;;  %4280 = vmatpush3.bf16.msra.mxu1 %v5904_v54 }
 0x14a   : > { %949 = vst [vmem:[#allocation2 + $0x108] sm:$0xff] %v5968_v52  ;;  %v950_v18 = vld [vmem:[#allocation2 + $0x120] sm:$0xff]  ;;  %v953_v27 = vld [vmem:[#allocation2 + $0x138] sm:$0xff]  ;;  %v978_v31 = vsel %vm5491_vm3, 0, %v977_v10  ;;  %v981_v47 = vsel %vm5491_vm3, 0, %v980_v61  ;;  %v984_v10 = vsel %vm5491_vm3, 0, %v983_v21  ;;  %4281 = vmatprep.subr.bf16.mxu1 %v4713_v62 }
 0x14b   : > { %v883_v40 = vor.u32 %v6782_v55, %v880_v23  ;;  %v1017_v14 = vor.u32 %v5630_v32, %v6783_v36  ;;  %v5984_v23 = vsel %vm5566_vm9, %v869_v34, %v950_v18  ;;  %v5988_v3 = vsel %vm5566_vm9, %v876_v8, %v953_v27  ;;  %979 = vst [vmem:[#allocation2 + $0x70] sm:$0x80] %v978_v31  ;;  %v956_v53 = vld [vmem:[#allocation2 + $0x150] sm:$0xff] }
 0x14c   : > { %v6784_v32 = vshll.u32 %v5764_v63, 16  ;;  %982 = vst [vmem:[#allocation2 + $0x88] sm:$0x80] %v981_v47  ;;  %v1028_v61 = vrot.slane %v832_v58, 1  ;;  %952 = vst [vmem:[#allocation2 + $0x120] sm:$0xff] %v5984_v23  ;;  %v6785_v34 = vshll.u32 %v5798_v2, 16  ;;  %1613 = vmatmul.mubr.bf16.gmra.mrb[24].mxu0 %v5921_v39 }
 0x14d   : > { %955 = vst [vmem:[#allocation2 + $0x138] sm:$0xff] %v5988_v3  ;;  %985 = vst [vmem:[#allocation2 + $0xa0] sm:$0x80] %v984_v10  ;;  %v990_v21 = vsel %vm5491_vm3, 0, %v989_v13  ;;  %v6786_v58 = vshrl.u32 %v5590_v49, 16  ;;  %v1030_v54 = vrot.slane %v839_v15, 1  ;;  %1620 = vmatprep.mubr.bf16.mxu0 %v5883_v11  ;;  %4282 = vmatpush3.bf16.msra.mxu1 %v4713_v62 }
 0x14e   : > { %v890_v6 = vor.u32 %v6784_v32, %v887_v9  ;;  %v897_v8 = vor.u32 %v6785_v34, %v894_v38  ;;  %v987_v9 = vsel %vm5491_vm3, 0, %v986_v48  ;;  %v4714_v41 = vld [vmem:[#allocation9 + $0xa0] sm:$0xff]   ;;  %v6014_v38 = vsel %vm5566_vm9, %v883_v40, %v956_v53  ;;  %991 = vst [vmem:[#allocation2 + $0xd0] sm:$0x80] %v990_v21  ;;  %v962_v28 = vld [vmem:[#allocation2 + $0x180] sm:$0xff] }
 0x14f   : > { %v1019_v4 = vor.u32 %v5699_v7, %v6786_v58  ;;  %v6787_v48 = vshrl.u32 %v5676_v45, 16  ;;  %988 = vst [vmem:[#allocation2 + $0xb8] sm:$0x80] %v987_v9  ;;  %v1145_v49 = vld [vmem:[#allocation2 + $0x10] sm:$0x80]  ;;  %958 = vst [vmem:[#allocation2 + $0x150] sm:$0xff] %v6014_v38  ;;  %4283 = vmatprep.subr.bf16.mxu1 %v4714_v41 }
 0x150   : > { %v959_v7 = vld [vmem:[#allocation2 + $0x168] sm:$0xff]  ;;  %v1146_v15 = vsel %vm5491_vm3, 0, %v1145_v49  ;;  %v6788_v55 = vshrl.u32 %v5740_v30, 16  ;;  %v6789_v40 = vshrl.u32 %v5808_v43, 16  ;;  %v6036_v18 = vsel %vm5566_vm9, %v897_v8, %v962_v28  ;;  %v1069_v31 = vld [vmem:[#allocation2 + $0x40] sm:$0xff]  ;;  %v1072_v47 = vld [vmem:[#allocation2 + $0x58] sm:$0xff]  ;;  %2047 = vmatmul.mubr.bf16.gmra.mrb[24].mxu1 %v5651_v60 }
 0x151   : > { %v1021_v51 = vor.u32 %v5760_v59, %v6787_v48  ;;  %v6025_v13 = vsel %vm5566_vm9, %v890_v6, %v959_v7  ;;  %1147 = vst [vmem:[#allocation2 + $0x10] sm:$0x80] %v1146_v15  ;;  %v1066_v27 = vld [vmem:[#allocation2 + $0x28] sm:$0xff]  ;;  %v6790_v32 = vshrl.u32 %v5837_v44, 16  ;;  %964 = vst [vmem:[#allocation2 + $0x180] sm:$0xff] %v6036_v18  ;;  %v6050_v10 = vsel %vm5577_vm10, %v1019_v4, %v1069_v31  ;;  %v4743_v48 = vld [vmem:[#allocation2 + $0xe0] sm:$0xff] }
 0x152   : > { %v1023_v59 = vor.u32 %v5864_v5, %v6788_v55  ;;  %v1025_v36 = vor.u32 %v5877_v26, %v6789_v40  ;;  %961 = vst [vmem:[#allocation2 + $0x168] sm:$0xff] %v6025_v13  ;;  %v1029_v5 = vor.u32 %v1028_v61, %v829_v24  ;;  %v4715_v26 = vld [vmem:[#allocation9 + $0xa8] sm:$0xff]   ;;  %v6046_v62 = vsel %vm5577_vm10, %v1017_v14, %v1066_v27  ;;  %v1075_v24 = vld [vmem:[#allocation2 + $0x70] sm:$0xff]  ;;  %v4725_v7 = vld [vmem:[#allocation9 + $0xb8] sm:$0xff]  }
 0x153   : > { %v1027_v6 = vor.u32 %v5909_v33, %v6790_v32  ;;  %v6054_v53 = vsel %vm5577_vm10, %v1021_v51, %v1072_v47  ;;  %v6791_v33 = vshrl.u32 %v5883_v11, 16  ;;  %1068 = vst [vmem:[#allocation2 + $0x28] sm:$0xff] %v6046_v62  ;;  %1071 = vst [vmem:[#allocation2 + $0x40] sm:$0xff] %v6050_v10  ;;  %v1078_v14 = vld [vmem:[#allocation2 + $0x88] sm:$0xff]  ;;  %v1148_v61 = vrot.slane %v5843_v25, 1  ;;  %2054 = vmatprep.mubr.bf16.mxu1 %v5676_v45  ;;  %v6100_v15 = vld [vmem:[#allocation9 + $0x200] sm:$0xff]  }
 0x154   : > { %1074 = vst [vmem:[#allocation2 + $0x58] sm:$0xff] %v6054_v53  ;;  %v6065_v8 = vsel %vm5577_vm10, %v1023_v59, %v1075_v24  ;;  %v6069_v9 = vsel %vm5577_vm10, %v1025_v36, %v1078_v14  ;;  %v1081_v21 = vld [vmem:[#allocation2 + $0xa0] sm:$0xff]  ;;  %4284 = vmatpush3.bf16.msra.mxu1 %v4714_v41  ;;  %1621 = vmatmul.mubr.bf16.gmra.mrb[28].mxu0 %v5963_v20  ;;  %v4744_v28 = vld [vmem:[#allocation2 + $0xf8] sm:$0xff]  ;;  %v4718_v55 = vld [vmem:[#allocation9 + $0x180] sm:$0xff]  }
 0x155   : > { %v1031_v34 = vor.u32 %v1030_v54, %v6791_v33  ;;  %1077 = vst [vmem:[#allocation2 + $0x70] sm:$0xff] %v6065_v8  ;;  %1080 = vst [vmem:[#allocation2 + $0x88] sm:$0xff] %v6069_v9  ;;  %v6076_v58 = vsel %vm5577_vm10, %v1027_v6, %v1081_v21  ;;  %v1087_v4 = vld [vmem:[#allocation2 + $0xd0] sm:$0xff]  ;;  %4285 = vmatprep.subr.bf16.mxu1 %v4715_v26  ;;  %v4716_v54 = vld [vmem:[#allocation9 + $0xb0] sm:$0xff]   ;;  %1628 = vmatprep.mubr.bf16.mxu0 %v4743_v48 }
 0x156   : > { %v1084_v60 = vld [vmem:[#allocation2 + $0xb8] sm:$0xff]  ;;  %1083 = vst [vmem:[#allocation2 + $0xa0] sm:$0xff] %v6076_v58  ;;  %v4746_v40 = vld [vmem:[#allocation2 + $0x128] sm:$0xff]  ;;  %v4721_v36 = vld [vmem:[#allocation9 + $0x1d0] sm:$0xff]  }
 0x157   : > { %v6082_v45 = vsel %vm5577_vm10, %v1029_v5, %v1084_v60  ;;  %v6086_v41 = vsel %vm5577_vm10, %v1031_v34, %v1087_v4  ;;  %v4719_v59 = vld [vmem:[#allocation9 + $0x1c8] sm:$0xff]   ;;  %v4722_v27 = vld [vmem:[#allocation9 + $0x190] sm:$0xff]   ;;  %v4723_v31 = vld [vmem:[#allocation9 + $0x1d8] sm:$0xff]  }
 0x158   : > { %1086 = vst [vmem:[#allocation2 + $0xb8] sm:$0xff] %v6082_v45  ;;  %1089 = vst [vmem:[#allocation2 + $0xd0] sm:$0xff] %v6086_v41  ;;  %v1151_v51 = vld [vmem:[#allocation2 + $0x10] sm:$0xff]  ;;  %4286 = vmatpush3.bf16.msra.mxu1 %v4715_v26  ;;  %v4724_v47 = vld [vmem:[#allocation9 + $0x198] sm:$0xff]  }
 0x159   : > { %v6094_v49 = vsel %vm5577_vm10, %v1148_v61, %v1151_v51  ;;  %4287 = vmatprep.subr.bf16.mxu1 %v4716_v54  ;;  %2055 = vmatmul.mubr.bf16.gmra.mrb[28].mxu1 %v5727_v35  ;;  %v4745_v35 = vld [vmem:[#allocation2 + $0x110] sm:$0xff]  ;;  %v4728_v5 = vld [vmem:[#allocation9 + $0x1e8] sm:$0xff]   ;;  %v4730_v26 = vld [vmem:[#allocation9 + $0x1f0] sm:$0xff]  }
 0x15a   : > { %1153 = vst [vmem:[#allocation2 + $0x10] sm:$0xff] %v6094_v49  ;;  %2062 = vmatprep.mubr.bf16.mxu1 %v5740_v30  ;;  %v6118_v30 = vld [vmem:[#allocation2 + $0xe0] sm:$0xff]  ;;  %v4726_v32 = vld [vmem:[#allocation9 + $0x1e0] sm:$0xff]   ;;  %v1172_v33 = vld [vmem:[#allocation2 + $0x198] sm:$0x1] }
 0x15b   : > { %v4727_v6 = vld [vmem:[#allocation9 + $0x1a0] sm:$0xff]   ;;  %v1186_v34 = vld [vmem:[#allocation2 + $0x1a8] sm:$0x80]  ;;  %v1173_v24 = vsel %vm5499_vm5, 0, %v1172_v33  ;;  %v4731_v21 = vld [vmem:[#allocation9 + $0x1b0] sm:$0xff]  }
 0x15c   : > { %4288 = vmatpush3.bf16.msra.mxu1 %v4716_v54  ;;  %1629 = vmatmul.mubr.bf16.gmra.mrb[32].mxu0 %v5928_v1  ;;  %v1187_v14 = vsel %vm5491_vm3, 0, %v1186_v34  ;;  %1174 = vst [vmem:[#allocation2 + $0x198] sm:$0x1] %v1173_v24  ;;  %v2322_v60 = vld [vmem:[#allocation2 + $0x38] sm:$0xff]  ;;  %v4733_v4 = vld [vmem:[#allocation9 + $0x1b8] sm:$0xff]   ;;  %v2321_v54 = vld [vmem:[#allocation2 + $0x30] sm:$0xff] }
 0x15d   : > { %4289 = vmatprep.subr.bf16.mxu1 %v4725_v7  ;;  %1636 = vmatprep.mubr.bf16.mxu0 %v4744_v28  ;;  %1188 = vst [vmem:[#allocation2 + $0x1a8] sm:$0x80] %v1187_v14  ;;  %v2325_v51 = vld [vmem:[#allocation2 + $0x50] sm:$0xff]  ;;  %v2327_v28 = vld [vmem:[#allocation2 + $0x60] sm:$0xff] }
 0x160   : > { %4290 = vmatpush3.bf16.msra.mxu1 %v4725_v7  ;;  %v2328_v7 = vld [vmem:[#allocation2 + $0x68] sm:$0xff] }
 0x161   : > { %4323 = vmatprep.subr.bf16.mxu1 %v6100_v15  ;;  %2063 = vmatmul.mubr.bf16.gmra.mrb[32].mxu1 %v5791_v0  ;;  %v6130_v0 = vld [vmem:[#allocation2 + $0x110] sm:$0xff] }
 0x162   : > { %2070 = vmatprep.mubr.bf16.mxu1 %v5808_v43 }
 0x163   : > { %v1183_v19 = vld [vmem:[#allocation2 + $0x198] sm:$0xff] }
 0x164   : > { %1637 = vmatmul.mubr.bf16.gmra.mrb[36].mxu0 %v5947_v29  ;;  %v1192_v16 = vld [vmem:[#allocation2 + $0x1a8] sm:$0xff]  ;;  %v6157_v48 = vsel %vm5566_vm9, %v5584_v46, %v1183_v19  ;;  %v2358_v19 = vld [vmem:[#allocation2 + $0x158] sm:$0xff] }
 0x165   : > { %1644 = vmatprep.mubr.bf16.mxu0 %v4745_v35  ;;  %1185 = vst [vmem:[#allocation2 + $0x198] sm:$0xff] %v6157_v48  ;;  %v2324_v46 = vld [vmem:[#allocation2 + $0x48] sm:$0xff] }
 0x166   : > { %v4741_v35 = vld [vmem:[#allocation9 + $0x238] sm:$0xff]  }
 0x169   : > { %2071 = vmatmul.mubr.bf16.gmra.mrb[36].mxu1 %v5848_v17 }
 0x16a   : > { %2078 = vmatprep.mubr.bf16.mxu1 %v5837_v44 }
 0x16c   : > { %1645 = vmatmul.mubr.bf16.gmra.mrb[40].mxu0 %v5968_v52 }
 0x16d   : > { %1652 = vmatprep.mubr.bf16.mxu0 %v5659_v12  ;;  %v6124_v12 = vld [vmem:[#allocation2 + $0xf8] sm:$0xff] }
 0x171   : > { %2079 = vmatmul.mubr.bf16.gmra.mrb[40].mxu1 %v5891_v56 }
 0x172   : > { %2086 = vmatprep.mubr.bf16.mxu1 %v5856_v22 }
 0x174   : > { %1653 = vmatmul.mubr.bf16.gmra.mrb[44].mxu0 %v5984_v23 }
 0x175   : > { %1660 = vmatprep.mubr.bf16.mxu0 %v5687_v57 }
 0x179   : > { %2087 = vmatmul.mubr.bf16.gmra.mrb[44].mxu1 %v5921_v39 }
 0x17a   : > { %2094 = vmatprep.mubr.bf16.mxu1 %v5883_v11 }
 0x17c   : > { %1661 = vmatmul.mubr.bf16.gmra.mrb[48].mxu0 %v5988_v3 }
 0x17d   : > { %1668 = vmatprep.mubr.bf16.mxu0 %v5716_v50 }
 0x181   : > { %2095 = vmatmul.mubr.bf16.gmra.mrb[48].mxu1 %v5963_v20 }
 0x182   : > { %2102 = vmatprep.mubr.bf16.mxu1 %v6118_v30 }
 0x184   : > { %1669 = vmatmul.mubr.bf16.gmra.mrb[52].mxu0 %v6014_v38 }
 0x185   : > { %1676 = vmatprep.mubr.bf16.mxu0 %v5764_v63 }
 0x189   : > { %2103 = vmatmul.mubr.bf16.gmra.mrb[52].mxu1 %v5928_v1 }
 0x18a   : > { %2110 = vmatprep.mubr.bf16.mxu1 %v6124_v12 }
 0x18c   : > { %1677 = vmatmul.mubr.bf16.gmra.mrb[56].mxu0 %v6025_v13 }
 0x18d   : > { %1684 = vmatprep.mubr.bf16.mxu0 %v5798_v2  ;;  %v4720_v2 = vld [vmem:[#allocation9 + $0x188] sm:$0xff]  }
 0x191   : > { %2111 = vmatmul.mubr.bf16.gmra.mrb[56].mxu1 %v5947_v29 }
 0x192   : > { %2118 = vmatprep.mubr.bf16.mxu1 %v6130_v0 }
 0x194   : > { %1685 = vmatmul.mubr.bf16.gmra.mrb[60].mxu0 %v6036_v18 }
 0x195   : > { %4243 = vmatprep.mubr.bf16.mxu0 %v6046_v62 }
 0x199   : > { %2119 = vmatmul.mubr.bf16.gmra.mrb[60].mxu1 %v5968_v52 }
 0x19a   : > { %2126 = vmatprep.mubr.bf16.mxu1 %v4746_v40  ;;  %v6195_v40 = vld [vmem:[#allocation2 + $0x130] sm:$0xff] }
 0x19c   : > { %4244 = vmatmul.mubr.bf16.vlgmr.msra.gmra.mrb[64].mxu0 %v6050_v10 }
 0x19d   : > { %4092 = vmatpush3.bf16.msra.mxu0 %v4718_v55  ;;  %4247 = vmatprep.mubr.bf16.mxu0 %v6054_v53 }
 0x19e   : > { %4093 = vmatprep.subr.bf16.mxu0 %v4719_v59  ;;  %v6191_v59 = vld [vmem:[#allocation2 + $0x118] sm:$0xff] }
 0x1a1   : > { %4094 = vmatpush3.bf16.msra.mxu0 %v4720_v2  ;;  %2127 = vmatmul.mubr.bf16.gmra.mrb[64].mxu1 %v5984_v23 }
 0x1a2   : > { %4095 = vmatprep.subr.bf16.mxu0 %v4721_v36  ;;  %2134 = vmatprep.mubr.bf16.mxu1 %v5687_v57  ;;  %v4729_v57 = vld [vmem:[#allocation9 + $0x1a8] sm:$0xff]  }
 0x1a4   : > { %4248 = vmatmul.mubr.bf16.gmra.mrb[68].mxu0 %v6065_v8 }
 0x1a5   : > { %4096 = vmatpush3.bf16.msra.mxu0 %v4722_v27  ;;  %4251 = vmatprep.mubr.bf16.mxu0 %v6069_v9 }
 0x1a6   : > { %4097 = vmatprep.subr.bf16.mxu0 %v4723_v31  ;;  %v6205_v31 = vld [vmem:[#allocation2 + $0x160] sm:$0xff] }
 0x1a9   : > { %4098 = vmatpush3.bf16.msra.mxu0 %v4724_v47  ;;  %2135 = vmatmul.mubr.bf16.gmra.mrb[68].mxu1 %v5988_v3 }
 0x1aa   : > { %4099 = vmatprep.subr.bf16.mxu0 %v4726_v32  ;;  %2142 = vmatprep.mubr.bf16.mxu1 %v5716_v50  ;;  %v4732_v50 = vld [vmem:[#allocation9 + $0x1f8] sm:$0xff]  }
 0x1ac   : > { %4252 = vmatmul.mubr.bf16.gmra.mrb[72].mxu0 %v6076_v58 }
 0x1ad   : > { %4100 = vmatpush3.bf16.msra.mxu0 %v4727_v6  ;;  %4255 = vmatprep.mubr.bf16.mxu0 %v6082_v45 }
 0x1ae   : > { %4101 = vmatprep.subr.bf16.mxu0 %v4728_v5 }
 0x1b1   : > { %4102 = vmatpush3.bf16.msra.mxu0 %v4729_v57  ;;  %2143 = vmatmul.mubr.bf16.gmra.mrb[72].mxu1 %v6014_v38 }
 0x1b2   : > { %4103 = vmatprep.subr.bf16.mxu0 %v4730_v26  ;;  %2150 = vmatprep.mubr.bf16.mxu1 %v5764_v63  ;;  %v6163_v63 = vsel %vm5577_vm10, %v1148_v61, %v1192_v16  ;;  %v4737_v61 = vld [vmem:[#allocation9 + $0x218] sm:$0xff]  }
 0x1b3   : > { %1194 = vst [vmem:[#allocation2 + $0x1a8] sm:$0xff] %v6163_v63 }
 0x1b4   : > { %4256 = vmatmul.mubr.bf16.gmra.mrb[76].mxu0 %v6086_v41 }
 0x1b5   : > { %4104 = vmatpush3.bf16.msra.mxu0 %v4731_v21  ;;  %2594 = vmatprep.mubr.bf16.mxu0 %v2322_v60 }
 0x1b6   : > { %4105 = vmatprep.subr.bf16.mxu0 %v4732_v50 }
 0x1b9   : > { %4106 = vmatpush3.bf16.msra.mxu0 %v4733_v4  ;;  %2151 = vmatmul.mubr.bf16.gmra.mrb[76].mxu1 %v6025_v13 }
 0x1ba   : > { %4291 = vmatprep.mubr.bf16.mxu1 %v6094_v49  ;;  %v4739_v49 = vld [vmem:[#allocation9 + $0x228] sm:$0xff]  }
 0x1bc   : > { %2595 = vmatmul.mubr.bf16.vlgmr.msra.gmra.mrb[80].mxu0 %v2321_v54 }
 0x1bd   : > { %2602 = vmatprep.mubr.bf16.mxu0 %v2325_v51 }
 0x1c1   : > { %4292 = vmatmul.mubr.bf16.vlgmr.msra.gmra.mrb[80].mxu1 %v6046_v62  ;;  %v4738_v62 = vld [vmem:[#allocation9 + $0x220] sm:$0xff]  }
 0x1c2   : > { %4324 = vmatpush3.bf16.msra.mxu1 %v6100_v15  ;;  %4295 = vmatprep.mubr.bf16.mxu1 %v6050_v10  ;;  %v4740_v15 = vld [vmem:[#allocation9 + $0x230] sm:$0xff]  }
 0x1c3   : > { %4325 = vmatprep.subr.bf16.mxu1 %v4735_v37 }
 0x1c4   : > { %2603 = vmatmul.mubr.bf16.gmra.mrb[84].mxu0 %v2324_v46 }
 0x1c5   : > { %2610 = vmatprep.mubr.bf16.mxu0 %v2328_v7 }
 0x1c6   : > { %4326 = vmatpush3.bf16.msra.mxu1 %v4735_v37 }
 0x1c7   : > { %4327 = vmatprep.subr.bf16.mxu1 %v4736_v42 }
 0x1c9   : > { %4296 = vmatmul.mubr.bf16.gmra.mrb[84].mxu1 %v6054_v53 }
 0x1ca   : > { %4299 = vmatprep.mubr.bf16.mxu1 %v6065_v8  ;;  %4328 = vmatpush3.bf16.msra.mxu1 %v4736_v42 }
 0x1cb   : > { %4329 = vmatprep.subr.bf16.mxu1 %v4737_v61 }
 0x1cc   : > { %2611 = vmatmul.mubr.bf16.gmra.mrb[88].mxu0 %v2327_v28 }
 0x1cd   : > { %2618 = vmatprep.mubr.bf16.mxu0 %v5808_v43  ;;  %v6183_v43 = vld [vmem:[#allocation2 + $0xe8] sm:$0xff] }
 0x1ce   : > { %4330 = vmatpush3.bf16.msra.mxu1 %v4737_v61 }
 0x1cf   : > { %4331 = vmatprep.subr.bf16.mxu1 %v4738_v62 }
 0x1d1   : > { %4300 = vmatmul.mubr.bf16.gmra.mrb[88].mxu1 %v6069_v9 }
 0x1d2   : > { %4303 = vmatprep.mubr.bf16.mxu1 %v6076_v58  ;;  %4332 = vmatpush3.bf16.msra.mxu1 %v4738_v62 }
 0x1d3   : > { %4333 = vmatprep.subr.bf16.mxu1 %v4739_v49 }
 0x1d4   : > { %2619 = vmatmul.mubr.bf16.gmra.mrb[92].mxu0 %v5848_v17  ;;  %v6185_v17 = vld [vmem:[#allocation2 + $0x100] sm:$0xff] }
 0x1d5   : > { %2626 = vmatprep.mubr.bf16.mxu0 %v5837_v44 }
 0x1d6   : > { %4334 = vmatpush3.bf16.msra.mxu1 %v4739_v49 }
 0x1d7   : > { %4335 = vmatprep.subr.bf16.mxu1 %v4740_v15 }
 0x1d9   : > { %4304 = vmatmul.mubr.bf16.gmra.mrb[92].mxu1 %v6082_v45 }
 0x1da   : > { %4307 = vmatprep.mubr.bf16.mxu1 %v6086_v41  ;;  %4336 = vmatpush3.bf16.msra.mxu1 %v4740_v15 }
 0x1db   : > { %4337 = vmatprep.subr.bf16.mxu1 %v4741_v35 }
 0x1dc   : > { %2627 = vmatmul.mubr.bf16.gmra.mrb[96].mxu0 %v5891_v56 }
 0x1dd   : > { %2634 = vmatprep.mubr.bf16.mxu0 %v5856_v22 }
 0x1de   : > { %4338 = vmatpush3.bf16.msra.mxu1 %v4741_v35 }
 0x1e1   : > { %4308 = vmatmul.mubr.bf16.gmra.mrb[0].mxu1 %v6183_v43 }
 0x1e2   : > { %4311 = vmatprep.mubr.bf16.mxu1 %v6185_v17 }
 0x1e4   : > { %2635 = vmatmul.mubr.bf16.gmra.mrb[100].mxu0 %v5921_v39  ;;  %v6203_v39 = vld [vmem:[#allocation2 + $0x148] sm:$0xff] }
 0x1e5   : > { %2642 = vmatprep.mubr.bf16.mxu0 %v5883_v11 }
 0x1e6   : > { %v3835_v44 = vpop.f32.mrb[0].mxu0 }
 0x1e7   : > { %v3836_v55 = vpop.f32.mrb[1].mxu0 }
 0x1e8   : > { %v6193_v56 = vadd.f32 %v3836_v55, %v3835_v44  ;;  %v3838_v22 = vpop.f32.mrb[2].mxu0 }
 0x1e9   : > { %v3839_v2 = vpop.f32.mrb[3].mxu0  ;;  %4312 = vmatmul.mubr.bf16.gmra.mrb[4].mxu1 %v6191_v59 }
 0x1ea   : > { %v6197_v36 = vadd.f32 %v3839_v2, %v3838_v22  ;;  %4315 = vmatprep.mubr.bf16.mxu1 %v6195_v40 }
 0x1ec   : > { %2643 = vmatmul.mubr.bf16.gmra.mrb[104].mxu0 %v5963_v20  ;;  %v6215_v20 = vld [vmem:[#allocation2 + $0x178] sm:$0xff] }
 0x1ed   : > { %2650 = vmatprep.mubr.bf16.mxu0 %v6118_v30 }
 0x1ee   : > { %v3841_v11 = vpop.f32.mrb[4].mxu0 }
 0x1ef   : > { %v3842_v27 = vpop.f32.mrb[5].mxu0 }
 0x1f0   : > { %v6207_v47 = vadd.f32 %v3842_v27, %v3841_v11  ;;  %v3844_v32 = vpop.f32.mrb[6].mxu0 }
 0x1f1   : > { %v3845_v6 = vpop.f32.mrb[7].mxu0  ;;  %4316 = vmatmul.mubr.bf16.gmra.mrb[8].mxu1 %v6203_v39 }
 0x1f2   : > { %v6210_v5 = vadd.f32 %v3845_v6, %v3844_v32  ;;  %4319 = vmatprep.mubr.bf16.mxu1 %v6205_v31 }
 0x1f4   : > { %2651 = vmatmul.mubr.bf16.gmra.mrb[108].mxu0 %v5928_v1  ;;  %v2352_v1 = vld [vmem:[#allocation2 + $0x128] sm:$0xff] }
 0x1f5   : > { %2658 = vmatprep.mubr.bf16.mxu0 %v6124_v12 }
 0x1f8   : > { %v3847_v30 = vpop.f32.mrb[8].mxu0 }
 0x1f9   : > { %4320 = vmatmul.mubr.bf16.gmra.mrb[12].mxu1 %v6215_v20  ;;  %v3848_v57 = vpop.f32.mrb[9].mxu0 }
 0x1fa   : > { %4339 = vmatprep.mubr.bf16.mxu1 %v6050_v10  ;;  %v6220_v26 = vadd.f32 %v3848_v57, %v3847_v30  ;;  %v3850_v33 = vpop.f32.mrb[10].mxu0 }
 0x1fb   : > { %v3851_v34 = vpop.f32.mrb[11].mxu0 }
 0x1fc   : > { %2659 = vmatmul.mubr.bf16.gmra.mrb[112].mxu0 %v5947_v29  ;;  %v6223_v24 = vadd.f32 %v3851_v34, %v3850_v33 }
 0x1fd   : > { %2666 = vmatprep.mubr.bf16.mxu0 %v6130_v0  ;;  %v2355_v0 = vld [vmem:[#allocation2 + $0x140] sm:$0xff] }
 0x201   : > { %4340 = vmatmul.mubr.bf16.vlgmr.msra.gmra.mrb[80].mxu1 %v6054_v53 }
 0x202   : > { %4343 = vmatprep.mubr.bf16.mxu1 %v6065_v8 }
 0x204   : > { %2667 = vmatmul.mubr.bf16.gmra.mrb[116].mxu0 %v5968_v52  ;;  %v3853_v12 = vpop.f32.mrb[12].mxu0 }
 0x205   : > { %v3854_v10 = vpop.f32.mrb[13].mxu0  ;;  %2674 = vmatprep.mubr.bf16.mxu0 %v2352_v1 }
 0x206   : > { %v6228_v14 = vadd.f32 %v3854_v10, %v3853_v12  ;;  %v3856_v29 = vpop.f32.mrb[14].mxu0 }
 0x207   : > { %v3857_v21 = vpop.f32.mrb[15].mxu0 }
 0x208   : > { %v6230_v50 = vadd.f32 %v3857_v21, %v3856_v29 }
 0x209   : > { %4344 = vmatmul.mubr.bf16.gmra.mrb[84].mxu1 %v6069_v9 }
 0x20a   : > { %4347 = vmatprep.mubr.bf16.mxu1 %v6076_v58 }
 0x20c   : > { %2675 = vmatmul.mubr.bf16.gmra.mrb[120].mxu0 %v5984_v23 }
 0x20d   : > { %2682 = vmatprep.mubr.bf16.mxu0 %v2355_v0 }
 0x20e   : > { %v3859_v53 = vpop.f32.mrb[16].mxu0 }
 0x20f   : > { %v3860_v8 = vpop.f32.mrb[17].mxu0 }
 0x210   : > { %v6235_v52 = vadd.f32 %v3860_v8, %v3859_v53  ;;  %v3862_v60 = vpop.f32.mrb[18].mxu0 }
 0x211   : > { %4348 = vmatmul.mubr.bf16.gmra.mrb[88].mxu1 %v6082_v45  ;;  %v3863_v4 = vpop.f32.mrb[19].mxu0 }
 0x212   : > { %v6238_v16 = vadd.f32 %v3863_v4, %v3862_v60  ;;  %4351 = vmatprep.mubr.bf16.mxu1 %v6086_v41  ;;  %v2361_v41 = vld [vmem:[#allocation2 + $0x170] sm:$0xff] }
 0x213   : > { %v3971_v9 = vpop.f32.mrb[16].mxu1  ;;  %v2365_v4 = vld [vmem:[#allocation2 + $0x190] sm:$0xff] }
 0x214   : > { %2683 = vmatmul.mubr.bf16.gmra.mrb[124].mxu0 %v5988_v3  ;;  %v3972_v58 = vpop.f32.mrb[17].mxu1 }
 0x215   : > { %2690 = vmatprep.mubr.bf16.mxu0 %v2358_v19  ;;  %v6242_v23 = vadd.f32 %v3972_v58, %v3971_v9  ;;  %v3974_v54 = vpop.f32.mrb[18].mxu1 }
 0x216   : > { %v3865_v51 = vpop.f32.mrb[20].mxu0  ;;  %v3975_v37 = vpop.f32.mrb[19].mxu1 }
 0x217   : > { %v3866_v46 = vpop.f32.mrb[21].mxu0  ;;  %v6244_v7 = vadd.f32 %v3975_v37, %v3974_v54 }
 0x218   : > { %v6246_v45 = vadd.f32 %v3866_v46, %v3865_v51  ;;  %v3868_v42 = vpop.f32.mrb[22].mxu0 }
 0x219   : > { %4352 = vmatmul.mubr.bf16.gmra.mrb[92].mxu1 %v6183_v43  ;;  %v3869_v61 = vpop.f32.mrb[23].mxu0 }
 0x21a   : > { %v6249_v28 = vadd.f32 %v3869_v61, %v3868_v42  ;;  %4355 = vmatprep.mubr.bf16.mxu1 %v6185_v17  ;;  %v2364_v17 = vld [vmem:[#allocation2 + $0x188] sm:$0xff] }
 0x21b   : > { %v3977_v3 = vpop.f32.mrb[20].mxu1 }
 0x21c   : > { %2691 = vmatmul.mubr.bf16.gmra.mrb[128].mxu0 %v6014_v38  ;;  %v3978_v62 = vpop.f32.mrb[21].mxu1 }
 0x21d   : > { %2698 = vmatprep.mubr.bf16.mxu0 %v2361_v41  ;;  %v6253_v49 = vadd.f32 %v3978_v62, %v3977_v3  ;;  %v3980_v15 = vpop.f32.mrb[22].mxu1 }
 0x21e   : > { %v3981_v44 = vpop.f32.mrb[23].mxu1 }
 0x21f   : > { %v3871_v35 = vpop.f32.mrb[24].mxu0  ;;  %v6255_v22 = vadd.f32 %v3981_v44, %v3980_v15 }
 0x220   : > { %v3872_v55 = vpop.f32.mrb[25].mxu0 }
 0x221   : > { %v6257_v43 = vadd.f32 %v3872_v55, %v3871_v35  ;;  %v3874_v2 = vpop.f32.mrb[26].mxu0  ;;  %4356 = vmatmul.mubr.bf16.gmra.mrb[0].mxu1 %v6191_v59 }
 0x222   : > { %v3875_v11 = vpop.f32.mrb[27].mxu0  ;;  %4359 = vmatprep.mubr.bf16.mxu1 %v6195_v40 }
 0x223   : > { %v6260_v27 = vadd.f32 %v3875_v11, %v3874_v2  ;;  %v3983_v38 = vpop.f32.mrb[24].mxu1 }
 0x224   : > { %2699 = vmatmul.mubr.bf16.gmra.mrb[132].mxu0 %v6025_v13  ;;  %v3984_v32 = vpop.f32.mrb[25].mxu1 }
 0x225   : > { %2706 = vmatprep.mubr.bf16.mxu0 %v2364_v17  ;;  %v6264_v6 = vadd.f32 %v3984_v32, %v3983_v38  ;;  %v3986_v30 = vpop.f32.mrb[26].mxu1 }
 0x226   : > { %v3987_v33 = vpop.f32.mrb[27].mxu1 }
 0x227   : > { %v3877_v57 = vpop.f32.mrb[28].mxu0  ;;  %v6266_v1 = vadd.f32 %v3987_v33, %v3986_v30 }
 0x228   : > { %v3878_v34 = vpop.f32.mrb[29].mxu0 }
 0x229   : > { %v6268_v59 = vadd.f32 %v3878_v34, %v3877_v57  ;;  %v3880_v12 = vpop.f32.mrb[30].mxu0  ;;  %4360 = vmatmul.mubr.bf16.gmra.mrb[4].mxu1 %v6203_v39 }
 0x22a   : > { %v3881_v10 = vpop.f32.mrb[31].mxu0  ;;  %4363 = vmatprep.mubr.bf16.mxu1 %v6205_v31 }
 0x22b   : > { %v6271_v40 = vadd.f32 %v3881_v10, %v3880_v12 }
 0x22c   : > { %2707 = vmatmul.mubr.bf16.gmra.mrb[136].mxu0 %v6036_v18  ;;  %v3989_v13 = vpop.f32.mrb[28].mxu1 }
 0x22d   : > { %2714 = vmatprep.mubr.bf16.mxu0 %v5843_v25  ;;  %v3990_v29 = vpop.f32.mrb[29].mxu1 }
 0x22e   : > { %v6276_v21 = vadd.f32 %v3990_v29, %v3989_v13  ;;  %v3992_v0 = vpop.f32.mrb[30].mxu1 }
 0x22f   : > { %v3883_v53 = vpop.f32.mrb[32].mxu0  ;;  %v3993_v8 = vpop.f32.mrb[31].mxu1 }
 0x230   : > { %v3884_v60 = vpop.f32.mrb[33].mxu0  ;;  %v6278_v19 = vadd.f32 %v3993_v8, %v3992_v0 }
 0x231   : > { %v6280_v39 = vadd.f32 %v3884_v60, %v3883_v53  ;;  %v3886_v9 = vpop.f32.mrb[34].mxu0  ;;  %4364 = vmatmul.mubr.bf16.gmra.mrb[8].mxu1 %v6215_v20 }
 0x232   : > { %v3887_v31 = vpop.f32.mrb[35].mxu0  ;;  %4367 = vmatprep.mubr.bf16.mxu1 %v2365_v4 }
 0x233   : > { %v6283_v18 = vadd.f32 %v3887_v31, %v3886_v9 }
 0x234   : > { %2715 = vmatmul.mubr.bf16.gmra.mrb[140].mxu0 %v6157_v48  ;;  %v3995_v25 = vpop.f32.mrb[32].mxu1 }
 0x235   : > { %v3996_v58 = vpop.f32.mrb[33].mxu1 }
 0x236   : > { %v6286_v54 = vadd.f32 %v3996_v58, %v3995_v25  ;;  %v3998_v51 = vpop.f32.mrb[34].mxu1 }
 0x237   : > { %v3889_v37 = vpop.f32.mrb[36].mxu0  ;;  %v3999_v46 = vpop.f32.mrb[35].mxu1 }
 0x238   : > { %v3890_v42 = vpop.f32.mrb[37].mxu0  ;;  %v6288_v61 = vadd.f32 %v3999_v46, %v3998_v51 }
 0x239   : > { %v3891_v41 = vadd.f32 %v3890_v42, %v3889_v37  ;;  %v3892_v3 = vpop.f32.mrb[38].mxu0  ;;  %4368 = vmatmul.mubr.bf16.gmra.mrb[12].mxu1 %v6163_v63 }
 0x23a   : > { %v3893_v20 = vpop.f32.mrb[39].mxu0 }
 0x23b   : > { %v6291_v62 = vadd.f32 %v3893_v20, %v3892_v3 }
 0x23c   : > { %v4001_v15 = vpop.f32.mrb[36].mxu1 }
 0x23d   : > { %v4002_v35 = vpop.f32.mrb[37].mxu1 }
 0x23e   : > { %v6293_v48 = vadd.f32 %v4002_v35, %v4001_v15  ;;  %v4004_v44 = vpop.f32.mrb[38].mxu1 }
 0x23f   : > { %v3895_v55 = vpop.f32.mrb[40].mxu0  ;;  %v4005_v2 = vpop.f32.mrb[39].mxu1 }
 0x240   : > { %v3896_v11 = vpop.f32.mrb[41].mxu0  ;;  %v6295_v17 = vadd.f32 %v4005_v2, %v4004_v44 }
 0x241   : > { %v6297_v38 = vadd.f32 %v3896_v11, %v3895_v55  ;;  %v3898_v32 = vpop.f32.mrb[42].mxu0 }
 0x242   : > { %v3899_v30 = vpop.f32.mrb[43].mxu0 }
 0x243   : > { %v6299_v57 = vadd.f32 %v3899_v30, %v3898_v32 }
 0x244   : > { %v4007_v63 = vpop.f32.mrb[40].mxu1 }
 0x245   : > { %v4008_v33 = vpop.f32.mrb[41].mxu1 }
 0x246   : > { %v6301_v34 = vadd.f32 %v4008_v33, %v4007_v63  ;;  %v4010_v12 = vpop.f32.mrb[42].mxu1 }
 0x247   : > { %v3901_v10 = vpop.f32.mrb[44].mxu0  ;;  %v4011_v13 = vpop.f32.mrb[43].mxu1 }
 0x248   : > { %v3902_v29 = vpop.f32.mrb[45].mxu0  ;;  %v6303_v0 = vadd.f32 %v4011_v13, %v4010_v12 }
 0x249   : > { %v6305_v53 = vadd.f32 %v3902_v29, %v3901_v10  ;;  %v3904_v8 = vpop.f32.mrb[46].mxu0 }
 0x24a   : > { %v3905_v60 = vpop.f32.mrb[47].mxu0 }
 0x24b   : > { %v6307_v4 = vadd.f32 %v3905_v60, %v3904_v8 }
 0x24c   : > { %v4013_v9 = vpop.f32.mrb[44].mxu1 }
 0x24d   : > { %v4014_v31 = vpop.f32.mrb[45].mxu1 }
 0x24e   : > { %v6309_v25 = vadd.f32 %v4014_v31, %v4013_v9  ;;  %v4016_v58 = vpop.f32.mrb[46].mxu1 }
 0x24f   : > { %v3907_v51 = vpop.f32.mrb[48].mxu0  ;;  %v4017_v37 = vpop.f32.mrb[47].mxu1 }
 0x250   : > { %v3908_v46 = vpop.f32.mrb[49].mxu0  ;;  %v6311_v42 = vadd.f32 %v4017_v37, %v4016_v58 }
 0x251   : > { %v6313_v3 = vadd.f32 %v3908_v46, %v3907_v51  ;;  %v3910_v20 = vpop.f32.mrb[50].mxu0 }
 0x252   : > { %v3911_v15 = vpop.f32.mrb[51].mxu0 }
 0x253   : > { %v6315_v35 = vadd.f32 %v3911_v15, %v3910_v20 }
 0x254   : > { %v4019_v44 = vpop.f32.mrb[48].mxu1 }
 0x255   : > { %v4020_v55 = vpop.f32.mrb[49].mxu1 }
 0x256   : > { %v4021_v2 = vadd.f32 %v4020_v55, %v4019_v44  ;;  %v4022_v11 = vpop.f32.mrb[50].mxu1 }
 0x257   : > { %v3913_v32 = vpop.f32.mrb[52].mxu0  ;;  %v4023_v30 = vpop.f32.mrb[51].mxu1 }
 0x258   : > { %v3914_v63 = vpop.f32.mrb[53].mxu0  ;;  %v6318_v33 = vadd.f32 %v4021_v2, %v6280_v39  ;;  %v4024_v12 = vadd.f32 %v4023_v30, %v4022_v11 }
 0x259   : > { %v6320_v10 = vadd.f32 %v3914_v63, %v3913_v32  ;;  %v3916_v13 = vpop.f32.mrb[54].mxu0 }
 0x25a   : > { %v3917_v29 = vpop.f32.mrb[55].mxu0  ;;  %v6323_v8 = vadd.f32 %v4024_v12, %v6283_v18 }
 0x25b   : > { %v6325_v60 = vadd.f32 %v3917_v29, %v3916_v13 }
 0x25c   : > { %v4025_v9 = vpop.f32.mrb[52].mxu1 }
 0x25d   : > { %v4026_v31 = vpop.f32.mrb[53].mxu1 }
 0x25e   : > { %v4027_v58 = vadd.f32 %v4026_v31, %v4025_v9  ;;  %v4028_v51 = vpop.f32.mrb[54].mxu1 }
 0x25f   : > { %v3919_v37 = vpop.f32.mrb[56].mxu0  ;;  %v4029_v46 = vpop.f32.mrb[55].mxu1 }
 0x260   : > { %v3920_v20 = vpop.f32.mrb[57].mxu0  ;;  %v6327_v15 = vadd.f32 %v4027_v58, %v3891_v41  ;;  %v4030_v39 = vadd.f32 %v4029_v46, %v4028_v51 }
 0x261   : > { %v6329_v44 = vadd.f32 %v3920_v20, %v3919_v37  ;;  %v3922_v55 = vpop.f32.mrb[58].mxu0 }
 0x262   : > { %v3923_v2 = vpop.f32.mrb[59].mxu0  ;;  %v6332_v11 = vadd.f32 %v4030_v39, %v6291_v62 }
 0x263   : > { %v6334_v18 = vadd.f32 %v3923_v2, %v3922_v55 }
 0x264   : > { %6792 = vst [vmem:[#allocation32_spill] sm:$0xff] %v6332_v11  ;;  %v4031_v32 = vpop.f32.mrb[56].mxu1 }
 0x265   : > { %v4032_v30 = vpop.f32.mrb[57].mxu1 }
 0x266   : > { %v4033_v63 = vadd.f32 %v4032_v30, %v4031_v32  ;;  %v4034_v12 = vpop.f32.mrb[58].mxu1 }
 0x267   : > { %v3925_v13 = vpop.f32.mrb[60].mxu0  ;;  %v4035_v29 = vpop.f32.mrb[59].mxu1 }
 0x268   : > { %v3926_v9 = vpop.f32.mrb[61].mxu0  ;;  %v6337_v41 = vadd.f32 %v4033_v63, %v6297_v38  ;;  %v4036_v31 = vadd.f32 %v4035_v29, %v4034_v12 }
 0x269   : > { %v6339_v58 = vadd.f32 %v3926_v9, %v3925_v13  ;;  %v3928_v51 = vpop.f32.mrb[62].mxu0 }
 0x26a   : > { %v3929_v37 = vpop.f32.mrb[63].mxu0  ;;  %v6342_v62 = vadd.f32 %v4036_v31, %v6299_v57 }
 0x26b   : > { %v6344_v46 = vadd.f32 %v3929_v37, %v3928_v51 }
 0x26c   : > { %v4037_v20 = vpop.f32.mrb[60].mxu1 }
 0x26d   : > { %v4038_v39 = vpop.f32.mrb[61].mxu1 }
 0x26e   : > { %v4039_v55 = vadd.f32 %v4038_v39, %v4037_v20  ;;  %v4040_v2 = vpop.f32.mrb[62].mxu1 }
 0x26f   : > { %v4245_v32 = vpop.f32.mrb[64].mxu0  ;;  %v4041_v30 = vpop.f32.mrb[63].mxu1 }
 0x270   : > { %v1736_v11 = vadd.f32 %v4245_v32, %v6207_v47  ;;  %v1727_v38 = vpop.f32.mrb[65].mxu0  ;;  %v6348_v63 = vadd.f32 %v4039_v55, %v6305_v53  ;;  %v4042_v12 = vadd.f32 %v4041_v30, %v4040_v2 }
 0x271   : > { %v1728_v13 = vadd.f32 %v6193_v56, %v1727_v38  ;;  %v4246_v29 = vpop.f32.mrb[66].mxu0 }
 0x272   : > { %v6352_v57 = vadd.f32 %v6253_v49, %v1736_v11  ;;  %v1739_v9 = vadd.f32 %v4246_v29, %v6210_v5  ;;  %v1730_v31 = vpop.f32.mrb[67].mxu0  ;;  %v6356_v51 = vadd.f32 %v4042_v12, %v6307_v4 }
 0x273   : > { %v6359_v37 = vadd.f32 %v6242_v23, %v1728_v13  ;;  %v1731_v47 = vadd.f32 %v6197_v36, %v1730_v31 }
 0x274   : > { %v6363_v53 = vadd.f32 %v6255_v22, %v1739_v9  ;;  %v4043_v20 = vpop.f32.mrb[64].mxu1 }
 0x275   : > { %v6366_v56 = vadd.f32 %v6244_v7, %v1731_v47  ;;  %v4044_v49 = vpop.f32.mrb[65].mxu1 }
 0x276   : > { %v4045_v11 = vadd.f32 %v4044_v49, %v4043_v20  ;;  %v4046_v39 = vpop.f32.mrb[66].mxu1 }
 0x277   : > { %v4249_v5 = vpop.f32.mrb[68].mxu0  ;;  %v4047_v55 = vpop.f32.mrb[67].mxu1 }
 0x278   : > { %v1752_v4 = vadd.f32 %v4249_v5, %v6228_v14  ;;  %v1743_v2 = vpop.f32.mrb[69].mxu0  ;;  %v6370_v23 = vadd.f32 %v4045_v11, %v6313_v3  ;;  %v4048_v32 = vadd.f32 %v4047_v55, %v4046_v39 }
 0x279   : > { %v1744_v36 = vadd.f32 %v6220_v26, %v1743_v2  ;;  %v4250_v22 = vpop.f32.mrb[70].mxu0 }
 0x27a   : > { %v6374_v30 = vadd.f32 %v6276_v21, %v1752_v4  ;;  %v1755_v7 = vadd.f32 %v4250_v22, %v6230_v50  ;;  %v1746_v38 = vpop.f32.mrb[71].mxu0  ;;  %v6378_v12 = vadd.f32 %v4048_v32, %v6315_v35 }
 0x27b   : > { %v6381_v13 = vadd.f32 %v6264_v6, %v1744_v36  ;;  %v1747_v14 = vadd.f32 %v6223_v24, %v1746_v38 }
 0x27c   : > { %v6385_v3 = vadd.f32 %v6278_v19, %v1755_v7  ;;  %v4049_v29 = vpop.f32.mrb[68].mxu1 }
 0x27d   : > { %v6388_v26 = vadd.f32 %v6266_v1, %v1747_v14  ;;  %v4050_v21 = vpop.f32.mrb[69].mxu1 }
 0x27e   : > { %v4051_v9 = vadd.f32 %v4050_v21, %v4049_v29  ;;  %v4052_v31 = vpop.f32.mrb[70].mxu1 }
 0x27f   : > { %v4253_v50 = vpop.f32.mrb[72].mxu0  ;;  %v4053_v47 = vpop.f32.mrb[71].mxu1 }
 0x280   : > { %v1768_v35 = vadd.f32 %v4253_v50, %v6246_v45  ;;  %v1759_v20 = vpop.f32.mrb[73].mxu0  ;;  %v6392_v6 = vadd.f32 %v4051_v9, %v6320_v10  ;;  %v4054_v49 = vadd.f32 %v4053_v47, %v4052_v31 }
 0x281   : > { %v1760_v24 = vadd.f32 %v6235_v52, %v1759_v20  ;;  %v4254_v19 = vpop.f32.mrb[74].mxu0 }
 0x282   : > { %v6396_v11 = vadd.f32 %v6293_v48, %v1768_v35  ;;  %v1771_v1 = vadd.f32 %v4254_v19, %v6249_v28  ;;  %v1762_v39 = vpop.f32.mrb[75].mxu0  ;;  %v6400_v5 = vadd.f32 %v4054_v49, %v6325_v60 }
 0x283   : > { %v6403_v55 = vadd.f32 %v6286_v54, %v1760_v24  ;;  %v1763_v45 = vadd.f32 %v6238_v16, %v1762_v39 }
 0x284   : > { %v6407_v10 = vadd.f32 %v6295_v17, %v1771_v1  ;;  %v4055_v4 = vpop.f32.mrb[72].mxu1 }
 0x285   : > { %v6410_v52 = vadd.f32 %v6288_v61, %v1763_v45  ;;  %v4056_v48 = vpop.f32.mrb[73].mxu1 }
 0x286   : > { %v4057_v2 = vadd.f32 %v4056_v48, %v4055_v4  ;;  %v4058_v32 = vpop.f32.mrb[74].mxu1 }
 0x287   : > { %v4257_v28 = vpop.f32.mrb[76].mxu0  ;;  %v4059_v36 = vpop.f32.mrb[75].mxu1 }
 0x288   : > { %v1784_v60 = vadd.f32 %v4257_v28, %v6268_v59  ;;  %v1775_v22 = vpop.f32.mrb[77].mxu0  ;;  %v6414_v54 = vadd.f32 %v4057_v2, %v6329_v44  ;;  %v4060_v7 = vadd.f32 %v4059_v36, %v4058_v32 }
 0x289   : > { %v1776_v16 = vadd.f32 %v6257_v43, %v1775_v22  ;;  %v4258_v17 = vpop.f32.mrb[78].mxu0 }
 0x28a   : > { %v6418_v38 = vadd.f32 %v6309_v25, %v1784_v60  ;;  %v1787_v61 = vadd.f32 %v4258_v17, %v6271_v40  ;;  %v1778_v14 = vpop.f32.mrb[79].mxu0  ;;  %v6422_v29 = vadd.f32 %v4060_v7, %v6334_v18 }
 0x28b   : > { %v6425_v21 = vadd.f32 %v6301_v34, %v1776_v16  ;;  %v1779_v59 = vadd.f32 %v6260_v27, %v1778_v14 }
 0x28c   : > { %v6429_v44 = vadd.f32 %v6311_v42, %v1787_v61  ;;  %v4061_v9 = vpop.f32.mrb[76].mxu1 }
 0x28d   : > { %v6432_v43 = vadd.f32 %v6303_v0, %v1779_v59  ;;  %v4062_v25 = vpop.f32.mrb[77].mxu1 }
 0x28e   : > { %v4063_v31 = vadd.f32 %v4062_v25, %v4061_v9  ;;  %v4064_v50 = vpop.f32.mrb[78].mxu1 }
 0x28f   : > { %v4107_v40 = vpop.f32.mrb[80].mxu0  ;;  %v4065_v47 = vpop.f32.mrb[79].mxu1 }
 0x290   : > { %v4108_v35 = vpop.f32.mrb[81].mxu0  ;;  %v6435_v18 = vadd.f32 %v4063_v31, %v6339_v58  ;;  %v4066_v34 = vadd.f32 %v4065_v47, %v4064_v50 }
 0x291   : > { %v4109_v20 = vadd.f32 %v4108_v35, %v4107_v40  ;;  %v4110_v49 = vpop.f32.mrb[82].mxu0 }
 0x292   : > { %v4111_v27 = vpop.f32.mrb[83].mxu0  ;;  %v6438_v42 = vadd.f32 %v4066_v34, %v6344_v46 }
 0x293   : > { %v4112_v24 = vadd.f32 %v4111_v27, %v4110_v49  ;;  %v6441_v0 = vadd.f32 %v4109_v20, %v6359_v37 }
 0x295   : > { %v6444_v19 = vadd.f32 %v4112_v24, %v6366_v56 }
 0x297   : > { %v4113_v1 = vpop.f32.mrb[84].mxu0 }
 0x298   : > { %v4114_v39 = vpop.f32.mrb[85].mxu0 }
 0x299   : > { %v4115_v45 = vadd.f32 %v4114_v39, %v4113_v1  ;;  %v4116_v4 = vpop.f32.mrb[86].mxu0 }
 0x29a   : > { %v4117_v58 = vpop.f32.mrb[87].mxu0 }
 0x29b   : > { %v4118_v48 = vadd.f32 %v4117_v58, %v4116_v4  ;;  %v4389_v2 = vadd.f32 %v4115_v45, %v6352_v57 }
 0x29d   : > { %v6448_v32 = vadd.f32 %v4118_v48, %v6363_v53 }
 0x29f   : > { %v4119_v46 = vpop.f32.mrb[88].mxu0 }
 0x2a0   : > { %v4120_v28 = vpop.f32.mrb[89].mxu0 }
 0x2a1   : > { %v4121_v36 = vadd.f32 %v4120_v28, %v4119_v46  ;;  %v4122_v60 = vpop.f32.mrb[90].mxu0 }
 0x2a2   : > { %v4123_v37 = vpop.f32.mrb[91].mxu0 }
 0x2a3   : > { %v4124_v22 = vadd.f32 %v4123_v37, %v4122_v60  ;;  %v6451_v56 = vadd.f32 %v4121_v36, %v6381_v13 }
 0x2a5   : > { %v6454_v7 = vadd.f32 %v4124_v22, %v6388_v26 }
 0x2a7   : > { %v4125_v16 = vpop.f32.mrb[92].mxu0 }
 0x2a8   : > { %v4126_v17 = vpop.f32.mrb[93].mxu0 }
 0x2a9   : > { %v4127_v61 = vadd.f32 %v4126_v17, %v4125_v16  ;;  %v4128_v14 = vpop.f32.mrb[94].mxu0 }
 0x2aa   : > { %v4129_v57 = vpop.f32.mrb[95].mxu0 }
 0x2ab   : > { %v4130_v59 = vadd.f32 %v4129_v57, %v4128_v14  ;;  %v6457_v53 = vadd.f32 %v4127_v61, %v6374_v30 }
 0x2ad   : > { %v6460_v9 = vadd.f32 %v4130_v59, %v6385_v3 }
 0x2af   : > { %v4131_v25 = vpop.f32.mrb[96].mxu0 }
 0x2b0   : > { %v4132_v31 = vpop.f32.mrb[97].mxu0 }
 0x2b1   : > { %v4133_v50 = vadd.f32 %v4132_v31, %v4131_v25  ;;  %v4134_v13 = vpop.f32.mrb[98].mxu0 }
 0x2b2   : > { %v4135_v40 = vpop.f32.mrb[99].mxu0 }
 0x2b3   : > { %v4136_v47 = vadd.f32 %v4135_v40, %v4134_v13  ;;  %v6463_v26 = vadd.f32 %v4133_v50, %v6403_v55  ;;  %v6492_v13 = vld [vmem:[#allocation11] ss:$0 sm:$0xff] }
 0x2b5   : > { %v6466_v35 = vadd.f32 %v4136_v47, %v6410_v52 }
 0x2b7   : > { %v4137_v34 = vpop.f32.mrb[100].mxu0 }
 0x2b8   : > { %v4138_v20 = vpop.f32.mrb[101].mxu0 }
 0x2b9   : > { %v4139_v49 = vadd.f32 %v4138_v20, %v4137_v34  ;;  %v4140_v30 = vpop.f32.mrb[102].mxu0 }
 0x2ba   : > { %v4141_v27 = vpop.f32.mrb[103].mxu0 }
 0x2bb   : > { %v4142_v24 = vadd.f32 %v4141_v27, %v4140_v30  ;;  %v6469_v3 = vadd.f32 %v4139_v49, %v6396_v11 }
 0x2bd   : > { %v6472_v1 = vadd.f32 %v4142_v24, %v6407_v10 }
 0x2bf   : > { %v4143_v39 = vpop.f32.mrb[104].mxu0 }
 0x2c0   : > { %v4144_v45 = vpop.f32.mrb[105].mxu0 }
 0x2c1   : > { %v4145_v4 = vadd.f32 %v4144_v45, %v4143_v39  ;;  %v4146_v55 = vpop.f32.mrb[106].mxu0 }
 0x2c2   : > { %v4147_v58 = vpop.f32.mrb[107].mxu0 }
 0x2c3   : > { %v4148_v48 = vadd.f32 %v4147_v58, %v4146_v55  ;;  %v6475_v52 = vadd.f32 %v4145_v4, %v6425_v21 }
 0x2c5   : > { %v6478_v46 = vadd.f32 %v4148_v48, %v6432_v43 }
 0x2c7   : > { %v4149_v28 = vpop.f32.mrb[108].mxu0 }
 0x2c8   : > { %v4150_v36 = vpop.f32.mrb[109].mxu0 }
 0x2c9   : > { %v4151_v60 = vadd.f32 %v4150_v36, %v4149_v28  ;;  %v4152_v11 = vpop.f32.mrb[110].mxu0  ;;  %v6793_v36 = vld [vmem:[#allocation32_spill] sm:$0xff] }
 0x2ca   : > { %v4153_v37 = vpop.f32.mrb[111].mxu0 }
 0x2cb   : > { %v4154_v22 = vadd.f32 %v4153_v37, %v4152_v11  ;;  %v6481_v10 = vadd.f32 %v4151_v60, %v6418_v38 }
 0x2cd   : > { %v6484_v16 = vadd.f32 %v4154_v22, %v6429_v44 }
 0x2cf   : > { %v4155_v17 = vpop.f32.mrb[112].mxu0 }
 0x2d0   : > { %v4156_v61 = vpop.f32.mrb[113].mxu0 }
 0x2d1   : > { %v4157_v14 = vadd.f32 %v4156_v61, %v4155_v17  ;;  %v4158_v21 = vpop.f32.mrb[114].mxu0 }
 0x2d2   : > { %v4159_v57 = vpop.f32.mrb[115].mxu0 }
 0x2d3   : > { %v4160_v59 = vadd.f32 %v4159_v57, %v4158_v21  ;;  %v6487_v43 = vadd.f32 %v6318_v33, %v4157_v14 }
 0x2d4   : > { %v4341_v25 = vpop.f32.mrb[80].mxu1 }
 0x2d5   : > { %v6490_v31 = vadd.f32 %v6323_v8, %v4160_v59  ;;  %v4390_v50 = vadd.f32 %v4389_v2, %v4341_v25  ;;  %v2757_v38 = vpop.f32.mrb[81].mxu1 }
 0x2d6   : > { %v4394_v44 = vadd.f32 %v6441_v0, %v2757_v38  ;;  %v4342_v40 = vpop.f32.mrb[82].mxu1 }
 0x2d7   : > { %v4161_v47 = vpop.f32.mrb[116].mxu0  ;;  %v4398_v34 = vadd.f32 %v6448_v32, %v4342_v40  ;;  %v2760_v20 = vpop.f32.mrb[83].mxu1  ;;  %v2925_v2 = vadd.f32 %v4390_v50, %v6492_v13 }
 0x2d8   : > { %v4162_v49 = vpop.f32.mrb[117].mxu0  ;;  %v2923_v30 = vadd.f32 %v4394_v44, %v6492_v13  ;;  %v4402_v33 = vadd.f32 %v6444_v19, %v2760_v20 }
 0x2d9   : > { %v4163_v27 = vadd.f32 %v4162_v49, %v4161_v47  ;;  %v4164_v8 = vpop.f32.mrb[118].mxu0  ;;  %v2926_v24 = vadd.f32 %v4398_v34, %v6492_v13 }
 0x2da   : > { %v4165_v39 = vpop.f32.mrb[119].mxu0  ;;  %v2924_v0 = vadd.f32 %v4402_v33, %v6492_v13  ;;  %v3153_v32 = vmul.f32 %v2923_v30, %v2923_v30 }
 0x2db   : > { %v4166_v45 = vadd.f32 %v4165_v39, %v4164_v8  ;;  %v6502_v4 = vadd.f32 %v6327_v15, %v4163_v27  ;;  %v3716_v55 = vpack.c.bf16 %v2926_v24, %v2925_v2  ;;  %v3155_v15 = vmul.f32 %v2925_v2, %v2925_v2 }
 0x2dc   : > { %v3711_v58 = vpack.c.bf16 %v2924_v0, %v2923_v30  ;;  %v3115_v48 = vadd.f32 %v2924_v0, %v2923_v30  ;;  %v3154_v28 = vmul.f32 %v2924_v0, %v2924_v0  ;;  %v4345_v19 = vpop.f32.mrb[84].mxu1  ;;  %v3156_v57 = vmul.f32 %v2926_v24, %v2926_v24 }
 0x2dd   : > { %v6505_v60 = vadd.f32 %v6793_v36, %v4166_v45  ;;  %3804 = vst [vmem:[%s6509_s11 + $0x8] sm:$0xff] %v3716_v55   ;;  %v4406_v11 = vadd.f32 %v6457_v53, %v4345_v19  ;;  %v2773_v37 = vpop.f32.mrb[85].mxu1 }
 0x2de   : > { %3712 = vst [vmem:[%s6509_s11] sm:$0xff] %v3711_v58   ;;  %v3116_v22 = vadd.f32 %v3115_v48, %v2925_v2  ;;  %v3185_v17 = vadd.f32 %v3154_v28, %v3153_v32  ;;  %v4410_v61 = vadd.f32 %v6451_v56, %v2773_v37  ;;  %v4346_v14 = vpop.f32.mrb[86].mxu1 }
 0x2df   : > { %v4167_v21 = vpop.f32.mrb[120].mxu0  ;;  %v4414_v59 = vadd.f32 %v6460_v9, %v4346_v14  ;;  %v2776_v25 = vpop.f32.mrb[87].mxu1  ;;  %v2929_v34 = vadd.f32 %v4406_v11, %v6492_v13 }
 0x2e0   : > { %v4168_v50 = vpop.f32.mrb[121].mxu0  ;;  %v3186_v38 = vadd.f32 %v3185_v17, %v3155_v15  ;;  %v2927_v44 = vadd.f32 %v4410_v61, %v6492_v13  ;;  %v3117_v40 = vadd.f32 %v3116_v22, %v2926_v24  ;;  %v4418_v53 = vadd.f32 %v6454_v7, %v2776_v25 }
 0x2e1   : > { %v4170_v47 = vpop.f32.mrb[122].mxu0  ;;  %v2930_v20 = vadd.f32 %v4414_v59, %v6492_v13  ;;  %v4169_v56 = vadd.f32 %v4168_v50, %v4167_v21  ;;  %v3159_v28 = vmul.f32 %v2929_v34, %v2929_v34 }
 0x2e2   : > { %v4171_v49 = vpop.f32.mrb[123].mxu0  ;;  %v3118_v30 = vadd.f32 %v3117_v40, %v2927_v44  ;;  %v3157_v33 = vmul.f32 %v2927_v44, %v2927_v44  ;;  %v3187_v9 = vadd.f32 %v3186_v38, %v3156_v57  ;;  %v2928_v27 = vadd.f32 %v4418_v53, %v6492_v13 }
 0x2e3   : > { %v3726_v8 = vpack.c.bf16 %v2930_v20, %v2929_v34  ;;  %v4172_v2 = vadd.f32 %v4171_v49, %v4170_v47  ;;  %v6522_v24 = vadd.f32 %v6337_v41, %v4169_v56  ;;  %v3160_v15 = vmul.f32 %v2930_v20, %v2930_v20 }
 0x2e4   : > { %v3188_v7 = vadd.f32 %v3187_v9, %v3157_v33  ;;  %v3721_v39 = vpack.c.bf16 %v2928_v27, %v2927_v44  ;;  %v3119_v0 = vadd.f32 %v3118_v30, %v2928_v27  ;;  %v3158_v45 = vmul.f32 %v2928_v27, %v2928_v27  ;;  %v4349_v32 = vpop.f32.mrb[88].mxu1 }
 0x2e5   : > { %3806 = vst [vmem:[%s6509_s11 + $0x18] sm:$0xff] %v3726_v8   ;;  %v4422_v55 = vadd.f32 %v6469_v3, %v4349_v32  ;;  %v2789_v58 = vpop.f32.mrb[89].mxu1  ;;  %v6527_v48 = vadd.f32 %v6342_v62, %v4172_v2 }
 0x2e6   : > { %3805 = vst [vmem:[%s6509_s11 + $0x10] sm:$0xff] %v3721_v39   ;;  %v3120_v19 = vadd.f32 %v3119_v0, %v2929_v34  ;;  %v3189_v36 = vadd.f32 %v3188_v7, %v3158_v45  ;;  %v4426_v11 = vadd.f32 %v6463_v26, %v2789_v58  ;;  %v4350_v41 = vpop.f32.mrb[90].mxu1 }
 0x2e7   : > { %v4173_v37 = vpop.f32.mrb[124].mxu0  ;;  %v4430_v22 = vadd.f32 %v6472_v1, %v4350_v41  ;;  %v2792_v17 = vpop.f32.mrb[91].mxu1  ;;  %v2933_v59 = vadd.f32 %v4422_v55, %v6492_v13 }
 0x2e8   : > { %v4174_v61 = vpop.f32.mrb[125].mxu0  ;;  %v3190_v14 = vadd.f32 %v3189_v36, %v3159_v28  ;;  %v2931_v3 = vadd.f32 %v4426_v11, %v6492_v13  ;;  %v3121_v21 = vadd.f32 %v3120_v19, %v2930_v20  ;;  %v4434_v62 = vadd.f32 %v6466_v35, %v2792_v17 }
 0x2e9   : > { %v4176_v57 = vpop.f32.mrb[126].mxu0  ;;  %v2934_v25 = vadd.f32 %v4430_v22, %v6492_v13  ;;  %v4175_v26 = vadd.f32 %v4174_v61, %v4173_v37  ;;  %v3163_v8 = vmul.f32 %v2933_v59, %v2933_v59 }
 0x2ea   : > { %v4177_v50 = vpop.f32.mrb[127].mxu0  ;;  %v3122_v38 = vadd.f32 %v3121_v21, %v2931_v3  ;;  %v3161_v44 = vmul.f32 %v2931_v3, %v2931_v3  ;;  %v3191_v1 = vadd.f32 %v3190_v14, %v3160_v15  ;;  %v2932_v40 = vadd.f32 %v4434_v62, %v6492_v13 }
 0x2eb   : > { %v3736_v53 = vpack.c.bf16 %v2934_v25, %v2933_v59  ;;  %v4178_v47 = vadd.f32 %v4177_v50, %v4176_v57  ;;  %v6538_v34 = vadd.f32 %v6348_v63, %v4175_v26  ;;  %v3164_v45 = vmul.f32 %v2934_v25, %v2934_v25 }
 0x2ec   : > { %v3192_v35 = vadd.f32 %v3191_v1, %v3161_v44  ;;  %v3731_v20 = vpack.c.bf16 %v2932_v40, %v2931_v3  ;;  %v3123_v56 = vadd.f32 %v3122_v38, %v2932_v40  ;;  %v3162_v49 = vmul.f32 %v2932_v40, %v2932_v40  ;;  %v4353_v30 = vpop.f32.mrb[92].mxu1 }
 0x2ed   : > { %3808 = vst [vmem:[%s6509_s11 + $0x28] sm:$0xff] %v3736_v53   ;;  %v4438_v33 = vadd.f32 %v6481_v10, %v4353_v30  ;;  %v2805_v9 = vpop.f32.mrb[93].mxu1  ;;  %v6543_v27 = vadd.f32 %v6356_v51, %v4178_v47 }
 0x2ee   : > { %3807 = vst [vmem:[%s6509_s11 + $0x20] sm:$0xff] %v3731_v20   ;;  %v3124_v2 = vadd.f32 %v3123_v56, %v2933_v59  ;;  %v3193_v7 = vadd.f32 %v3192_v35, %v3162_v49  ;;  %v4442_v39 = vadd.f32 %v6475_v52, %v2805_v9  ;;  %v4354_v63 = vpop.f32.mrb[94].mxu1 }
 0x2ef   : > { %v4179_v0 = vpop.f32.mrb[128].mxu0  ;;  %v4446_v32 = vadd.f32 %v6484_v16, %v4354_v63  ;;  %v2808_v55 = vpop.f32.mrb[95].mxu1  ;;  %v2937_v11 = vadd.f32 %v4438_v33, %v6492_v13 }
 0x2f0   : > { %v4180_v58 = vpop.f32.mrb[129].mxu0  ;;  %v3194_v28 = vadd.f32 %v3193_v7, %v3163_v8  ;;  %v2935_v10 = vadd.f32 %v4442_v39, %v6492_v13  ;;  %v3125_v19 = vadd.f32 %v3124_v2, %v2934_v25  ;;  %v4450_v51 = vadd.f32 %v6478_v46, %v2808_v55 }
 0x2f1   : > { %v4182_v36 = vpop.f32.mrb[130].mxu0  ;;  %v2938_v41 = vadd.f32 %v4446_v32, %v6492_v13  ;;  %v4181_v52 = vadd.f32 %v4180_v58, %v4179_v0  ;;  %v3167_v38 = vmul.f32 %v2937_v11, %v2937_v11 }
 0x2f2   : > { %v4183_v37 = vpop.f32.mrb[131].mxu0  ;;  %v3126_v15 = vadd.f32 %v3125_v19, %v2935_v10  ;;  %v3165_v22 = vmul.f32 %v2935_v10, %v2935_v10  ;;  %v3195_v16 = vadd.f32 %v3194_v28, %v3164_v45  ;;  %v2936_v17 = vadd.f32 %v4450_v51, %v6492_v13 }
 0x2f3   : > { %v3746_v61 = vpack.c.bf16 %v2938_v41, %v2937_v11  ;;  %v4184_v14 = vadd.f32 %v4183_v37, %v4182_v36  ;;  %v6554_v3 = vadd.f32 %v6370_v23, %v4181_v52  ;;  %v3168_v47 = vmul.f32 %v2938_v41, %v2938_v41 }
 0x2f4   : > { %v3196_v46 = vadd.f32 %v3195_v16, %v3165_v22  ;;  %v3741_v21 = vpack.c.bf16 %v2936_v17, %v2935_v10  ;;  %v3127_v62 = vadd.f32 %v3126_v15, %v2936_v17  ;;  %v3166_v57 = vmul.f32 %v2936_v17, %v2936_v17  ;;  %v4357_v59 = vpop.f32.mrb[0].mxu1 }
 0x2f5   : > { %3810 = vst [vmem:[%s6509_s11 + $0x38] sm:$0xff] %v3746_v61   ;;  %v4453_v25 = vadd.f32 %v6502_v4, %v4357_v59  ;;  %v2821_v26 = vpop.f32.mrb[1].mxu1  ;;  %v6559_v50 = vadd.f32 %v6378_v12, %v4184_v14 }
 0x2f6   : > { %3809 = vst [vmem:[%s6509_s11 + $0x30] sm:$0xff] %v3741_v21   ;;  %v3128_v44 = vadd.f32 %v3127_v62, %v2937_v11  ;;  %v3197_v1 = vadd.f32 %v3196_v46, %v3166_v57  ;;  %v4456_v40 = vadd.f32 %v6487_v43, %v2821_v26  ;;  %v4358_v23 = vpop.f32.mrb[2].mxu1 }
 0x2f7   : > { %v4185_v53 = vpop.f32.mrb[132].mxu0  ;;  %v4459_v35 = vadd.f32 %v6505_v60, %v4358_v23  ;;  %v2824_v20 = vpop.f32.mrb[3].mxu1  ;;  %v2941_v9 = vadd.f32 %v4453_v25, %v6492_v13 }
 0x2f8   : > { %v4186_v56 = vpop.f32.mrb[133].mxu0  ;;  %v3198_v49 = vadd.f32 %v3197_v1, %v3167_v38  ;;  %v2939_v4 = vadd.f32 %v4456_v40, %v6492_v13  ;;  %v3129_v30 = vadd.f32 %v3128_v44, %v2938_v41  ;;  %v4462_v12 = vadd.f32 %v6490_v31, %v2824_v20 }
 0x2f9   : > { %v4188_v33 = vpop.f32.mrb[134].mxu0  ;;  %v2942_v8 = vadd.f32 %v4459_v35, %v6492_v13  ;;  %v4187_v43 = vadd.f32 %v4186_v56, %v4185_v53  ;;  %v3171_v11 = vmul.f32 %v2941_v9, %v2941_v9 }
 0x2fa   : > { %v4189_v2 = vpop.f32.mrb[135].mxu0  ;;  %v3130_v7 = vadd.f32 %v3129_v30, %v2939_v4  ;;  %v3169_v39 = vmul.f32 %v2939_v4, %v2939_v4  ;;  %v3199_v60 = vadd.f32 %v3198_v49, %v3168_v47  ;;  %v2940_v63 = vadd.f32 %v4462_v12, %v6492_v13 }
 0x2fb   : > { %v3756_v0 = vpack.c.bf16 %v2942_v8, %v2941_v9  ;;  %v4190_v45 = vadd.f32 %v4189_v2, %v4188_v33  ;;  %v4476_v32 = vadd.f32 %v6392_v6, %v4187_v43  ;;  %v3172_v6 = vmul.f32 %v2942_v8, %v2942_v8 }
 0x2fc   : > { %v3200_v55 = vadd.f32 %v3199_v60, %v3169_v39  ;;  %v3751_v31 = vpack.c.bf16 %v2940_v63, %v2939_v4  ;;  %v3131_v58 = vadd.f32 %v3130_v7, %v2940_v63  ;;  %v3170_v28 = vmul.f32 %v2940_v63, %v2940_v63  ;;  %v4361_v10 = vpop.f32.mrb[4].mxu1 }
 0x2fd   : > { %3812 = vst [vmem:[%s6509_s11 + $0x48] sm:$0xff] %v3756_v0   ;;  %v4465_v19 = vadd.f32 %v6538_v34, %v4361_v10  ;;  %v2837_v51 = vpop.f32.mrb[5].mxu1  ;;  %v4482_v36 = vadd.f32 %v6400_v5, %v4190_v45 }
 0x2fe   : > { %3811 = vst [vmem:[%s6509_s11 + $0x40] sm:$0xff] %v3751_v31   ;;  %v3132_v41 = vadd.f32 %v3131_v58, %v2941_v9  ;;  %v3201_v52 = vadd.f32 %v3200_v55, %v3170_v28  ;;  %v4468_v37 = vadd.f32 %v6522_v24, %v2837_v51  ;;  %v4362_v15 = vpop.f32.mrb[6].mxu1 }
 0x2ff   : > { %v4191_v22 = vpop.f32.mrb[136].mxu0  ;;  %v4471_v16 = vadd.f32 %v6543_v27, %v4362_v15  ;;  %v2840_v17 = vpop.f32.mrb[7].mxu1  ;;  %v2945_v62 = vadd.f32 %v4465_v19, %v6492_v13 }
 0x300   : > { %v4192_v61 = vpop.f32.mrb[137].mxu0  ;;  %v3202_v14 = vadd.f32 %v3201_v52, %v3171_v11  ;;  %v2943_v46 = vadd.f32 %v4468_v37, %v6492_v13  ;;  %v3133_v34 = vadd.f32 %v3132_v41, %v2942_v8  ;;  %v4474_v21 = vadd.f32 %v6527_v48, %v2840_v17 }
 0x301   : > { %v4194_v5 = vpop.f32.mrb[138].mxu0  ;;  %v2946_v57 = vadd.f32 %v4471_v16, %v6492_v13  ;;  %v4193_v24 = vadd.f32 %v4192_v61, %v4191_v22  ;;  %v3175_v4 = vmul.f32 %v2945_v62, %v2945_v62 }
 0x302   : > { %v4195_v59 = vpop.f32.mrb[139].mxu0  ;;  %v3134_v25 = vadd.f32 %v3133_v34, %v2943_v46  ;;  %v3173_v26 = vmul.f32 %v2943_v46, %v2943_v46  ;;  %v3203_v27 = vadd.f32 %v3202_v14, %v3172_v6  ;;  %v2944_v38 = vadd.f32 %v4474_v21, %v6492_v13 }
 0x303   : > { %v3766_v44 = vpack.c.bf16 %v2946_v57, %v2945_v62  ;;  %v4196_v1 = vadd.f32 %v4195_v59, %v4194_v5  ;;  %v4491_v40 = vadd.f32 %v6414_v54, %v4193_v24  ;;  %v3176_v43 = vmul.f32 %v2946_v57, %v2946_v57 }
 0x304   : > { %v3204_v23 = vadd.f32 %v3203_v27, %v3173_v26  ;;  %v3761_v48 = vpack.c.bf16 %v2944_v38, %v2943_v46  ;;  %v3135_v53 = vadd.f32 %v3134_v25, %v2944_v38  ;;  %v3174_v47 = vmul.f32 %v2944_v38, %v2944_v38  ;;  %v4365_v35 = vpop.f32.mrb[8].mxu1 }
 0x305   : > { %3814 = vst [vmem:[%s6509_s11 + $0x58] sm:$0xff] %v3766_v44   ;;  %v4477_v20 = vadd.f32 %v4476_v32, %v4365_v35  ;;  %v2853_v56 = vpop.f32.mrb[9].mxu1  ;;  %v4497_v49 = vadd.f32 %v6422_v29, %v4196_v1 }
 0x306   : > { %3813 = vst [vmem:[%s6509_s11 + $0x50] sm:$0xff] %v3761_v48   ;;  %v3136_v30 = vadd.f32 %v3135_v53, %v2945_v62  ;;  %v3205_v12 = vadd.f32 %v3204_v23, %v3174_v47  ;;  %v4480_v33 = vadd.f32 %v6554_v3, %v2853_v56  ;;  %v4366_v9 = vpop.f32.mrb[10].mxu1 }
 0x307   : > { %v4197_v8 = vpop.f32.mrb[140].mxu0  ;;  %v4483_v54 = vadd.f32 %v4482_v36, %v4366_v9  ;;  %v2856_v2 = vpop.f32.mrb[11].mxu1  ;;  %v2949_v29 = vadd.f32 %v4477_v20, %v6492_v13 }
 0x308   : > { %v4198_v7 = vpop.f32.mrb[141].mxu0  ;;  %v3206_v39 = vadd.f32 %v3205_v12, %v3175_v4  ;;  %v2947_v60 = vadd.f32 %v4480_v33, %v6492_v13  ;;  %v3137_v63 = vadd.f32 %v3136_v30, %v2946_v57  ;;  %v4486_v0 = vadd.f32 %v6559_v50, %v2856_v2 }
 0x309   : > { %v4200_v45 = vpop.f32.mrb[142].mxu0  ;;  %v2950_v32 = vadd.f32 %v4483_v54, %v6492_v13  ;;  %v4199_v55 = vadd.f32 %v4198_v7, %v4197_v8  ;;  %v3179_v16 = vmul.f32 %v2949_v29, %v2949_v29 }
 0x30a   : > { %v4201_v3 = vpop.f32.mrb[143].mxu0  ;;  %v3138_v31 = vadd.f32 %v3137_v63, %v2947_v60  ;;  %v3177_v58 = vmul.f32 %v2947_v60, %v2947_v60  ;;  %v3207_v28 = vadd.f32 %v3206_v39, %v3176_v43  ;;  %v2948_v10 = vadd.f32 %v4486_v0, %v6492_v13 }
 0x30b   : > { %v3776_v19 = vpack.c.bf16 %v2950_v32, %v2949_v29  ;;  %v4488_v51 = vadd.f32 %v6435_v18, %v4199_v55  ;;  %v4202_v36 = vadd.f32 %v4201_v3, %v4200_v45  ;;  %v3180_v18 = vmul.f32 %v2950_v32, %v2950_v32 }
 0x30c   : > { %v3208_v11 = vadd.f32 %v3207_v28, %v3177_v58  ;;  %v3771_v50 = vpack.c.bf16 %v2948_v10, %v2947_v60  ;;  %v3139_v41 = vadd.f32 %v3138_v31, %v2948_v10  ;;  %v3178_v52 = vmul.f32 %v2948_v10, %v2948_v10  ;;  %v4369_v37 = vpop.f32.mrb[12].mxu1 }
 0x30d   : > { %3816 = vst [vmem:[%s6509_s11 + $0x68] sm:$0xff] %v3776_v19   ;;  %v4489_v15 = vadd.f32 %v4488_v51, %v4369_v37  ;;  %v2869_v22 = vpop.f32.mrb[13].mxu1  ;;  %v4494_v6 = vadd.f32 %v6438_v42, %v4202_v36 }
 0x30e   : > { %3815 = vst [vmem:[%s6509_s11 + $0x60] sm:$0xff] %v3771_v50   ;;  %v3140_v17 = vadd.f32 %v3139_v41, %v2949_v29  ;;  %v3209_v61 = vadd.f32 %v3208_v11, %v3178_v52  ;;  %v4492_v14 = vadd.f32 %v4491_v40, %v2869_v22  ;;  %v4370_v46 = vpop.f32.mrb[14].mxu1 }
 0x30f   : > { %v2953_v34 = vadd.f32 %v4489_v15, %v6492_v13  ;;  %v4495_v21 = vadd.f32 %v4494_v6, %v4370_v46  ;;  %v2872_v5 = vpop.f32.mrb[15].mxu1 }
 0x310   : > { %v3210_v62 = vadd.f32 %v3209_v61, %v3179_v16  ;;  %v2951_v57 = vadd.f32 %v4492_v14, %v6492_v13  ;;  %v3141_v24 = vadd.f32 %v3140_v17, %v2950_v32  ;;  %v4498_v59 = vadd.f32 %v4497_v49, %v2872_v5 }
 0x311   : > { %v2954_v42 = vadd.f32 %v4495_v21, %v6492_v13  ;;  %v3183_v44 = vmul.f32 %v2953_v34, %v2953_v34 }
 0x312   : > { %v3142_v25 = vadd.f32 %v3141_v24, %v2951_v57  ;;  %v3181_v26 = vmul.f32 %v2951_v57, %v2951_v57  ;;  %v3211_v27 = vadd.f32 %v3210_v62, %v3180_v18  ;;  %v2952_v38 = vadd.f32 %v4498_v59, %v6492_v13 }
 0x313   : > { %v3786_v1 = vpack.c.bf16 %v2954_v42, %v2953_v34  ;;  %v3184_v47 = vmul.f32 %v2954_v42, %v2954_v42 }
 0x314   : > { %v3212_v40 = vadd.f32 %v3211_v27, %v3181_v26  ;;  %v3781_v23 = vpack.c.bf16 %v2952_v38, %v2951_v57  ;;  %v3143_v48 = vadd.f32 %v3142_v25, %v2952_v38  ;;  %v3182_v53 = vmul.f32 %v2952_v38, %v2952_v38 }
 0x315   : > { %3818 = vst [vmem:[%s6509_s11 + $0x78] sm:$0xff] %v3786_v1  }
 0x316   : > { %3817 = vst [vmem:[%s6509_s11 + $0x70] sm:$0xff] %v3781_v23   ;;  %v3144_v13 = vadd.f32 %v3143_v48, %v2953_v34  ;;  %v3213_v35 = vadd.f32 %v3212_v40, %v3182_v53 }
 0x317   : > { %4962 = shalt.err (!%p4959_p2)
}
 0x318   : > { %s4963_s25 = scalar_lea.hbm %s6604_s14, 2048  ;;  %s4967_s17 = scalar_lea.hbm %s6795_s18, 4096 }
 0x319   : > { %p4964_p6 = scmp.ne.s32.totalorder %s6604_s14, %s4963_s25  ;;  %p4968_p10 = scmp.lt.u32.totalorder %s6604_s14, %s6795_s18 }
 0x31a   : > { %p4969_p5 = scmp.lt.u32.totalorder %s4967_s17, %s4963_s25  ;;  %p4971_p11 = scmp.lt.u32.totalorder %s4963_s25, %s6604_s14 }
 0x31b   : > { %p4965_p9 = pnand %p4964_p6, %p6796_p8 }
 0x31c   : > { %p4970_p7 = por %p4969_p5, %p4968_p10 }
 0x31d   : > { %p4966_p13 = pneg %p4965_p9 }
 0x31e   : > { %p4972_p4 = por %p4971_p11, %p4970_p7 }
 0x320   : > { %p4973_p12 = pnand %p4972_p4, %p4966_p13 }
 0x322   : > { %4976 = shalt.err (!%p4973_p12)
}
 0x323   : > { %s5088_s27 = smov 64   ;;  %s5089_s20 = smov 4   ;;  %v3145_v20 = vadd.f32 %v3144_v13, %v2954_v42  ;;  %v3214_v56 = vadd.f32 %v3213_v35, %v3183_v44 }
 0x324   : > { %4569 = dma.vmem_to_hbm [thread:$0]  (%p6796_p8), %s6606_s24, 2048, %s6604_s14, %s3224_s3, %s5088_s27, %s5088_s27, %s5089_s20  }
 0x325   : > { %v3146_v49 = vrot.slane %v3145_v20, 4  ;;  %v3215_v4 = vadd.f32 %v3214_v56, %v3184_v47  ;;  %s3492_s19 = sshll.u32 %s5447_s21, 1  ;;  %s3604_s15 = sshll.u32 %s5067_s30, 5 }
 0x326   : > { %s516_s23 = scalar_lea.vmem [#allocation16], %s3492_s19  ;;  %s6797_s5 = sld [smem:[#allocation37_spill]] }
 0x327   : > { %v3147_v30 = vadd.f32 %v3146_v49, %v3145_v20  ;;  %v3216_v12 = vrot.slane %v3215_v4, 4  ;;  %s3262_s11 = sshll.u32 %s516_s23, 4  ;;  %s3229_s14 = scalar_lea.sflag [#allocation17], %s5447_s21  ;;  %s6641_s11 = int_to_ptr.vmem [resolvable:$true] %s3262_s11 }
 0x328   : > { %s4977_s3 = scalar_lea.vmem %s6641_s11, 32  ;;  %s5090_s30 = smov [#allocation16]  }
 0x329   : > { %v3148_v33 = vrot.slane %v3147_v30, 2  ;;  %v3217_v9 = vadd.f32 %v3216_v12, %v3215_v4  ;;  %p4978_p1 = scmp.ne.s32.totalorder %s6641_s11, %s4977_s3  ;;  %s4981_s22 = sshll.u32 %s5090_s30, 4  ;;  %s4982_s22 = int_to_ptr.vmem [resolvable:$false] %s4981_s22 }
 0x32a   : > { %s4983_s12 = scalar_lea.vmem %s4982_s22, 64  ;;  %p4984_p2 = scmp.lt.s32.totalorder %s6641_s11, %s4982_s22 }
 0x32b   : > { %v3149_v8 = vadd.f32 %v3148_v33, %v3147_v30  ;;  %v3218_v43 = vrot.slane %v3217_v9, 2  ;;  %p4979_p3 = pnand %p4978_p1, %p6796_p8  ;;  %p4985_p6 = scmp.lt.s32.totalorder %s4983_s12, %s4977_s3 }
 0x32c   : > { %s6639_s1 = scalar_lea.hbm %s6797_s5, %s3604_s15 }
 0x32d   : > { %v3150_v54 = vrot.slane %v3149_v8, 1  ;;  %v3219_v2 = vadd.f32 %v3218_v43, %v3217_v9  ;;  %p4980_p0 = pneg %p4979_p3  ;;  %p4986_p9 = por %p4985_p6, %p4984_p2 }
 0x32f   : > { %v3151_v7 = vadd.f32 %v3150_v54, %v3149_v8  ;;  %v3220_v39 = vrot.slane %v3219_v2, 1  ;;  %p4987_p13 = pnand %p4986_p9, %p4980_p0 }
 0x331   : > { %3152 = vst [vmem:[%s516_s23] sm:$0x1] %v3151_v7  ;;  %v3221_v60 = vadd.f32 %v3220_v39, %v3219_v2 }
 0x333   : > { %3222 = vst [vmem:[%s516_s23 + $0x1] sm:$0x1] %v3221_v60 }
 0x334   : > { %4990 = shalt.err (!%p4987_p13)
}
 0x335   : > { %s4991_s21 = scalar_lea.hbm %s6639_s1, 32  ;;  %s4995_s25 = scalar_lea.hbm %s6797_s5, 64 }
 0x336   : > { %p4992_p10 = scmp.ne.s32.totalorder %s6639_s1, %s4991_s21  ;;  %p4996_p11 = scmp.lt.u32.totalorder %s6639_s1, %s6797_s5 }
 0x337   : > { %p4997_p4 = scmp.lt.u32.totalorder %s4995_s25, %s4991_s21  ;;  %p4999_p1 = scmp.lt.u32.totalorder %s4991_s21, %s6639_s1 }
 0x338   : > { %p4993_p5 = pnand %p4992_p10, %p6796_p8 }
 0x339   : > { %p4998_p12 = por %p4997_p4, %p4996_p11 }
 0x33a   : > { %p4994_p7 = pneg %p4993_p5 }
 0x33b   : > { %p5000_p3 = por %p4999_p1, %p4998_p12 }
 0x33d   : > { %p5001_p0 = pnand %p5000_p3, %p4994_p7 }
 0x33f   : > { %5004 = shalt.err (!%p5001_p0)
}
 0x340   : > { %4570 = dma.vmem_to_hbm [thread:$0]  (%p6796_p8), %s6641_s11, 32, %s6639_s1, %s3229_s14  }
 0x341 PF: > { %s6798_s17 = sld [smem:[#allocation24_spill]]  ;;  %s6799_s8 = sld [smem:[#allocation28_spill]] }
 0x342   : > { %s6800_s29 = sld [smem:[#allocation27_spill]] }
 0x347   : > { %s3274_s27 = sand.u32 1, %s6798_s17   ;;  %p6801_p2 = scmp.ne.s32.totalorder %s6799_s8, 0 }
 0x348   : > { %p6802_p6 = scmp.ge.s32.totalorder %s6800_s29, 2  ;;  %s3275_s20 = scalar_lea.sflag [#allocation5], %s3274_s27 }
 0x34a   : > { %p4597_p9 = pnand %p6802_p6, %p6801_p2 }
 0x34c   : > { %5046 = dma.done.wait (!%p4597_p9), %s3275_s20, 2048  }
 0x34d   : > { %5048 = vsyncadd (!%p4597_p9), %s3275_s20, 4294965248  ;;  %s3284_s19 = scalar_lea.sflag [#allocation17], %s3274_s27 }
 0x34e   : > { %5050 = dma.done.wait (!%p4597_p9), %s3284_s19, 32  }
 0x34f   : > { %5052 = vsyncadd (!%p4597_p9), %s3284_s19, 4294967264  ;;  %s33_s10 = sadd.s32 1, %s6800_s29   ;;  %s6803_s9 = sld [smem:[#allocation25_spill]] }
 0x350   : > { %p30_p13 = scmp.ge.s32.totalorder %s33_s10, 4   ;;  %s6804_s29 = sld [smem:[#allocation31_spill]] }
 0x351   : > { %s6805_s30 = sld [smem:[#allocation26_spill]]  ;;  %s6806_s15 = sld [smem:[#allocation29_spill]] }
 0x352   : > { %s6807_s27 = smov %s5059_s28  ;;  %32 = sbr.rel (!%p30_p13) target bundleno = 18 (0x12), region = 155 }
 0x355   : > { %s6808_s28 = smov %s6803_s9 }
 0x357   : > { %s6809_s9 = smov %s6806_s15 }
 0x359   :  { %3289 = vsyncpa [#allocation4], 1 }
 0x35a   :  { %3291 = vsyncpa [#allocation4 + $0x1], 1 }
 0x35b   :  { %3292 = vsyncpa [#allocation7], 1 }
 0x35c   :  { %3294 = vsyncpa [#allocation7 + $0x1], 1 }
 0x35d   :  { %3295 = vsyncpa [#allocation10], 1 }
 0x35e   :  { %3296 = vsyncpa [#allocation13], 1 }
 0x35f   :  { %3297 = vsyncpa [#allocation5], 1 }
 0x360   :  { %3299 = vsyncpa [#allocation5 + $0x1], 1 }
 0x361   :  { %3300 = vsyncpa [#allocation17], 1 }
 0x362   :  { %3302 = vsyncpa [#allocation17 + $0x1], 1 }

// kernel: double_conv_forward.3
= control target key start
LH: loop header
LB: loop body
LE: loop exit
PB: predicated region body
PF: predicated region fallthrough
CT: control target
= control target key end

     0   :  { %s6446_s0 = inlined_call_operand.hbm [shape: bf16[2,16,16,128], index: 0, kind: input, shape index: {}, may-alias: {0,1,2}]   ;;  %s6447_s1 = inlined_call_operand.hbm [shape: bf16[2,16,16,128], index: 1, kind: input, shape index: {}, may-alias: {0,1,2}]   ;;  %s6448_s2 = inlined_call_operand.hbm [shape: bf16[2,16,16,128], index: 2, kind: input, shape index: {}, may-alias: {0,1,2}]   ;;  %s6449_s3 = inlined_call_operand.hbm [shape: bf16[3,384,128], index: 3, kind: input, shape index: {}]   ;;  %s6450_s4 = inlined_call_operand.hbm [shape: f32[1,128], index: 4, kind: input, shape index: {}]   ;;  %s6451_s5 = inlined_call_operand.hbm [shape: f32[1,128], index: 5, kind: input, shape index: {}, may-alias: {5,6}]   ;;  %s6452_s6 = inlined_call_operand.hbm [shape: f32[1,128], index: 6, kind: input, shape index: {}, may-alias: {5,6}]   ;;  %s6453_s7 = inlined_call_operand.hbm [shape: bf16[2,16,16,128], index: 7, kind: output, shape index: {0}]   ;;  %s6454_s8 = inlined_call_operand.hbm [shape: f32[2,1,2,128], index: 8, kind: output, shape index: {1}]  }
   0x1   :  { %6492 = sst [smem:[#allocation33_spill]] %s6447_s1 }
   0x2   :  { %6493 = sst [smem:[#allocation34_spill]] %s6449_s3 }
   0x3   :  { %6494 = sst [smem:[#allocation35_spill]] %s6451_s5 }
   0x4   :  { %6495 = sst [smem:[#allocation36_spill]] %s6453_s7 }
   0x5   :  { %6496 = sst [smem:[#allocation37_spill]] %s6454_s8 }
   0x6   :  { %14 = vsyncpa [#allocation4], 0 }
   0x7   :  { %16 = vsyncpa [#allocation4 + $0x1], 0 }
   0x8   :  { %17 = vsyncpa [#allocation7], 0 }
   0x9   :  { %19 = vsyncpa [#allocation7 + $0x1], 0 }
   0xa   :  { %20 = vsyncpa [#allocation10], 0 }
   0xb   :  { %21 = vsyncpa [#allocation13], 0 }
   0xc   :  { %22 = vsyncpa [#allocation5], 0 }
   0xd   :  { %24 = vsyncpa [#allocation5 + $0x1], 0 }
   0xe   :  { %25 = vsyncpa [#allocation17], 0 }
   0xf   :  { %27 = vsyncpa [#allocation17 + $0x1], 0  ;;  %s5022_s27 = smov 0   ;;  %s5024_s28 = smov 0  }
  0x10   :  { %s5026_s29 = smov 0   ;;  %s5028_s30 = smov 0  }
  0x11   :  { %s5030_s9 = smov 0   ;;  %s5032_s10 = smov 0  }
  0x12 LB: > { %6497 = sst [smem:[#allocation24_spill]] %s4941_s27  ;;  %s5053_s11 = sadd.s32 4294967295, %s4961_s10   ;;  %s4961_s10 = sphi %s5032_s10, %s33_s10   ;;  %s4957_s9 = sphi %s5030_s9, %s6565_s9   ;;  %s4953_s30 = sphi %s5028_s30, %s6561_s30   ;;  %s4949_s29 = sphi %s5026_s29, %s6560_s29   ;;  %s4945_s28 = sphi %s5024_s28, %s6564_s28   ;;  %s4941_s27 = sphi %s5022_s27, %s6563_s27  }
  0x13   : > { %6498 = sst [smem:[#allocation25_spill]] %s4949_s29  ;;  %s3401_s12 = sadd.s32 4294967294, %s4961_s10  }
  0x14   : > { %6499 = sst [smem:[#allocation26_spill]] %s4957_s9  ;;  %p67_p0 = scmp.ne.s32.totalorder %s4945_s28, %s4941_s27 }
  0x15   : > { %6500 = sst [smem:[#allocation27_spill]] %s4961_s10  ;;  %p6455_p1 = scmp.eq.s32.totalorder %s5053_s11, 0 }
  0x16   : > { %p255_p3 = scmp.eq.s32.totalorder %s3401_s12, 1  ;;  %p3402_p5 = scmp.ge.s32.totalorder %s4961_s10, 1 }
  0x17   : > { %p5062_p4 = por %p6455_p1, %p67_p0  ;;  %p290_p7 = scmp.lt.s32.totalorder %s4961_s10, 3 }
  0x18   : > { %p5067_p6 = por %p255_p3, %p67_p0  ;;  %s4963_s16 = smov [#allocation9]  }
  0x19   : > { %s6501_s13 = scalar_select %p5062_p4, 1, 0 }
  0x1a   : > { %s6502_s14 = scalar_select %p5067_p6, 1, 0 }
  0x1b   : > { %p5072_p8 = pnand %p3402_p5, %p290_p7  ;;  %s302_s17 = sshll.u32 %s4963_s16, 4  ;;  %s5076_s17 = int_to_ptr.vmem [resolvable:$true] %s302_s17 }
  0x1c   : > { %6503 = sst [smem:[#allocation28_spill]] %s6502_s14  ;;  %s4964_s19 = smov [#allocation12]  }
  0x1d   : > { %s6504_s15 = scalar_select %p5072_p8, 1, 0 }
  0x1e   : > { %p4444_p9 = pneg %p5072_p8  ;;  %s327_s20 = sshll.u32 %s4964_s19, 4  ;;  %s5087_s20 = int_to_ptr.vmem [resolvable:$true] %s327_s20 }
  0x1f   : > { %s6506_s3 = sld [smem:[#allocation34_spill]] }
  0x20   : > { %p5083_p11 = pnand %p4444_p9, %p6455_p1 }
  0x22   : > { %s6505_s18 = scalar_select %p5083_p11, 1, 0 }
  0x23   : > { %p5097_p13 = pneg %p5083_p11 }
  0x25   : > { %s4633_s23 = scalar_lea.hbm %s6506_s3, 9216 }
  0x26   : > { %p4634_p12 = scmp.ne.s32.totalorder %s6506_s3, %s4633_s23  ;;  %p4640_p5 = scmp.lt.u32.totalorder %s4633_s23, %s6506_s3 }
  0x27   : > { %s6507_s26 = scalar_select %p5097_p13, 1, 0 }
  0x28   : > { %p4636_p0 = pnand %p5097_p13, %p4634_p12 }
  0x2a   : > { %p4637_p3 = pneg %p4636_p0 }
  0x2c   : > { %p4642_p7 = pnand %p4640_p5, %p4637_p3 }
  0x2e   : > { %4645 = shalt.err (!%p4642_p7)
}
  0x2f   : > { %s4646_s19 = scalar_lea.vmem %s5076_s17, 9216  ;;  %p4654_p2 = scmp.lt.s32.totalorder %s5076_s17, %s5076_s17 }
  0x30   : > { %p4647_p9 = scmp.ne.s32.totalorder %s5076_s17, %s4646_s19  ;;  %p4655_p6 = scmp.lt.s32.totalorder %s4646_s19, %s4646_s19 }
  0x32   : > { %p4649_p10 = pnand %p4647_p9, %p5097_p13  ;;  %p4656_p12 = por %p4655_p6, %p4654_p2 }
  0x34   : > { %p4650_p1 = pneg %p4649_p10 }
  0x36   : > { %p4657_p0 = pnand %p4656_p12, %p4650_p1 }
  0x38   : > { %4660 = shalt.err (!%p4657_p0)
}
  0x39   : > { %s6459_s21 = smov 64   ;;  %s6461_s22 = smov 4  }
  0x3a   : > { %4447 = dma.hbm_to_vmem [thread:$0]  (!%p5083_p11), %s6506_s3, 9216, %s5076_s17, [#allocation10], %s6459_s21, %s6459_s21, %s6461_s22  }
  0x3b   : > { %s6508_s5 = sld [smem:[#allocation35_spill]] }
  0x41   : > { %s4661_s16 = scalar_lea.hbm %s6508_s5, 16 }
  0x42   : > { %p4662_p1 = scmp.ne.s32.totalorder %s6508_s5, %s4661_s16  ;;  %p4668_p10 = scmp.lt.u32.totalorder %s4661_s16, %s6508_s5 }
  0x44   : > { %p4664_p2 = pnand %p4662_p1, %p5097_p13 }
  0x46   : > { %p4665_p6 = pneg %p4664_p2 }
  0x48   : > { %p4670_p3 = pnand %p4668_p10, %p4665_p6 }
  0x4a   : > { %4673 = shalt.err (!%p4670_p3)
}
  0x4b   : > { %s4674_s17 = scalar_lea.vmem %s5087_s20, 16  ;;  %s4681_s14 = scalar_lea.vmem %s5087_s20, 32 }
  0x4c   : > { %p4675_p5 = scmp.ne.s32.totalorder %s5087_s20, %s4674_s17  ;;  %p4682_p12 = scmp.lt.s32.totalorder %s5087_s20, %s5087_s20 }
  0x4d   : > { %p4683_p0 = scmp.lt.s32.totalorder %s4681_s14, %s4674_s17 }
  0x4e   : > { %p4677_p7 = pnand %p4675_p5, %p5097_p13 }
  0x4f   : > { %p4684_p1 = por %p4683_p0, %p4682_p12 }
  0x50   : > { %p4678_p9 = pneg %p4677_p7 }
  0x52   : > { %p4685_p2 = pnand %p4684_p1, %p4678_p9 }
  0x54   : > { %4688 = shalt.err (!%p4685_p2)
}
  0x55   : > { %4453 = dma.hbm_to_vmem [thread:$0]  (!%p5083_p11), %s6508_s5, 16, %s5087_s20, [#allocation13]  }
  0x56   : > { %s45_s23 = sadd.s32 1, %s4957_s9  ;;  %s54_s24 = sadd.s32 1, %s4949_s29 }
  0x57   : > { %p47_p6 = scmp.ge.s32.totalorder %s45_s23, 2  ;;  %p61_p10 = scmp.ne.s32.totalorder %s4949_s29, %s4945_s28 }
  0x58   : > { %p62_p3 = scmp.eq.s32.totalorder %s4961_s10, 0  ;;  %p4478_p5 = scmp.lt.s32.totalorder %s4961_s10, 2 }
  0x59   : > { %s6567_s23 = smov (%p47_p6, %s45_s23), 0  ;;  %p6510_p9 = scmp.eq.s32.totalorder %s5053_s11, 1 }
  0x5a   : > { %6509 = sst [smem:[#allocation29_spill]] %s6567_s23  ;;  %p63_p7 = por %p62_p3, %p61_p10 }
  0x5b   : > { %p5155_p12 = por %p6510_p9, %p61_p10  ;;  %s49_s12 = ssub.s32 %s4957_s9, %s6567_s23 }
  0x5c   : > { %s5162_s16 = sand.u32 1, %s4949_s29   ;;  %p52_p0 = scmp.eq.s32.totalorder %s49_s12, 0 }
  0x5d   : > { %s6511_s25 = scalar_select %p5155_p12, 1, 0 }
  0x5e   : > { %s5165_s20 = sshll.u32 %s4957_s9, 11  ;;  %p5167_p1 = pnand %p4478_p5, %p63_p7 }
  0x5f   : > { %6512 = sst [smem:[#allocation30_spill]] %s6511_s25  ;;  %s373_s17 = sand.u32 1, %s4961_s10  }
  0x60   : > { %s6513_s19 = scalar_select %p5167_p1, 1, 0 }
  0x61   : > { %s5173_s14 = scalar_select %p52_p0, %s4949_s29, %s54_s24  }
  0x62   : > { %s3411_s8 = sshll.u32 %s5162_s16, 3  ;;  %s6515_s1 = sld [smem:[#allocation33_spill]] }
  0x63   : > { %6514 = sst [smem:[#allocation31_spill]] %s5173_s14  ;;  %s377_s12 = scalar_lea.vmem [#allocation6], %s3411_s8 }
  0x64   : > { %s390_s3 = sshll.u32 %s377_s12, 4  ;;  %s404_s5 = scalar_lea.vmem [#allocation8], %s3411_s8  ;;  %s5182_s3 = int_to_ptr.vmem [resolvable:$true] %s390_s3 }
  0x65   : > { %s417_s23 = sshll.u32 %s404_s5, 4  ;;  %s5186_s24 = scalar_lea.sflag [#allocation7], %s373_s17  ;;  %s5184_s23 = int_to_ptr.vmem [resolvable:$true] %s417_s23 }
  0x66   : > { %p5192_p6 = pneg %p5167_p1 }
  0x68   : > { %s5180_s22 = scalar_lea.hbm %s6515_s1, %s5165_s20  ;;  %s4694_s5 = scalar_lea.hbm %s6515_s1, 4096 }
  0x69   : > { %s4689_s9 = scalar_lea.hbm %s5180_s22, 128  ;;  %p4695_p5 = scmp.lt.u32.totalorder %s5180_s22, %s6515_s1 }
  0x6a   : > { %p4690_p2 = scmp.ne.s32.totalorder %s5180_s22, %s4689_s9  ;;  %p4696_p7 = scmp.lt.u32.totalorder %s4694_s5, %s4689_s9 }
  0x6b   : > { %p4698_p0 = scmp.lt.u32.totalorder %s4689_s9, %s5180_s22 }
  0x6c   : > { %p4692_p10 = pnand %p5192_p6, %p4690_p2  ;;  %p4697_p9 = por %p4696_p7, %p4695_p5 }
  0x6e   : > { %p4693_p3 = pneg %p4692_p10  ;;  %p4699_p12 = por %p4698_p0, %p4697_p9 }
  0x70   : > { %p4700_p4 = pnand %p4699_p12, %p4693_p3 }
  0x72   : > { %4703 = shalt.err (!%p4700_p4)
}
  0x73   : > { %s4704_s17 = scalar_lea.vmem %s5182_s3, 128  ;;  %s4967_s27 = smov [#allocation6]  }
  0x74   : > { %p4705_p2 = scmp.ne.s32.totalorder %s5182_s3, %s4704_s17  ;;  %s4709_s8 = sshll.u32 %s4967_s27, 4  ;;  %s4710_s8 = int_to_ptr.vmem [resolvable:$false] %s4709_s8 }
  0x75   : > { %s4711_s14 = scalar_lea.vmem %s4710_s8, 256  ;;  %p4712_p11 = scmp.lt.s32.totalorder %s5182_s3, %s4710_s8 }
  0x76   : > { %p4707_p10 = pnand %p4705_p2, %p5192_p6  ;;  %p4713_p13 = scmp.lt.s32.totalorder %s4711_s14, %s4704_s17 }
  0x78   : > { %p4708_p8 = pneg %p4707_p10  ;;  %p4714_p5 = por %p4713_p13, %p4712_p11 }
  0x7a   : > { %p4715_p7 = pnand %p4714_p5, %p4708_p8 }
  0x7c   : > { %4718 = shalt.err (!%p4715_p7)
}
  0x7d   : > { %s6517_s9 = smov 4   ;;  %s6518_s5 = smov 64  }
  0x7e   : > { %4463 = dma.hbm_to_vmem [thread:$0]  (!%p5167_p1), %s5180_s22, 128, %s5182_s3, %s5186_s24, %s6518_s5, %s6518_s5, %s6517_s9  }
  0x7f   : > { %s4968_s12 = smov [#allocation11]   ;;  %s4969_s27 = smov [#allocation14]  }
  0x80   : > { %s316_s1 = sshll.u32 %s4968_s12, 4  ;;  %s338_s29 = sshll.u32 %s4969_s27, 4  ;;  %s317_s1 = int_to_ptr.vmem [resolvable:$true] %s316_s1  ;;  %s5219_s29 = int_to_ptr.vmem [resolvable:$true] %s338_s29 }
  0x81   : > { %s4719_s14 = scalar_lea.hbm %s6450_s4, 16  ;;  %p6519_p8 = scmp.ne.s32.totalorder %s6507_s26, 0 }
  0x82   : > { %p4720_p4 = scmp.ne.s32.totalorder %s6450_s4, %s4719_s14  ;;  %p4726_p12 = scmp.lt.u32.totalorder %s4719_s14, %s6450_s4 }
  0x84   : > { %p4722_p11 = pnand %p4720_p4, %p6519_p8 }
  0x86   : > { %p4723_p13 = pneg %p4722_p11 }
  0x88   : > { %p4728_p3 = pnand %p4726_p12, %p4723_p13 }
  0x8a   : > { %4731 = shalt.err (!%p4728_p3)
}
  0x8b   : > { %s4732_s22 = scalar_lea.vmem %s317_s1, 16  ;;  %s4739_s12 = scalar_lea.vmem %s317_s1, 32 }
  0x8c   : > { %p4733_p9 = scmp.ne.s32.totalorder %s317_s1, %s4732_s22  ;;  %p4740_p10 = scmp.lt.s32.totalorder %s317_s1, %s317_s1 }
  0x8d   : > { %p4741_p5 = scmp.lt.s32.totalorder %s4739_s12, %s4732_s22 }
  0x8e   : > { %p4735_p0 = pnand %p4733_p9, %p6519_p8 }
  0x8f   : > { %p4742_p7 = por %p4741_p5, %p4740_p10 }
  0x90   : > { %p4736_p2 = pneg %p4735_p0 }
  0x92   : > { %p4743_p1 = pnand %p4742_p7, %p4736_p2 }
  0x94   : > { %4746 = shalt.err (!%p4743_p1)
}
  0x95   : > { %p6520_p4 = scmp.ne.s32.totalorder %s6505_s18, 0  ;;  %s4747_s17 = scalar_lea.hbm %s6452_s6, 16 }
  0x96   : > { %p4748_p11 = scmp.ne.s32.totalorder %s6452_s6, %s4747_s17  ;;  %p4754_p1 = scmp.lt.u32.totalorder %s4747_s17, %s6452_s6 }
  0x97   : > { %4450 = dma.hbm_to_vmem [thread:$0]  (!%p6520_p4), %s6450_s4, 16, %s317_s1, [#allocation10]  }
  0x98   : > { %p4750_p13 = pnand %p4748_p11, %p6519_p8 }
  0x9a   : > { %p4751_p12 = pneg %p4750_p13 }
  0x9c   : > { %p4756_p3 = pnand %p4754_p1, %p4751_p12 }
  0x9e   : > { %4759 = shalt.err (!%p4756_p3)
}
  0x9f   : > { %s4760_s1 = scalar_lea.vmem %s5219_s29, 16  ;;  %s4767_s12 = scalar_lea.vmem %s5219_s29, 32 }
  0xa0   : > { %p4761_p9 = scmp.ne.s32.totalorder %s5219_s29, %s4760_s1  ;;  %p4768_p10 = scmp.lt.s32.totalorder %s5219_s29, %s5219_s29 }
  0xa1   : > { %p4769_p5 = scmp.lt.s32.totalorder %s4767_s12, %s4760_s1 }
  0xa2   : > { %p4763_p0 = pnand %p4761_p9, %p6519_p8 }
  0xa3   : > { %p4770_p7 = por %p4769_p5, %p4768_p10 }
  0xa4   : > { %p4764_p2 = pneg %p4763_p0 }
  0xa6   : > { %p4771_p11 = pnand %p4770_p7, %p4764_p2 }
  0xa8   : > { %4774 = shalt.err (!%p4771_p11)
}
  0xa9   : > { %4456 = dma.hbm_to_vmem [thread:$0]  (!%p6520_p4), %s6452_s6, 16, %s5219_s29, [#allocation13]  }
  0xaa   : > { %s3408_s26 = sshll.u32 %s5162_s16, 7  ;;  %s5268_s17 = scalar_lea.hbm %s6446_s0, %s5165_s20 }
  0xab   : > { %s353_s18 = scalar_lea.vmem [#allocation3], %s3408_s26  ;;  %s3560_s14 = sadd.s32 1920, %s5165_s20 }
  0xac   : > { %s363_s8 = sshll.u32 %s353_s18, 4  ;;  %s5276_s1 = scalar_lea.hbm %s6448_s2, %s3560_s14  ;;  %s5271_s8 = int_to_ptr.vmem [resolvable:$true] %s363_s8 }
  0xad   : > { %s350_s29 = scalar_lea.sflag [#allocation4], %s5162_s16  ;;  %s4775_s12 = scalar_lea.hbm %s5268_s17, 2048 }
  0xae   : > { %p4776_p8 = scmp.ne.s32.totalorder %s5268_s17, %s4775_s12  ;;  %s4780_s25 = scalar_lea.hbm %s6446_s0, 4096 }
  0xaf   : > { %p4781_p12 = scmp.lt.u32.totalorder %s5268_s17, %s6446_s0  ;;  %p4782_p1 = scmp.lt.u32.totalorder %s4780_s25, %s4775_s12 }
  0xb0   : > { %p4778_p4 = pnand %p4776_p8, %p5192_p6  ;;  %p4784_p9 = scmp.lt.u32.totalorder %s4775_s12, %s5268_s17 }
  0xb1   : > { %p4783_p3 = por %p4782_p1, %p4781_p12 }
  0xb2   : > { %p4779_p13 = pneg %p4778_p4 }
  0xb3   : > { %p4785_p0 = por %p4784_p9, %p4783_p3 }
  0xb5   : > { %p4786_p2 = pnand %p4785_p0, %p4779_p13 }
  0xb7   : > { %4789 = shalt.err (!%p4786_p2)
}
  0xb8   : > { %s4790_s20 = scalar_lea.vmem %s5271_s8, 2048  ;;  %s4970_s18 = smov [#allocation3]  }
  0xb9   : > { %p4791_p10 = scmp.ne.s32.totalorder %s5271_s8, %s4790_s20  ;;  %s4795_s14 = sshll.u32 %s4970_s18, 4  ;;  %s4796_s14 = int_to_ptr.vmem [resolvable:$false] %s4795_s14 }
  0xba   : > { %s4797_s3 = scalar_lea.vmem %s4796_s14, 4096  ;;  %p4798_p11 = scmp.lt.s32.totalorder %s5271_s8, %s4796_s14 }
  0xbb   : > { %p4793_p5 = pnand %p4791_p10, %p5192_p6  ;;  %p4799_p8 = scmp.lt.s32.totalorder %s4797_s3, %s4790_s20 }
  0xbd   : > { %p4794_p7 = pneg %p4793_p5  ;;  %p4800_p4 = por %p4799_p8, %p4798_p11 }
  0xbf   : > { %p4801_p12 = pnand %p4800_p4, %p4794_p7 }
  0xc1   : > { %4804 = shalt.err (!%p4801_p12)
}
  0xc2   : > { %p6521_p13 = scmp.ne.s32.totalorder %s6513_s19, 0  ;;  %s4805_s22 = scalar_lea.hbm %s5276_s1, 128 }
  0xc3   : > { %p4806_p1 = scmp.ne.s32.totalorder %s5276_s1, %s4805_s22  ;;  %s4810_s10 = scalar_lea.hbm %s6448_s2, 4096 }
  0xc4   : > { %4460 = dma.hbm_to_vmem [thread:$0]  (!%p6521_p13), %s5268_s17, 2048, %s5271_s8, %s350_s29, %s6518_s5, %s6518_s5, %s6517_s9  }
  0xc5   : > { %p4808_p3 = pnand %p4806_p1, %p5192_p6  ;;  %p4811_p0 = scmp.lt.u32.totalorder %s5276_s1, %s6448_s2 }
  0xc6   : > { %p4812_p2 = scmp.lt.u32.totalorder %s4810_s10, %s4805_s22  ;;  %p4814_p5 = scmp.lt.u32.totalorder %s4805_s22, %s5276_s1 }
  0xc7   : > { %p4809_p9 = pneg %p4808_p3 }
  0xc8   : > { %p4813_p10 = por %p4812_p2, %p4811_p0 }
  0xca   : > { %p4815_p7 = por %p4814_p5, %p4813_p10 }
  0xcc   : > { %p4816_p11 = pnand %p4815_p7, %p4809_p9 }
  0xce   : > { %4819 = shalt.err (!%p4816_p11)
}
  0xcf   : > { %s4820_s16 = scalar_lea.vmem %s5184_s23, 128  ;;  %s4971_s17 = smov [#allocation8]  }
  0xd0   : > { %p4821_p8 = scmp.ne.s32.totalorder %s5184_s23, %s4820_s16  ;;  %s4825_s8 = sshll.u32 %s4971_s17, 4  ;;  %s4826_s8 = int_to_ptr.vmem [resolvable:$false] %s4825_s8 }
  0xd1   : > { %s4827_s29 = scalar_lea.vmem %s4826_s8, 256  ;;  %p4828_p1 = scmp.lt.s32.totalorder %s5184_s23, %s4826_s8 }
  0xd2   : > { %p4823_p4 = pnand %p4821_p8, %p5192_p6  ;;  %p4829_p3 = scmp.lt.s32.totalorder %s4827_s29, %s4820_s16 }
  0xd4   : > { %p4824_p12 = pneg %p4823_p4  ;;  %p4830_p0 = por %p4829_p3, %p4828_p1 }
  0xd6   : > { %p4831_p2 = pnand %p4830_p0, %p4824_p12 }
  0xd8   : > { %4834 = shalt.err (!%p4831_p2)
}
  0xd9   : > { %4466 = dma.hbm_to_vmem [thread:$0]  (!%p6521_p13), %s5276_s1, 128, %s5184_s23, %s5186_s24, %s6518_s5, %s6518_s5, %s6517_s9  }
  0xda   : > { %p6522_p6 = scmp.ne.s32.totalorder %s6504_s15, 0 }
  0xdc   : > { %429 = sbr.rel (%p6522_p6) target bundleno = 825 (0x339), region = 48 }
  0xe3   : > { %s5333_s21 = sand.u32 1, %s4945_s28   ;;  %p6523_p9 = scmp.ne.s32.totalorder %s6501_s13, 0 }
  0xe4   : > { %s3418_s27 = sshll.u32 %s5333_s21, 7  ;;  %s432_s20 = scalar_lea.sflag [#allocation4], %s5333_s21 }
  0xe5   : > { %s5339_s19 = scalar_lea.vmem [#allocation3], %s3418_s27 }
  0xe6   : > { %4916 = dma.done.wait (%p6523_p9), %s432_s20, 2048  }
  0xe7   : > { %4918 = vsyncadd (%p6523_p9), %s432_s20, 4294965248  ;;  %s440_s15 = sand.u32 1, %s5053_s11  }
  0xe8   : > { %s441_s23 = scalar_lea.sflag [#allocation7], %s440_s15 }
  0xe9   : > { %4920 = dma.done.wait (%p6523_p9), %s441_s23, 256  }
  0xea   : > { %4922 = vsyncadd (%p6523_p9), %s441_s23, 4294967040  ;;  %p6524_p13 = scmp.eq.s32.totalorder %s5053_s11, 0 }
  0xec   : > { %4924 = dma.done.wait (%p6524_p13), [#allocation10], 9232   ;;  %p6525_p10 = pmov %p6524_p13 }
  0xee   : > { %4926 = vsyncadd (%p6525_p10), [#allocation10], 4294958064  ;;  %p6526_p5 = pmov %p6525_p10 }
  0xf0   : > { %4928 = dma.done.wait (%p6526_p5), [#allocation13], 32   ;;  %p6527_p7 = pmov %p6526_p5 }
  0xf1   : > { %v4972_v0 = vmov 0   ;;  %v4541_v2 = vld [vmem:[#allocation9 + $0x100] sm:$0xff]   ;;  %v4544_v5 = vld [vmem:[#allocation9 + $0x108] sm:$0xff]   ;;  %vm904_vm0 = vsmask.f32 7966  ;;  %v4547_v8 = vld [vmem:[#allocation9 + $0x110] sm:$0xff]  }
  0xf2   : > { %4930 = vsyncadd (%p6527_p7), [#allocation13], 4294967264  ;;  %v5358_v1 = vcombine.low %v4972_v0, %v4972_v0  ;;  %v5361_v3 = vld [vmem:[#allocation9 + $0x140] sm:$0xff]   ;;  %3690 = vmatprep.subr.bf16.mxu0 %v4541_v2  ;;  %v5365_v6 = vld [vmem:[#allocation9 + $0x148] sm:$0xff]   ;;  %vm903_vm1 = vcmask 1047559   ;;  %vm673_vm3 = vcmask 1040384  }
  0xf3   : > { %v4543_v4 = vld [vmem:[#allocation9 + $0xc0] sm:$0xff]   ;;  %4242 = vmatprep.subr.bf16.mxu1 %v5361_v3  ;;  %v4546_v7 = vld [vmem:[#allocation9 + $0xc8] sm:$0xff]   ;;  %v5368_v9 = vld [vmem:[#allocation9 + $0x150] sm:$0xff]   ;;  %vm674_vm2 = vsmask.f32 256  ;;  %vm852_vm8 = vcmask 1047552  }
  0xf4   : > { %1105 = vst [vmem:[#allocation2 + $0x1a0] sm:$0xff] %v5358_v1  ;;  %3691 = vmatpush3.bf16.msra.mxu0 %v4543_v4  ;;  %4250 = vmatpush3.bf16.msra.mxu1 %v5361_v3  ;;  %v4549_v10 = vld [vmem:[#allocation9 + $0xd0] sm:$0xff]   ;;  %v4550_v11 = vld [vmem:[#allocation9 + $0x118] sm:$0xff]   ;;  %v4553_v14 = vld [vmem:[#allocation9 + $0x120] sm:$0xff]   ;;  %vm1002_vm6 = vsmask.f32 7424 }
  0xf5   : > { %3692 = vmatprep.subr.bf16.mxu0 %v4544_v5  ;;  %4243 = vmatprep.subr.bf16.mxu1 %v5365_v6  ;;  %v5372_v12 = vld [vmem:[#allocation9 + $0x158] sm:$0xff]   ;;  %v5376_v15 = vld [vmem:[#allocation9 + $0x160] sm:$0xff]   ;;  %v4556_v17 = vld [vmem:[#allocation9 + $0x128] sm:$0xff]   ;;  %vm853_vm7 = vsmask.f32 7938  ;;  %s6267_s11 = scalar_lea.vmem [#allocation15], %s3418_s27 }
  0xf6   : > { %v4552_v13 = vld [vmem:[#allocation9 + $0xd8] sm:$0xff]   ;;  %v4555_v16 = vld [vmem:[#allocation9 + $0xe0] sm:$0xff]   ;;  %vm5380_vm4 = vmand %vm903_vm1, %vm904_vm0  ;;  %s3593_s13 = sshll.u32 %s4953_s30, 11  ;;  %s3179_s24 = sshll.u32 %s6267_s11, 4  ;;  %s6365_s24 = int_to_ptr.vmem [resolvable:$true] %s3179_s24 }
  0xf7   : > { %v5385_v19 = vld [vmem:[#allocation9 + $0x168] sm:$0xff]   ;;  %vm5387_vm5 = vmand %vm673_vm3, %vm674_vm2  ;;  %v4559_v22 = vld [vmem:[#allocation9 + $0x130] sm:$0xff]   ;;  %s6550_s9 = sld [smem:[#allocation30_spill]]  ;;  %s6551_s18 = sld [smem:[#allocation36_spill]] }
  0xf8   : > { %3693 = vmatpush3.bf16.msra.mxu0 %v4546_v7  ;;  %4251 = vmatpush3.bf16.msra.mxu1 %v5365_v6  ;;  %v4558_v21 = vld [vmem:[#allocation9 + $0xe8] sm:$0xff]   ;;  %v5393_v23 = vld [vmem:[#allocation9 + $0x170] sm:$0xff]   ;;  %v4562_v25 = vld [vmem:[#allocation9 + $0x138] sm:$0xff]   ;;  %s3158_s3 = scalar_lea.sflag [#allocation5], %s5333_s21  ;;  %s4835_s22 = scalar_lea.vmem %s6365_s24, 2048 }
  0xf9   : > { %3694 = vmatprep.subr.bf16.mxu0 %v4547_v8  ;;  %4244 = vmatprep.subr.bf16.mxu1 %v5368_v9  ;;  %v4561_v24 = vld [vmem:[#allocation9 + $0xf0] sm:$0xff]   ;;  %v5395_v26 = vld [vmem:[#allocation9 + $0x178] sm:$0xff]   ;;  %v5399_v27 = vld [vmem:[%s5339_s19] sm:$0xff]   ;;  %p4836_p11 = scmp.ne.s32.totalorder %s6365_s24, %s4835_s22  ;;  %s4973_s12 = smov [#allocation15]  }
  0xfa   : > { %v5403_v28 = vld [vmem:[%s5339_s19 + $0x40] sm:$0xff]   ;;  %v725_v29 = vshrl.u32 %v5399_v27, 16  ;;  %1498 = vmatprep.mubr.bf16.mxu0 %v5399_v27  ;;  %v930_v30 = vld [vmem:[#allocation2 + $0xe8] sm:$0x80]  ;;  %v676_v31 = vld [vmem:[#allocation2 + $0x18] sm:$0x1] }
  0xfb   : > { %v4564_v32 = vld [vmem:[#allocation9 + $0xf8] sm:$0xff]   ;;  %v784_v33 = vshll.u32 %v5403_v28, 16  ;;  %v931_v34 = vsel %vm5380_vm4, 0, %v930_v30  ;;  %665 = vst [vmem:[#allocation2 + $0xe0] sm:$0xff] %v5403_v28  ;;  %v677_v35 = vsel %vm5387_vm5, 0, %v676_v31  ;;  %v728_v37 = vshll.u32 %v5399_v27, 16  ;;  %vm5428_vm9 = vmand %vm852_vm8, %vm1002_vm6 }
  0xfc   : > { %3695 = vmatpush3.bf16.msra.mxu0 %v4549_v10  ;;  %4252 = vmatpush3.bf16.msra.mxu1 %v5368_v9  ;;  %v727_v36 = vrot.slane %v725_v29, 7  ;;  %v781_v38 = vshrl.u32 %v5403_v28, 16  ;;  %932 = vst [vmem:[#allocation2 + $0xe8] sm:$0x80] %v931_v34  ;;  %678 = vst [vmem:[#allocation2 + $0x18] sm:$0x1] %v677_v35 }
  0xfd   : > { %3696 = vmatprep.subr.bf16.mxu0 %v4550_v11  ;;  %4245 = vmatprep.subr.bf16.mxu1 %v5372_v12  ;;  %v5419_v39 = vld [vmem:[%s5339_s19 + $0x48] sm:$0xff]   ;;  %v970_v40 = vrot.slane %v784_v33, 1  ;;  %v933_v41 = vld [vmem:[#allocation2 + $0x100] sm:$0x80]  ;;  %v4568_v42 = vld [vmem:[#allocation9 + $0x40] sm:$0xff]   ;;  %s6363_s14 = scalar_lea.hbm %s6551_s18, %s3593_s13  ;;  %p6552_p8 = scmp.ne.s32.totalorder %s6550_s9, 0 }
  0xfe   : > { %v791_v43 = vshll.u32 %v5419_v39, 16  ;;  %666 = vst [vmem:[#allocation2 + $0xf8] sm:$0xff] %v5419_v39  ;;  %v934_v45 = vsel %vm5380_vm4, 0, %v933_v41  ;;  %v730_v46 = vor.u32 %v728_v37, %v727_v36  ;;  %vm5441_vm10 = vmand %vm852_vm8, %vm853_vm7  ;;  %v788_v49 = vshrl.u32 %v5419_v39, 16  ;;  %v5450_v51 = vld [vmem:[%s5339_s19 + $0x8] sm:$0xff]   ;;  %v5453_v54 = vld [vmem:[%s5339_s19 + $0x50] sm:$0xff]  }
  0xff   : > { %v971_v47 = vor.u32 %v970_v40, %v781_v38  ;;  %935 = vst [vmem:[#allocation2 + $0x100] sm:$0x80] %v934_v45  ;;  %v4569_v58 = vld [vmem:[#allocation9] sm:$0xff]   ;;  %658 = vst [vmem:[#allocation2 + $0x38] sm:$0xff] %v5450_v51  ;;  %v732_v59 = vshrl.u32 %v5450_v51, 16  ;;  %v4570_v62 = vld [vmem:[#allocation9 + $0x48] sm:$0xff]   ;;  %p4837_p4 = pnand %p4836_p11, %p6552_p8 }
 0x100   : > { %3697 = vmatpush3.bf16.msra.mxu0 %v4552_v13  ;;  %4253 = vmatpush3.bf16.msra.mxu1 %v5372_v12  ;;  %v972_v50 = vrot.slane %v791_v43, 1  ;;  %v936_v60 = vld [vmem:[#allocation2 + $0x118] sm:$0x80]  ;;  %v679_v61 = vld [vmem:[#allocation2 + $0x30] sm:$0x1]  ;;  %v798_v63 = vshll.u32 %v5453_v54, 16 }
 0x101   : > { %3698 = vmatprep.subr.bf16.mxu0 %v4553_v14  ;;  %4246 = vmatprep.subr.bf16.mxu1 %v5376_v15  ;;  %v937_v0 = vsel %vm5380_vm4, 0, %v936_v60  ;;  %667 = vst [vmem:[#allocation2 + $0x110] sm:$0xff] %v5453_v54  ;;  %v680_v2 = vsel %vm5387_vm5, 0, %v679_v61  ;;  %v734_v4 = vrot.slane %v732_v59, 7  ;;  %v735_v5 = vshll.u32 %v5450_v51, 16  ;;  %v5480_v8 = vld [vmem:[%s5339_s19 + $0x58] sm:$0xff]   ;;  %p4838_p12 = pneg %p4837_p4 }
 0x102   : > { %v973_v57 = vor.u32 %v972_v50, %v788_v49  ;;  %v795_v7 = vshrl.u32 %v5453_v54, 16  ;;  %938 = vst [vmem:[#allocation2 + $0x118] sm:$0x80] %v937_v0  ;;  %681 = vst [vmem:[#allocation2 + $0x30] sm:$0x1] %v680_v2  ;;  %v974_v11 = vrot.slane %v798_v63, 1 }
 0x103   : > { %v1028_v52 = vld [vmem:[#allocation2 + $0xe8] sm:$0xff]  ;;  %v855_v53 = vld [vmem:[#allocation2 + $0x18] sm:$0xff]  ;;  %v939_v13 = vld [vmem:[#allocation2 + $0x130] sm:$0x80]  ;;  %668 = vst [vmem:[#allocation2 + $0x128] sm:$0xff] %v5480_v8  ;;  %v805_v14 = vshll.u32 %v5480_v8, 16 }
 0x104   : > { %3699 = vmatpush3.bf16.msra.mxu0 %v4555_v16  ;;  %4254 = vmatpush3.bf16.msra.mxu1 %v5376_v15  ;;  %v1029_v55 = vsel %vm5428_vm9, %v971_v47, %v1028_v52  ;;  %v5459_v56 = vsel %vm5441_vm10, %v730_v46, %v855_v53  ;;  %v940_v16 = vsel %vm5380_vm4, 0, %v939_v13  ;;  %v4575_v30 = vld [vmem:[#allocation9 + $0x50] sm:$0xff]   ;;  %v942_v45 = vld [vmem:[#allocation2 + $0x148] sm:$0x80]  ;;  %v5517_v46 = vld [vmem:[%s5339_s19 + $0x68] sm:$0xff]   ;;  %s4839_s7 = sshll.u32 %s4973_s12, 4  ;;  %s4840_s7 = int_to_ptr.vmem [resolvable:$false] %s4839_s7 }
 0x105   : > { %3700 = vmatprep.subr.bf16.mxu0 %v4556_v17  ;;  %4247 = vmatprep.subr.bf16.mxu1 %v5385_v19  ;;  %1030 = vst [vmem:[#allocation2 + $0xe8] sm:$0xff] %v1029_v55  ;;  %857 = vst [vmem:[#allocation2 + $0x18] sm:$0xff] %v5459_v56  ;;  %v4571_v17 = vld [vmem:[#allocation9 + $0x8] sm:$0xff]   ;;  %v4576_v31 = vld [vmem:[#allocation9 + $0x10] sm:$0xff]   ;;  %v943_v50 = vsel %vm5380_vm4, 0, %v942_v45  ;;  %v816_v13 = vshrl.u32 %v5517_v46, 16  ;;  %p4842_p1 = scmp.lt.s32.totalorder %s6365_s24, %s4840_s7 }
 0x106   : > { %4130 = vmatprep.mubr.bf16.mxu1 %v1029_v55  ;;  %v1031_v10 = vld [vmem:[#allocation2 + $0x100] sm:$0xff]  ;;  %941 = vst [vmem:[#allocation2 + $0x130] sm:$0x80] %v940_v16  ;;  %v4577_v47 = vld [vmem:[#allocation9 + $0x58] sm:$0xff]   ;;  %944 = vst [vmem:[#allocation2 + $0x148] sm:$0x80] %v943_v50 }
 0x107   : > { %v682_v52 = vld [vmem:[#allocation2 + $0x48] sm:$0x1]  ;;  %670 = vst [vmem:[#allocation2 + $0x158] sm:$0xff] %v5517_v46  ;;  %v945_v0 = vld [vmem:[#allocation2 + $0x160] sm:$0x80]  ;;  %v4582_v2 = vld [vmem:[#allocation9 + $0x60] sm:$0xff]  }
 0x108   : > { %3701 = vmatpush3.bf16.msra.mxu0 %v4558_v21  ;;  %4255 = vmatpush3.bf16.msra.mxu1 %v5385_v19  ;;  %v975_v21 = vor.u32 %v974_v11, %v795_v7  ;;  %v4578_v53 = vld [vmem:[#allocation9 + $0x18] sm:$0xff]   ;;  %v683_v61 = vsel %vm5387_vm5, 0, %v682_v52  ;;  %v946_v11 = vsel %vm5380_vm4, 0, %v945_v0  ;;  %v721_v39 = vld [vmem:[#allocation2 + $0x180] sm:$0x1]  ;;  %s4841_s10 = scalar_lea.vmem %s4840_s7, 4096 }
 0x109   : > { %3702 = vmatprep.subr.bf16.mxu0 %v4559_v22  ;;  %4248 = vmatprep.subr.bf16.mxu1 %v5393_v23  ;;  %v737_v22 = vor.u32 %v735_v5, %v734_v4  ;;  %v1034_v34 = vld [vmem:[#allocation2 + $0x118] sm:$0xff]  ;;  %v858_v35 = vld [vmem:[#allocation2 + $0x30] sm:$0xff]  ;;  %684 = vst [vmem:[#allocation2 + $0x48] sm:$0x1] %v683_v61  ;;  %947 = vst [vmem:[#allocation2 + $0x160] sm:$0x80] %v946_v11  ;;  %p4843_p3 = scmp.lt.s32.totalorder %s4841_s10, %s4835_s22 }
 0x10a   : > { %v1035_v36 = vsel %vm5428_vm9, %v975_v21, %v1034_v34  ;;  %v4584_v21 = vld [vmem:[#allocation9 + $0x68] sm:$0xff]   ;;  %v4589_v11 = vld [vmem:[#allocation9 + $0x70] sm:$0xff]  }
 0x10b   : > { %1036 = vst [vmem:[#allocation2 + $0x118] sm:$0xff] %v1035_v36  ;;  %v4618_v20 = vld [vmem:[#allocation9 + $0x1b0] sm:$0xff]   ;;  %p4844_p0 = por %p4843_p3, %p4842_p1 }
 0x10c   : > { %3703 = vmatpush3.bf16.msra.mxu0 %v4561_v24  ;;  %4256 = vmatpush3.bf16.msra.mxu1 %v5393_v23  ;;  %v802_v24 = vshrl.u32 %v5480_v8, 16  ;;  %v4623_v44 = vld [vmem:[#allocation9 + $0x210] sm:$0xff]  }
 0x10d   : > { %3704 = vmatprep.subr.bf16.mxu0 %v4562_v25  ;;  %4249 = vmatprep.subr.bf16.mxu1 %v5395_v26  ;;  %v976_v25 = vrot.slane %v805_v14, 1  ;;  %p4845_p2 = pnand %p4844_p0, %p4838_p12 }
 0x10f   : > { %v977_v40 = vor.u32 %v976_v25, %v802_v24  ;;  %v1040_v25 = vld [vmem:[#allocation2 + $0x148] sm:$0xff] }
 0x110   : > { %3705 = vmatpush3.bf16.msra.mxu0 %v4564_v32  ;;  %4257 = vmatpush3.bf16.msra.mxu1 %v5395_v26  ;;  %v5501_v32 = vld [vmem:[%s5339_s19 + $0x10] sm:$0xff]  }
 0x111   : > { %4098 = vmatprep.subr.bf16.mxu0 %v5361_v3  ;;  %3826 = vmatprep.subr.bf16.mxu1 %v4568_v42  ;;  %659 = vst [vmem:[#allocation2 + $0x50] sm:$0xff] %v5501_v32  ;;  %v6486_v41 = vshrl.u32 %v5501_v32, 16  ;;  %v5514_v42 = vld [vmem:[%s5339_s19 + $0x60] sm:$0xff]   ;;  %v742_v55 = vshll.u32 %v5501_v32, 16  ;;  %v1043_v52 = vld [vmem:[#allocation2 + $0x160] sm:$0xff] }
 0x112   : > { %669 = vst [vmem:[#allocation2 + $0x140] sm:$0xff] %v5514_v42 }
 0x113   : > { %1499 = vmatmul.mubr.bf16.vlgmr.msra.gmra.mrb[0].mxu0 %v5459_v56  ;;  %v741_v60 = vrot.slane %v6486_v41, 7 }
 0x114   : > { %4099 = vmatpush3.bf16.msra.mxu0 %v5361_v3  ;;  %1506 = vmatprep.mubr.bf16.mxu0 %v5450_v51  ;;  %v1032_v3 = vsel %vm5428_vm9, %v973_v57, %v1031_v10  ;;  %v809_v57 = vshrl.u32 %v5514_v42, 16 }
 0x115   : > { %4100 = vmatprep.subr.bf16.mxu0 %v5365_v6  ;;  %1033 = vst [vmem:[#allocation2 + $0x100] sm:$0xff] %v1032_v3  ;;  %4131 = vmatmul.mubr.bf16.vlgmr.msra.gmra.mrb[0].mxu1 %v1032_v3 }
 0x116   : > { %3827 = vmatpush3.bf16.msra.mxu1 %v4569_v58  ;;  %4134 = vmatprep.mubr.bf16.mxu1 %v1035_v36  ;;  %v1037_v58 = vld [vmem:[#allocation2 + $0x130] sm:$0xff]  ;;  %v948_v36 = vld [vmem:[#allocation2 + $0x178] sm:$0x80] }
 0x117   : > { %3828 = vmatprep.subr.bf16.mxu1 %v4570_v62  ;;  %v819_v62 = vshll.u32 %v5517_v46, 16  ;;  %v1038_v4 = vsel %vm5428_vm9, %v977_v40, %v1037_v58  ;;  %v5566_v40 = vld [vmem:[%s5339_s19 + $0x78] sm:$0xff]   ;;  %v949_v45 = vsel %vm5380_vm4, 0, %v948_v36  ;;  %v5605_v36 = vld [vmem:[%s5339_s19 + $0x20] sm:$0xff]  }
 0x118   : > { %4101 = vmatpush3.bf16.msra.mxu0 %v5365_v6  ;;  %v5507_v6 = vsel %vm5441_vm10, %v737_v22, %v858_v35  ;;  %1039 = vst [vmem:[#allocation2 + $0x130] sm:$0xff] %v1038_v4  ;;  %v5552_v22 = vld [vmem:[%s5339_s19 + $0x18] sm:$0xff]   ;;  %v5563_v35 = vld [vmem:[%s5339_s19 + $0x70] sm:$0xff]   ;;  %950 = vst [vmem:[#allocation2 + $0x178] sm:$0x80] %v949_v45 }
 0x119   : > { %4102 = vmatprep.subr.bf16.mxu0 %v5368_v9  ;;  %860 = vst [vmem:[#allocation2 + $0x30] sm:$0xff] %v5507_v6  ;;  %v980_v3 = vrot.slane %v819_v62, 1  ;;  %660 = vst [vmem:[#allocation2 + $0x68] sm:$0xff] %v5552_v22  ;;  %v6485_v34 = vshrl.u32 %v5552_v22, 16  ;;  %v823_v0 = vshrl.u32 %v5563_v35, 16 }
 0x11a   : > { %3829 = vmatpush3.bf16.msra.mxu1 %v4571_v17  ;;  %v4583_v17 = vld [vmem:[#allocation9 + $0x20] sm:$0xff]   ;;  %671 = vst [vmem:[#allocation2 + $0x170] sm:$0xff] %v5563_v35  ;;  %672 = vst [vmem:[#allocation2 + $0x188] sm:$0xff] %v5566_v40 }
 0x11b   : > { %1507 = vmatmul.mubr.bf16.gmra.mrb[4].mxu0 %v5507_v6  ;;  %3830 = vmatprep.subr.bf16.mxu1 %v4575_v30  ;;  %v981_v30 = vor.u32 %v980_v3, %v816_v13  ;;  %v748_v58 = vrot.slane %v6485_v34, 7 }
 0x11c   : > { %4103 = vmatpush3.bf16.msra.mxu0 %v5368_v9  ;;  %1514 = vmatprep.mubr.bf16.mxu0 %v5501_v32  ;;  %v812_v9 = vshll.u32 %v5514_v42, 16 }
 0x11d   : > { %4104 = vmatprep.subr.bf16.mxu0 %v5372_v12  ;;  %4135 = vmatmul.mubr.bf16.gmra.mrb[4].mxu1 %v1038_v4  ;;  %v1044_v61 = vsel %vm5428_vm9, %v981_v30, %v1043_v52  ;;  %v4591_v30 = vld [vmem:[#allocation9 + $0x78] sm:$0xff]  }
 0x11e   : > { %3831 = vmatpush3.bf16.msra.mxu1 %v4576_v31  ;;  %v978_v10 = vrot.slane %v812_v9, 1  ;;  %1045 = vst [vmem:[#allocation2 + $0x160] sm:$0xff] %v1044_v61  ;;  %v4592_v52 = vld [vmem:[#allocation9 + $0x38] sm:$0xff]  }
 0x11f   : > { %3832 = vmatprep.subr.bf16.mxu1 %v4577_v47  ;;  %v685_v47 = vld [vmem:[#allocation2 + $0x60] sm:$0x1]  ;;  %v1046_v45 = vld [vmem:[#allocation2 + $0x178] sm:$0xff] }
 0x120   : > { %4105 = vmatpush3.bf16.msra.mxu0 %v5372_v12  ;;  %v979_v16 = vor.u32 %v978_v10, %v809_v57  ;;  %v744_v12 = vor.u32 %v742_v55, %v741_v60  ;;  %v6489_v60 = vshll.u32 %v5552_v22, 16  ;;  %v686_v4 = vsel %vm5387_vm5, 0, %v685_v47  ;;  %v951_v10 = vld [vmem:[#allocation2 + $0x190] sm:$0x80] }
 0x121   : > { %4106 = vmatprep.subr.bf16.mxu0 %v5376_v15  ;;  %687 = vst [vmem:[#allocation2 + $0x60] sm:$0x1] %v686_v4  ;;  %v952_v3 = vsel %vm5380_vm4, 0, %v951_v10  ;;  %v6481_v10 = vshrl.u32 %v5605_v36, 16  ;;  %v2255_v48 = vld [vmem:[#allocation2 + $0x30] sm:$0xff] }
 0x122   : > { %3833 = vmatpush3.bf16.msra.mxu1 %v4578_v53  ;;  %v1041_v31 = vsel %vm5428_vm9, %v979_v16, %v1040_v25  ;;  %v4585_v53 = vld [vmem:[#allocation9 + $0x28] sm:$0xff]   ;;  %953 = vst [vmem:[#allocation2 + $0x190] sm:$0x80] %v952_v3  ;;  %v5617_v3 = vld [vmem:[#allocation9 + $0x80] sm:$0xff]  }
 0x123   : > { %3834 = vmatprep.subr.bf16.mxu1 %v4582_v2  ;;  %1042 = vst [vmem:[#allocation2 + $0x148] sm:$0xff] %v1041_v31  ;;  %4138 = vmatprep.mubr.bf16.mxu1 %v1041_v31  ;;  %v826_v2 = vshll.u32 %v5563_v35, 16  ;;  %v751_v31 = vor.u32 %v6489_v60, %v748_v58  ;;  %v6484_v58 = vshll.u32 %v5605_v36, 16  ;;  %v706_v60 = vld [vmem:[#allocation2 + $0x108] sm:$0x1] }
 0x124   : > { %4107 = vmatpush3.bf16.msra.mxu0 %v5376_v15  ;;  %v861_v15 = vld [vmem:[#allocation2 + $0x48] sm:$0xff] }
 0x125   : > { %4108 = vmatprep.subr.bf16.mxu0 %v5385_v19  ;;  %v5572_v50 = vsel %vm5441_vm10, %v744_v12, %v861_v15  ;;  %4139 = vmatmul.mubr.bf16.gmra.mrb[8].mxu1 %v1044_v61  ;;  %v982_v16 = vrot.slane %v826_v2, 1  ;;  %v4590_v12 = vld [vmem:[#allocation9 + $0x30] sm:$0xff]   ;;  %v6480_v15 = vshrl.u32 %v5358_v1, 16 }
 0x126   : > { %3835 = vmatpush3.bf16.msra.mxu1 %v4583_v17  ;;  %863 = vst [vmem:[#allocation2 + $0x48] sm:$0xff] %v5572_v50  ;;  %1515 = vmatmul.mubr.bf16.gmra.mrb[8].mxu0 %v5572_v50  ;;  %v830_v17 = vshrl.u32 %v5566_v40, 16  ;;  %v1067_v61 = vld [vmem:[#allocation2] sm:$0x1] }
 0x127   : > { %3836 = vmatprep.subr.bf16.mxu1 %v4584_v21  ;;  %1522 = vmatprep.mubr.bf16.mxu0 %v5552_v22  ;;  %v983_v25 = vor.u32 %v982_v16, %v823_v0 }
 0x128   : > { %4109 = vmatpush3.bf16.msra.mxu0 %v5385_v19  ;;  %v833_v19 = vshll.u32 %v5566_v40, 16  ;;  %v864_v16 = vld [vmem:[#allocation2 + $0x60] sm:$0xff] }
 0x129   : > { %4110 = vmatprep.subr.bf16.mxu0 %v5393_v23  ;;  %v1047_v4 = vsel %vm5428_vm9, %v983_v25, %v1046_v45  ;;  %v1049_v25 = vld [vmem:[#allocation2 + $0x190] sm:$0xff]  ;;  %v755_v45 = vrot.slane %v6481_v10, 7  ;;  %v5660_v10 = vld [vmem:[%s5339_s19 + $0x38] sm:$0xff]  }
 0x12a   : > { %3837 = vmatpush3.bf16.msra.mxu1 %v4585_v53  ;;  %v984_v21 = vrot.slane %v833_v19, 1  ;;  %v688_v53 = vld [vmem:[#allocation2 + $0x78] sm:$0x1]  ;;  %1048 = vst [vmem:[#allocation2 + $0x178] sm:$0xff] %v1047_v4  ;;  %4142 = vmatprep.mubr.bf16.mxu1 %v1047_v4  ;;  %v6491_v41 = vshrl.u32 %v5660_v10, 16 }
 0x12b   : > { %3838 = vmatprep.subr.bf16.mxu1 %v4589_v11  ;;  %v689_v11 = vsel %vm5387_vm5, 0, %v688_v53  ;;  %v5631_v53 = vld [vmem:[%s5339_s19 + $0x28] sm:$0xff]  }
 0x12c   : > { %4111 = vmatpush3.bf16.msra.mxu0 %v5393_v23  ;;  %v985_v47 = vor.u32 %v984_v21, %v830_v17  ;;  %v6482_v23 = vshll.u32 %v5358_v1, 16  ;;  %690 = vst [vmem:[#allocation2 + $0x78] sm:$0x1] %v689_v11  ;;  %v1068_v21 = vsel %vm5387_vm5, 0, %v1067_v61  ;;  %v6483_v61 = vshrl.u32 %v5631_v53, 16 }
 0x12d   : > { %4112 = vmatprep.subr.bf16.mxu0 %v5395_v26  ;;  %1069 = vst [vmem:[#allocation2] sm:$0x1] %v1068_v21  ;;  %v6488_v4 = vshll.u32 %v5631_v53, 16  ;;  %v694_v21 = vld [vmem:[#allocation2 + $0xa8] sm:$0x1] }
 0x12e   : > { %3839 = vmatpush3.bf16.msra.mxu1 %v4590_v12  ;;  %v5624_v12 = vsel %vm5441_vm10, %v751_v31, %v864_v16  ;;  %v691_v31 = vld [vmem:[#allocation2 + $0x90] sm:$0x1]  ;;  %v5643_v16 = vld [vmem:[%s5339_s19 + $0x30] sm:$0xff]  }
 0x12f   : > { %3840 = vmatprep.subr.bf16.mxu1 %v4591_v30  ;;  %866 = vst [vmem:[#allocation2 + $0x60] sm:$0xff] %v5624_v12  ;;  %1523 = vmatmul.mubr.bf16.gmra.mrb[12].mxu0 %v5624_v12  ;;  %v1050_v30 = vsel %vm5428_vm9, %v985_v47, %v1049_v25  ;;  %v692_v11 = vsel %vm5387_vm5, 0, %v691_v31  ;;  %v758_v47 = vor.u32 %v6484_v58, %v755_v45  ;;  %v695_v25 = vsel %vm5387_vm5, 0, %v694_v21  ;;  %v697_v45 = vld [vmem:[#allocation2 + $0xc0] sm:$0x1] }
 0x130   : > { %4113 = vmatpush3.bf16.msra.mxu0 %v5395_v26  ;;  %v1073_v26 = vrot.slane %v6480_v15, 7  ;;  %1051 = vst [vmem:[#allocation2 + $0x190] sm:$0xff] %v1050_v30  ;;  %4143 = vmatmul.mubr.bf16.gmra.mrb[12].mxu1 %v1050_v30  ;;  %693 = vst [vmem:[#allocation2 + $0x90] sm:$0x1] %v692_v11  ;;  %v762_v31 = vrot.slane %v6483_v61, 7  ;;  %v6490_v15 = vshll.u32 %v5643_v16, 16 }
 0x131   : > { %1530 = vmatprep.mubr.bf16.mxu0 %v5605_v36  ;;  %1964 = vmatprep.mubr.bf16.mxu1 %v5358_v1  ;;  %696 = vst [vmem:[#allocation2 + $0xa8] sm:$0x1] %v695_v25  ;;  %v5664_v11 = vrot.slane %v728_v37, 1  ;;  %v698_v61 = vsel %vm5387_vm5, 0, %v697_v45  ;;  %v700_v58 = vld [vmem:[#allocation2 + $0xd8] sm:$0x1] }
 0x132   : > { %3841 = vmatpush3.bf16.msra.mxu1 %v4592_v52  ;;  %v5652_v30 = vor.u32 %v6482_v23, %v1073_v26  ;;  %v6487_v52 = vshrl.u32 %v5643_v16, 16  ;;  %v765_v26 = vor.u32 %v6488_v4, %v762_v31  ;;  %v777_v37 = vshll.u32 %v5660_v10, 16  ;;  %699 = vst [vmem:[#allocation2 + $0xc0] sm:$0x1] %v698_v61  ;;  %v703_v4 = vld [vmem:[#allocation2 + $0xf0] sm:$0x1] }
 0x133   : > { %4146 = vmatprep.subr.bf16.mxu1 %v5617_v3  ;;  %v867_v21 = vld [vmem:[#allocation2 + $0x78] sm:$0xff]  ;;  %v701_v31 = vsel %vm5387_vm5, 0, %v700_v58  ;;  %v776_v58 = vrot.slane %v6491_v41, 7  ;;  %v704_v61 = vsel %vm5387_vm5, 0, %v703_v4 }
 0x134   : > { %v769_v23 = vrot.slane %v6487_v52, 7  ;;  %v5674_v25 = vsel %vm5441_vm10, %v758_v47, %v867_v21  ;;  %v1078_v34 = vld [vmem:[#allocation2] sm:$0xff]  ;;  %v4597_v47 = vld [vmem:[#allocation9 + $0x88] sm:$0xff]   ;;  %702 = vst [vmem:[#allocation2 + $0xd8] sm:$0x1] %v701_v31  ;;  %v783_v21 = vrot.slane %v781_v38, 7 }
 0x135   : > { %869 = vst [vmem:[#allocation2 + $0x78] sm:$0xff] %v5674_v25  ;;  %v1079_v45 = vsel %vm5441_vm10, %v5652_v30, %v1078_v34  ;;  %v790_v34 = vrot.slane %v788_v49, 7  ;;  %v4599_v31 = vld [vmem:[#allocation9 + $0x90] sm:$0xff]   ;;  %705 = vst [vmem:[#allocation2 + $0xf0] sm:$0x1] %v704_v61  ;;  %v804_v61 = vrot.slane %v802_v24, 7 }
 0x136   : > { %v772_v52 = vor.u32 %v6490_v15, %v769_v23  ;;  %1080 = vst [vmem:[#allocation2] sm:$0xff] %v1079_v45  ;;  %v797_v23 = vrot.slane %v795_v7, 7  ;;  %v707_v15 = vsel %vm5387_vm5, 0, %v706_v60  ;;  %v779_v7 = vor.u32 %v777_v37, %v776_v58  ;;  %v712_v41 = vld [vmem:[#allocation2 + $0x138] sm:$0x1] }
 0x137   : > { %1531 = vmatmul.mubr.bf16.gmra.mrb[16].mxu0 %v5674_v25  ;;  %v870_v38 = vld [vmem:[#allocation2 + $0x90] sm:$0xff]  ;;  %708 = vst [vmem:[#allocation2 + $0x108] sm:$0x1] %v707_v15  ;;  %v713_v15 = vsel %vm5387_vm5, 0, %v712_v41  ;;  %v811_v24 = vrot.slane %v809_v57, 7 }
 0x138   : > { %1965 = vmatmul.mubr.bf16.vlgmr.msra.gmra.mrb[16].mxu1 %v1079_v45  ;;  %1538 = vmatprep.mubr.bf16.mxu0 %v5631_v53  ;;  %v5704_v49 = vsel %vm5441_vm10, %v765_v26, %v870_v38  ;;  %v873_v4 = vld [vmem:[#allocation2 + $0xa8] sm:$0xff]  ;;  %v709_v45 = vld [vmem:[#allocation2 + $0x120] sm:$0x1]  ;;  %714 = vst [vmem:[#allocation2 + $0x138] sm:$0x1] %v713_v15 }
 0x139   : > { %4147 = vmatpush3.bf16.msra.mxu1 %v5617_v3  ;;  %1972 = vmatprep.mubr.bf16.mxu1 %v5399_v27  ;;  %872 = vst [vmem:[#allocation2 + $0x90] sm:$0xff] %v5704_v49  ;;  %v5713_v60 = vsel %vm5441_vm10, %v772_v52, %v873_v4  ;;  %v786_v3 = vor.u32 %v784_v33, %v783_v21  ;;  %v710_v26 = vsel %vm5387_vm5, 0, %v709_v45  ;;  %v715_v58 = vld [vmem:[#allocation2 + $0x150] sm:$0x1]  ;;  %v818_v52 = vrot.slane %v816_v13, 7  ;;  %v876_v4 = vld [vmem:[#allocation2 + $0xc0] sm:$0xff] }
 0x13a   : > { %4148 = vmatprep.subr.bf16.mxu1 %v4597_v47  ;;  %875 = vst [vmem:[#allocation2 + $0xa8] sm:$0xff] %v5713_v60  ;;  %711 = vst [vmem:[#allocation2 + $0x120] sm:$0x1] %v710_v26  ;;  %v718_v38 = vld [vmem:[#allocation2 + $0x168] sm:$0x1]  ;;  %v793_v33 = vor.u32 %v791_v43, %v790_v34  ;;  %v716_v21 = vsel %vm5387_vm5, 0, %v715_v58  ;;  %v5736_v57 = vsel %vm5441_vm10, %v779_v7, %v876_v4 }
 0x13b   : > { %v719_v41 = vsel %vm5387_vm5, 0, %v718_v38  ;;  %v825_v45 = vrot.slane %v823_v0, 7  ;;  %v879_v13 = vld [vmem:[#allocation2 + $0xd8] sm:$0xff]  ;;  %v800_v26 = vor.u32 %v798_v63, %v797_v23  ;;  %717 = vst [vmem:[#allocation2 + $0x150] sm:$0x1] %v716_v21  ;;  %v832_v43 = vrot.slane %v830_v17, 7 }
 0x13c   : > { %720 = vst [vmem:[#allocation2 + $0x168] sm:$0x1] %v719_v41  ;;  %878 = vst [vmem:[#allocation2 + $0xc0] sm:$0xff] %v5736_v57  ;;  %v5745_v0 = vsel %vm5441_vm10, %v786_v3, %v879_v13  ;;  %v722_v34 = vsel %vm5387_vm5, 0, %v721_v39  ;;  %v906_v7 = vld [vmem:[#allocation2 + $0x28] sm:$0x80]  ;;  %v807_v17 = vor.u32 %v805_v14, %v804_v61  ;;  %v814_v23 = vor.u32 %v812_v9, %v811_v24 }
 0x13d   : > { %4149 = vmatpush3.bf16.msra.mxu1 %v4597_v47  ;;  %v4600_v47 = vld [vmem:[#allocation9 + $0x98] sm:$0xff]   ;;  %v909_v15 = vld [vmem:[#allocation2 + $0x40] sm:$0x80]  ;;  %881 = vst [vmem:[#allocation2 + $0xd8] sm:$0xff] %v5745_v0  ;;  %v882_v63 = vld [vmem:[#allocation2 + $0xf0] sm:$0xff]  ;;  %v907_v3 = vsel %vm5380_vm4, 0, %v906_v7 }
 0x13e   : > { %4150 = vmatprep.subr.bf16.mxu1 %v4599_v31  ;;  %723 = vst [vmem:[#allocation2 + $0x180] sm:$0x1] %v722_v34  ;;  %v910_v58 = vsel %vm5380_vm4, 0, %v909_v15  ;;  %v4604_v38 = vld [vmem:[#allocation9 + $0x1c0] sm:$0xff]   ;;  %v956_v4 = vrot.slane %v735_v5, 1  ;;  %v5765_v14 = vsel %vm5441_vm10, %v793_v33, %v882_v63  ;;  %v885_v9 = vld [vmem:[#allocation2 + $0x108] sm:$0xff]  ;;  %v828_v5 = vor.u32 %v826_v2, %v825_v45 }
 0x13f   : > { %1539 = vmatmul.mubr.bf16.gmra.mrb[20].mxu0 %v5704_v49  ;;  %908 = vst [vmem:[#allocation2 + $0x28] sm:$0x80] %v907_v3  ;;  %911 = vst [vmem:[#allocation2 + $0x40] sm:$0x80] %v910_v58  ;;  %v5771_v61 = vsel %vm5441_vm10, %v800_v26, %v885_v9  ;;  %v891_v33 = vld [vmem:[#allocation2 + $0x138] sm:$0xff]  ;;  %v4601_v21 = vld [vmem:[#allocation9 + $0xa0] sm:$0xff]   ;;  %3962 = vmatprep.subr.bf16.mxu0 %v4604_v38  ;;  %v955_v2 = vor.u32 %v5664_v11, %v725_v29 }
 0x140   : > { %1973 = vmatmul.mubr.bf16.gmra.mrb[20].mxu1 %v5459_v56  ;;  %1546 = vmatprep.mubr.bf16.mxu0 %v5643_v16  ;;  %884 = vst [vmem:[#allocation2 + $0xf0] sm:$0xff] %v5765_v14  ;;  %v821_v56 = vor.u32 %v819_v62, %v818_v52  ;;  %887 = vst [vmem:[#allocation2 + $0x108] sm:$0xff] %v5771_v61  ;;  %v5784_v41 = vsel %vm5441_vm10, %v814_v23, %v891_v33  ;;  %v4602_v27 = vld [vmem:[#allocation9 + $0xa8] sm:$0xff]   ;;  %v915_v11 = vld [vmem:[#allocation2 + $0x70] sm:$0x80]  ;;  %v958_v39 = vrot.slane %v742_v55, 1 }
 0x141   : > { %1980 = vmatprep.mubr.bf16.mxu1 %v5450_v51  ;;  %4151 = vmatpush3.bf16.msra.mxu1 %v4599_v31  ;;  %v888_v24 = vld [vmem:[#allocation2 + $0x120] sm:$0xff]  ;;  %v835_v62 = vor.u32 %v833_v19, %v832_v43  ;;  %v957_v52 = vor.u32 %v956_v4, %v732_v59  ;;  %893 = vst [vmem:[#allocation2 + $0x138] sm:$0xff] %v5784_v41  ;;  %v912_v29 = vld [vmem:[#allocation2 + $0x58] sm:$0x80]  ;;  %v916_v7 = vsel %vm5380_vm4, 0, %v915_v11  ;;  %v6536_v15 = vshll.u32 %v5552_v22, 16 }
 0x142   : > { %4152 = vmatprep.subr.bf16.mxu1 %v4600_v47  ;;  %v5780_v31 = vsel %vm5441_vm10, %v807_v17, %v888_v24  ;;  %v894_v45 = vld [vmem:[#allocation2 + $0x150] sm:$0xff]  ;;  %v913_v59 = vsel %vm5380_vm4, 0, %v912_v29  ;;  %917 = vst [vmem:[#allocation2 + $0x70] sm:$0x80] %v916_v7  ;;  %v6537_v23 = vshrl.u32 %v5501_v32, 16  ;;  %v6538_v4 = vshrl.u32 %v5552_v22, 16 }
 0x143   : > { %890 = vst [vmem:[#allocation2 + $0x120] sm:$0xff] %v5780_v31  ;;  %v897_v13 = vld [vmem:[#allocation2 + $0x168] sm:$0xff]  ;;  %v5797_v26 = vsel %vm5441_vm10, %v821_v56, %v894_v45  ;;  %914 = vst [vmem:[#allocation2 + $0x58] sm:$0x80] %v913_v59  ;;  %v960_v63 = vrot.slane %v6536_v15, 1  ;;  %v6539_v24 = vshll.u32 %v5605_v36, 16 }
 0x144   : > { %v5801_v19 = vsel %vm5441_vm10, %v828_v5, %v897_v13  ;;  %896 = vst [vmem:[#allocation2 + $0x150] sm:$0xff] %v5797_v26  ;;  %v959_v3 = vor.u32 %v958_v39, %v6537_v23  ;;  %v918_v58 = vld [vmem:[#allocation2 + $0x88] sm:$0x80]  ;;  %v921_v38 = vld [vmem:[#allocation2 + $0xa0] sm:$0x80]  ;;  %v4629_v23 = vld [vmem:[#allocation2 + $0xf8] sm:$0xff] }
 0x145   : > { %4153 = vmatpush3.bf16.msra.mxu1 %v4600_v47  ;;  %899 = vst [vmem:[#allocation2 + $0x168] sm:$0xff] %v5801_v19  ;;  %v900_v51 = vld [vmem:[#allocation2 + $0x180] sm:$0xff]  ;;  %v961_v9 = vor.u32 %v960_v63, %v6538_v4  ;;  %v919_v56 = vsel %vm5380_vm4, 0, %v918_v58  ;;  %v922_v5 = vsel %vm5380_vm4, 0, %v921_v38  ;;  %v962_v33 = vrot.slane %v6539_v24, 1  ;;  %v5891_v24 = vld [vmem:[#allocation9 + $0x200] sm:$0xff]  }
 0x146   : > { %4154 = vmatprep.subr.bf16.mxu1 %v4601_v21  ;;  %v5812_v43 = vsel %vm5441_vm10, %v835_v62, %v900_v51  ;;  %v1004_v47 = vld [vmem:[#allocation2 + $0x28] sm:$0xff]  ;;  %v1007_v34 = vld [vmem:[#allocation2 + $0x40] sm:$0xff]  ;;  %920 = vst [vmem:[#allocation2 + $0x88] sm:$0x80] %v919_v56  ;;  %923 = vst [vmem:[#allocation2 + $0xa0] sm:$0x80] %v922_v5 }
 0x147   : > { %1547 = vmatmul.mubr.bf16.gmra.mrb[24].mxu0 %v5713_v60  ;;  %902 = vst [vmem:[#allocation2 + $0x180] sm:$0xff] %v5812_v43  ;;  %v5823_v55 = vsel %vm5428_vm9, %v955_v2, %v1004_v47  ;;  %v5827_v17 = vsel %vm5428_vm9, %v957_v52, %v1007_v34  ;;  %v4612_v2 = vld [vmem:[#allocation9 + $0xb8] sm:$0xff]   ;;  %v6542_v51 = vshrl.u32 %v5631_v53, 16  ;;  %v968_v34 = vrot.slane %v777_v37, 1  ;;  %v1081_v37 = vld [vmem:[#allocation2 + $0x10] sm:$0x80] }
 0x148   : > { %1981 = vmatmul.mubr.bf16.gmra.mrb[24].mxu1 %v5507_v6  ;;  %1554 = vmatprep.mubr.bf16.mxu0 %v5660_v10  ;;  %1006 = vst [vmem:[#allocation2 + $0x28] sm:$0xff] %v5823_v55  ;;  %1009 = vst [vmem:[#allocation2 + $0x40] sm:$0xff] %v5827_v17  ;;  %v4603_v6 = vld [vmem:[#allocation9 + $0xb0] sm:$0xff]   ;;  %v6545_v38 = vshrl.u32 %v5660_v10, 16  ;;  %v6546_v56 = vshll.u32 %v5358_v1, 16 }
 0x149   : > { %1988 = vmatprep.mubr.bf16.mxu1 %v5501_v32  ;;  %4155 = vmatpush3.bf16.msra.mxu1 %v4601_v21  ;;  %v6540_v21 = vshll.u32 %v5631_v53, 16  ;;  %v1013_v45 = vld [vmem:[#allocation2 + $0x70] sm:$0xff] }
 0x14a   : > { %4156 = vmatprep.subr.bf16.mxu1 %v4602_v27  ;;  %v1010_v32 = vld [vmem:[#allocation2 + $0x58] sm:$0xff]  ;;  %v5854_v13 = vsel %vm5428_vm9, %v961_v9, %v1013_v45  ;;  %v969_v4 = vor.u32 %v968_v34, %v6545_v38  ;;  %v1082_v9 = vsel %vm5380_vm4, 0, %v1081_v37  ;;  %v1084_v5 = vrot.slane %v6546_v56, 1 }
 0x14b   : > { %v964_v62 = vrot.slane %v6540_v21, 1  ;;  %v5847_v52 = vsel %vm5428_vm9, %v959_v3, %v1010_v32  ;;  %1015 = vst [vmem:[#allocation2 + $0x70] sm:$0xff] %v5854_v13  ;;  %v6544_v3 = vshrl.u32 %v5643_v16, 16  ;;  %1083 = vst [vmem:[#allocation2 + $0x10] sm:$0x80] %v1082_v9  ;;  %v4620_v9 = vld [vmem:[#allocation9 + $0x1b8] sm:$0xff]  }
 0x14c   : > { %1012 = vst [vmem:[#allocation2 + $0x58] sm:$0xff] %v5847_v52  ;;  %v1106_v34 = vld [vmem:[#allocation2 + $0x198] sm:$0x1] }
 0x14d   : > { %4157 = vmatpush3.bf16.msra.mxu1 %v4602_v27  ;;  %v6541_v27 = vshrl.u32 %v5605_v36, 16  ;;  %v965_v59 = vor.u32 %v964_v62, %v6542_v51  ;;  %v1016_v7 = vld [vmem:[#allocation2 + $0x88] sm:$0xff]  ;;  %v1019_v15 = vld [vmem:[#allocation2 + $0xa0] sm:$0xff]  ;;  %v4605_v51 = vld [vmem:[#allocation9 + $0x180] sm:$0xff]  }
 0x14e   : > { %4158 = vmatprep.subr.bf16.mxu1 %v4603_v6  ;;  %v4622_v56 = vld [vmem:[#allocation9 + $0x208] sm:$0xff]  }
 0x14f   : > { %1555 = vmatmul.mubr.bf16.gmra.mrb[28].mxu0 %v5736_v57  ;;  %v963_v29 = vor.u32 %v962_v33, %v6541_v27 }
 0x150   : > { %1989 = vmatmul.mubr.bf16.gmra.mrb[28].mxu1 %v5572_v50  ;;  %1562 = vmatprep.mubr.bf16.mxu0 %v5403_v28  ;;  %v924_v50 = vld [vmem:[#allocation2 + $0xb8] sm:$0x80]  ;;  %v927_v28 = vld [vmem:[#allocation2 + $0xd0] sm:$0x80] }
 0x151   : > { %1996 = vmatprep.mubr.bf16.mxu1 %v5552_v22  ;;  %4159 = vmatpush3.bf16.msra.mxu1 %v4603_v6  ;;  %v925_v11 = vsel %vm5380_vm4, 0, %v924_v50  ;;  %v928_v39 = vsel %vm5380_vm4, 0, %v927_v28  ;;  %v6543_v22 = vshll.u32 %v5643_v16, 16  ;;  %v5872_v63 = vsel %vm5428_vm9, %v963_v29, %v1016_v7  ;;  %v4607_v50 = vld [vmem:[#allocation9 + $0x188] sm:$0xff]   ;;  %v4609_v28 = vld [vmem:[#allocation9 + $0x190] sm:$0xff]  }
 0x152   : > { %4160 = vmatprep.subr.bf16.mxu1 %v4612_v2  ;;  %926 = vst [vmem:[#allocation2 + $0xb8] sm:$0x80] %v925_v11  ;;  %929 = vst [vmem:[#allocation2 + $0xd0] sm:$0x80] %v928_v39  ;;  %v5876_v6 = vsel %vm5428_vm9, %v965_v59, %v1019_v15  ;;  %v1087_v27 = vld [vmem:[#allocation2 + $0x10] sm:$0xff]  ;;  %v4606_v59 = vld [vmem:[#allocation9 + $0x1c8] sm:$0xff]  }
 0x153   : > { %v966_v47 = vrot.slane %v6543_v22, 1  ;;  %1018 = vst [vmem:[#allocation2 + $0x88] sm:$0xff] %v5872_v63  ;;  %1021 = vst [vmem:[#allocation2 + $0xa0] sm:$0xff] %v5876_v6  ;;  %v4610_v11 = vld [vmem:[#allocation9 + $0x1d8] sm:$0xff]   ;;  %v4613_v22 = vld [vmem:[#allocation9 + $0x1e0] sm:$0xff]   ;;  %v1107_v15 = vsel %vm5387_vm5, 0, %v1106_v34 }
 0x154   : > { %v4611_v39 = vld [vmem:[#allocation9 + $0x198] sm:$0xff]   ;;  %1108 = vst [vmem:[#allocation2 + $0x198] sm:$0x1] %v1107_v15 }
 0x155   : > { %4161 = vmatpush3.bf16.msra.mxu1 %v4612_v2  ;;  %v967_v58 = vor.u32 %v966_v47, %v6544_v3  ;;  %v6547_v2 = vshrl.u32 %v5358_v1, 16  ;;  %v4630_v1 = vld [vmem:[#allocation2 + $0xe0] sm:$0xff]  ;;  %v4614_v47 = vld [vmem:[#allocation9 + $0x1a0] sm:$0xff]   ;;  %v1120_v7 = vld [vmem:[#allocation2 + $0x1a8] sm:$0x80] }
 0x156   : > { %4194 = vmatprep.subr.bf16.mxu1 %v5891_v24  ;;  %v1121_v37 = vsel %vm5380_vm4, 0, %v1120_v7  ;;  %v4619_v3 = vld [vmem:[#allocation9 + $0x1f8] sm:$0xff]  }
 0x157   : > { %1563 = vmatmul.mubr.bf16.gmra.mrb[32].mxu0 %v5745_v0  ;;  %v5906_v45 = vor.u32 %v1084_v5, %v6547_v2  ;;  %1122 = vst [vmem:[#allocation2 + $0x1a8] sm:$0x80] %v1121_v37  ;;  %v2258_v5 = vld [vmem:[#allocation2 + $0x48] sm:$0xff]  ;;  %v4627_v2 = vld [vmem:[#allocation9 + $0x230] sm:$0xff]  }
 0x158   : > { %1997 = vmatmul.mubr.bf16.gmra.mrb[32].mxu1 %v5624_v12  ;;  %1570 = vmatprep.mubr.bf16.mxu0 %v4629_v23  ;;  %v2286_v37 = vld [vmem:[#allocation2 + $0x128] sm:$0xff] }
 0x159   : > { %2004 = vmatprep.mubr.bf16.mxu1 %v5605_v36  ;;  %v1022_v33 = vld [vmem:[#allocation2 + $0xb8] sm:$0xff]  ;;  %v1025_v21 = vld [vmem:[#allocation2 + $0xd0] sm:$0xff]  ;;  %v5915_v29 = vsel %vm5428_vm9, %v5906_v45, %v1087_v27 }
 0x15a   : > { %v5896_v62 = vsel %vm5428_vm9, %v967_v58, %v1022_v33  ;;  %v5900_v32 = vsel %vm5428_vm9, %v969_v4, %v1025_v21  ;;  %1089 = vst [vmem:[#allocation2 + $0x10] sm:$0xff] %v5915_v29  ;;  %v2256_v58 = vld [vmem:[#allocation2 + $0x38] sm:$0xff]  ;;  %v2262_v33 = vld [vmem:[#allocation2 + $0x68] sm:$0xff] }
 0x15b   : > { %1024 = vst [vmem:[#allocation2 + $0xb8] sm:$0xff] %v5896_v62  ;;  %1027 = vst [vmem:[#allocation2 + $0xd0] sm:$0xff] %v5900_v32  ;;  %v1117_v18 = vld [vmem:[#allocation2 + $0x198] sm:$0xff]  ;;  %v4624_v21 = vld [vmem:[#allocation9 + $0x218] sm:$0xff]  }
 0x15c   : > { %v5958_v38 = vsel %vm5441_vm10, %v5652_v30, %v1117_v18  ;;  %v2259_v30 = vld [vmem:[#allocation2 + $0x50] sm:$0xff] }
 0x15d   : > { %1119 = vst [vmem:[#allocation2 + $0x198] sm:$0xff] %v5958_v38 }
 0x15e   : > { %v1126_v4 = vld [vmem:[#allocation2 + $0x1a8] sm:$0xff] }
 0x15f   : > { %1571 = vmatmul.mubr.bf16.gmra.mrb[36].mxu0 %v5765_v14 }
 0x160   : > { %2005 = vmatmul.mubr.bf16.gmra.mrb[36].mxu1 %v5674_v25  ;;  %1578 = vmatprep.mubr.bf16.mxu0 %v5453_v54  ;;  %v4631_v54 = vld [vmem:[#allocation2 + $0x110] sm:$0xff] }
 0x161   : > { %2012 = vmatprep.mubr.bf16.mxu1 %v5631_v53 }
 0x167   : > { %1579 = vmatmul.mubr.bf16.gmra.mrb[40].mxu0 %v5771_v61 }
 0x168   : > { %2013 = vmatmul.mubr.bf16.gmra.mrb[40].mxu1 %v5704_v49  ;;  %1586 = vmatprep.mubr.bf16.mxu0 %v5480_v8  ;;  %v4632_v8 = vld [vmem:[#allocation2 + $0x128] sm:$0xff] }
 0x169   : > { %2020 = vmatprep.mubr.bf16.mxu1 %v5643_v16 }
 0x16f   : > { %1587 = vmatmul.mubr.bf16.gmra.mrb[44].mxu0 %v5780_v31 }
 0x170   : > { %2021 = vmatmul.mubr.bf16.gmra.mrb[44].mxu1 %v5713_v60  ;;  %1594 = vmatprep.mubr.bf16.mxu0 %v5514_v42 }
 0x171   : > { %2028 = vmatprep.mubr.bf16.mxu1 %v5660_v10 }
 0x177   : > { %1595 = vmatmul.mubr.bf16.gmra.mrb[48].mxu0 %v5784_v41 }
 0x178   : > { %2029 = vmatmul.mubr.bf16.gmra.mrb[48].mxu1 %v5736_v57  ;;  %1602 = vmatprep.mubr.bf16.mxu0 %v5517_v46 }
 0x179   : > { %2036 = vmatprep.mubr.bf16.mxu1 %v4630_v1 }
 0x17f   : > { %1603 = vmatmul.mubr.bf16.gmra.mrb[52].mxu0 %v5797_v26 }
 0x180   : > { %2037 = vmatmul.mubr.bf16.gmra.mrb[52].mxu1 %v5745_v0  ;;  %1610 = vmatprep.mubr.bf16.mxu0 %v5563_v35 }
 0x181   : > { %2044 = vmatprep.mubr.bf16.mxu1 %v4629_v23  ;;  %v4617_v23 = vld [vmem:[#allocation9 + $0x1f0] sm:$0xff]  }
 0x187   : > { %1611 = vmatmul.mubr.bf16.gmra.mrb[56].mxu0 %v5801_v19 }
 0x188   : > { %2045 = vmatmul.mubr.bf16.gmra.mrb[56].mxu1 %v5765_v14  ;;  %1618 = vmatprep.mubr.bf16.mxu0 %v5566_v40  ;;  %v4608_v40 = vld [vmem:[#allocation9 + $0x1d0] sm:$0xff]  }
 0x189   : > { %2052 = vmatprep.mubr.bf16.mxu1 %v4631_v54 }
 0x18f   : > { %1619 = vmatmul.mubr.bf16.gmra.mrb[60].mxu0 %v5812_v43 }
 0x190   : > { %2053 = vmatmul.mubr.bf16.gmra.mrb[60].mxu1 %v5771_v61  ;;  %4114 = vmatprep.mubr.bf16.mxu0 %v5823_v55 }
 0x191   : > { %2060 = vmatprep.mubr.bf16.mxu1 %v4632_v8  ;;  %v2277_v8 = vld [vmem:[#allocation2 + $0xe0] sm:$0xff] }
 0x197   : > { %4115 = vmatmul.mubr.bf16.vlgmr.msra.gmra.mrb[64].mxu0 %v5827_v17 }
 0x198   : > { %2061 = vmatmul.mubr.bf16.gmra.mrb[64].mxu1 %v5780_v31  ;;  %3963 = vmatpush3.bf16.msra.mxu0 %v4605_v51 }
 0x199   : > { %3964 = vmatprep.subr.bf16.mxu0 %v4606_v59  ;;  %4118 = vmatprep.mubr.bf16.mxu0 %v5847_v52  ;;  %v6004_v59 = vld [vmem:[#allocation2 + $0x160] sm:$0xff] }
 0x19a   : > { %2068 = vmatprep.mubr.bf16.mxu1 %v5514_v42  ;;  %v4615_v42 = vld [vmem:[#allocation9 + $0x1e8] sm:$0xff]  }
 0x19c   : > { %3965 = vmatpush3.bf16.msra.mxu0 %v4607_v50 }
 0x19d   : > { %3966 = vmatprep.subr.bf16.mxu0 %v4608_v40  ;;  %v2280_v40 = vld [vmem:[#allocation2 + $0xf8] sm:$0xff] }
 0x19f   : > { %4119 = vmatmul.mubr.bf16.gmra.mrb[68].mxu0 %v5854_v13 }
 0x1a0   : > { %2069 = vmatmul.mubr.bf16.gmra.mrb[68].mxu1 %v5784_v41  ;;  %3967 = vmatpush3.bf16.msra.mxu0 %v4609_v28 }
 0x1a1   : > { %3968 = vmatprep.subr.bf16.mxu0 %v4610_v11  ;;  %4122 = vmatprep.mubr.bf16.mxu0 %v5872_v63 }
 0x1a2   : > { %2076 = vmatprep.mubr.bf16.mxu1 %v5517_v46  ;;  %v4616_v46 = vld [vmem:[#allocation9 + $0x1a8] sm:$0xff]  }
 0x1a4   : > { %3969 = vmatpush3.bf16.msra.mxu0 %v4611_v39 }
 0x1a5   : > { %3970 = vmatprep.subr.bf16.mxu0 %v4613_v22 }
 0x1a7   : > { %4123 = vmatmul.mubr.bf16.gmra.mrb[72].mxu0 %v5876_v6 }
 0x1a8   : > { %2077 = vmatmul.mubr.bf16.gmra.mrb[72].mxu1 %v5797_v26  ;;  %3971 = vmatpush3.bf16.msra.mxu0 %v4614_v47 }
 0x1a9   : > { %3972 = vmatprep.subr.bf16.mxu0 %v4615_v42  ;;  %4126 = vmatprep.mubr.bf16.mxu0 %v5896_v62 }
 0x1aa   : > { %2084 = vmatprep.mubr.bf16.mxu1 %v5563_v35  ;;  %v5965_v35 = vsel %vm5428_vm9, %v5906_v45, %v1126_v4  ;;  %v4628_v45 = vld [vmem:[#allocation9 + $0x238] sm:$0xff]  }
 0x1ab   : > { %1128 = vst [vmem:[#allocation2 + $0x1a8] sm:$0xff] %v5965_v35 }
 0x1ac   : > { %3973 = vmatpush3.bf16.msra.mxu0 %v4616_v46 }
 0x1ad   : > { %3974 = vmatprep.subr.bf16.mxu0 %v4617_v23  ;;  %v2289_v23 = vld [vmem:[#allocation2 + $0x140] sm:$0xff] }
 0x1af   : > { %4127 = vmatmul.mubr.bf16.gmra.mrb[76].mxu0 %v5900_v32 }
 0x1b0   : > { %2085 = vmatmul.mubr.bf16.gmra.mrb[76].mxu1 %v5801_v19  ;;  %3975 = vmatpush3.bf16.msra.mxu0 %v4618_v20 }
 0x1b1   : > { %3976 = vmatprep.subr.bf16.mxu0 %v4619_v3  ;;  %4162 = vmatprep.mubr.bf16.mxu1 %v5915_v29 }
 0x1b2   : > { %2528 = vmatprep.mubr.bf16.mxu0 %v2256_v58 }
 0x1b4   : > { %3977 = vmatpush3.bf16.msra.mxu0 %v4620_v9 }
 0x1b7   : > { %2529 = vmatmul.mubr.bf16.vlgmr.msra.gmra.mrb[80].mxu0 %v2255_v48 }
 0x1b8   : > { %4163 = vmatmul.mubr.bf16.vlgmr.msra.gmra.mrb[80].mxu1 %v5823_v55  ;;  %2536 = vmatprep.mubr.bf16.mxu0 %v2259_v30  ;;  %v4625_v55 = vld [vmem:[#allocation9 + $0x220] sm:$0xff]   ;;  %v2292_v30 = vld [vmem:[#allocation2 + $0x158] sm:$0xff] }
 0x1b9   : > { %4195 = vmatpush3.bf16.msra.mxu1 %v5891_v24  ;;  %4166 = vmatprep.mubr.bf16.mxu1 %v5827_v17  ;;  %v4626_v24 = vld [vmem:[#allocation9 + $0x228] sm:$0xff]  }
 0x1ba   : > { %4196 = vmatprep.subr.bf16.mxu1 %v4622_v56 }
 0x1bd   : > { %4197 = vmatpush3.bf16.msra.mxu1 %v4622_v56 }
 0x1be   : > { %4198 = vmatprep.subr.bf16.mxu1 %v4623_v44 }
 0x1bf   : > { %2537 = vmatmul.mubr.bf16.gmra.mrb[84].mxu0 %v2258_v5 }
 0x1c0   : > { %4167 = vmatmul.mubr.bf16.gmra.mrb[84].mxu1 %v5847_v52  ;;  %2544 = vmatprep.mubr.bf16.mxu0 %v2262_v33 }
 0x1c1   : > { %4170 = vmatprep.mubr.bf16.mxu1 %v5854_v13  ;;  %4199 = vmatpush3.bf16.msra.mxu1 %v4623_v44 }
 0x1c2   : > { %4200 = vmatprep.subr.bf16.mxu1 %v4624_v21 }
 0x1c5   : > { %4201 = vmatpush3.bf16.msra.mxu1 %v4624_v21 }
 0x1c6   : > { %4202 = vmatprep.subr.bf16.mxu1 %v4625_v55 }
 0x1c7   : > { %2545 = vmatmul.mubr.bf16.gmra.mrb[88].mxu0 %v5624_v12  ;;  %v5982_v12 = vld [vmem:[#allocation2 + $0xe8] sm:$0xff] }
 0x1c8   : > { %4171 = vmatmul.mubr.bf16.gmra.mrb[88].mxu1 %v5872_v63  ;;  %2552 = vmatprep.mubr.bf16.mxu0 %v5605_v36  ;;  %v5984_v36 = vld [vmem:[#allocation2 + $0x100] sm:$0xff] }
 0x1c9   : > { %4174 = vmatprep.mubr.bf16.mxu1 %v5876_v6  ;;  %4203 = vmatpush3.bf16.msra.mxu1 %v4625_v55 }
 0x1ca   : > { %4204 = vmatprep.subr.bf16.mxu1 %v4626_v24 }
 0x1cd   : > { %4205 = vmatpush3.bf16.msra.mxu1 %v4626_v24 }
 0x1ce   : > { %4206 = vmatprep.subr.bf16.mxu1 %v4627_v2 }
 0x1cf   : > { %2553 = vmatmul.mubr.bf16.gmra.mrb[92].mxu0 %v5674_v25  ;;  %v5990_v25 = vld [vmem:[#allocation2 + $0x118] sm:$0xff] }
 0x1d0   : > { %4175 = vmatmul.mubr.bf16.gmra.mrb[92].mxu1 %v5896_v62  ;;  %2560 = vmatprep.mubr.bf16.mxu0 %v5631_v53  ;;  %v5992_v53 = vld [vmem:[#allocation2 + $0x130] sm:$0xff] }
 0x1d1   : > { %4178 = vmatprep.mubr.bf16.mxu1 %v5900_v32  ;;  %4207 = vmatpush3.bf16.msra.mxu1 %v4627_v2 }
 0x1d2   : > { %4208 = vmatprep.subr.bf16.mxu1 %v4628_v45 }
 0x1d5   : > { %4209 = vmatpush3.bf16.msra.mxu1 %v4628_v45 }
 0x1d7   : > { %2561 = vmatmul.mubr.bf16.gmra.mrb[96].mxu0 %v5704_v49 }
 0x1d8   : > { %4179 = vmatmul.mubr.bf16.gmra.mrb[0].mxu1 %v5982_v12  ;;  %2568 = vmatprep.mubr.bf16.mxu0 %v5643_v16  ;;  %v6000_v16 = vld [vmem:[#allocation2 + $0x148] sm:$0xff] }
 0x1d9   : > { %4182 = vmatprep.mubr.bf16.mxu1 %v5984_v36 }
 0x1df   : > { %2569 = vmatmul.mubr.bf16.gmra.mrb[100].mxu0 %v5713_v60  ;;  %v6009_v60 = vld [vmem:[#allocation2 + $0x178] sm:$0xff] }
 0x1e0   : > { %4183 = vmatmul.mubr.bf16.gmra.mrb[4].mxu1 %v5990_v25  ;;  %2576 = vmatprep.mubr.bf16.mxu0 %v5660_v10 }
 0x1e1   : > { %4186 = vmatprep.mubr.bf16.mxu1 %v5992_v53 }
 0x1e6   : > { %v3706_v27 = vpop.f32.mrb[0].mxu0 }
 0x1e7   : > { %v3707_v49 = vpop.f32.mrb[1].mxu0  ;;  %2577 = vmatmul.mubr.bf16.gmra.mrb[104].mxu0 %v5736_v57  ;;  %v2283_v57 = vld [vmem:[#allocation2 + $0x110] sm:$0xff] }
 0x1e8   : > { %v5998_v29 = vadd.f32 %v3707_v49, %v3706_v27  ;;  %v3709_v1 = vpop.f32.mrb[2].mxu0  ;;  %4187 = vmatmul.mubr.bf16.gmra.mrb[8].mxu1 %v6000_v16  ;;  %2584 = vmatprep.mubr.bf16.mxu0 %v2277_v8  ;;  %v2295_v27 = vld [vmem:[#allocation2 + $0x170] sm:$0xff] }
 0x1e9   : > { %v3710_v54 = vpop.f32.mrb[3].mxu0  ;;  %4190 = vmatprep.mubr.bf16.mxu1 %v6004_v59 }
 0x1ea   : > { %v6002_v51 = vadd.f32 %v3710_v54, %v3709_v1 }
 0x1ee   : > { %v3712_v10 = vpop.f32.mrb[4].mxu0 }
 0x1ef   : > { %v3713_v50 = vpop.f32.mrb[5].mxu0  ;;  %2585 = vmatmul.mubr.bf16.gmra.mrb[108].mxu0 %v5745_v0 }
 0x1f0   : > { %v6011_v28 = vadd.f32 %v3713_v50, %v3712_v10  ;;  %v3715_v11 = vpop.f32.mrb[6].mxu0  ;;  %4191 = vmatmul.mubr.bf16.gmra.mrb[12].mxu1 %v6009_v60  ;;  %2592 = vmatprep.mubr.bf16.mxu0 %v2280_v40 }
 0x1f1   : > { %v3716_v39 = vpop.f32.mrb[7].mxu0  ;;  %4210 = vmatprep.mubr.bf16.mxu1 %v5827_v17 }
 0x1f2   : > { %v6015_v22 = vadd.f32 %v3716_v39, %v3715_v11 }
 0x1f7   : > { %2593 = vmatmul.mubr.bf16.gmra.mrb[112].mxu0 %v5765_v14 }
 0x1f8   : > { %4211 = vmatmul.mubr.bf16.vlgmr.msra.gmra.mrb[80].mxu1 %v5847_v52  ;;  %2600 = vmatprep.mubr.bf16.mxu0 %v2283_v57  ;;  %v2298_v57 = vld [vmem:[#allocation2 + $0x188] sm:$0xff] }
 0x1f9   : > { %v3718_v47 = vpop.f32.mrb[8].mxu0  ;;  %4214 = vmatprep.mubr.bf16.mxu1 %v5854_v13 }
 0x1fa   : > { %v3719_v42 = vpop.f32.mrb[9].mxu0 }
 0x1fb   : > { %v6021_v34 = vadd.f32 %v3719_v42, %v3718_v47  ;;  %v3721_v0 = vpop.f32.mrb[10].mxu0 }
 0x1fc   : > { %v3722_v7 = vpop.f32.mrb[11].mxu0 }
 0x1fd   : > { %v6023_v15 = vadd.f32 %v3722_v7, %v3721_v0 }
 0x1ff   : > { %2601 = vmatmul.mubr.bf16.gmra.mrb[116].mxu0 %v5771_v61 }
 0x200   : > { %4215 = vmatmul.mubr.bf16.gmra.mrb[84].mxu1 %v5872_v63  ;;  %2608 = vmatprep.mubr.bf16.mxu0 %v2286_v37 }
 0x201   : > { %4218 = vmatprep.mubr.bf16.mxu1 %v5876_v6 }
 0x202   : > { %v3724_v14 = vpop.f32.mrb[12].mxu0 }
 0x203   : > { %v3725_v17 = vpop.f32.mrb[13].mxu0 }
 0x204   : > { %v6028_v52 = vadd.f32 %v3725_v17, %v3724_v14  ;;  %v3727_v46 = vpop.f32.mrb[14].mxu0 }
 0x205   : > { %v3728_v13 = vpop.f32.mrb[15].mxu0 }
 0x206   : > { %v6030_v20 = vadd.f32 %v3728_v13, %v3727_v46 }
 0x207   : > { %2609 = vmatmul.mubr.bf16.gmra.mrb[120].mxu0 %v5780_v31 }
 0x208   : > { %4219 = vmatmul.mubr.bf16.gmra.mrb[88].mxu1 %v5896_v62  ;;  %2616 = vmatprep.mubr.bf16.mxu0 %v2289_v23  ;;  %v2301_v23 = vld [vmem:[#allocation2 + $0x1a0] sm:$0xff] }
 0x209   : > { %4222 = vmatprep.mubr.bf16.mxu1 %v5900_v32 }
 0x20a   : > { %v3730_v61 = vpop.f32.mrb[16].mxu0 }
 0x20b   : > { %v3842_v63 = vpop.f32.mrb[16].mxu1  ;;  %v3731_v3 = vpop.f32.mrb[17].mxu0 }
 0x20c   : > { %v6035_v6 = vadd.f32 %v3731_v3, %v3730_v61  ;;  %v3843_v18 = vpop.f32.mrb[17].mxu1  ;;  %v3733_v58 = vpop.f32.mrb[18].mxu0 }
 0x20d   : > { %v6037_v4 = vadd.f32 %v3843_v18, %v3842_v63  ;;  %v3845_v9 = vpop.f32.mrb[18].mxu1  ;;  %v3734_v48 = vpop.f32.mrb[19].mxu0  ;;  %v2299_v63 = vld [vmem:[#allocation2 + $0x190] sm:$0xff] }
 0x20e   : > { %v6039_v56 = vadd.f32 %v3734_v48, %v3733_v58  ;;  %v3846_v31 = vpop.f32.mrb[19].mxu1 }
 0x20f   : > { %v6041_v44 = vadd.f32 %v3846_v31, %v3845_v9  ;;  %2617 = vmatmul.mubr.bf16.gmra.mrb[124].mxu0 %v5784_v41 }
 0x210   : > { %4223 = vmatmul.mubr.bf16.gmra.mrb[92].mxu1 %v5982_v12  ;;  %2624 = vmatprep.mubr.bf16.mxu0 %v2292_v30 }
 0x211   : > { %4226 = vmatprep.mubr.bf16.mxu1 %v5984_v36 }
 0x212   : > { %v3736_v62 = vpop.f32.mrb[20].mxu0 }
 0x213   : > { %v3848_v32 = vpop.f32.mrb[20].mxu1  ;;  %v3737_v5 = vpop.f32.mrb[21].mxu0 }
 0x214   : > { %v6046_v33 = vadd.f32 %v3737_v5, %v3736_v62  ;;  %v3849_v21 = vpop.f32.mrb[21].mxu1  ;;  %v3739_v55 = vpop.f32.mrb[22].mxu0 }
 0x215   : > { %v6048_v24 = vadd.f32 %v3849_v21, %v3848_v32  ;;  %v3851_v2 = vpop.f32.mrb[22].mxu1  ;;  %v3740_v45 = vpop.f32.mrb[23].mxu0 }
 0x216   : > { %v6050_v49 = vadd.f32 %v3740_v45, %v3739_v55  ;;  %v3852_v41 = vpop.f32.mrb[23].mxu1 }
 0x217   : > { %v6052_v1 = vadd.f32 %v3852_v41, %v3851_v2  ;;  %2625 = vmatmul.mubr.bf16.gmra.mrb[128].mxu0 %v5797_v26 }
 0x218   : > { %4227 = vmatmul.mubr.bf16.gmra.mrb[0].mxu1 %v5990_v25  ;;  %2632 = vmatprep.mubr.bf16.mxu0 %v2295_v27 }
 0x219   : > { %4230 = vmatprep.mubr.bf16.mxu1 %v5992_v53 }
 0x21a   : > { %v3742_v12 = vpop.f32.mrb[24].mxu0 }
 0x21b   : > { %v3854_v36 = vpop.f32.mrb[24].mxu1  ;;  %v3743_v54 = vpop.f32.mrb[25].mxu0 }
 0x21c   : > { %v6057_v8 = vadd.f32 %v3743_v54, %v3742_v12  ;;  %v3855_v10 = vpop.f32.mrb[25].mxu1  ;;  %v3745_v50 = vpop.f32.mrb[26].mxu0 }
 0x21d   : > { %v6059_v40 = vadd.f32 %v3855_v10, %v3854_v36  ;;  %v3857_v11 = vpop.f32.mrb[26].mxu1  ;;  %v3746_v39 = vpop.f32.mrb[27].mxu0 }
 0x21e   : > { %v6061_v47 = vadd.f32 %v3746_v39, %v3745_v50  ;;  %v3858_v26 = vpop.f32.mrb[27].mxu1 }
 0x21f   : > { %v6063_v42 = vadd.f32 %v3858_v26, %v3857_v11  ;;  %2633 = vmatmul.mubr.bf16.gmra.mrb[132].mxu0 %v5801_v19 }
 0x220   : > { %4231 = vmatmul.mubr.bf16.gmra.mrb[4].mxu1 %v6000_v16  ;;  %2640 = vmatprep.mubr.bf16.mxu0 %v2298_v57 }
 0x221   : > { %4234 = vmatprep.mubr.bf16.mxu1 %v6004_v59 }
 0x222   : > { %v3748_v25 = vpop.f32.mrb[28].mxu0 }
 0x223   : > { %v3860_v53 = vpop.f32.mrb[28].mxu1  ;;  %v3749_v0 = vpop.f32.mrb[29].mxu0 }
 0x224   : > { %v6068_v7 = vadd.f32 %v3749_v0, %v3748_v25  ;;  %v3861_v37 = vpop.f32.mrb[29].mxu1  ;;  %v3751_v14 = vpop.f32.mrb[30].mxu0 }
 0x225   : > { %v6070_v17 = vadd.f32 %v3861_v37, %v3860_v53  ;;  %v3863_v46 = vpop.f32.mrb[30].mxu1  ;;  %v3752_v13 = vpop.f32.mrb[31].mxu0 }
 0x226   : > { %v6072_v61 = vadd.f32 %v3752_v13, %v3751_v14  ;;  %v3864_v19 = vpop.f32.mrb[31].mxu1 }
 0x227   : > { %v6074_v16 = vadd.f32 %v3864_v19, %v3863_v46  ;;  %2641 = vmatmul.mubr.bf16.gmra.mrb[136].mxu0 %v5812_v43 }
 0x228   : > { %4235 = vmatmul.mubr.bf16.gmra.mrb[8].mxu1 %v6009_v60  ;;  %2648 = vmatprep.mubr.bf16.mxu0 %v2301_v23 }
 0x229   : > { %4238 = vmatprep.mubr.bf16.mxu1 %v2299_v63 }
 0x22a   : > { %v3754_v59 = vpop.f32.mrb[32].mxu0 }
 0x22b   : > { %v3866_v3 = vpop.f32.mrb[32].mxu1  ;;  %v3755_v18 = vpop.f32.mrb[33].mxu0 }
 0x22c   : > { %v3756_v58 = vadd.f32 %v3755_v18, %v3754_v59  ;;  %v3867_v9 = vpop.f32.mrb[33].mxu1  ;;  %v3757_v48 = vpop.f32.mrb[34].mxu0 }
 0x22d   : > { %v6078_v30 = vadd.f32 %v3867_v9, %v3866_v3  ;;  %v3869_v31 = vpop.f32.mrb[34].mxu1  ;;  %v3758_v62 = vpop.f32.mrb[35].mxu0 }
 0x22e   : > { %v3759_v32 = vadd.f32 %v3758_v62, %v3757_v48  ;;  %v3870_v5 = vpop.f32.mrb[35].mxu1 }
 0x22f   : > { %v6080_v21 = vadd.f32 %v3870_v5, %v3869_v31  ;;  %2649 = vmatmul.mubr.bf16.gmra.mrb[140].mxu0 %v5958_v38 }
 0x230   : > { %4239 = vmatmul.mubr.bf16.gmra.mrb[12].mxu1 %v5965_v35 }
 0x232   : > { %v3760_v43 = vpop.f32.mrb[36].mxu0 }
 0x233   : > { %v3872_v60 = vpop.f32.mrb[36].mxu1  ;;  %v3761_v55 = vpop.f32.mrb[37].mxu0 }
 0x234   : > { %v3762_v2 = vadd.f32 %v3761_v55, %v3760_v43  ;;  %v3873_v45 = vpop.f32.mrb[37].mxu1  ;;  %v3763_v27 = vpop.f32.mrb[38].mxu0 }
 0x235   : > { %v6084_v41 = vadd.f32 %v3873_v45, %v3872_v60  ;;  %v3875_v12 = vpop.f32.mrb[38].mxu1  ;;  %v3764_v36 = vpop.f32.mrb[39].mxu0 }
 0x236   : > { %v3765_v54 = vadd.f32 %v3764_v36, %v3763_v27  ;;  %v3876_v10 = vpop.f32.mrb[39].mxu1 }
 0x237   : > { %v6086_v50 = vadd.f32 %v3876_v10, %v3875_v12 }
 0x23a   : > { %v3766_v11 = vpop.f32.mrb[40].mxu0 }
 0x23b   : > { %v3878_v39 = vpop.f32.mrb[40].mxu1  ;;  %v3767_v57 = vpop.f32.mrb[41].mxu0 }
 0x23c   : > { %v3768_v38 = vadd.f32 %v3767_v57, %v3766_v11  ;;  %v3879_v26 = vpop.f32.mrb[41].mxu1  ;;  %v3769_v35 = vpop.f32.mrb[42].mxu0 }
 0x23d   : > { %v6088_v25 = vadd.f32 %v3879_v26, %v3878_v39  ;;  %v3881_v53 = vpop.f32.mrb[42].mxu1  ;;  %v3770_v0 = vpop.f32.mrb[43].mxu0 }
 0x23e   : > { %v3771_v37 = vadd.f32 %v3770_v0, %v3769_v35  ;;  %v3882_v14 = vpop.f32.mrb[43].mxu1 }
 0x23f   : > { %v6090_v46 = vadd.f32 %v3882_v14, %v3881_v53 }
 0x242   : > { %v3772_v13 = vpop.f32.mrb[44].mxu0 }
 0x243   : > { %v3884_v23 = vpop.f32.mrb[44].mxu1  ;;  %v3773_v19 = vpop.f32.mrb[45].mxu0 }
 0x244   : > { %v3774_v63 = vadd.f32 %v3773_v19, %v3772_v13  ;;  %v3885_v59 = vpop.f32.mrb[45].mxu1  ;;  %v3775_v3 = vpop.f32.mrb[46].mxu0 }
 0x245   : > { %v6092_v18 = vadd.f32 %v3885_v59, %v3884_v23  ;;  %v3887_v9 = vpop.f32.mrb[46].mxu1  ;;  %v3776_v48 = vpop.f32.mrb[47].mxu0 }
 0x246   : > { %v3777_v31 = vadd.f32 %v3776_v48, %v3775_v3  ;;  %v3888_v62 = vpop.f32.mrb[47].mxu1 }
 0x247   : > { %v6094_v5 = vadd.f32 %v3888_v62, %v3887_v9 }
 0x24a   : > { %v3778_v43 = vpop.f32.mrb[48].mxu0 }
 0x24b   : > { %v3890_v60 = vpop.f32.mrb[48].mxu1  ;;  %v3779_v55 = vpop.f32.mrb[49].mxu0 }
 0x24c   : > { %v6096_v45 = vadd.f32 %v3779_v55, %v3778_v43  ;;  %v3891_v27 = vpop.f32.mrb[49].mxu1  ;;  %v3781_v12 = vpop.f32.mrb[50].mxu0 }
 0x24d   : > { %v3892_v36 = vadd.f32 %v3891_v27, %v3890_v60  ;;  %v3893_v10 = vpop.f32.mrb[50].mxu1  ;;  %v3782_v11 = vpop.f32.mrb[51].mxu0 }
 0x24e   : > { %v6098_v39 = vadd.f32 %v3782_v11, %v3781_v12  ;;  %v3894_v57 = vpop.f32.mrb[51].mxu1 }
 0x24f   : > { %v6100_v26 = vadd.f32 %v3892_v36, %v3756_v58  ;;  %v3895_v35 = vadd.f32 %v3894_v57, %v3893_v10 }
 0x251   : > { %v6102_v53 = vadd.f32 %v3895_v35, %v3759_v32 }
 0x252   : > { %v3784_v0 = vpop.f32.mrb[52].mxu0 }
 0x253   : > { %v3896_v14 = vpop.f32.mrb[52].mxu1  ;;  %v3785_v13 = vpop.f32.mrb[53].mxu0 }
 0x254   : > { %v6104_v23 = vadd.f32 %v3785_v13, %v3784_v0  ;;  %v3897_v19 = vpop.f32.mrb[53].mxu1  ;;  %v3787_v59 = vpop.f32.mrb[54].mxu0 }
 0x255   : > { %v3898_v3 = vadd.f32 %v3897_v19, %v3896_v14  ;;  %v3899_v9 = vpop.f32.mrb[54].mxu1  ;;  %v3788_v48 = vpop.f32.mrb[55].mxu0 }
 0x256   : > { %v6106_v62 = vadd.f32 %v3788_v48, %v3787_v59  ;;  %v3900_v43 = vpop.f32.mrb[55].mxu1 }
 0x257   : > { %v6108_v60 = vadd.f32 %v3898_v3, %v3762_v2  ;;  %v3901_v58 = vadd.f32 %v3900_v43, %v3899_v9 }
 0x259   : > { %v6110_v55 = vadd.f32 %v3901_v58, %v3765_v54 }
 0x25a   : > { %v3790_v32 = vpop.f32.mrb[56].mxu0 }
 0x25b   : > { %v3902_v27 = vpop.f32.mrb[56].mxu1  ;;  %v3791_v12 = vpop.f32.mrb[57].mxu0 }
 0x25c   : > { %v6112_v36 = vadd.f32 %v3791_v12, %v3790_v32  ;;  %v3903_v10 = vpop.f32.mrb[57].mxu1  ;;  %v3793_v11 = vpop.f32.mrb[58].mxu0 }
 0x25d   : > { %v3904_v57 = vadd.f32 %v3903_v10, %v3902_v27  ;;  %v3905_v35 = vpop.f32.mrb[58].mxu1  ;;  %v3794_v0 = vpop.f32.mrb[59].mxu0 }
 0x25e   : > { %v6114_v14 = vadd.f32 %v3794_v0, %v3793_v11  ;;  %v3906_v13 = vpop.f32.mrb[59].mxu1 }
 0x25f   : > { %v6116_v19 = vadd.f32 %v3904_v57, %v3768_v38  ;;  %v3907_v2 = vadd.f32 %v3906_v13, %v3905_v35 }
 0x261   : > { %v6118_v59 = vadd.f32 %v3907_v2, %v3771_v37 }
 0x262   : > { %v3796_v54 = vpop.f32.mrb[60].mxu0 }
 0x263   : > { %6548 = vst [vmem:[#allocation32_spill] sm:$0xff] %v6118_v59  ;;  %v3908_v3 = vpop.f32.mrb[60].mxu1  ;;  %v3797_v9 = vpop.f32.mrb[61].mxu0 }
 0x264   : > { %v6120_v48 = vadd.f32 %v3797_v9, %v3796_v54  ;;  %v3909_v43 = vpop.f32.mrb[61].mxu1  ;;  %v3799_v58 = vpop.f32.mrb[62].mxu0 }
 0x265   : > { %v3910_v32 = vadd.f32 %v3909_v43, %v3908_v3  ;;  %v3911_v12 = vpop.f32.mrb[62].mxu1  ;;  %v3800_v27 = vpop.f32.mrb[63].mxu0 }
 0x266   : > { %v6122_v10 = vadd.f32 %v3800_v27, %v3799_v58  ;;  %v3912_v11 = vpop.f32.mrb[63].mxu1 }
 0x267   : > { %v6124_v0 = vadd.f32 %v3910_v32, %v3774_v63  ;;  %v3913_v38 = vadd.f32 %v3912_v11, %v3911_v12 }
 0x269   : > { %v6126_v57 = vadd.f32 %v3913_v38, %v3777_v31 }
 0x26a   : > { %v4116_v37 = vpop.f32.mrb[64].mxu0 }
 0x26b   : > { %v1670_v35 = vadd.f32 %v4116_v37, %v6011_v28  ;;  %v3914_v13 = vpop.f32.mrb[64].mxu1  ;;  %v1661_v2 = vpop.f32.mrb[65].mxu0 }
 0x26c   : > { %v1662_v54 = vadd.f32 %v5998_v29, %v1661_v2  ;;  %v3915_v9 = vpop.f32.mrb[65].mxu1  ;;  %v4117_v59 = vpop.f32.mrb[66].mxu0 }
 0x26d   : > { %v6131_v3 = vadd.f32 %v6048_v24, %v1670_v35  ;;  %v3916_v43 = vadd.f32 %v3915_v9, %v3914_v13  ;;  %v1673_v58 = vadd.f32 %v4117_v59, %v6015_v22  ;;  %v3917_v63 = vpop.f32.mrb[66].mxu1  ;;  %v1664_v32 = vpop.f32.mrb[67].mxu0 }
 0x26e   : > { %v6135_v31 = vadd.f32 %v6037_v4, %v1662_v54  ;;  %v1665_v12 = vadd.f32 %v6002_v51, %v1664_v32  ;;  %v3918_v28 = vpop.f32.mrb[67].mxu1 }
 0x26f   : > { %v6139_v27 = vadd.f32 %v3916_v43, %v6096_v45  ;;  %v6142_v29 = vadd.f32 %v6052_v1, %v1673_v58  ;;  %v3919_v11 = vadd.f32 %v3918_v28, %v3917_v63 }
 0x270   : > { %v6145_v24 = vadd.f32 %v6041_v44, %v1665_v12 }
 0x271   : > { %v6148_v22 = vadd.f32 %v3919_v11, %v6098_v39 }
 0x272   : > { %v4120_v59 = vpop.f32.mrb[68].mxu0 }
 0x273   : > { %v1686_v4 = vadd.f32 %v4120_v59, %v6028_v52  ;;  %v3920_v38 = vpop.f32.mrb[68].mxu1  ;;  %v1677_v37 = vpop.f32.mrb[69].mxu0 }
 0x274   : > { %v1678_v51 = vadd.f32 %v6021_v34, %v1677_v37  ;;  %v3921_v35 = vpop.f32.mrb[69].mxu1  ;;  %v4121_v45 = vpop.f32.mrb[70].mxu0 }
 0x275   : > { %v6153_v13 = vadd.f32 %v6070_v17, %v1686_v4  ;;  %v3922_v1 = vadd.f32 %v3921_v35, %v3920_v38  ;;  %v1689_v2 = vadd.f32 %v4121_v45, %v6030_v20  ;;  %v3923_v44 = vpop.f32.mrb[70].mxu1  ;;  %v1680_v54 = vpop.f32.mrb[71].mxu0 }
 0x276   : > { %v6157_v39 = vadd.f32 %v6059_v40, %v1678_v51  ;;  %v1681_v9 = vadd.f32 %v6023_v15, %v1680_v54  ;;  %v3924_v52 = vpop.f32.mrb[71].mxu1 }
 0x277   : > { %v6161_v43 = vadd.f32 %v3922_v1, %v6104_v23  ;;  %v6164_v34 = vadd.f32 %v6074_v16, %v1689_v2  ;;  %v3925_v58 = vadd.f32 %v3924_v52, %v3923_v44 }
 0x278   : > { %v6167_v17 = vadd.f32 %v6063_v42, %v1681_v9 }
 0x279   : > { %v6170_v20 = vadd.f32 %v3925_v58, %v6106_v62 }
 0x27a   : > { %v4124_v63 = vpop.f32.mrb[72].mxu0 }
 0x27b   : > { %v1702_v40 = vadd.f32 %v4124_v63, %v6046_v33  ;;  %v3926_v32 = vpop.f32.mrb[72].mxu1  ;;  %v1693_v12 = vpop.f32.mrb[73].mxu0 }
 0x27c   : > { %v1694_v15 = vadd.f32 %v6035_v6, %v1693_v12  ;;  %v3927_v28 = vpop.f32.mrb[73].mxu1  ;;  %v4125_v23 = vpop.f32.mrb[74].mxu0 }
 0x27d   : > { %v6175_v11 = vadd.f32 %v6084_v41, %v1702_v40  ;;  %v3928_v16 = vadd.f32 %v3927_v28, %v3926_v32  ;;  %v1705_v59 = vadd.f32 %v4125_v23, %v6050_v49  ;;  %v3929_v42 = vpop.f32.mrb[74].mxu1  ;;  %v1696_v4 = vpop.f32.mrb[75].mxu0 }
 0x27e   : > { %v6179_v62 = vadd.f32 %v6078_v30, %v1694_v15  ;;  %v1697_v38 = vadd.f32 %v6039_v56, %v1696_v4  ;;  %v3930_v33 = vpop.f32.mrb[75].mxu1 }
 0x27f   : > { %v6183_v37 = vadd.f32 %v3928_v16, %v6112_v36  ;;  %v6186_v6 = vadd.f32 %v6086_v50, %v1705_v59  ;;  %v3931_v51 = vadd.f32 %v3930_v33, %v3929_v42 }
 0x280   : > { %v2002_v41 = vadd.f32 %v6080_v21, %v1697_v38 }
 0x281   : > { %v6190_v35 = vadd.f32 %v3931_v51, %v6114_v14 }
 0x282   : > { %v4128_v49 = vpop.f32.mrb[76].mxu0 }
 0x283   : > { %v1718_v45 = vadd.f32 %v4128_v49, %v6068_v7  ;;  %v3932_v30 = vpop.f32.mrb[76].mxu1  ;;  %v1709_v1 = vpop.f32.mrb[77].mxu0 }
 0x284   : > { %v1710_v56 = vadd.f32 %v6057_v8, %v1709_v1  ;;  %v3933_v2 = vpop.f32.mrb[77].mxu1  ;;  %v4129_v44 = vpop.f32.mrb[78].mxu0 }
 0x285   : > { %v6195_v36 = vadd.f32 %v6092_v18, %v1718_v45  ;;  %v3934_v50 = vadd.f32 %v3933_v2, %v3932_v30  ;;  %v1721_v54 = vadd.f32 %v4129_v44, %v6072_v61  ;;  %v3935_v9 = vpop.f32.mrb[78].mxu1  ;;  %v1712_v21 = vpop.f32.mrb[79].mxu0 }
 0x286   : > { %v2015_v14 = vadd.f32 %v6088_v25, %v1710_v56  ;;  %v1713_v52 = vadd.f32 %v6061_v47, %v1712_v21  ;;  %v3936_v58 = vpop.f32.mrb[79].mxu1 }
 0x287   : > { %v6201_v7 = vadd.f32 %v3934_v50, %v6120_v48  ;;  %v6204_v8 = vadd.f32 %v6094_v5, %v1721_v54  ;;  %v3937_v63 = vadd.f32 %v3936_v58, %v3935_v9 }
 0x288   : > { %v2018_v18 = vadd.f32 %v6090_v46, %v1713_v52 }
 0x289   : > { %v6208_v40 = vadd.f32 %v3937_v63, %v6122_v10 }
 0x28a   : > { %v3978_v61 = vpop.f32.mrb[80].mxu0 }
 0x28b   : > { %v3979_v32 = vpop.f32.mrb[81].mxu0 }
 0x28c   : > { %v3980_v12 = vadd.f32 %v3979_v32, %v3978_v61  ;;  %v3981_v15 = vpop.f32.mrb[82].mxu0 }
 0x28d   : > { %v3982_v25 = vpop.f32.mrb[83].mxu0 }
 0x28e   : > { %v3983_v28 = vadd.f32 %v3982_v25, %v3981_v15  ;;  %v6211_v47 = vadd.f32 %v3980_v12, %v6135_v31 }
 0x290   : > { %v6214_v48 = vadd.f32 %v3983_v28, %v6145_v24 }
 0x292   : > { %v3984_v5 = vpop.f32.mrb[84].mxu0 }
 0x293   : > { %v3985_v23 = vpop.f32.mrb[85].mxu0 }
 0x294   : > { %v3986_v16 = vadd.f32 %v3985_v23, %v3984_v5  ;;  %v3987_v59 = vpop.f32.mrb[86].mxu0 }
 0x295   : > { %v3988_v46 = vpop.f32.mrb[87].mxu0 }
 0x296   : > { %v3989_v42 = vadd.f32 %v3988_v46, %v3987_v59  ;;  %v4260_v10 = vadd.f32 %v3986_v16, %v6131_v3 }
 0x298   : > { %v4268_v4 = vadd.f32 %v3989_v42, %v6142_v29 }
 0x29a   : > { %v3990_v38 = vpop.f32.mrb[88].mxu0 }
 0x29b   : > { %v3991_v33 = vpop.f32.mrb[89].mxu0 }
 0x29c   : > { %v3992_v51 = vadd.f32 %v3991_v33, %v3990_v38  ;;  %v3993_v49 = vpop.f32.mrb[90].mxu0 }
 0x29d   : > { %v3994_v45 = vpop.f32.mrb[91].mxu0 }
 0x29e   : > { %v3995_v31 = vadd.f32 %v3994_v45, %v3993_v49  ;;  %v6219_v30 = vadd.f32 %v3992_v51, %v6157_v39 }
 0x2a0   : > { %v6222_v24 = vadd.f32 %v3995_v31, %v6167_v17 }
 0x2a2   : > { %v3996_v1 = vpop.f32.mrb[92].mxu0 }
 0x2a3   : > { %v3997_v56 = vpop.f32.mrb[93].mxu0 }
 0x2a4   : > { %v3998_v2 = vadd.f32 %v3997_v56, %v3996_v1  ;;  %v3999_v44 = vpop.f32.mrb[94].mxu0 }
 0x2a5   : > { %v4000_v50 = vpop.f32.mrb[95].mxu0 }
 0x2a6   : > { %v4001_v3 = vadd.f32 %v4000_v50, %v3999_v44  ;;  %v6225_v29 = vadd.f32 %v3998_v2, %v6153_v13 }
 0x2a8   : > { %v6228_v54 = vadd.f32 %v4001_v3, %v6164_v34 }
 0x2aa   : > { %v4002_v9 = vpop.f32.mrb[96].mxu0 }
 0x2ab   : > { %v4003_v21 = vpop.f32.mrb[97].mxu0 }
 0x2ac   : > { %v4004_v52 = vadd.f32 %v4003_v21, %v4002_v9  ;;  %v4005_v39 = vpop.f32.mrb[98].mxu0 }
 0x2ad   : > { %v4006_v58 = vpop.f32.mrb[99].mxu0 }
 0x2ae   : > { %v4007_v63 = vadd.f32 %v4006_v58, %v4005_v39  ;;  %v6231_v17 = vadd.f32 %v4004_v52, %v6179_v62 }
 0x2b0   : > { %v6233_v61 = vadd.f32 %v4007_v63, %v2002_v41 }
 0x2b2   : > { %v4008_v32 = vpop.f32.mrb[100].mxu0 }
 0x2b3   : > { %v4009_v12 = vpop.f32.mrb[101].mxu0 }
 0x2b4   : > { %v4010_v15 = vadd.f32 %v4009_v12, %v4008_v32  ;;  %v4011_v25 = vpop.f32.mrb[102].mxu0 }
 0x2b5   : > { %v4012_v13 = vpop.f32.mrb[103].mxu0 }
 0x2b6   : > { %v4013_v28 = vadd.f32 %v4012_v13, %v4011_v25  ;;  %v6236_v34 = vadd.f32 %v4010_v15, %v6175_v11 }
 0x2b8   : > { %v6239_v5 = vadd.f32 %v4013_v28, %v6186_v6 }
 0x2ba   : > { %v4014_v23 = vpop.f32.mrb[104].mxu0 }
 0x2bb   : > { %v4015_v16 = vpop.f32.mrb[105].mxu0 }
 0x2bc   : > { %v4016_v59 = vadd.f32 %v4015_v16, %v4014_v23  ;;  %v4017_v46 = vpop.f32.mrb[106].mxu0 }
 0x2bd   : > { %v4018_v62 = vpop.f32.mrb[107].mxu0 }
 0x2be   : > { %v4019_v42 = vadd.f32 %v4018_v62, %v4017_v46  ;;  %v6241_v41 = vadd.f32 %v4016_v59, %v2015_v14  ;;  %v6251_v14 = vld [vmem:[#allocation11] ss:$0 sm:$0xff] }
 0x2c0   : > { %v6243_v38 = vadd.f32 %v4019_v42, %v2018_v18 }
 0x2c2   : > { %v4020_v33 = vpop.f32.mrb[108].mxu0 }
 0x2c3   : > { %v4021_v51 = vpop.f32.mrb[109].mxu0 }
 0x2c4   : > { %v4022_v49 = vadd.f32 %v4021_v51, %v4020_v33  ;;  %v4023_v45 = vpop.f32.mrb[110].mxu0 }
 0x2c5   : > { %v4024_v31 = vpop.f32.mrb[111].mxu0 }
 0x2c6   : > { %v4025_v11 = vadd.f32 %v4024_v31, %v4023_v45  ;;  %v6246_v1 = vadd.f32 %v4022_v49, %v6195_v36 }
 0x2c8   : > { %v6249_v6 = vadd.f32 %v4025_v11, %v6204_v8 }
 0x2ca   : > { %v4026_v56 = vpop.f32.mrb[112].mxu0 }
 0x2cb   : > { %v4212_v2 = vpop.f32.mrb[80].mxu1  ;;  %v4027_v44 = vpop.f32.mrb[113].mxu0 }
 0x2cc   : > { %v4261_v50 = vadd.f32 %v4260_v10, %v4212_v2  ;;  %v4028_v18 = vadd.f32 %v4027_v44, %v4026_v56  ;;  %v2691_v3 = vpop.f32.mrb[81].mxu1  ;;  %v4029_v9 = vpop.f32.mrb[114].mxu0 }
 0x2cd   : > { %v4265_v21 = vadd.f32 %v6211_v47, %v2691_v3  ;;  %v4213_v52 = vpop.f32.mrb[82].mxu1  ;;  %v4030_v39 = vpop.f32.mrb[115].mxu0 }
 0x2ce   : > { %v4269_v58 = vadd.f32 %v4268_v4, %v4213_v52  ;;  %v4031_v63 = vadd.f32 %v4030_v39, %v4029_v9  ;;  %v2694_v36 = vpop.f32.mrb[83].mxu1  ;;  %v6255_v8 = vadd.f32 %v6100_v26, %v4028_v18  ;;  %v2859_v12 = vadd.f32 %v4261_v50, %v6251_v14 }
 0x2cf   : > { %v2857_v32 = vadd.f32 %v4265_v21, %v6251_v14  ;;  %v4273_v10 = vadd.f32 %v6214_v48, %v2694_v36 }
 0x2d0   : > { %v2860_v15 = vadd.f32 %v4269_v58, %v6251_v14  ;;  %v6262_v25 = vadd.f32 %v6102_v53, %v4031_v63  ;;  %v3089_v33 = vmul.f32 %v2859_v12, %v2859_v12 }
 0x2d1   : > { %v2858_v47 = vadd.f32 %v4273_v10, %v6251_v14  ;;  %v3087_v28 = vmul.f32 %v2857_v32, %v2857_v32 }
 0x2d2   : > { %v3602_v4 = vpack.c.bf16 %v2860_v15, %v2859_v12  ;;  %v4032_v13 = vpop.f32.mrb[116].mxu0  ;;  %v3090_v56 = vmul.f32 %v2860_v15, %v2860_v15 }
 0x2d3   : > { %v3597_v23 = vpack.c.bf16 %v2858_v47, %v2857_v32  ;;  %v3049_v16 = vadd.f32 %v2858_v47, %v2857_v32  ;;  %v3088_v26 = vmul.f32 %v2858_v47, %v2858_v47  ;;  %v4216_v59 = vpop.f32.mrb[84].mxu1  ;;  %v4033_v46 = vpop.f32.mrb[117].mxu0 }
 0x2d4   : > { %3675 = vst [vmem:[%s6267_s11 + $0x8] sm:$0xff] %v3602_v4   ;;  %v4277_v48 = vadd.f32 %v6225_v29, %v4216_v59  ;;  %v4034_v53 = vadd.f32 %v4033_v46, %v4032_v13  ;;  %v2707_v62 = vpop.f32.mrb[85].mxu1  ;;  %v4035_v42 = vpop.f32.mrb[118].mxu0 }
 0x2d5   : > { %3598 = vst [vmem:[%s6267_s11] sm:$0xff] %v3597_v23   ;;  %v3050_v51 = vadd.f32 %v3049_v16, %v2859_v12  ;;  %v3119_v49 = vadd.f32 %v3088_v26, %v3087_v28  ;;  %v4281_v45 = vadd.f32 %v6219_v30, %v2707_v62  ;;  %v4217_v31 = vpop.f32.mrb[86].mxu1  ;;  %v4036_v11 = vpop.f32.mrb[119].mxu0 }
 0x2d6   : > { %v4285_v2 = vadd.f32 %v6228_v54, %v4217_v31  ;;  %v4037_v44 = vadd.f32 %v4036_v11, %v4035_v42  ;;  %v2710_v50 = vpop.f32.mrb[87].mxu1  ;;  %v6275_v18 = vadd.f32 %v6108_v60, %v4034_v53  ;;  %v2863_v52 = vadd.f32 %v4277_v48, %v6251_v14 }
 0x2d7   : > { %v3120_v29 = vadd.f32 %v3119_v49, %v3089_v33  ;;  %v2861_v3 = vadd.f32 %v4281_v45, %v6251_v14  ;;  %v3051_v9 = vadd.f32 %v3050_v51, %v2860_v15  ;;  %v4289_v21 = vadd.f32 %v6222_v24, %v2710_v50 }
 0x2d8   : > { %v2864_v30 = vadd.f32 %v4285_v2, %v6251_v14  ;;  %v6282_v39 = vadd.f32 %v6110_v55, %v4037_v44  ;;  %v3093_v16 = vmul.f32 %v2863_v52, %v2863_v52  ;;  %v6549_v2 = vld [vmem:[#allocation32_spill] sm:$0xff] }
 0x2d9   : > { %v3052_v54 = vadd.f32 %v3051_v9, %v2861_v3  ;;  %v3091_v58 = vmul.f32 %v2861_v3, %v2861_v3  ;;  %v3121_v63 = vadd.f32 %v3120_v29, %v3090_v56  ;;  %v2862_v60 = vadd.f32 %v4289_v21, %v6251_v14 }
 0x2da   : > { %v3612_v36 = vpack.c.bf16 %v2864_v30, %v2863_v52  ;;  %v4038_v32 = vpop.f32.mrb[120].mxu0  ;;  %v3094_v62 = vmul.f32 %v2864_v30, %v2864_v30 }
 0x2db   : > { %v3122_v10 = vadd.f32 %v3121_v63, %v3091_v58  ;;  %v3607_v12 = vpack.c.bf16 %v2862_v60, %v2861_v3  ;;  %v3053_v15 = vadd.f32 %v3052_v54, %v2862_v60  ;;  %v3092_v24 = vmul.f32 %v2862_v60, %v2862_v60  ;;  %v4220_v47 = vpop.f32.mrb[88].mxu1  ;;  %v4039_v4 = vpop.f32.mrb[121].mxu0 }
 0x2dc   : > { %3677 = vst [vmem:[%s6267_s11 + $0x18] sm:$0xff] %v3612_v36   ;;  %v4293_v13 = vadd.f32 %v6236_v34, %v4220_v47  ;;  %v4040_v28 = vadd.f32 %v4039_v4, %v4038_v32  ;;  %v2723_v55 = vpop.f32.mrb[89].mxu1  ;;  %v4041_v23 = vpop.f32.mrb[122].mxu0 }
 0x2dd   : > { %3676 = vst [vmem:[%s6267_s11 + $0x10] sm:$0xff] %v3607_v12   ;;  %v3054_v26 = vadd.f32 %v3053_v15, %v2863_v52  ;;  %v3123_v59 = vadd.f32 %v3122_v10, %v3092_v24  ;;  %v4297_v46 = vadd.f32 %v6231_v17, %v2723_v55  ;;  %v4221_v48 = vpop.f32.mrb[90].mxu1  ;;  %v4042_v53 = vpop.f32.mrb[123].mxu0 }
 0x2de   : > { %v4301_v42 = vadd.f32 %v6239_v5, %v4221_v48  ;;  %v4043_v33 = vadd.f32 %v4042_v53, %v4041_v23  ;;  %v2726_v51 = vpop.f32.mrb[91].mxu1  ;;  %v6291_v49 = vadd.f32 %v6116_v19, %v4040_v28  ;;  %v2867_v56 = vadd.f32 %v4293_v13, %v6251_v14 }
 0x2df   : > { %v3124_v34 = vadd.f32 %v3123_v59, %v3093_v16  ;;  %v2865_v45 = vadd.f32 %v4297_v46, %v6251_v14  ;;  %v3055_v31 = vadd.f32 %v3054_v26, %v2864_v30  ;;  %v4305_v11 = vadd.f32 %v6233_v61, %v2726_v51 }
 0x2e0   : > { %v2868_v17 = vadd.f32 %v4301_v42, %v6251_v14  ;;  %v6298_v44 = vadd.f32 %v6549_v2, %v4043_v33  ;;  %v3097_v10 = vmul.f32 %v2867_v56, %v2867_v56 }
 0x2e1   : > { %v3056_v5 = vadd.f32 %v3055_v31, %v2865_v45  ;;  %v3095_v50 = vmul.f32 %v2865_v45, %v2865_v45  ;;  %v3125_v29 = vadd.f32 %v3124_v34, %v3094_v62  ;;  %v2866_v19 = vadd.f32 %v4305_v11, %v6251_v14 }
 0x2e2   : > { %v3622_v3 = vpack.c.bf16 %v2868_v17, %v2867_v56  ;;  %v4044_v9 = vpop.f32.mrb[124].mxu0  ;;  %v3098_v13 = vmul.f32 %v2868_v17, %v2868_v17 }
 0x2e3   : > { %v3126_v21 = vadd.f32 %v3125_v29, %v3095_v50  ;;  %v3617_v52 = vpack.c.bf16 %v2866_v19, %v2865_v45  ;;  %v3057_v30 = vadd.f32 %v3056_v5, %v2866_v19  ;;  %v3096_v61 = vmul.f32 %v2866_v19, %v2866_v19  ;;  %v4224_v54 = vpop.f32.mrb[92].mxu1  ;;  %v4045_v58 = vpop.f32.mrb[125].mxu0 }
 0x2e4   : > { %3679 = vst [vmem:[%s6267_s11 + $0x28] sm:$0xff] %v3622_v3   ;;  %v4309_v63 = vadd.f32 %v6246_v1, %v4224_v54  ;;  %v4046_v60 = vadd.f32 %v4045_v58, %v4044_v9  ;;  %v2739_v36 = vpop.f32.mrb[93].mxu1  ;;  %v4047_v32 = vpop.f32.mrb[126].mxu0 }
 0x2e5   : > { %3678 = vst [vmem:[%s6267_s11 + $0x20] sm:$0xff] %v3617_v52   ;;  %v3058_v12 = vadd.f32 %v3057_v30, %v2867_v56  ;;  %v3127_v15 = vadd.f32 %v3126_v21, %v3096_v61  ;;  %v4313_v24 = vadd.f32 %v6241_v41, %v2739_v36  ;;  %v4225_v47 = vpop.f32.mrb[94].mxu1  ;;  %v4048_v4 = vpop.f32.mrb[127].mxu0 }
 0x2e6   : > { %v4317_v28 = vadd.f32 %v6249_v6, %v4225_v47  ;;  %v4049_v55 = vadd.f32 %v4048_v4, %v4047_v32  ;;  %v2742_v23 = vpop.f32.mrb[95].mxu1  ;;  %v4335_v16 = vadd.f32 %v6124_v0, %v4046_v60  ;;  %v2871_v48 = vadd.f32 %v4309_v63, %v6251_v14 }
 0x2e7   : > { %v3128_v26 = vadd.f32 %v3127_v15, %v3097_v10  ;;  %v2869_v1 = vadd.f32 %v4313_v24, %v6251_v14  ;;  %v3059_v59 = vadd.f32 %v3058_v12, %v2868_v17  ;;  %v4321_v46 = vadd.f32 %v6243_v38, %v2742_v23 }
 0x2e8   : > { %v2872_v41 = vadd.f32 %v4317_v28, %v6251_v14  ;;  %v4341_v53 = vadd.f32 %v6126_v57, %v4049_v55  ;;  %v3101_v50 = vmul.f32 %v2871_v48, %v2871_v48 }
 0x2e9   : > { %v3060_v62 = vadd.f32 %v3059_v59, %v2869_v1  ;;  %v3099_v42 = vmul.f32 %v2869_v1, %v2869_v1  ;;  %v3129_v6 = vadd.f32 %v3128_v26, %v3098_v13  ;;  %v2870_v33 = vadd.f32 %v4321_v46, %v6251_v14 }
 0x2ea   : > { %v3632_v0 = vpack.c.bf16 %v2872_v41, %v2871_v48  ;;  %v4050_v51 = vpop.f32.mrb[128].mxu0  ;;  %v3102_v52 = vmul.f32 %v2872_v41, %v2872_v41 }
 0x2eb   : > { %v3130_v34 = vadd.f32 %v3129_v6, %v3099_v42  ;;  %v3627_v45 = vpack.c.bf16 %v2870_v33, %v2869_v1  ;;  %v3061_v31 = vadd.f32 %v3060_v62, %v2870_v33  ;;  %v3100_v11 = vmul.f32 %v2870_v33, %v2870_v33  ;;  %v4228_v38 = vpop.f32.mrb[0].mxu1  ;;  %v4051_v56 = vpop.f32.mrb[129].mxu0 }
 0x2ec   : > { %3681 = vst [vmem:[%s6267_s11 + $0x38] sm:$0xff] %v3632_v0   ;;  %v4324_v17 = vadd.f32 %v6275_v18, %v4228_v38  ;;  %v4052_v2 = vadd.f32 %v4051_v56, %v4050_v51  ;;  %v2755_v5 = vpop.f32.mrb[1].mxu1  ;;  %v4053_v57 = vpop.f32.mrb[130].mxu0 }
 0x2ed   : > { %3680 = vst [vmem:[%s6267_s11 + $0x30] sm:$0xff] %v3627_v45   ;;  %v3062_v29 = vadd.f32 %v3061_v31, %v2871_v48  ;;  %v3131_v19 = vadd.f32 %v3130_v34, %v3100_v11  ;;  %v4327_v3 = vadd.f32 %v6255_v8, %v2755_v5  ;;  %v4229_v9 = vpop.f32.mrb[2].mxu1  ;;  %v4054_v21 = vpop.f32.mrb[131].mxu0 }
 0x2ee   : > { %v4330_v30 = vadd.f32 %v6282_v39, %v4229_v9  ;;  %v4055_v61 = vadd.f32 %v4054_v21, %v4053_v57  ;;  %v2758_v54 = vpop.f32.mrb[3].mxu1  ;;  %v6319_v58 = vadd.f32 %v6139_v27, %v4052_v2  ;;  %v2875_v32 = vadd.f32 %v4324_v17, %v6251_v14 }
 0x2ef   : > { %v3132_v18 = vadd.f32 %v3131_v19, %v3101_v50  ;;  %v2873_v63 = vadd.f32 %v4327_v3, %v6251_v14  ;;  %v3063_v60 = vadd.f32 %v3062_v29, %v2872_v41  ;;  %v4333_v36 = vadd.f32 %v6262_v25, %v2758_v54 }
 0x2f0   : > { %v2876_v8 = vadd.f32 %v4330_v30, %v6251_v14  ;;  %v6326_v10 = vadd.f32 %v6148_v22, %v4055_v61  ;;  %v3105_v46 = vmul.f32 %v2875_v32, %v2875_v32 }
 0x2f1   : > { %v3064_v39 = vadd.f32 %v3063_v60, %v2873_v63  ;;  %v3103_v12 = vmul.f32 %v2873_v63, %v2873_v63  ;;  %v3133_v15 = vadd.f32 %v3132_v18, %v3102_v52  ;;  %v2874_v27 = vadd.f32 %v4333_v36, %v6251_v14 }
 0x2f2   : > { %v3642_v24 = vpack.c.bf16 %v2876_v8, %v2875_v32  ;;  %v4056_v47 = vpop.f32.mrb[132].mxu0  ;;  %v3106_v33 = vmul.f32 %v2876_v8, %v2876_v8 }
 0x2f3   : > { %v3134_v4 = vadd.f32 %v3133_v15, %v3103_v12  ;;  %v3637_v13 = vpack.c.bf16 %v2874_v27, %v2873_v63  ;;  %v3065_v28 = vadd.f32 %v3064_v39, %v2874_v27  ;;  %v3104_v25 = vmul.f32 %v2874_v27, %v2874_v27  ;;  %v4232_v55 = vpop.f32.mrb[4].mxu1  ;;  %v4057_v23 = vpop.f32.mrb[133].mxu0 }
 0x2f4   : > { %3683 = vst [vmem:[%s6267_s11 + $0x48] sm:$0xff] %v3642_v24   ;;  %v4336_v26 = vadd.f32 %v4335_v16, %v4232_v55  ;;  %v4058_v1 = vadd.f32 %v4057_v23, %v4056_v47  ;;  %v2771_v59 = vpop.f32.mrb[5].mxu1  ;;  %v4059_v22 = vpop.f32.mrb[134].mxu0 }
 0x2f5   : > { %3682 = vst [vmem:[%s6267_s11 + $0x40] sm:$0xff] %v3637_v13   ;;  %v3066_v48 = vadd.f32 %v3065_v28, %v2875_v32  ;;  %v3135_v41 = vadd.f32 %v3134_v4, %v3104_v25  ;;  %v4339_v62 = vadd.f32 %v6291_v49, %v2771_v59  ;;  %v4233_v42 = vpop.f32.mrb[6].mxu1  ;;  %v4060_v6 = vpop.f32.mrb[135].mxu0 }
 0x2f6   : > { %v4342_v0 = vadd.f32 %v4341_v53, %v4233_v42  ;;  %v4061_v51 = vadd.f32 %v4060_v6, %v4059_v22  ;;  %v2774_v34 = vpop.f32.mrb[7].mxu1  ;;  %v4347_v45 = vadd.f32 %v6161_v43, %v4058_v1  ;;  %v2879_v56 = vadd.f32 %v4336_v26, %v6251_v14 }
 0x2f7   : > { %v3136_v31 = vadd.f32 %v3135_v41, %v3105_v46  ;;  %v2877_v16 = vadd.f32 %v4339_v62, %v6251_v14  ;;  %v3067_v11 = vadd.f32 %v3066_v48, %v2876_v8  ;;  %v4345_v38 = vadd.f32 %v6298_v44, %v2774_v34 }
 0x2f8   : > { %v2880_v17 = vadd.f32 %v4342_v0, %v6251_v14  ;;  %v4353_v49 = vadd.f32 %v6170_v20, %v4061_v51  ;;  %v3109_v20 = vmul.f32 %v2879_v56, %v2879_v56 }
 0x2f9   : > { %v3068_v2 = vadd.f32 %v3067_v11, %v2877_v16  ;;  %v3107_v5 = vmul.f32 %v2877_v16, %v2877_v16  ;;  %v3137_v53 = vadd.f32 %v3136_v31, %v3106_v33  ;;  %v2878_v57 = vadd.f32 %v4345_v38, %v6251_v14 }
 0x2fa   : > { %v3652_v43 = vpack.c.bf16 %v2880_v17, %v2879_v56  ;;  %v4062_v50 = vpop.f32.mrb[136].mxu0  ;;  %v3110_v8 = vmul.f32 %v2880_v17, %v2880_v17 }
 0x2fb   : > { %v3138_v29 = vadd.f32 %v3137_v53, %v3107_v5  ;;  %v3647_v19 = vpack.c.bf16 %v2878_v57, %v2877_v16  ;;  %v3069_v3 = vadd.f32 %v3068_v2, %v2878_v57  ;;  %v3108_v9 = vmul.f32 %v2878_v57, %v2878_v57  ;;  %v4236_v44 = vpop.f32.mrb[8].mxu1  ;;  %v4063_v21 = vpop.f32.mrb[137].mxu0 }
 0x2fc   : > { %3685 = vst [vmem:[%s6267_s11 + $0x58] sm:$0xff] %v3652_v43   ;;  %v4348_v52 = vadd.f32 %v4347_v45, %v4236_v44  ;;  %v4064_v30 = vadd.f32 %v4063_v21, %v4062_v50  ;;  %v2787_v61 = vpop.f32.mrb[9].mxu1  ;;  %v4065_v54 = vpop.f32.mrb[138].mxu0 }
 0x2fd   : > { %3684 = vst [vmem:[%s6267_s11 + $0x50] sm:$0xff] %v3647_v19   ;;  %v3070_v18 = vadd.f32 %v3069_v3, %v2879_v56  ;;  %v3139_v63 = vadd.f32 %v3138_v29, %v3108_v9  ;;  %v4351_v60 = vadd.f32 %v6319_v58, %v2787_v61  ;;  %v4237_v36 = vpop.f32.mrb[10].mxu1  ;;  %v4066_v32 = vpop.f32.mrb[139].mxu0 }
 0x2fe   : > { %v4354_v39 = vadd.f32 %v4353_v49, %v4237_v36  ;;  %v4067_v12 = vadd.f32 %v4066_v32, %v4065_v54  ;;  %v2790_v15 = vpop.f32.mrb[11].mxu1  ;;  %v4362_v27 = vadd.f32 %v6183_v37, %v4064_v30  ;;  %v2883_v28 = vadd.f32 %v4348_v52, %v6251_v14 }
 0x2ff   : > { %v3140_v24 = vadd.f32 %v3139_v63, %v3109_v20  ;;  %v2881_v47 = vadd.f32 %v4351_v60, %v6251_v14  ;;  %v3071_v4 = vadd.f32 %v3070_v18, %v2880_v17  ;;  %v4357_v13 = vadd.f32 %v6326_v10, %v2790_v15 }
 0x300   : > { %v2884_v25 = vadd.f32 %v4354_v39, %v6251_v14  ;;  %v4368_v58 = vadd.f32 %v6190_v35, %v4067_v12  ;;  %v3113_v0 = vmul.f32 %v2883_v28, %v2883_v28 }
 0x301   : > { %v3072_v55 = vadd.f32 %v3071_v4, %v2881_v47  ;;  %v3111_v23 = vmul.f32 %v2881_v47, %v2881_v47  ;;  %v3141_v26 = vadd.f32 %v3140_v24, %v3110_v8  ;;  %v2882_v1 = vadd.f32 %v4357_v13, %v6251_v14 }
 0x302   : > { %v3662_v37 = vpack.c.bf16 %v2884_v25, %v2883_v28  ;;  %v4068_v59 = vpop.f32.mrb[140].mxu0  ;;  %v3114_v16 = vmul.f32 %v2884_v25, %v2884_v25 }
 0x303   : > { %v3142_v22 = vadd.f32 %v3141_v26, %v3111_v23  ;;  %v3657_v46 = vpack.c.bf16 %v2882_v1, %v2881_v47  ;;  %v3073_v48 = vadd.f32 %v3072_v55, %v2882_v1  ;;  %v3112_v41 = vmul.f32 %v2882_v1, %v2882_v1  ;;  %v4240_v10 = vpop.f32.mrb[12].mxu1  ;;  %v4069_v62 = vpop.f32.mrb[141].mxu0 }
 0x304   : > { %3687 = vst [vmem:[%s6267_s11 + $0x68] sm:$0xff] %v3662_v37   ;;  %v4070_v42 = vadd.f32 %v4069_v62, %v4068_v59  ;;  %v2803_v6 = vpop.f32.mrb[13].mxu1  ;;  %v4071_v33 = vpop.f32.mrb[142].mxu0 }
 0x305   : > { %3686 = vst [vmem:[%s6267_s11 + $0x60] sm:$0xff] %v3657_v46   ;;  %v3074_v35 = vadd.f32 %v3073_v48, %v2883_v28  ;;  %v3143_v51 = vadd.f32 %v3142_v22, %v3112_v41  ;;  %v4363_v34 = vadd.f32 %v4362_v27, %v2803_v6  ;;  %v4241_v45 = vpop.f32.mrb[14].mxu1  ;;  %v4072_v31 = vpop.f32.mrb[143].mxu0 }
 0x306   : > { %v4359_v11 = vadd.f32 %v6201_v7, %v4070_v42  ;;  %v4073_v38 = vadd.f32 %v4072_v31, %v4071_v33  ;;  %v2806_v56 = vpop.f32.mrb[15].mxu1 }
 0x307   : > { %v3144_v17 = vadd.f32 %v3143_v51, %v3113_v0  ;;  %v2885_v49 = vadd.f32 %v4363_v34, %v6251_v14  ;;  %v3075_v2 = vadd.f32 %v3074_v35, %v2884_v25  ;;  %v4369_v5 = vadd.f32 %v4368_v58, %v2806_v56 }
 0x308   : > { %v4360_v53 = vadd.f32 %v4359_v11, %v4240_v10  ;;  %v4365_v57 = vadd.f32 %v6208_v40, %v4073_v38 }
 0x309   : > { %v3076_v43 = vadd.f32 %v3075_v2, %v2885_v49  ;;  %v3115_v50 = vmul.f32 %v2885_v49, %v2885_v49  ;;  %v3145_v29 = vadd.f32 %v3144_v17, %v3114_v16  ;;  %v2886_v19 = vadd.f32 %v4369_v5, %v6251_v14 }
 0x30a   : > { %v2887_v3 = vadd.f32 %v4360_v53, %v6251_v14  ;;  %v4366_v7 = vadd.f32 %v4365_v57, %v4241_v45 }
 0x30b   : > { %v3146_v9 = vadd.f32 %v3145_v29, %v3115_v50  ;;  %v3667_v44 = vpack.c.bf16 %v2886_v19, %v2885_v49  ;;  %v3077_v21 = vadd.f32 %v3076_v43, %v2886_v19  ;;  %v3116_v52 = vmul.f32 %v2886_v19, %v2886_v19 }
 0x30c   : > { %v3117_v30 = vmul.f32 %v2887_v3, %v2887_v3  ;;  %v2888_v61 = vadd.f32 %v4366_v7, %v6251_v14 }
 0x30d   : > { %3688 = vst [vmem:[%s6267_s11 + $0x70] sm:$0xff] %v3667_v44   ;;  %v3078_v40 = vadd.f32 %v3077_v21, %v2887_v3  ;;  %v3147_v54 = vadd.f32 %v3146_v9, %v3116_v52 }
 0x30e   : > { %v3672_v20 = vpack.c.bf16 %v2888_v61, %v2887_v3  ;;  %v3118_v18 = vmul.f32 %v2888_v61, %v2888_v61 }
 0x30f   : > { %v3079_v63 = vadd.f32 %v3078_v40, %v2888_v61  ;;  %v3148_v60 = vadd.f32 %v3147_v54, %v3117_v30 }
 0x310   : > { %3689 = vst [vmem:[%s6267_s11 + $0x78] sm:$0xff] %v3672_v20  }
 0x311   : > { %v3080_v14 = vrot.slane %v3079_v63, 4  ;;  %v3149_v36 = vadd.f32 %v3148_v60, %v3118_v18 }
 0x312   : > { %4848 = shalt.err (!%p4845_p2)
}
 0x313   : > { %s4849_s25 = scalar_lea.hbm %s6363_s14, 2048  ;;  %s4853_s17 = scalar_lea.hbm %s6551_s18, 4096 }
 0x314   : > { %p4850_p6 = scmp.ne.s32.totalorder %s6363_s14, %s4849_s25  ;;  %p4854_p10 = scmp.lt.u32.totalorder %s6363_s14, %s6551_s18 }
 0x315   : > { %p4855_p5 = scmp.lt.u32.totalorder %s4853_s17, %s4849_s25  ;;  %p4857_p11 = scmp.lt.u32.totalorder %s4849_s25, %s6363_s14 }
 0x316   : > { %p4851_p9 = pnand %p4850_p6, %p6552_p8 }
 0x317   : > { %p4856_p7 = por %p4855_p5, %p4854_p10 }
 0x318   : > { %p4852_p13 = pneg %p4851_p9 }
 0x319   : > { %p4858_p4 = por %p4857_p11, %p4856_p7 }
 0x31b   : > { %p4859_p12 = pnand %p4858_p4, %p4852_p13 }
 0x31d   : > { %4862 = shalt.err (!%p4859_p12)
}
 0x31e   : > { %s4974_s27 = smov 64   ;;  %s4975_s20 = smov 4   ;;  %v3081_v32 = vadd.f32 %v3080_v14, %v3079_v63  ;;  %v3150_v8 = vrot.slane %v3149_v36, 4 }
 0x31f   : > { %4440 = dma.vmem_to_hbm [thread:$0]  (%p6552_p8), %s6365_s24, 2048, %s6363_s14, %s3158_s3, %s4974_s27, %s4974_s27, %s4975_s20  }
 0x320   : > { %s3426_s19 = sshll.u32 %s5333_s21, 1  ;;  %v3082_v39 = vrot.slane %v3081_v32, 2  ;;  %v3151_v12 = vadd.f32 %v3150_v8, %v3149_v36  ;;  %s3554_s15 = sshll.u32 %s4953_s30, 5 }
 0x321   : > { %s516_s23 = scalar_lea.vmem [#allocation16], %s3426_s19  ;;  %s6553_s5 = sld [smem:[#allocation37_spill]] }
 0x322   : > { %v3083_v15 = vadd.f32 %v3082_v39, %v3081_v32  ;;  %v3152_v27 = vrot.slane %v3151_v12, 2  ;;  %s3196_s11 = sshll.u32 %s516_s23, 4  ;;  %s3163_s14 = scalar_lea.sflag [#allocation17], %s5333_s21  ;;  %s6399_s11 = int_to_ptr.vmem [resolvable:$true] %s3196_s11 }
 0x323   : > { %s4863_s3 = scalar_lea.vmem %s6399_s11, 32  ;;  %s4976_s30 = smov [#allocation16]  }
 0x324   : > { %v3084_v24 = vrot.slane %v3083_v15, 1  ;;  %v3153_v47 = vadd.f32 %v3152_v27, %v3151_v12  ;;  %p4864_p1 = scmp.ne.s32.totalorder %s6399_s11, %s4863_s3  ;;  %s4867_s22 = sshll.u32 %s4976_s30, 4  ;;  %s4868_s22 = int_to_ptr.vmem [resolvable:$false] %s4867_s22 }
 0x325   : > { %s4869_s12 = scalar_lea.vmem %s4868_s22, 64  ;;  %p4870_p2 = scmp.lt.s32.totalorder %s6399_s11, %s4868_s22 }
 0x326   : > { %v3085_v4 = vadd.f32 %v3084_v24, %v3083_v15  ;;  %v3154_v13 = vrot.slane %v3153_v47, 1  ;;  %p4865_p3 = pnand %p4864_p1, %p6552_p8  ;;  %p4871_p6 = scmp.lt.s32.totalorder %s4869_s12, %s4863_s3 }
 0x327   : > { %s6397_s1 = scalar_lea.hbm %s6553_s5, %s3554_s15 }
 0x328   : > { %3086 = vst [vmem:[%s516_s23] sm:$0x1] %v3085_v4  ;;  %v3155_v28 = vadd.f32 %v3154_v13, %v3153_v47  ;;  %p4866_p0 = pneg %p4865_p3  ;;  %p4872_p9 = por %p4871_p6, %p4870_p2 }
 0x32a   : > { %3156 = vst [vmem:[%s516_s23 + $0x1] sm:$0x1] %v3155_v28  ;;  %p4873_p13 = pnand %p4872_p9, %p4866_p0 }
 0x32c   : > { %4876 = shalt.err (!%p4873_p13)
}
 0x32d   : > { %s4877_s21 = scalar_lea.hbm %s6397_s1, 32  ;;  %s4881_s25 = scalar_lea.hbm %s6553_s5, 64 }
 0x32e   : > { %p4878_p10 = scmp.ne.s32.totalorder %s6397_s1, %s4877_s21  ;;  %p4882_p11 = scmp.lt.u32.totalorder %s6397_s1, %s6553_s5 }
 0x32f   : > { %p4883_p4 = scmp.lt.u32.totalorder %s4881_s25, %s4877_s21  ;;  %p4885_p1 = scmp.lt.u32.totalorder %s4877_s21, %s6397_s1 }
 0x330   : > { %p4879_p5 = pnand %p4878_p10, %p6552_p8 }
 0x331   : > { %p4884_p12 = por %p4883_p4, %p4882_p11 }
 0x332   : > { %p4880_p7 = pneg %p4879_p5 }
 0x333   : > { %p4886_p3 = por %p4885_p1, %p4884_p12 }
 0x335   : > { %p4887_p0 = pnand %p4886_p3, %p4880_p7 }
 0x337   : > { %4890 = shalt.err (!%p4887_p0)
}
 0x338   : > { %4441 = dma.vmem_to_hbm [thread:$0]  (%p6552_p8), %s6399_s11, 32, %s6397_s1, %s3163_s14  }
 0x339 PF: > { %s6554_s17 = sld [smem:[#allocation24_spill]]  ;;  %s6555_s8 = sld [smem:[#allocation28_spill]] }
 0x33a   : > { %s6556_s29 = sld [smem:[#allocation27_spill]] }
 0x33f   : > { %s3208_s27 = sand.u32 1, %s6554_s17   ;;  %p6557_p2 = scmp.ne.s32.totalorder %s6555_s8, 0 }
 0x340   : > { %p6558_p6 = scmp.ge.s32.totalorder %s6556_s29, 2  ;;  %s3209_s20 = scalar_lea.sflag [#allocation5], %s3208_s27 }
 0x342   : > { %p4468_p9 = pnand %p6558_p6, %p6557_p2 }
 0x344   : > { %4932 = dma.done.wait (!%p4468_p9), %s3209_s20, 2048  }
 0x345   : > { %4934 = vsyncadd (!%p4468_p9), %s3209_s20, 4294965248  ;;  %s3218_s19 = scalar_lea.sflag [#allocation17], %s3208_s27 }
 0x346   : > { %4936 = dma.done.wait (!%p4468_p9), %s3218_s19, 32  }
 0x347   : > { %4938 = vsyncadd (!%p4468_p9), %s3218_s19, 4294967264  ;;  %s33_s10 = sadd.s32 1, %s6556_s29   ;;  %s6559_s9 = sld [smem:[#allocation25_spill]] }
 0x348   : > { %p30_p13 = scmp.ge.s32.totalorder %s33_s10, 4   ;;  %s6560_s29 = sld [smem:[#allocation31_spill]] }
 0x349   : > { %s6561_s30 = sld [smem:[#allocation26_spill]]  ;;  %s6562_s15 = sld [smem:[#allocation29_spill]] }
 0x34a   : > { %s6563_s27 = smov %s4945_s28  ;;  %32 = sbr.rel (!%p30_p13) target bundleno = 18 (0x12), region = 155 }
 0x34d   : > { %s6564_s28 = smov %s6559_s9 }
 0x34f   : > { %s6565_s9 = smov %s6562_s15 }
 0x351   :  { %3223 = vsyncpa [#allocation4], 1 }
 0x352   :  { %3225 = vsyncpa [#allocation4 + $0x1], 1 }
 0x353   :  { %3226 = vsyncpa [#allocation7], 1 }
 0x354   :  { %3228 = vsyncpa [#allocation7 + $0x1], 1 }
 0x355   :  { %3229 = vsyncpa [#allocation10], 1 }
 0x356   :  { %3230 = vsyncpa [#allocation13], 1 }
 0x357   :  { %3231 = vsyncpa [#allocation5], 1 }
 0x358   :  { %3233 = vsyncpa [#allocation5 + $0x1], 1 }
 0x359   :  { %3234 = vsyncpa [#allocation17], 1 }
 0x35a   :  { %3236 = vsyncpa [#allocation17 + $0x1], 1 }

</bundles_post_ra>
